<compile_context>
chip_gen: v7x
topology: tpu7x:2x2x1
jax: 0.10.0
libtpu: 0.0.40
codegen_flags: <defaults>
</compile_context>

<pallas_src>
from functools import partial

import jax
import jax.numpy as jnp
from jax.experimental import pallas as pl
from jax.experimental.pallas import tpu as pltpu


# ----------------------------------------------------------------------------
# Fused Pallas kernel
# ----------------------------------------------------------------------------
def _block_body(x, w_ref, bn_ref, blk, cfg, l, compute_dtype):
    """One conv1d -> maxpool -> bn -> hardtanh block on a fused (B*l, C_in) slab.

    x:      (B*l, C_in)  batch and length fused along the sublane axis
    w_ref:  stacked weights (n_blk, KC_max, C_max); block blk uses
            rows [k*C_in, (k+1)*C_in) of w_ref[blk] as tap k's (C_in, C_out)
    bn_ref: stacked (scale, shift) (n_blk, 2, C_max); conv bias already folded
    """
    c_in, c_out, k, pad, pool = cfg
    rows = x.shape[0]                      # B * l

    # Per-batch-element position of every fused row (for boundary masking of
    # rolled taps: zero-padding without any pad-concat relayout).
    if k > 1:
        pos = jax.lax.broadcasted_iota(jnp.int32, (rows, c_in), 0)
        if (l & (l - 1)) == 0:             # l is a power of two in these models
            pos = pos & (l - 1)
        else:
            pos = jax.lax.rem(pos, l)

    acc = None
    for kk in range(k):
        s = pad - kk                       # sublane shift for this tap
        if s == 0:
            tap = x
        else:
            tap = pltpu.roll(x, s % rows, axis=0)        # XLU rotate, no copy
            if s > 0:
                tap = jnp.where(pos >= s, tap, 0.0)      # left-boundary zeros
            else:
                tap = jnp.where(pos < l + s, tap, 0.0)   # right-boundary zeros
        w_k = w_ref[blk, kk * c_in:(kk + 1) * c_in, :c_out]   # (C_in, C_out)
        if c_in == 1:
            # block1: broadcast FMA on the VPU, no MXU pass / im2col needed.
            contrib = tap * w_k
        else:
            contrib = jnp.dot(tap.astype(compute_dtype),
                              w_k.astype(compute_dtype),
                              preferred_element_type=jnp.float32)
        acc = contrib if acc is None else acc + contrib

    # Non-overlapping MaxPool1d (pool_k == pool_s); l % pool == 0 is asserted
    # in the wrapper so the fused batch blocks stay contiguous.
    acc = jnp.max(acc.reshape(rows // pool, pool, c_out), axis=1)

    # Folded BatchNorm (+ conv bias) then Hardtanh.
    scale = bn_ref[blk, 0:1, :c_out]
    shift = bn_ref[blk, 1:2, :c_out]
    return jnp.clip(acc * scale + shift, -1.0, 1.0)


def _fused_kernel(x_ref, w_ref, bn_ref, o_ref, *, cfgs, l0, b_tile, compute_dtype):
    """One batch tile per grid step.  x_ref: (b_tile*l0, C0) fused slab."""
    x = x_ref[...]
    l = l0
    for blk, cfg in enumerate(cfgs):
        x = _block_body(x, w_ref, bn_ref, blk, cfg, l, compute_dtype)
        l //= cfg[4]                      # pooled length per batch element

    # dropout0: inference identity.  mean(dim=2) in NCW == mean over length.
    c_last = x.shape[-1]
    o_ref[...] = jnp.mean(x.reshape(b_tile, l, c_last), axis=1)   # (b_tile, C)


# ----------------------------------------------------------------------------
# Wrapper: parameter folding/stacking + pallas_call plumbing
# ----------------------------------------------------------------------------
def ecg_full_float_forward(x_ncw, block_params, block_cfgs, *,
                           batch_tile=None, compute_dtype=jnp.float32):
    """Fused Pallas forward for ECG_Full_Float.  x_ncw: (N, C, L) like PyTorch."""
    active = [(p, c) for p, c in zip(block_params, block_cfgs) if c is not None]

    x = jnp.transpose(x_ncw, (0, 2, 1)).astype(jnp.float32)      # NCW -> NLC
    n, l0, c0 = x.shape

    # Validate configs and derive the static per-block kernel config.
    kern_cfgs = []
    l, c = l0, c0
    for _, cfg in active:
        in_c, out_c, k, stride, pad, pool_k, pool_s = cfg
        assert in_c == c, "channel mismatch between blocks"
        assert stride == 1, "fused kernel: stride-1 convolutions only"
        assert 2 * pad == k - 1, "fused kernel: 'same' convolutions only"
        assert pool_k == pool_s, "fused kernel: non-overlapping pooling only"
        assert l % pool_k == 0, "fused kernel: pooling must tile the length"
        kern_cfgs.append((in_c, out_c, k, pad, pool_k))
        l //= pool_k
        c = out_c
    c_last = c

    # Fold conv bias + BN into (scale, shift) and stack ALL block params into
    # two zero-padded operands (cuts 16 tiny DMAs down to 2).
    n_blk = len(kern_cfgs)
    kc_max = max(k * ci for ci, _, k, _, _ in kern_cfgs)
    c_max = max(co for _, co, _, _, _ in kern_cfgs)
    w_all = jnp.zeros((n_blk, kc_max, c_max), jnp.float32)
    bn_all = jnp.zeros((n_blk, 2, c_max), jnp.float32)
    eps = 1e-5
    for i, ((params, _), (ci, co, k, _, _)) in enumerate(zip(active, kern_cfgs)):
        # torch Conv1d weight (C_out, C_in, K) -> (K, C_in, C_out) -> (K*C_in, C_out)
        w = jnp.transpose(params["w"], (2, 1, 0)).reshape(k * ci, co)
        scale = params["gamma"] / jnp.sqrt(params["var"] + eps)
        shift = params["beta"] + (params["b"] - params["mean"]) * scale
        w_all = w_all.at[i, :k * ci, :co].set(w.astype(jnp.float32))
        bn_all = bn_all.at[i, 0, :co].set(scale.astype(jnp.float32))
        bn_all = bn_all.at[i, 1, :co].set(shift.astype(jnp.float32))

    # Batch tile choice:
    #   * tiny batches -> single grid step (v5e/v6e have one TC; grid is a loop)
    #   * large batches -> >=2 multiple-of-8 tiles so both v7x TCs get work.
    # VMEM is nowhere near binding at this model size on any generation.
    if batch_tile is None:
        if n <= 8:
            batch_tile = n
        else:
            batch_tile = min(n, ((pl.cdiv(n, 2) + 7) // 8) * 8)
    if not (batch_tile == n or batch_tile % 8 == 0):
        raise ValueError("batch_tile must equal N or be a multiple of 8")
    n_steps = pl.cdiv(n, batch_tile)

    x2 = x.reshape(n * l0, c0)            # fused (batch*length, C_in) slab

    kern = partial(_fused_kernel, cfgs=tuple(kern_cfgs), l0=l0,
                   b_tile=batch_tile, compute_dtype=compute_dtype)

    out = pl.pallas_call(
        kern,
        grid=(n_steps,),
        out_shape=jax.ShapeDtypeStruct((n, c_last), jnp.float32),
        in_specs=[
            pl.BlockSpec((batch_tile * l0, c0), lambda b: (b, 0)),
            pl.BlockSpec((n_blk, kc_max, c_max), lambda b: (0, 0, 0)),
            pl.BlockSpec((n_blk, 2, c_max), lambda b: (0, 0, 0)),
        ],
        out_specs=pl.BlockSpec((batch_tile, c_last), lambda b: (b, 0)),
        compiler_params=pltpu.CompilerParams(
            dimension_semantics=("parallel",)),
    )(x2, w_all, bn_all)
    return out                                                     # (N, C_last)


# ----------------------------------------------------------------------------
# Deterministic parameter init (synthetic; no checkpoint loading)
# ----------------------------------------------------------------------------
def init_block_params(key, cfg):
    in_c, out_c, conv_k = cfg[0], cfg[1], cfg[2]
    k_w, k_b, k_g, k_be, k_m, k_v = jax.random.split(key, 6)
    return dict(
        w=jax.random.normal(k_w, (out_c, in_c, conv_k), jnp.float32) * 0.2,
        b=jax.random.normal(k_b, (out_c,), jnp.float32) * 0.1,
        gamma=1.0 + 0.1 * jax.random.normal(k_g, (out_c,), jnp.float32),
        beta=0.1 * jax.random.normal(k_be, (out_c,), jnp.float32),
        mean=0.1 * jax.random.normal(k_m, (out_c,), jnp.float32),
        var=jnp.abs(1.0 + 0.1 * jax.random.normal(k_v, (out_c,), jnp.float32)),
    )


# ----------------------------------------------------------------------------
# Pure-JAX reference (un-folded parameters, PyTorch semantics) for sanity check
# ----------------------------------------------------------------------------
def reference_forward(x_ncw, block_params, block_cfgs):
    x = jnp.transpose(x_ncw, (0, 2, 1)).astype(jnp.float32)
    for params, cfg in zip(block_params, block_cfgs):
        if cfg is None:
            continue
        in_c, out_c, k, s, pad, pk, ps = cfg
        n, l, _ = x.shape
        xp = jnp.pad(x, ((0, 0), (pad, pad), (0, 0)))
        l_out = (l + 2 * pad - k) // s + 1
        w = jnp.transpose(params["w"], (2, 1, 0))
        y = jnp.zeros((n, l_out, out_c), jnp.float32)
        for kk in range(k):
            y = y + jnp.einsum('nlc,cd->nld', xp[:, kk:kk + l_out, :], w[kk])
        y = y + params["b"].reshape(1, 1, out_c)
        l_pool = (l_out - pk) // ps + 1
        y = jnp.max(y[:, :l_pool * ps, :].reshape(n, l_pool, pk, out_c), axis=2)
        eps = 1e-5
        scale = params["gamma"] / jnp.sqrt(params["var"] + eps)
        shift = params["beta"] - params["mean"] * scale
        y = y * scale.reshape(1, 1, out_c) + shift.reshape(1, 1, out_c)
        x = jnp.clip(y, -1.0, 1.0)
    return jnp.mean(x, axis=1)


# ----------------------------------------------------------------------------
if __name__ == "__main__":
    # cfg tuple: (in_c, out_c, conv_k, conv_stride, conv_pad, pool_k, pool_s)
    block_cfgs = [
        (1,  8,  3, 1, 1, 2, 2),   # block1: L 128 -> 64
        (8,  16, 3, 1, 1, 2, 2),   # block2: 64 -> 32
        (16, 32, 3, 1, 1, 2, 2),   # block3: 32 -> 16
        (32, 32, 3, 1, 1, 2, 2),   # block4: 16 -> 8
        (32, 64, 3, 1, 1, 2, 2),   # block5: 8 -> 4
        None,                      # block6 disabled
        None,                      # block7 disabled
    ]

    root = jax.random.PRNGKey(0)
    keys = jax.random.split(root, len(block_cfgs) + 1)
    block_params = [
        init_block_params(keys[i], cfg) if cfg is not None else None
        for i, cfg in enumerate(block_cfgs)
    ]

    # Input in PyTorch NCW layout: (batch=2, channels=1, length=128)
    x = jax.random.normal(keys[-1], (2, 1, 128), jnp.float32)

    # f32 MXU operands: exact-ish match to the reference.
    out = jax.block_until_ready(ecg_full_float_forward(x, block_params, block_cfgs))
    assert out.shape == (2, 64), out.shape
    ref = reference_forward(x, block_params, block_cfgs)
    assert jnp.allclose(out, ref, rtol=1e-4, atol=1e-4), "f32 kernel mismatch vs reference"

    # bf16 MXU operands (v5e / v7x review item): f32 accumulation, looser tolerance.
    out_bf16 = jax.block_until_ready(
        ecg_full_float_forward(x, block_params, block_cfgs,
                               compute_dtype=jnp.bfloat16))
    assert jnp.allclose(out_bf16, ref, rtol=5e-2, atol=5e-2), "bf16 kernel mismatch vs reference"

    print("KERNEL_OK")
</pallas_src>

<mosaic_0001>
module attributes {stable_mosaic.version = 11 : i64} {
  func.func @_fused_kernel(%arg0: i32, %arg1: memref<256x1xf32, #tpu.memory_space<vmem>>, %arg2: memref<5x96x64xf32, #tpu.memory_space<vmem>>, %arg3: memref<5x2x64xf32, #tpu.memory_space<vmem>>, %arg4: memref<2x64xf32, #tpu.memory_space<vmem>>) attributes {dimension_semantics = [#tpu.dimension_semantics<parallel>], iteration_bounds = array<i64: 1>, scalar_prefetch = 0 : i64, scratch_operands = 0 : i64, tpu.core_type = #tpu.core_type<tc>, window_params = [{transform_indices = @transform_0, window_bounds = array<i64: 256, 1>}, {pipeline_mode = #tpu.pipeline_mode<synchronous>, transform_indices = @transform_1, window_bounds = array<i64: 5, 96, 64>}, {pipeline_mode = #tpu.pipeline_mode<synchronous>, transform_indices = @transform_2, window_bounds = array<i64: 5, 2, 64>}, {transform_indices = @transform_3, window_bounds = array<i64: 2, 64>}]} {
    %c0 = arith.constant 0 : index
    %c0_0 = arith.constant 0 : index
    %0 = vector.load %arg1[%c0, %c0_0] : memref<256x1xf32, #tpu.memory_space<vmem>>, vector<256x1xf32>
    %1 = tpu.iota {dimensions = array<i32: 0>} : vector<256x1xi32>
    %c127_i32 = arith.constant 127 : i32
    %2 = vector.broadcast %c127_i32 : i32 to vector<256x1xi32>
    %3 = arith.andi %1, %2 : vector<256x1xi32>
    %c1_i32 = arith.constant 1 : i32
    %4 = tpu.dynamic_rotate %0 by %c1_i32 dim 0 : vector<256x1xf32>, i32 -> vector<256x1xf32>
    %c1_i32_1 = arith.constant 1 : i32
    %5 = vector.broadcast %c1_i32_1 : i32 to vector<256x1xi32>
    %6 = arith.cmpi sge, %3, %5 : vector<256x1xi32>
    %cst = arith.constant 0.000000e+00 : f32
    %7 = vector.broadcast %cst : f32 to vector<256x1xf32>
    %8 = arith.select %6, %4, %7 : vector<256x1xi1>, vector<256x1xf32>
    %c0_2 = arith.constant 0 : index
    %c0_3 = arith.constant 0 : index
    %c0_4 = arith.constant 0 : index
    %9 = vector.load %arg2[%c0_2, %c0_3, %c0_4] : memref<5x96x64xf32, #tpu.memory_space<vmem>>, vector<1x1x8xf32>
    %10 = vector.shape_cast %9 : vector<1x1x8xf32> to vector<1x8xf32>
    %11 = vector.broadcast %8 : vector<256x1xf32> to vector<256x8xf32>
    %12 = vector.broadcast %10 : vector<1x8xf32> to vector<256x8xf32>
    %13 = arith.mulf %11, %12 : vector<256x8xf32>
    %c0_5 = arith.constant 0 : index
    %c1 = arith.constant 1 : index
    %c0_6 = arith.constant 0 : index
    %14 = vector.load %arg2[%c0_5, %c1, %c0_6] : memref<5x96x64xf32, #tpu.memory_space<vmem>>, vector<1x1x8xf32>
    %15 = vector.shape_cast %14 : vector<1x1x8xf32> to vector<1x8xf32>
    %16 = vector.broadcast %0 : vector<256x1xf32> to vector<256x8xf32>
    %17 = vector.broadcast %15 : vector<1x8xf32> to vector<256x8xf32>
    %18 = arith.mulf %16, %17 : vector<256x8xf32>
    %19 = arith.addf %13, %18 : vector<256x8xf32>
    %c255_i32 = arith.constant 255 : i32
    %20 = tpu.dynamic_rotate %0 by %c255_i32 dim 0 : vector<256x1xf32>, i32 -> vector<256x1xf32>
    %c127_i32_7 = arith.constant 127 : i32
    %21 = vector.broadcast %c127_i32_7 : i32 to vector<256x1xi32>
    %22 = arith.cmpi slt, %3, %21 : vector<256x1xi32>
    %cst_8 = arith.constant 0.000000e+00 : f32
    %23 = vector.broadcast %cst_8 : f32 to vector<256x1xf32>
    %24 = arith.select %22, %20, %23 : vector<256x1xi1>, vector<256x1xf32>
    %c0_9 = arith.constant 0 : index
    %c2 = arith.constant 2 : index
    %c0_10 = arith.constant 0 : index
    %25 = vector.load %arg2[%c0_9, %c2, %c0_10] : memref<5x96x64xf32, #tpu.memory_space<vmem>>, vector<1x1x8xf32>
    %26 = vector.shape_cast %25 : vector<1x1x8xf32> to vector<1x8xf32>
    %27 = vector.broadcast %24 : vector<256x1xf32> to vector<256x8xf32>
    %28 = vector.broadcast %26 : vector<1x8xf32> to vector<256x8xf32>
    %29 = arith.mulf %27, %28 : vector<256x8xf32>
    %30 = arith.addf %19, %29 : vector<256x8xf32>
    %31 = vector.shape_cast %30 : vector<256x8xf32> to vector<128x2x8xf32>
    %cst_11 = arith.constant dense<0xFF800000> : vector<128x8xf32>
    %32 = vector.multi_reduction <maximumf>, %31, %cst_11 [1] : vector<128x2x8xf32> to vector<128x8xf32>
    %c0_12 = arith.constant 0 : index
    %c0_13 = arith.constant 0 : index
    %c0_14 = arith.constant 0 : index
    %33 = vector.load %arg3[%c0_12, %c0_13, %c0_14] : memref<5x2x64xf32, #tpu.memory_space<vmem>>, vector<1x1x8xf32>
    %34 = vector.shape_cast %33 : vector<1x1x8xf32> to vector<1x8xf32>
    %c0_15 = arith.constant 0 : index
    %c1_16 = arith.constant 1 : index
    %c0_17 = arith.constant 0 : index
    %35 = vector.load %arg3[%c0_15, %c1_16, %c0_17] : memref<5x2x64xf32, #tpu.memory_space<vmem>>, vector<1x1x8xf32>
    %36 = vector.shape_cast %35 : vector<1x1x8xf32> to vector<1x8xf32>
    %37 = vector.broadcast %34 : vector<1x8xf32> to vector<128x8xf32>
    %38 = arith.mulf %32, %37 : vector<128x8xf32>
    %39 = vector.broadcast %36 : vector<1x8xf32> to vector<128x8xf32>
    %40 = arith.addf %38, %39 : vector<128x8xf32>
    %cst_18 = arith.constant -1.000000e+00 : f32
    %cst_19 = arith.constant 1.000000e+00 : f32
    %41 = vector.broadcast %cst_18 : f32 to vector<128x8xf32>
    %42 = arith.maximumf %41, %40 : vector<128x8xf32>
    %43 = vector.broadcast %cst_19 : f32 to vector<128x8xf32>
    %44 = arith.minimumf %43, %42 : vector<128x8xf32>
    %45 = tpu.iota {dimensions = array<i32: 0>} : vector<128x8xi32>
    %c63_i32 = arith.constant 63 : i32
    %46 = vector.broadcast %c63_i32 : i32 to vector<128x8xi32>
    %47 = arith.andi %45, %46 : vector<128x8xi32>
    %c1_i32_20 = arith.constant 1 : i32
    %48 = tpu.dynamic_rotate %44 by %c1_i32_20 dim 0 : vector<128x8xf32>, i32 -> vector<128x8xf32>
    %c1_i32_21 = arith.constant 1 : i32
    %49 = vector.broadcast %c1_i32_21 : i32 to vector<128x8xi32>
    %50 = arith.cmpi sge, %47, %49 : vector<128x8xi32>
    %cst_22 = arith.constant 0.000000e+00 : f32
    %51 = vector.broadcast %cst_22 : f32 to vector<128x8xf32>
    %52 = arith.select %50, %48, %51 : vector<128x8xi1>, vector<128x8xf32>
    %c1_23 = arith.constant 1 : index
    %c0_24 = arith.constant 0 : index
    %c0_25 = arith.constant 0 : index
    %53 = vector.load %arg2[%c1_23, %c0_24, %c0_25] : memref<5x96x64xf32, #tpu.memory_space<vmem>>, vector<1x8x16xf32>
    %54 = vector.shape_cast %53 : vector<1x8x16xf32> to vector<8x16xf32>
    %cst_26 = arith.constant dense<0.000000e+00> : vector<128x16xf32>
    %55 = tpu.matmul %52, %54, %cst_26 {dimension_numbers = #tpu.dot_dimension_numbers<[1], [0], [0], [1], [0, 0, 1, 1], [], []>} : vector<128x8xf32>, vector<8x16xf32>, vector<128x16xf32> -> vector<128x16xf32>
    %c1_27 = arith.constant 1 : index
    %c8 = arith.constant 8 : index
    %c0_28 = arith.constant 0 : index
    %56 = vector.load %arg2[%c1_27, %c8, %c0_28] : memref<5x96x64xf32, #tpu.memory_space<vmem>>, vector<1x8x16xf32>
    %57 = vector.shape_cast %56 : vector<1x8x16xf32> to vector<8x16xf32>
    %cst_29 = arith.constant dense<0.000000e+00> : vector<128x16xf32>
    %58 = tpu.matmul %44, %57, %cst_29 {dimension_numbers = #tpu.dot_dimension_numbers<[1], [0], [0], [1], [0, 0, 1, 1], [], []>} : vector<128x8xf32>, vector<8x16xf32>, vector<128x16xf32> -> vector<128x16xf32>
    %59 = arith.addf %55, %58 : vector<128x16xf32>
    %c127_i32_30 = arith.constant 127 : i32
    %60 = tpu.dynamic_rotate %44 by %c127_i32_30 dim 0 : vector<128x8xf32>, i32 -> vector<128x8xf32>
    %c63_i32_31 = arith.constant 63 : i32
    %61 = vector.broadcast %c63_i32_31 : i32 to vector<128x8xi32>
    %62 = arith.cmpi slt, %47, %61 : vector<128x8xi32>
    %cst_32 = arith.constant 0.000000e+00 : f32
    %63 = vector.broadcast %cst_32 : f32 to vector<128x8xf32>
    %64 = arith.select %62, %60, %63 : vector<128x8xi1>, vector<128x8xf32>
    %c1_33 = arith.constant 1 : index
    %c16 = arith.constant 16 : index
    %c0_34 = arith.constant 0 : index
    %65 = vector.load %arg2[%c1_33, %c16, %c0_34] : memref<5x96x64xf32, #tpu.memory_space<vmem>>, vector<1x8x16xf32>
    %66 = vector.shape_cast %65 : vector<1x8x16xf32> to vector<8x16xf32>
    %cst_35 = arith.constant dense<0.000000e+00> : vector<128x16xf32>
    %67 = tpu.matmul %64, %66, %cst_35 {dimension_numbers = #tpu.dot_dimension_numbers<[1], [0], [0], [1], [0, 0, 1, 1], [], []>} : vector<128x8xf32>, vector<8x16xf32>, vector<128x16xf32> -> vector<128x16xf32>
    %68 = arith.addf %59, %67 : vector<128x16xf32>
    %69 = vector.shape_cast %68 : vector<128x16xf32> to vector<64x2x16xf32>
    %cst_36 = arith.constant dense<0xFF800000> : vector<64x16xf32>
    %70 = vector.multi_reduction <maximumf>, %69, %cst_36 [1] : vector<64x2x16xf32> to vector<64x16xf32>
    %c1_37 = arith.constant 1 : index
    %c0_38 = arith.constant 0 : index
    %c0_39 = arith.constant 0 : index
    %71 = vector.load %arg3[%c1_37, %c0_38, %c0_39] : memref<5x2x64xf32, #tpu.memory_space<vmem>>, vector<1x1x16xf32>
    %72 = vector.shape_cast %71 : vector<1x1x16xf32> to vector<1x16xf32>
    %c1_40 = arith.constant 1 : index
    %c1_41 = arith.constant 1 : index
    %c0_42 = arith.constant 0 : index
    %73 = vector.load %arg3[%c1_40, %c1_41, %c0_42] : memref<5x2x64xf32, #tpu.memory_space<vmem>>, vector<1x1x16xf32>
    %74 = vector.shape_cast %73 : vector<1x1x16xf32> to vector<1x16xf32>
    %75 = vector.broadcast %72 : vector<1x16xf32> to vector<64x16xf32>
    %76 = arith.mulf %70, %75 : vector<64x16xf32>
    %77 = vector.broadcast %74 : vector<1x16xf32> to vector<64x16xf32>
    %78 = arith.addf %76, %77 : vector<64x16xf32>
    %cst_43 = arith.constant -1.000000e+00 : f32
    %cst_44 = arith.constant 1.000000e+00 : f32
    %79 = vector.broadcast %cst_43 : f32 to vector<64x16xf32>
    %80 = arith.maximumf %79, %78 : vector<64x16xf32>
    %81 = vector.broadcast %cst_44 : f32 to vector<64x16xf32>
    %82 = arith.minimumf %81, %80 : vector<64x16xf32>
    %83 = tpu.iota {dimensions = array<i32: 0>} : vector<64x16xi32>
    %c31_i32 = arith.constant 31 : i32
    %84 = vector.broadcast %c31_i32 : i32 to vector<64x16xi32>
    %85 = arith.andi %83, %84 : vector<64x16xi32>
    %c1_i32_45 = arith.constant 1 : i32
    %86 = tpu.dynamic_rotate %82 by %c1_i32_45 dim 0 : vector<64x16xf32>, i32 -> vector<64x16xf32>
    %c1_i32_46 = arith.constant 1 : i32
    %87 = vector.broadcast %c1_i32_46 : i32 to vector<64x16xi32>
    %88 = arith.cmpi sge, %85, %87 : vector<64x16xi32>
    %cst_47 = arith.constant 0.000000e+00 : f32
    %89 = vector.broadcast %cst_47 : f32 to vector<64x16xf32>
    %90 = arith.select %88, %86, %89 : vector<64x16xi1>, vector<64x16xf32>
    %c2_48 = arith.constant 2 : index
    %c0_49 = arith.constant 0 : index
    %c0_50 = arith.constant 0 : index
    %91 = vector.load %arg2[%c2_48, %c0_49, %c0_50] : memref<5x96x64xf32, #tpu.memory_space<vmem>>, vector<1x16x32xf32>
    %92 = vector.shape_cast %91 : vector<1x16x32xf32> to vector<16x32xf32>
    %cst_51 = arith.constant dense<0.000000e+00> : vector<64x32xf32>
    %93 = tpu.matmul %90, %92, %cst_51 {dimension_numbers = #tpu.dot_dimension_numbers<[1], [0], [0], [1], [0, 0, 1, 1], [], []>} : vector<64x16xf32>, vector<16x32xf32>, vector<64x32xf32> -> vector<64x32xf32>
    %c2_52 = arith.constant 2 : index
    %c16_53 = arith.constant 16 : index
    %c0_54 = arith.constant 0 : index
    %94 = vector.load %arg2[%c2_52, %c16_53, %c0_54] : memref<5x96x64xf32, #tpu.memory_space<vmem>>, vector<1x16x32xf32>
    %95 = vector.shape_cast %94 : vector<1x16x32xf32> to vector<16x32xf32>
    %cst_55 = arith.constant dense<0.000000e+00> : vector<64x32xf32>
    %96 = tpu.matmul %82, %95, %cst_55 {dimension_numbers = #tpu.dot_dimension_numbers<[1], [0], [0], [1], [0, 0, 1, 1], [], []>} : vector<64x16xf32>, vector<16x32xf32>, vector<64x32xf32> -> vector<64x32xf32>
    %97 = arith.addf %93, %96 : vector<64x32xf32>
    %c63_i32_56 = arith.constant 63 : i32
    %98 = tpu.dynamic_rotate %82 by %c63_i32_56 dim 0 : vector<64x16xf32>, i32 -> vector<64x16xf32>
    %c31_i32_57 = arith.constant 31 : i32
    %99 = vector.broadcast %c31_i32_57 : i32 to vector<64x16xi32>
    %100 = arith.cmpi slt, %85, %99 : vector<64x16xi32>
    %cst_58 = arith.constant 0.000000e+00 : f32
    %101 = vector.broadcast %cst_58 : f32 to vector<64x16xf32>
    %102 = arith.select %100, %98, %101 : vector<64x16xi1>, vector<64x16xf32>
    %c2_59 = arith.constant 2 : index
    %c32 = arith.constant 32 : index
    %c0_60 = arith.constant 0 : index
    %103 = vector.load %arg2[%c2_59, %c32, %c0_60] : memref<5x96x64xf32, #tpu.memory_space<vmem>>, vector<1x16x32xf32>
    %104 = vector.shape_cast %103 : vector<1x16x32xf32> to vector<16x32xf32>
    %cst_61 = arith.constant dense<0.000000e+00> : vector<64x32xf32>
    %105 = tpu.matmul %102, %104, %cst_61 {dimension_numbers = #tpu.dot_dimension_numbers<[1], [0], [0], [1], [0, 0, 1, 1], [], []>} : vector<64x16xf32>, vector<16x32xf32>, vector<64x32xf32> -> vector<64x32xf32>
    %106 = arith.addf %97, %105 : vector<64x32xf32>
    %107 = vector.shape_cast %106 : vector<64x32xf32> to vector<32x2x32xf32>
    %cst_62 = arith.constant dense<0xFF800000> : vector<32x32xf32>
    %108 = vector.multi_reduction <maximumf>, %107, %cst_62 [1] : vector<32x2x32xf32> to vector<32x32xf32>
    %c2_63 = arith.constant 2 : index
    %c0_64 = arith.constant 0 : index
    %c0_65 = arith.constant 0 : index
    %109 = vector.load %arg3[%c2_63, %c0_64, %c0_65] : memref<5x2x64xf32, #tpu.memory_space<vmem>>, vector<1x1x32xf32>
    %110 = vector.shape_cast %109 : vector<1x1x32xf32> to vector<1x32xf32>
    %c2_66 = arith.constant 2 : index
    %c1_67 = arith.constant 1 : index
    %c0_68 = arith.constant 0 : index
    %111 = vector.load %arg3[%c2_66, %c1_67, %c0_68] : memref<5x2x64xf32, #tpu.memory_space<vmem>>, vector<1x1x32xf32>
    %112 = vector.shape_cast %111 : vector<1x1x32xf32> to vector<1x32xf32>
    %113 = vector.broadcast %110 : vector<1x32xf32> to vector<32x32xf32>
    %114 = arith.mulf %108, %113 : vector<32x32xf32>
    %115 = vector.broadcast %112 : vector<1x32xf32> to vector<32x32xf32>
    %116 = arith.addf %114, %115 : vector<32x32xf32>
    %cst_69 = arith.constant -1.000000e+00 : f32
    %cst_70 = arith.constant 1.000000e+00 : f32
    %117 = vector.broadcast %cst_69 : f32 to vector<32x32xf32>
    %118 = arith.maximumf %117, %116 : vector<32x32xf32>
    %119 = vector.broadcast %cst_70 : f32 to vector<32x32xf32>
    %120 = arith.minimumf %119, %118 : vector<32x32xf32>
    %121 = tpu.iota {dimensions = array<i32: 0>} : vector<32x32xi32>
    %c15_i32 = arith.constant 15 : i32
    %122 = vector.broadcast %c15_i32 : i32 to vector<32x32xi32>
    %123 = arith.andi %121, %122 : vector<32x32xi32>
    %c1_i32_71 = arith.constant 1 : i32
    %124 = tpu.dynamic_rotate %120 by %c1_i32_71 dim 0 : vector<32x32xf32>, i32 -> vector<32x32xf32>
    %c1_i32_72 = arith.constant 1 : i32
    %125 = vector.broadcast %c1_i32_72 : i32 to vector<32x32xi32>
    %126 = arith.cmpi sge, %123, %125 : vector<32x32xi32>
    %cst_73 = arith.constant 0.000000e+00 : f32
    %127 = vector.broadcast %cst_73 : f32 to vector<32x32xf32>
    %128 = arith.select %126, %124, %127 : vector<32x32xi1>, vector<32x32xf32>
    %c3 = arith.constant 3 : index
    %c0_74 = arith.constant 0 : index
    %c0_75 = arith.constant 0 : index
    %129 = vector.load %arg2[%c3, %c0_74, %c0_75] : memref<5x96x64xf32, #tpu.memory_space<vmem>>, vector<1x32x32xf32>
    %130 = vector.shape_cast %129 : vector<1x32x32xf32> to vector<32x32xf32>
    %cst_76 = arith.constant dense<0.000000e+00> : vector<32x32xf32>
    %131 = tpu.matmul %128, %130, %cst_76 {dimension_numbers = #tpu.dot_dimension_numbers<[1], [0], [0], [1], [0, 0, 1, 1], [], []>} : vector<32x32xf32>, vector<32x32xf32>, vector<32x32xf32> -> vector<32x32xf32>
    %c3_77 = arith.constant 3 : index
    %c32_78 = arith.constant 32 : index
    %c0_79 = arith.constant 0 : index
    %132 = vector.load %arg2[%c3_77, %c32_78, %c0_79] : memref<5x96x64xf32, #tpu.memory_space<vmem>>, vector<1x32x32xf32>
    %133 = vector.shape_cast %132 : vector<1x32x32xf32> to vector<32x32xf32>
    %cst_80 = arith.constant dense<0.000000e+00> : vector<32x32xf32>
    %134 = tpu.matmul %120, %133, %cst_80 {dimension_numbers = #tpu.dot_dimension_numbers<[1], [0], [0], [1], [0, 0, 1, 1], [], []>} : vector<32x32xf32>, vector<32x32xf32>, vector<32x32xf32> -> vector<32x32xf32>
    %135 = arith.addf %131, %134 : vector<32x32xf32>
    %c31_i32_81 = arith.constant 31 : i32
    %136 = tpu.dynamic_rotate %120 by %c31_i32_81 dim 0 : vector<32x32xf32>, i32 -> vector<32x32xf32>
    %c15_i32_82 = arith.constant 15 : i32
    %137 = vector.broadcast %c15_i32_82 : i32 to vector<32x32xi32>
    %138 = arith.cmpi slt, %123, %137 : vector<32x32xi32>
    %cst_83 = arith.constant 0.000000e+00 : f32
    %139 = vector.broadcast %cst_83 : f32 to vector<32x32xf32>
    %140 = arith.select %138, %136, %139 : vector<32x32xi1>, vector<32x32xf32>
    %c3_84 = arith.constant 3 : index
    %c64 = arith.constant 64 : index
    %c0_85 = arith.constant 0 : index
    %141 = vector.load %arg2[%c3_84, %c64, %c0_85] : memref<5x96x64xf32, #tpu.memory_space<vmem>>, vector<1x32x32xf32>
    %142 = vector.shape_cast %141 : vector<1x32x32xf32> to vector<32x32xf32>
    %cst_86 = arith.constant dense<0.000000e+00> : vector<32x32xf32>
    %143 = tpu.matmul %140, %142, %cst_86 {dimension_numbers = #tpu.dot_dimension_numbers<[1], [0], [0], [1], [0, 0, 1, 1], [], []>} : vector<32x32xf32>, vector<32x32xf32>, vector<32x32xf32> -> vector<32x32xf32>
    %144 = arith.addf %135, %143 : vector<32x32xf32>
    %145 = vector.shape_cast %144 : vector<32x32xf32> to vector<16x2x32xf32>
    %cst_87 = arith.constant dense<0xFF800000> : vector<16x32xf32>
    %146 = vector.multi_reduction <maximumf>, %145, %cst_87 [1] : vector<16x2x32xf32> to vector<16x32xf32>
    %c3_88 = arith.constant 3 : index
    %c0_89 = arith.constant 0 : index
    %c0_90 = arith.constant 0 : index
    %147 = vector.load %arg3[%c3_88, %c0_89, %c0_90] : memref<5x2x64xf32, #tpu.memory_space<vmem>>, vector<1x1x32xf32>
    %148 = vector.shape_cast %147 : vector<1x1x32xf32> to vector<1x32xf32>
    %c3_91 = arith.constant 3 : index
    %c1_92 = arith.constant 1 : index
    %c0_93 = arith.constant 0 : index
    %149 = vector.load %arg3[%c3_91, %c1_92, %c0_93] : memref<5x2x64xf32, #tpu.memory_space<vmem>>, vector<1x1x32xf32>
    %150 = vector.shape_cast %149 : vector<1x1x32xf32> to vector<1x32xf32>
    %151 = vector.broadcast %148 : vector<1x32xf32> to vector<16x32xf32>
    %152 = arith.mulf %146, %151 : vector<16x32xf32>
    %153 = vector.broadcast %150 : vector<1x32xf32> to vector<16x32xf32>
    %154 = arith.addf %152, %153 : vector<16x32xf32>
    %cst_94 = arith.constant -1.000000e+00 : f32
    %cst_95 = arith.constant 1.000000e+00 : f32
    %155 = vector.broadcast %cst_94 : f32 to vector<16x32xf32>
    %156 = arith.maximumf %155, %154 : vector<16x32xf32>
    %157 = vector.broadcast %cst_95 : f32 to vector<16x32xf32>
    %158 = arith.minimumf %157, %156 : vector<16x32xf32>
    %159 = tpu.iota {dimensions = array<i32: 0>} : vector<16x32xi32>
    %c7_i32 = arith.constant 7 : i32
    %160 = vector.broadcast %c7_i32 : i32 to vector<16x32xi32>
    %161 = arith.andi %159, %160 : vector<16x32xi32>
    %c1_i32_96 = arith.constant 1 : i32
    %162 = tpu.dynamic_rotate %158 by %c1_i32_96 dim 0 : vector<16x32xf32>, i32 -> vector<16x32xf32>
    %c1_i32_97 = arith.constant 1 : i32
    %163 = vector.broadcast %c1_i32_97 : i32 to vector<16x32xi32>
    %164 = arith.cmpi sge, %161, %163 : vector<16x32xi32>
    %cst_98 = arith.constant 0.000000e+00 : f32
    %165 = vector.broadcast %cst_98 : f32 to vector<16x32xf32>
    %166 = arith.select %164, %162, %165 : vector<16x32xi1>, vector<16x32xf32>
    %c4 = arith.constant 4 : index
    %c0_99 = arith.constant 0 : index
    %c0_100 = arith.constant 0 : index
    %167 = vector.load %arg2[%c4, %c0_99, %c0_100] : memref<5x96x64xf32, #tpu.memory_space<vmem>>, vector<1x32x64xf32>
    %168 = vector.shape_cast %167 : vector<1x32x64xf32> to vector<32x64xf32>
    %cst_101 = arith.constant dense<0.000000e+00> : vector<16x64xf32>
    %169 = tpu.matmul %166, %168, %cst_101 {dimension_numbers = #tpu.dot_dimension_numbers<[1], [0], [0], [1], [0, 0, 1, 1], [], []>} : vector<16x32xf32>, vector<32x64xf32>, vector<16x64xf32> -> vector<16x64xf32>
    %c4_102 = arith.constant 4 : index
    %c32_103 = arith.constant 32 : index
    %c0_104 = arith.constant 0 : index
    %170 = vector.load %arg2[%c4_102, %c32_103, %c0_104] : memref<5x96x64xf32, #tpu.memory_space<vmem>>, vector<1x32x64xf32>
    %171 = vector.shape_cast %170 : vector<1x32x64xf32> to vector<32x64xf32>
    %cst_105 = arith.constant dense<0.000000e+00> : vector<16x64xf32>
    %172 = tpu.matmul %158, %171, %cst_105 {dimension_numbers = #tpu.dot_dimension_numbers<[1], [0], [0], [1], [0, 0, 1, 1], [], []>} : vector<16x32xf32>, vector<32x64xf32>, vector<16x64xf32> -> vector<16x64xf32>
    %173 = arith.addf %169, %172 : vector<16x64xf32>
    %c15_i32_106 = arith.constant 15 : i32
    %174 = tpu.dynamic_rotate %158 by %c15_i32_106 dim 0 : vector<16x32xf32>, i32 -> vector<16x32xf32>
    %c7_i32_107 = arith.constant 7 : i32
    %175 = vector.broadcast %c7_i32_107 : i32 to vector<16x32xi32>
    %176 = arith.cmpi slt, %161, %175 : vector<16x32xi32>
    %cst_108 = arith.constant 0.000000e+00 : f32
    %177 = vector.broadcast %cst_108 : f32 to vector<16x32xf32>
    %178 = arith.select %176, %174, %177 : vector<16x32xi1>, vector<16x32xf32>
    %c4_109 = arith.constant 4 : index
    %c64_110 = arith.constant 64 : index
    %c0_111 = arith.constant 0 : index
    %179 = vector.load %arg2[%c4_109, %c64_110, %c0_111] : memref<5x96x64xf32, #tpu.memory_space<vmem>>, vector<1x32x64xf32>
    %180 = vector.shape_cast %179 : vector<1x32x64xf32> to vector<32x64xf32>
    %cst_112 = arith.constant dense<0.000000e+00> : vector<16x64xf32>
    %181 = tpu.matmul %178, %180, %cst_112 {dimension_numbers = #tpu.dot_dimension_numbers<[1], [0], [0], [1], [0, 0, 1, 1], [], []>} : vector<16x32xf32>, vector<32x64xf32>, vector<16x64xf32> -> vector<16x64xf32>
    %182 = arith.addf %173, %181 : vector<16x64xf32>
    %183 = vector.shape_cast %182 : vector<16x64xf32> to vector<8x2x64xf32>
    %cst_113 = arith.constant dense<0xFF800000> : vector<8x64xf32>
    %184 = vector.multi_reduction <maximumf>, %183, %cst_113 [1] : vector<8x2x64xf32> to vector<8x64xf32>
    %c4_114 = arith.constant 4 : index
    %c0_115 = arith.constant 0 : index
    %c0_116 = arith.constant 0 : index
    %185 = vector.load %arg3[%c4_114, %c0_115, %c0_116] : memref<5x2x64xf32, #tpu.memory_space<vmem>>, vector<1x1x64xf32>
    %186 = vector.shape_cast %185 : vector<1x1x64xf32> to vector<1x64xf32>
    %c4_117 = arith.constant 4 : index
    %c1_118 = arith.constant 1 : index
    %c0_119 = arith.constant 0 : index
    %187 = vector.load %arg3[%c4_117, %c1_118, %c0_119] : memref<5x2x64xf32, #tpu.memory_space<vmem>>, vector<1x1x64xf32>
    %188 = vector.shape_cast %187 : vector<1x1x64xf32> to vector<1x64xf32>
    %189 = vector.broadcast %186 : vector<1x64xf32> to vector<8x64xf32>
    %190 = arith.mulf %184, %189 : vector<8x64xf32>
    %191 = vector.broadcast %188 : vector<1x64xf32> to vector<8x64xf32>
    %192 = arith.addf %190, %191 : vector<8x64xf32>
    %cst_120 = arith.constant -1.000000e+00 : f32
    %cst_121 = arith.constant 1.000000e+00 : f32
    %193 = vector.broadcast %cst_120 : f32 to vector<8x64xf32>
    %194 = arith.maximumf %193, %192 : vector<8x64xf32>
    %195 = vector.broadcast %cst_121 : f32 to vector<8x64xf32>
    %196 = arith.minimumf %195, %194 : vector<8x64xf32>
    %197 = vector.shape_cast %196 : vector<8x64xf32> to vector<2x4x64xf32>
    %cst_122 = arith.constant dense<0.000000e+00> : vector<2x64xf32>
    %198 = vector.multi_reduction <add>, %197, %cst_122 [1] : vector<2x4x64xf32> to vector<2x64xf32>
    %cst_123 = arith.constant 4.000000e+00 : f32
    %199 = vector.broadcast %cst_123 : f32 to vector<2x64xf32>
    %200 = arith.divf %198, %199 : vector<2x64xf32>
    %c0_124 = arith.constant 0 : index
    %c0_125 = arith.constant 0 : index
    %201 = vector.load %arg4[%c0_124, %c0_125] : memref<2x64xf32, #tpu.memory_space<vmem>>, vector<2x64xf32>
    tpu.vector_store %arg4[%c0_124, %c0_125], %200 {strides = array<i32>} : memref<2x64xf32, #tpu.memory_space<vmem>>, vector<2x64xf32>,
    return
  }
  func.func @transform_0(%arg0: i32) -> (i32, i32) {
    %c0_i32 = arith.constant 0 : i32
    %c0_i32_0 = arith.constant 0 : i32
    return %arg0, %c0_i32 : i32, i32
  }
  func.func @transform_1(%arg0: i32) -> (i32, i32, i32) {
    %c0_i32 = arith.constant 0 : i32
    %c0_i32_0 = arith.constant 0 : i32
    %c0_i32_1 = arith.constant 0 : i32
    %c0_i32_2 = arith.constant 0 : i32
    return %c0_i32, %c0_i32_0, %c0_i32_1 : i32, i32, i32
  }
  func.func @transform_2(%arg0: i32) -> (i32, i32, i32) {
    %c0_i32 = arith.constant 0 : i32
    %c0_i32_0 = arith.constant 0 : i32
    %c0_i32_1 = arith.constant 0 : i32
    %c0_i32_2 = arith.constant 0 : i32
    return %c0_i32, %c0_i32_0, %c0_i32_1 : i32, i32, i32
  }
  func.func @transform_3(%arg0: i32) -> (i32, i32) {
    %c0_i32 = arith.constant 0 : i32
    %c0_i32_0 = arith.constant 0 : i32
    return %arg0, %c0_i32 : i32, i32
  }
}

</mosaic_0001>

<bundles_post_ra>
// kernel: tpu_custom_call.1
= control target key start
LH: loop header
LB: loop body
LE: loop exit
PB: predicated region body
PF: predicated region fallthrough
CT: control target
= control target key end

     0   :  { %v47_v3 = vlaneseq  ;;  %v8624_v4 = vmov 0   ;;  %s12220_s0 = inlined_call_operand.vmem [shape: f32[256,1], index: 0, kind: input, shape index: {}]   ;;  %s12221_s1 = inlined_call_operand.vmem [shape: f32[5,96,64], index: 1, kind: input, shape index: {}]   ;;  %s12222_s2 = inlined_call_operand.vmem [shape: f32[5,2,64], index: 2, kind: input, shape index: {}]   ;;  %s12223_s3 = inlined_call_operand.hbm [shape: f32[2,64], index: 3, kind: output, shape index: {}]  }
   0x1   :  { %v17_v0 = vld [vmem:[%s12220_s0 + $0x10] sm:$0xff]  ;;  %v8653_v1 = vld [vmem:[%s12220_s0] sm:$0xff]  ;;  %v16_v2 = vld [vmem:[%s12220_s0 + $0x8] sm:$0xff]  ;;  %8582 = vset.pattern.permute.xlu1 %v8624_v4  ;;  %8581 = vset.pattern.permute.xlu0 %v8624_v4 }
   0x2   :  { %v114_v5 = vrot.slane %v17_v0, 7  ;;  %v112_v6 = vrot.slane %v8653_v1, 7  ;;  %v12229_v7 = vrot.slane %v8653_v1, 1  ;;  %v18_v8 = vld [vmem:[%s12220_s0 + $0x18] sm:$0xff]  ;;  %451 = vperm.xlu1 %8582, %v17_v0   ;;  %441 = vperm.xlu0 %8581, %v8653_v1   ;;  %v8669_v10 = vshrl.u32 %v47_v3, 7  ;;  %v19_v17 = vld [vmem:[%s12220_s0 + $0x20] sm:$0xff] }
   0x3   :  { %v8666_v9 = vld [vmem:[%s12220_s0 + $0xf8] sm:$0xff]  ;;  %v113_v11 = vrot.slane %v16_v2, 7  ;;  %v668_v12 = vrot.slane %v16_v2, 1  ;;  %v669_v13 = vrot.slane %v17_v0, 1  ;;  %v670_v14 = vrot.slane %v18_v8, 1  ;;  %v20_v27 = vld [vmem:[%s12220_s0 + $0x28] sm:$0xff] }
   0x4   :  { %12260 = vst [vmem:[#allocation5_spill] sm:$0xff] %v8669_v10  ;;  %v12228_v15 = vrot.slane %v8666_v9, 7  ;;  %vm144_vm0 = vcmp.lt.s32.totalorder %v8669_v10, 1  ;;  %vm699_vm1 = vcmp.lt.s32.totalorder %v8669_v10, 7  ;;  %v80_v16 = vand.u32 127, %v8669_v10  ;;  %v21_v28 = vld [vmem:[%s12220_s0 + $0x30] sm:$0xff] }
   0x5   :  { %v174_v18 = vsel %vm144_vm0, %v113_v11, %v114_v5  ;;  %v730_v19 = vsel %vm699_vm1, %v12229_v7, %v668_v12  ;;  %v728_v21 = vsel %vm699_vm1, %v669_v13, %v670_v14  ;;  %v115_v23 = vrot.slane %v18_v8, 7 }
   0x6   :  { %v176_v20 = vsel %vm144_vm0, %v12228_v15, %v112_v6  ;;  %254 = vperm.xlu1 %8582, %v174_v18   ;;  %799 = vperm.xlu0 %8581, %v730_v19   ;;  %vm177_vm2 = vcmp.ge.s32.totalorder %v80_v16, 1  ;;  %v116_v24 = vrot.slane %v19_v17, 7  ;;  %v175_v26 = vsel %vm144_vm0, %v112_v6, %v113_v11 }
   0x7   :  { %v209_v22 = vsel %vm177_vm2, %v176_v20, 0.0 }
   0x8   :  { %v172_v25 = vsel %vm144_vm0, %v115_v23, %v116_v24 }
   0xa   :  { %809 = vperm.xlu1 %8582, %v728_v21   ;;  %244 = vperm.xlu0 %8581, %v209_v22  }
   0xb   :  { %8 = vsyncpa [#allocation3], 0  ;;  %v117_v29 = vrot.slane %v20_v27, 7  ;;  %v118_v30 = vrot.slane %v21_v28, 7  ;;  %v173_v32 = vsel %vm144_vm0, %v114_v5, %v115_v23  ;;  %v671_v33 = vrot.slane %v19_v17, 1  ;;  %v22_v35 = vld [vmem:[%s12220_s0 + $0x38] sm:$0xff] }
   0xc   :  { %v672_v34 = vrot.slane %v20_v27, 1  ;;  %v729_v37 = vsel %vm699_vm1, %v668_v12, %v669_v13  ;;  %v673_v38 = vrot.slane %v21_v28, 1  ;;  %v674_v39 = vrot.slane %v22_v35, 1  ;;  %v23_v40 = vld [vmem:[%s12220_s0 + $0x40] sm:$0xff]  ;;  %v24_v47 = vld [vmem:[%s12220_s0 + $0x48] sm:$0xff]  ;;  %v25_v48 = vld [vmem:[%s12220_s0 + $0x50] sm:$0xff] }
   0xd   :  { %v170_v31 = vsel %vm144_vm0, %v117_v29, %v118_v30  ;;  %v727_v42 = vsel %vm699_vm1, %v670_v14, %v671_v33  ;;  %v119_v43 = vrot.slane %v22_v35, 7  ;;  %v120_v44 = vrot.slane %v23_v40, 7  ;;  %v26_v55 = vld [vmem:[%s12220_s0 + $0x58] sm:$0xff]  ;;  %v27_v60 = vld [vmem:[%s12220_s0 + $0x60] sm:$0xff]  ;;  %v28_v4 = vld [vmem:[%s12220_s0 + $0x68] sm:$0xff] }
   0xe   :  { %264 = vperm.xlu1 %8582, %v172_v25   ;;  %249 = vperm.xlu0 %8581, %v175_v26   ;;  %v726_v36 = vsel %vm699_vm1, %v671_v33, %v672_v34  ;;  %v724_v41 = vsel %vm699_vm1, %v673_v38, %v674_v39  ;;  %v171_v46 = vsel %vm144_vm0, %v116_v24, %v117_v29  ;;  %v121_v49 = vrot.slane %v24_v47, 7  ;;  %v29_v5 = vld [vmem:[%s12220_s0 + $0x70] sm:$0xff]  ;;  %v30_v16 = vld [vmem:[%s12220_s0 + $0x78] sm:$0xff]  ;;  %v31_v18 = vld [vmem:[%s12220_s0 + $0x80] sm:$0xff] }
   0xf   :  { %v168_v45 = vsel %vm144_vm0, %v119_v43, %v120_v44  ;;  %v122_v50 = vrot.slane %v25_v48, 7  ;;  %v169_v52 = vsel %vm144_vm0, %v118_v30, %v119_v43  ;;  %v675_v53 = vrot.slane %v23_v40, 1 }
  0x10   :  { %v676_v54 = vrot.slane %v24_v47, 1  ;;  %v725_v57 = vsel %vm699_vm1, %v672_v34, %v673_v38  ;;  %v677_v58 = vrot.slane %v25_v48, 1  ;;  %v678_v59 = vrot.slane %v26_v55, 1 }
  0x11   :  { %v166_v51 = vsel %vm144_vm0, %v121_v49, %v122_v50  ;;  %v723_v62 = vsel %vm699_vm1, %v674_v39, %v675_v53  ;;  %v123_v63 = vrot.slane %v26_v55, 7  ;;  %v124_v0 = vrot.slane %v27_v60, 7 }
  0x12   :  { %461 = vperm.xlu1 %8582, %v19_v17   ;;  %446 = vperm.xlu0 %8581, %v16_v2   ;;  %v722_v56 = vsel %vm699_vm1, %v675_v53, %v676_v54  ;;  %v720_v61 = vsel %vm699_vm1, %v677_v58, %v678_v59  ;;  %v167_v3 = vsel %vm144_vm0, %v120_v44, %v121_v49  ;;  %v125_v6 = vrot.slane %v28_v4, 7 }
  0x13   :  { %v164_v2 = vsel %vm144_vm0, %v123_v63, %v124_v0  ;;  %v165_v12 = vsel %vm144_vm0, %v122_v50, %v123_v63  ;;  %v679_v13 = vrot.slane %v27_v60, 1  ;;  %v680_v14 = vrot.slane %v28_v4, 1 }
  0x14   :  { %v64_v17 = vadd.s32 128, %v8669_v10  ;;  %v721_v20 = vsel %vm699_vm1, %v676_v54, %v677_v58  ;;  %v681_v21 = vrot.slane %v29_v5, 1  ;;  %v682_v22 = vrot.slane %v30_v16, 1  ;;  %v8814_v54 = vld [vmem:[%s12220_s0 + $0xa8] sm:$0xff] }
  0x15   :  { %v718_v19 = vsel %vm699_vm1, %v679_v13, %v680_v14  ;;  %v127_v24 = vrot.slane %v30_v16, 7  ;;  %v128_v25 = vrot.slane %v31_v18, 7  ;;  %v163_v30 = vsel %vm144_vm0, %v124_v0, %v125_v6 }
  0x16   :  { %274 = vperm.xlu1 %8582, %v170_v31   ;;  %259 = vperm.xlu0 %8581, %v173_v32   ;;  %v96_v23 = vand.u32 127, %v64_v17  ;;  %v716_v26 = vsel %vm699_vm1, %v681_v21, %v682_v22  ;;  %v32_v31 = vld [vmem:[%s12220_s0 + $0x88] sm:$0xff]  ;;  %v33_v32 = vld [vmem:[%s12220_s0 + $0x90] sm:$0xff]  ;;  %v683_v38 = vrot.slane %v31_v18, 1  ;;  %v717_v43 = vsel %vm699_vm1, %v680_v14, %v681_v21 }
  0x17   :  { %v129_v33 = vrot.slane %v32_v31, 7  ;;  %v130_v34 = vrot.slane %v33_v32, 7  ;;  %v684_v39 = vrot.slane %v32_v31, 1  ;;  %v685_v44 = vrot.slane %v33_v32, 1  ;;  %v8860_v17 = vld [vmem:[%s12220_s0 + $0xc8] sm:$0xff] }
  0x18   :  { %vm193_vm3 = vcmp.ge.s32.totalorder %v96_v23, 1  ;;  %v137_v23 = vrot.slane %v8860_v17, 7  ;;  %vm1729_vm5 = vcmask 58368   ;;  %vm3293_vm7 = vcmask 1041409  }
  0x19   :  { %v159_v53 = vsel %vm144_vm0, %v128_v25, %v129_v33  ;;  %v713_v0 = vsel %vm699_vm1, %v684_v39, %v685_v44  ;;  %vm3296_vm8 = vcmask 1042434   ;;  %vm3302_vm9 = vcmask 1044484  }
  0x1a   :  { %471 = vperm.xlu1 %8582, %v21_v28   ;;  %456 = vperm.xlu0 %8581, %v18_v8   ;;  %v126_v8 = vrot.slane %v29_v5, 7  ;;  %v160_v28 = vsel %vm144_vm0, %v127_v24, %v128_v25  ;;  %vm3299_vm10 = vcmask 1043459   ;;  %vm3305_vm11 = vcmask 1045509  }
  0x1b   :  { %v225_v29 = vsel %vm193_vm3, %v160_v28, 0.0  ;;  %vm3308_vm12 = vcmask 1046534   ;;  %vm3311_vm13 = vcmask 1047559   ;;  %vm3606_vm14 = vcmask 64512  }
  0x1c   :  { %v162_v11 = vsel %vm144_vm0, %v125_v6, %v126_v8 }
  0x1e   :  { %819 = vperm.xlu1 %8582, %v726_v36   ;;  %804 = vperm.xlu0 %8581, %v729_v37   ;;  %v161_v36 = vsel %vm144_vm0, %v126_v8, %v127_v24  ;;  %v8790_v37 = vadd.s32 120, %v8669_v10 }
  0x20   :  { %12261 = vst [vmem:[#allocation6_spill] sm:$0xff] %v8790_v37 }
  0x22   :  { %829 = vperm.xlu1 %8582, %v724_v41   ;;  %814 = vperm.xlu0 %8581, %v727_v42   ;;  %v95_v41 = vand.u32 127, %v8790_v37  ;;  %v714_v42 = vsel %vm699_vm1, %v683_v38, %v684_v39 }
  0x24   :  { %vm747_vm4 = vcmp.lt.s32.totalorder %v95_v41, 127  ;;  %v8921_v41 = vld [vmem:[%s12220_s0 + $0xf0] sm:$0xff] }
  0x26   :  { %284 = vperm.xlu1 %8582, %v168_v45   ;;  %269 = vperm.xlu0 %8581, %v171_v46   ;;  %v715_v46 = vsel %vm699_vm1, %v682_v22, %v683_v38 }
  0x27   :  { %v779_v49 = vsel %vm747_vm4, %v715_v46, 0.0 }
  0x2a   :  { %481 = vperm.xlu1 %8582, %v23_v40   ;;  %466 = vperm.xlu0 %8581, %v20_v27   ;;  %v719_v27 = vsel %vm699_vm1, %v678_v59, %v679_v13  ;;  %v34_v40 = vld [vmem:[%s12220_s0 + $0x98] sm:$0xff] }
  0x2b   :  { %v686_v45 = vrot.slane %v34_v40, 1  ;;  %v131_v50 = vrot.slane %v34_v40, 7 }
  0x2d   :  { %v157_v59 = vsel %vm144_vm0, %v130_v34, %v131_v50 }
  0x2e   :  { %294 = vperm.xlu1 %8582, %v166_v51   ;;  %279 = vperm.xlu0 %8581, %v169_v52  }
  0x32   :  { %491 = vperm.xlu1 %8582, %v25_v48   ;;  %476 = vperm.xlu0 %8581, %v22_v35   ;;  %v158_v35 = vsel %vm144_vm0, %v129_v33, %v130_v34  ;;  %v712_v48 = vsel %vm699_vm1, %v685_v44, %v686_v45 }
  0x36   :  { %839 = vperm.xlu1 %8582, %v722_v56   ;;  %824 = vperm.xlu0 %8581, %v725_v57   ;;  %v133_v56 = vrot.slane %v8814_v54, 7 }
  0x3a   :  { %849 = vperm.xlu1 %8582, %v720_v61   ;;  %834 = vperm.xlu0 %8581, %v723_v62   ;;  %v688_v61 = vrot.slane %v8814_v54, 1  ;;  %v8831_v62 = vld [vmem:[%s12220_s0 + $0xb8] sm:$0xff] }
  0x3e   :  { %304 = vperm.xlu1 %8582, %v164_v2   ;;  %289 = vperm.xlu0 %8581, %v167_v3   ;;  %v690_v3 = vrot.slane %v8831_v62, 1 }
  0x42   :  { %501 = vperm.xlu1 %8582, %v27_v60   ;;  %486 = vperm.xlu0 %8581, %v24_v47   ;;  %v35_v47 = vld [vmem:[%s12220_s0 + $0xa0] sm:$0xff] }
  0x43   :  { %v132_v51 = vrot.slane %v35_v47, 7  ;;  %v687_v60 = vrot.slane %v35_v47, 1 }
  0x45   :  { %v156_v52 = vsel %vm144_vm0, %v131_v50, %v132_v51  ;;  %v710_v63 = vsel %vm699_vm1, %v687_v60, %v688_v61  ;;  %v155_v22 = vsel %vm144_vm0, %v132_v51, %v133_v56 }
  0x46   :  { %314 = vperm.xlu1 %8582, %v162_v11   ;;  %299 = vperm.xlu0 %8581, %v165_v12   ;;  %v711_v11 = vsel %vm699_vm1, %v686_v45, %v687_v60  ;;  %v135_v12 = vrot.slane %v8831_v62, 7 }
  0x4a   :  { %511 = vperm.xlu1 %8582, %v29_v5   ;;  %496 = vperm.xlu0 %8581, %v26_v55   ;;  %v8819_v55 = vld [vmem:[%s12220_s0 + $0xb0] sm:$0xff]  ;;  %v8625_v5 = vmov 1983009808  }
  0x4b   :  { %v134_v57 = vrot.slane %v8819_v55, 7  ;;  %v689_v2 = vrot.slane %v8819_v55, 1  ;;  %v1059_v6 = vunpack.c.l.s4 %v8625_v5 }
  0x4d   :  { %v154_v58 = vsel %vm144_vm0, %v133_v56, %v134_v57  ;;  %v708_v8 = vsel %vm699_vm1, %v689_v2, %v690_v3  ;;  %v153_v34 = vsel %vm144_vm0, %v134_v57, %v135_v12  ;;  %v12227_v56 = vrot.slane %v8921_v41, 7 }
  0x4e   :  { %859 = vperm.xlu1 %8582, %v718_v19   ;;  %844 = vperm.xlu0 %8581, %v721_v20   ;;  %v1060_v19 = vunpack.c.0.s8 %v1059_v6  ;;  %v8870_v20 = vld [vmem:[%s12221_s1] ss:$0 sm:$0xff] }
  0x50   :  { %v8899_v33 = vsub.s32 %v1060_v19, %v8669_v10 }
  0x52   :  { %869 = vperm.xlu1 %8582, %v716_v26   ;;  %854 = vperm.xlu0 %8581, %v719_v27   ;;  %v692_v26 = vrot.slane %v8860_v17, 1  ;;  %v8885_v27 = vld [vmem:[%s12221_s1 + $0x1] ss:$0 sm:$0xff] }
  0x56   :  { %324 = vperm.xlu1 %8582, %v225_v29   ;;  %309 = vperm.xlu0 %8581, %v163_v30  }
  0x5a   :  { %521 = vperm.xlu1 %8582, %v31_v18   ;;  %506 = vperm.xlu0 %8581, %v28_v4   ;;  %v8845_v4 = vld [vmem:[%s12220_s0 + $0xc0] sm:$0xff]  ;;  %v8865_v18 = vld [vmem:[%s12220_s0 + $0xd0] sm:$0xff] }
  0x5b   :  { %v136_v13 = vrot.slane %v8845_v4, 7  ;;  %v138_v24 = vrot.slane %v8865_v18, 7  ;;  %v691_v25 = vrot.slane %v8845_v4, 1  ;;  %v693_v39 = vrot.slane %v8865_v18, 1 }
  0x5d   :  { %v152_v21 = vsel %vm144_vm0, %v135_v12, %v136_v13  ;;  %v8910_v38 = vsel %vm699_vm1, %v691_v25, %v692_v26 }
  0x5e   :  { %334 = vperm.xlu1 %8582, %v158_v35   ;;  %319 = vperm.xlu0 %8581, %v161_v36   ;;  %v150_v36 = vsel %vm144_vm0, %v137_v23, %v138_v24 }
  0x62   :  { %531 = vperm.xlu1 %8582, %v33_v32   ;;  %516 = vperm.xlu0 %8581, %v30_v16   ;;  %v8896_v32 = vld [vmem:[%s12220_s0 + $0xe0] sm:$0xff] }
  0x63   :  { %v695_v57 = vrot.slane %v8896_v32, 1 }
  0x66   :  { %879 = vperm.xlu1 %8582, %v714_v42   ;;  %864 = vperm.xlu0 %8581, %v717_v43   ;;  %v8927_v43 = vld [vmem:[%s12221_s1 + $0x2] ss:$0 sm:$0xff] }
  0x6a   :  { %889 = vperm.xlu1 %8582, %v712_v48   ;;  %874 = vperm.xlu0 %8581, %v779_v49   ;;  %v12225_v48 = vrot.slane %v8896_v32, 7  ;;  %v7876_v49 = vld [vmem:[%s12221_s1 + $0x68] sm:$0xff] }
  0x6b   :  { %8257 = vmatprep.subr.mxu0 %v7876_v49 }
  0x6c   :  { %8258 = vmatpush3.msra.mxu0 %v7876_v49 }
  0x6e   :  { %344 = vperm.xlu1 %8582, %v156_v52   ;;  %329 = vperm.xlu0 %8581, %v159_v53  }
  0x72   :  { %541 = vperm.xlu1 %8582, %v35_v47   ;;  %526 = vperm.xlu0 %8581, %v32_v31   ;;  %v8891_v31 = vld [vmem:[%s12220_s0 + $0xd8] sm:$0xff] }
  0x73   :  { %v694_v46 = vrot.slane %v8891_v31, 1  ;;  %v139_v47 = vrot.slane %v8891_v31, 7 }
  0x76   :  { %354 = vperm.xlu1 %8582, %v154_v58   ;;  %339 = vperm.xlu0 %8581, %v157_v59  }
  0x7a   :  { %551 = vperm.xlu1 %8582, %v8819_v55   ;;  %536 = vperm.xlu0 %8581, %v34_v40   ;;  %v8916_v40 = vld [vmem:[%s12220_s0 + $0xe8] sm:$0xff]  ;;  %v8972_v55 = vsel %vm144_vm0, %v139_v47, %v12225_v48 }
  0x7b   :  { %v12226_v53 = vrot.slane %v8916_v40, 7  ;;  %v12224_v58 = vrot.slane %v8916_v40, 1 }
  0x7e   :  { %899 = vperm.xlu1 %8582, %v710_v63   ;;  %884 = vperm.xlu0 %8581, %v713_v0   ;;  %v709_v0 = vsel %vm699_vm1, %v688_v61, %v689_v2  ;;  %v8975_v61 = vadd.s32 248, %v8669_v10 }
  0x81   :  { %v452_v14 = vpop.permute.xlu1 %451  ;;  %v442_v16 = vpop.permute.xlu0 %441 }
  0x82   :  { %909 = vperm.xlu1 %8582, %v708_v8   ;;  %894 = vperm.xlu0 %8581, %v711_v11   ;;  %v605_v35 = vmul.f32 %v8885_v27, %v452_v14  ;;  %v603_v42 = vmul.f32 %v8885_v27, %v442_v16  ;;  %v8960_v8 = vsel %vm699_vm1, %v693_v39, %v694_v46 }
  0x83   :  { %v8990_v14 = vsel %vm144_vm0, %v12226_v53, %v12227_v56  ;;  %v8994_v16 = vsel %vm144_vm0, %v138_v24, %v139_v47 }
  0x85   :  { %v255_v28 = vpop.permute.xlu1 %254  ;;  %v800_v29 = vpop.permute.xlu0 %799 }
  0x86   :  { %v408_v30 = vmul.f32 %v8870_v20, %v255_v28  ;;  %364 = vperm.xlu1 %8582, %v152_v21   ;;  %349 = vperm.xlu0 %8581, %v155_v22   ;;  %v961_v59 = vmul.f32 %v8927_v43, %v800_v29 }
  0x88   :  { %v637_v50 = vadd.f32 %v605_v35, %v408_v30  ;;  %v698_v30 = vrot.slane %v8666_v9, 1 }
  0x89   :  { %v810_v44 = vpop.permute.xlu1 %809  ;;  %v245_v45 = vpop.permute.xlu0 %244 }
  0x8a   :  { %v963_v51 = vmul.f32 %v8927_v43, %v810_v44  ;;  %v406_v52 = vmul.f32 %v8870_v20, %v245_v45  ;;  %561 = vperm.xlu1 %8582, %v8845_v4   ;;  %546 = vperm.xlu0 %8581, %v8814_v54   ;;  %v8966_v54 = vsel %vm699_vm1, %v690_v3, %v691_v25 }
  0x8b   :  { %v8982_v3 = vsel %vm144_vm0, %v136_v13, %v137_v23  ;;  %v9002_v4 = vsel %vm699_vm1, %v695_v57, %v12224_v58  ;;  %v697_v13 = vrot.slane %v8921_v41, 1 }
  0x8c   :  { %v995_v60 = vadd.f32 %v963_v51, %v637_v50  ;;  %v635_v63 = vadd.f32 %v603_v42, %v406_v52 }
  0x8d   :  { %v8950_v5 = vpop.permute.xlu1 %264  ;;  %v8952_v6 = vpop.permute.xlu0 %249 }
  0x8e   :  { %v1091_v2 = vcombine.high %v995_v60, %v995_v60  ;;  %v1098_v11 = vrot.slane %v995_v60, %v8899_v33  ;;  %v993_v12 = vadd.f32 %v961_v59, %v635_v63  ;;  %374 = vperm.xlu1 %8582, %v150_v36   ;;  %359 = vperm.xlu0 %8581, %v153_v34  }
  0x90   :  { %v1105_v19 = vrot.slane %v1091_v2, %v8899_v33  ;;  %v1106_v21 = vcombine.high %v1098_v11, %v1098_v11  ;;  %v1786_v22 = vsel %vm1729_vm5, %v1098_v11, -inf  ;;  %v1057_v23 = vcombine.high %v993_v12, %v993_v12 }
  0x91   :  { %v1787_v25 = vrot.slane %v1786_v22, 4  ;;  %v1064_v24 = vrot.slane %v993_v12, %v8899_v33  ;;  %v9008_v28 = vpop.permute.xlu1 %461  ;;  %v9010_v29 = vpop.permute.xlu0 %446 }
  0x92   :  { %v1107_v35 = vcombine.high %v1105_v19, %v1105_v19  ;;  %v1793_v36 = vsel %vm1729_vm5, %v1106_v21, -inf  ;;  %v1800_v42 = vsel %vm1729_vm5, %v1105_v19, -inf  ;;  %v1071_v44 = vrot.slane %v1057_v23, %v8899_v33  ;;  %571 = vperm.xlu1 %8582, %v8865_v18   ;;  %556 = vperm.xlu0 %8581, %v8831_v62  }
  0x93   :  { %v1788_v45 = vmax.f32 %v1786_v22, %v1787_v25  ;;  %v1794_v47 = vrot.slane %v1793_v36, 4  ;;  %v1801_v49 = vrot.slane %v1800_v42, 4  ;;  %v1072_v50 = vcombine.high %v1064_v24, %v1064_v24 }
  0x94   :  { %v1807_v51 = vsel %vm1729_vm5, %v1107_v35, -inf  ;;  %v1073_v52 = vcombine.high %v1071_v44, %v1071_v44  ;;  %v1730_v59 = vsel %vm1729_vm5, %v1064_v24, -inf  ;;  %v1744_v60 = vsel %vm1729_vm5, %v1071_v44, -inf }
  0x95   :  { %v1789_v63 = vrot.slane %v1788_v45, 2  ;;  %v1795_v2 = vmax.f32 %v1793_v36, %v1794_v47  ;;  %v1802_v11 = vmax.f32 %v1800_v42, %v1801_v49  ;;  %v1808_v12 = vrot.slane %v1807_v51, 4  ;;  %v9022_v19 = vpop.permute.xlu1 %274  ;;  %v9027_v48 = vpop.permute.xlu0 %259 }
  0x96   :  { %v1731_v21 = vrot.slane %v1730_v59, 4  ;;  %v1737_v22 = vsel %vm1729_vm5, %v1072_v50, -inf  ;;  %v1745_v23 = vrot.slane %v1744_v60, 4  ;;  %v1751_v25 = vsel %vm1729_vm5, %v1073_v52, -inf  ;;  %919 = vperm.xlu1 %8582, %v8910_v38   ;;  %904 = vperm.xlu0 %8581, %v709_v0   ;;  %v9034_v38 = vld [vmem:[%s12222_s2] ss:$0 sm:$0xff] }
  0x97   :  { %v1790_v62 = vmax.f32 %v1788_v45, %v1789_v63  ;;  %v1796_v35 = vrot.slane %v1795_v2, 2  ;;  %v1803_v58 = vrot.slane %v1802_v11, 2  ;;  %v1809_v24 = vmax.f32 %v1807_v51, %v1808_v12 }
  0x98   :  { %v1732_v36 = vmax.f32 %v1730_v59, %v1731_v21  ;;  %v1738_v42 = vrot.slane %v1737_v22, 4  ;;  %v1746_v44 = vmax.f32 %v1744_v60, %v1745_v23  ;;  %v1752_v47 = vrot.slane %v1751_v25, 4 }
  0x99   :  { %v1791_v49 = vrot.slane %v1790_v62, 1  ;;  %v1797_v53 = vmax.f32 %v1795_v2, %v1796_v35  ;;  %v1804_v56 = vmax.f32 %v1802_v11, %v1803_v58  ;;  %v1810_v50 = vrot.slane %v1809_v24, 2  ;;  %v9029_v15 = vpop.permute.xlu1 %471 }
  0x9a   :  { %v1733_v45 = vrot.slane %v1732_v36, 2  ;;  %v1739_v51 = vmax.f32 %v1737_v22, %v1738_v42  ;;  %v1747_v52 = vrot.slane %v1746_v44, 2  ;;  %v1753_v63 = vmax.f32 %v1751_v25, %v1752_v47  ;;  %929 = vperm.xlu1 %8582, %v8960_v8   ;;  %914 = vperm.xlu0 %8581, %v8966_v54   ;;  %v457_v22 = vpop.permute.xlu0 %456  ;;  %v9042_v8 = vld [vmem:[%s12222_s2 + $0x1] ss:$0 sm:$0xff] }
  0x9b   :  { %v1792_v0 = vmax.f32 %v1790_v62, %v1791_v49  ;;  %v1798_v59 = vrot.slane %v1797_v53, 1  ;;  %v1805_v60 = vrot.slane %v1804_v56, 1  ;;  %v1811_v12 = vmax.f32 %v1809_v24, %v1810_v50 }
  0x9c   :  { %v1734_v58 = vmax.f32 %v1732_v36, %v1733_v45  ;;  %v1740_v2 = vrot.slane %v1739_v51, 2  ;;  %v1748_v11 = vmax.f32 %v1746_v44, %v1747_v52  ;;  %v1754_v21 = vrot.slane %v1753_v63, 2 }
  0x9d   :  { %v1799_v23 = vmax.f32 %v1797_v53, %v1798_v59  ;;  %v1806_v35 = vmax.f32 %v1804_v56, %v1805_v60  ;;  %v1812_v34 = vrot.slane %v1811_v12, 1  ;;  %v2640_v7 = vmul.f32 %v9034_v38, %v1792_v0  ;;  %v820_v24 = vpop.permute.xlu1 %819 }
  0x9e   :  { %v1735_v25 = vrot.slane %v1734_v58, 1  ;;  %v1741_v62 = vmax.f32 %v1739_v51, %v1740_v2  ;;  %384 = vperm.xlu1 %8582, %v8972_v55   ;;  %v9051_v53 = vsel %vm699_vm1, %v692_v26, %v693_v39  ;;  %v9059_v56 = vsel %vm699_vm1, %v694_v46, %v695_v57  ;;  %369 = vperm.xlu0 %8581, %v8982_v3   ;;  %v805_v59 = vpop.permute.xlu0 %804 }
  0x9f   :  { %v2641_v54 = vmul.f32 %v9034_v38, %v1799_v23  ;;  %v9069_v18 = vsel %vm699_vm1, %v697_v13, %v698_v30  ;;  %v12262_v26 = vrot.slane %v8653_v1, 1  ;;  %v12263_v46 = vand.u32 127, %v8975_v61 }
  0xa0   :  { %v2642_v55 = vmul.f32 %v9034_v38, %v1806_v35  ;;  %v1736_v3 = vmax.f32 %v1734_v58, %v1735_v25  ;;  %v1742_v36 = vrot.slane %v1741_v62, 1  ;;  %v12266_v42 = vrot.slane %v8666_v9, 7 }
  0xa1   :  { %v9077_v39 = vsel %vm699_vm1, %v698_v30, %v12262_v26  ;;  %vm9081_vm6 = vcmp.lt.s32.totalorder %v12263_v46, 127  ;;  %v12267_v1 = vrot.slane %v8921_v41, 7  ;;  %v1813_v30 = vmax.f32 %v1811_v12, %v1812_v34  ;;  %v830_v2 = vpop.permute.xlu1 %829 }
  0xa2   :  { %v9095_v47 = vadd.f32 %v9042_v8, %v2640_v7  ;;  %v1749_v61 = vrot.slane %v1748_v11, 1  ;;  %v1755_v49 = vmax.f32 %v1753_v63, %v1754_v21  ;;  %v2773_v50 = vadd.f32 %v9042_v8, %v2641_v54  ;;  %566 = vperm.xlu1 %8582, %v8860_v17   ;;  %394 = vperm.xlu0 %8581, %v8990_v14  }
  0xa3   :  { %v9092_v44 = vsel %vm144_vm0, %v12267_v1, %v12266_v42  ;;  %v1743_v45 = vmax.f32 %v1741_v62, %v1742_v36  ;;  %v12268_v51 = vrot.slane %v8916_v40, 7  ;;  %v12269_v52 = vrot.slane %v8896_v32, 7  ;;  %v815_v1 = vpop.permute.xlu0 %814 }
  0xa4   :  { %v795_v7 = vsel %vm9081_vm6, %v9077_v39, 0.0  ;;  %v410_v34 = vmul.f32 %v8870_v20, %v8950_v5  ;;  %v607_v63 = vmul.f32 %v8885_v27, %v9008_v28  ;;  %v604_v17 = vmul.f32 %v8885_v27, %v9010_v29 }
  0xa5   :  { %v9105_v0 = vsel %vm144_vm0, %v12269_v52, %v12268_v51  ;;  %v12270_v60 = vrot.slane %v8916_v40, 1  ;;  %v2774_v58 = vadd.f32 %v9042_v8, %v2642_v55  ;;  %v2632_v5 = vmul.f32 %v9034_v38, %v1736_v3 }
  0xa6   :  { %v2633_v28 = vmul.f32 %v9034_v38, %v1743_v45  ;;  %v407_v29 = vmul.f32 %v8870_v20, %v8952_v6  ;;  %v9131_v14 = vmul.f32 %v9034_v38, %v1813_v30  ;;  %v1750_v23 = vmax.f32 %v1748_v11, %v1749_v61  ;;  %591 = vperm.xlu1 %8582, %v8921_v41  }
  0xa7   :  { %v9123_v12 = vsel %vm699_vm1, %v12270_v60, %v697_v13  ;;  %v1756_v35 = vrot.slane %v1755_v49, 1  ;;  %v7756_v25 = vclamps-f32 %v2773_v50, 1.0  ;;  %v639_v13 = vadd.f32 %v607_v63, %v410_v34  ;;  %581 = vperm.xlu0 %8581, %v8896_v32  }
  0xa8   :  { %v412_v62 = vmul.f32 %v8870_v20, %v9022_v19  ;;  %v609_v54 = vmul.f32 %v8885_v27, %v9029_v15  ;;  %v636_v26 = vadd.f32 %v604_v17, %v407_v29  ;;  %v965_v6 = vmul.f32 %v8927_v43, %v820_v24 }
  0xa9   :  { %v962_v46 = vmul.f32 %v8927_v43, %v805_v59  ;;  %v967_v55 = vmul.f32 %v8927_v43, %v830_v2  ;;  %v7757_v11 = vclamps-f32 %v2774_v58, 1.0  ;;  %v9144_v3 = vadd.f32 %v9042_v8, %v2632_v5 }
  0xaa   :  { %v9147_v19 = vadd.f32 %v9042_v8, %v2633_v28  ;;  %v641_v36 = vadd.f32 %v609_v54, %v412_v62  ;;  %v9149_v15 = vmax.f32 %v1755_v49, %v1756_v35  ;;  %v9152_v41 = vmul.f32 %v9034_v38, %v1750_v23  ;;  %576 = vperm.xlu1 %8582, %v8891_v31  }
  0xab   :  { %v997_v24 = vadd.f32 %v965_v6, %v639_v13  ;;  %v994_v42 = vadd.f32 %v962_v46, %v636_v26  ;;  %v9154_v30 = vrot.slane %v7756_v25, 7  ;;  %v409_v32 = vmul.f32 %v8870_v20, %v9027_v48  ;;  %379 = vperm.xlu0 %8581, %v8994_v16  }
  0xac   :  { %v606_v61 = vmul.f32 %v8885_v27, %v457_v22  ;;  %v999_v50 = vadd.f32 %v967_v55, %v641_v36  ;;  %v9163_v34 = vrot.slane %v7757_v11, 6  ;;  %v964_v48 = vmul.f32 %v8927_v43, %v815_v1  ;;  %v270_v1 = vpop.permute.xlu0 %269 }
  0xad   :  { %v1125_v45 = vcombine.high %v997_v24, %v997_v24  ;;  %v1132_v49 = vrot.slane %v997_v24, %v8899_v33  ;;  %v1074_v51 = vcombine.high %v994_v42, %v994_v42  ;;  %v1081_v52 = vrot.slane %v994_v42, %v8899_v33  ;;  %v285_v42 = vpop.permute.xlu1 %284 }
  0xae   :  { %v638_v58 = vadd.f32 %v606_v61, %v409_v32  ;;  %939 = vperm.xlu1 %8582, %v9002_v4   ;;  %v1159_v35 = vcombine.high %v999_v50, %v999_v50  ;;  %vm5548_vm6 = vcmask 130048  }
  0xaf   :  { %v1139_v22 = vrot.slane %v1125_v45, %v8899_v33  ;;  %v1140_v59 = vcombine.high %v1132_v49, %v1132_v49  ;;  %v1842_v31 = vsel %vm1729_vm5, %v1132_v49, -inf  ;;  %v1088_v60 = vrot.slane %v1074_v51, %v8899_v33  ;;  %924 = vperm.xlu0 %8581, %v9051_v53  }
  0xb0   :  { %v1843_v5 = vrot.slane %v1842_v31, 4  ;;  %v1089_v28 = vcombine.high %v1081_v52, %v1081_v52  ;;  %v1758_v16 = vsel %vm1729_vm5, %v1081_v52, -inf  ;;  %v1166_v45 = vrot.slane %v999_v50, %v8899_v33 }
  0xb1   :  { %v1141_v29 = vcombine.high %v1139_v22, %v1139_v22  ;;  %v1849_v2 = vsel %vm1729_vm5, %v1140_v59, -inf  ;;  %v1856_v23 = vsel %vm1729_vm5, %v1139_v22, -inf  ;;  %v1759_v54 = vrot.slane %v1758_v16, 4 }
  0xb2   :  { %v1844_v25 = vmax.f32 %v1842_v31, %v1843_v5  ;;  %v1850_v13 = vrot.slane %v1849_v2, 4  ;;  %v1857_v62 = vrot.slane %v1856_v23, 4  ;;  %v1090_v6 = vcombine.high %v1088_v60, %v1088_v60  ;;  %934 = vperm.xlu1 %8582, %v9059_v56  }
  0xb3   :  { %v1863_v26 = vsel %vm1729_vm5, %v1141_v29, -inf  ;;  %v1765_v46 = vsel %vm1729_vm5, %v1089_v28, -inf  ;;  %v1772_v55 = vsel %vm1729_vm5, %v1088_v60, -inf  ;;  %v1760_v53 = vmax.f32 %v1758_v16, %v1759_v54  ;;  %949 = vperm.xlu0 %8581, %v9069_v18  }
  0xb4   :  { %v1845_v4 = vrot.slane %v1844_v25, 2  ;;  %v1851_v11 = vmax.f32 %v1849_v2, %v1850_v13  ;;  %v1858_v36 = vmax.f32 %v1856_v23, %v1857_v62  ;;  %v1864_v24 = vrot.slane %v1863_v26, 4 }
  0xb5   :  { %v1766_v32 = vrot.slane %v1765_v46, 4  ;;  %v1773_v61 = vrot.slane %v1772_v55, 4  ;;  %v1761_v59 = vrot.slane %v1760_v53, 2  ;;  %v1779_v5 = vsel %vm1729_vm5, %v1090_v6, -inf  ;;  %v467_v6 = vpop.permute.xlu0 %466 }
  0xb6   :  { %v1846_v49 = vmax.f32 %v1844_v25, %v1845_v4  ;;  %v1852_v51 = vrot.slane %v1851_v11, 2  ;;  %v1859_v52 = vrot.slane %v1858_v36, 2  ;;  %v1865_v22 = vmax.f32 %v1863_v26, %v1864_v24  ;;  %399 = vperm.xlu1 %8582, %v9092_v44   ;;  %v482_v26 = vpop.permute.xlu1 %481 }
  0xb7   :  { %v1767_v31 = vmax.f32 %v1765_v46, %v1766_v32  ;;  %v1774_v60 = vmax.f32 %v1772_v55, %v1773_v61  ;;  %v1762_v16 = vmax.f32 %v1760_v53, %v1761_v59  ;;  %v1173_v50 = vrot.slane %v1159_v35, %v8899_v33  ;;  %389 = vperm.xlu0 %8581, %v9105_v0  }
  0xb8   :  { %v1847_v28 = vrot.slane %v1846_v49, 1  ;;  %v1853_v29 = vmax.f32 %v1851_v11, %v1852_v51  ;;  %v1860_v2 = vmax.f32 %v1858_v36, %v1859_v52  ;;  %v1866_v56 = vrot.slane %v1865_v22, 2 }
  0xb9   :  { %v996_v23 = vadd.f32 %v964_v48, %v638_v58  ;;  %v9186_v18 = vmul.f32 %v8870_v20, %v285_v42  ;;  %v1768_v54 = vrot.slane %v1767_v31, 2  ;;  %v1775_v46 = vrot.slane %v1774_v60, 2 }
  0xba   :  { %v1854_v25 = vrot.slane %v1853_v29, 1  ;;  %v1861_v13 = vrot.slane %v1860_v2, 1  ;;  %v1867_v62 = vmax.f32 %v1865_v22, %v1866_v56  ;;  %v1780_v55 = vrot.slane %v1779_v5, 4  ;;  %596 = vperm.xlu1 %8582, %v8666_v9  }
  0xbb   :  { %v1174_v4 = vcombine.high %v1166_v45, %v1166_v45  ;;  %v9190_v44 = vmul.f32 %v8870_v20, %v270_v1  ;;  %v1848_v11 = vmax.f32 %v1846_v49, %v1847_v28  ;;  %v1763_v58 = vrot.slane %v1762_v16, 1  ;;  %586 = vperm.xlu0 %8581, %v8916_v40   ;;  %v9224_v28 = vpop.permute.xlu1 %294 }
  0xbc   :  { %v1855_v35 = vmax.f32 %v1853_v29, %v1854_v25  ;;  %v1862_v48 = vmax.f32 %v1860_v2, %v1861_v13  ;;  %v1175_v36 = vcombine.high %v1173_v50, %v1173_v50  ;;  %v9194_v0 = vmul.f32 %v8885_v27, %v482_v26  ;;  %v9233_v26 = vpop.permute.xlu0 %279 }
  0xbd   :  { %v9197_v24 = vmul.f32 %v8885_v27, %v467_v6  ;;  %v9202_v42 = vmul.f32 %v9034_v38, %v9149_v15  ;;  %v1868_v1 = vrot.slane %v1867_v62, 1  ;;  %v9204_v53 = vmax.f32 %v1767_v31, %v1768_v54 }
  0xbe   :  { %v1108_v32 = vcombine.high %v996_v23, %v996_v23  ;;  %v1115_v61 = vrot.slane %v996_v23, %v8899_v33  ;;  %v9207_v9 = vmax.f32 %v1774_v60, %v1775_v46  ;;  %v9209_v49 = vmax.f32 %v1779_v5, %v1780_v55  ;;  %954 = vperm.xlu1 %8582, %v795_v7  }
  0xbf   :  { %v1898_v51 = vsel %vm1729_vm5, %v1166_v45, -inf  ;;  %v1905_v52 = vsel %vm1729_vm5, %v1174_v4, -inf  ;;  %v2648_v40 = vmul.f32 %v9034_v38, %v1848_v11  ;;  %v2649_v22 = vmul.f32 %v9034_v38, %v1855_v35  ;;  %944 = vperm.xlu0 %8581, %v9123_v12  }
  0xc0   :  { %v2650_v15 = vmul.f32 %v9034_v38, %v1862_v48  ;;  %v9216_v59 = vmax.f32 %v1762_v16, %v1763_v58  ;;  %v1899_v31 = vrot.slane %v1898_v51, 4  ;;  %v1906_v60 = vrot.slane %v1905_v52, 4 }
  0xc1   :  { %v1912_v5 = vsel %vm1729_vm5, %v1173_v50, -inf  ;;  %v1919_v45 = vsel %vm1729_vm5, %v1175_v36, -inf  ;;  %v9227_v29 = vmax.f32 %v1867_v62, %v1868_v1  ;;  %v1770_v2 = vrot.slane %v9204_v53, 1 }
  0xc2   :  { %v1913_v56 = vrot.slane %v1912_v5, 4  ;;  %v1920_v16 = vrot.slane %v1919_v45, 4  ;;  %v1900_v57 = vmax.f32 %v1898_v51, %v1899_v31  ;;  %v1907_v23 = vmax.f32 %v1905_v52, %v1906_v60 }
  0xc3   :  { %v1122_v39 = vrot.slane %v1108_v32, %v8899_v33  ;;  %v1123_v7 = vcombine.high %v1115_v61, %v1115_v61  ;;  %v2781_v25 = vadd.f32 %v9042_v8, %v2649_v22  ;;  %v2782_v50 = vadd.f32 %v9042_v8, %v2650_v15  ;;  %v492_v32 = vpop.permute.xlu1 %491 }
  0xc4   :  { %v1914_v13 = vmax.f32 %v1912_v5, %v1913_v56  ;;  %v1921_v54 = vmax.f32 %v1919_v45, %v1920_v16  ;;  %v1901_v12 = vrot.slane %v1900_v57, 2  ;;  %v1908_v62 = vrot.slane %v1907_v23, 2 }
  0xc5   :  { %v1124_v6 = vcombine.high %v1122_v39, %v1122_v39  ;;  %v1814_v46 = vsel %vm1729_vm5, %v1115_v61, -inf  ;;  %v1821_v35 = vsel %vm1729_vm5, %v1123_v7, -inf  ;;  %v1828_v1 = vsel %vm1729_vm5, %v1122_v39, -inf  ;;  %v477_v7 = vpop.permute.xlu0 %476 }
  0xc6   :  { %v1915_v55 = vrot.slane %v1914_v13, 2  ;;  %v1922_v4 = vrot.slane %v1921_v54, 2  ;;  %v1815_v11 = vrot.slane %v1814_v46, 4  ;;  %v1902_v48 = vmax.f32 %v1900_v57, %v1901_v12 }
  0xc7   :  { %v1909_v58 = vmax.f32 %v1907_v23, %v1908_v62  ;;  %v1822_v36 = vrot.slane %v1821_v35, 4  ;;  %v1829_v15 = vrot.slane %v1828_v1, 4  ;;  %v1835_v61 = vsel %vm1729_vm5, %v1124_v6, -inf }
  0xc8   :  { %v1916_v51 = vmax.f32 %v1914_v13, %v1915_v55  ;;  %v1923_v52 = vmax.f32 %v1921_v54, %v1922_v4  ;;  %v1816_v22 = vmax.f32 %v1814_v46, %v1815_v11  ;;  %v1903_v31 = vrot.slane %v1902_v48, 1 }
  0xc9   :  { %v1910_v60 = vrot.slane %v1909_v58, 1  ;;  %v1823_v5 = vmax.f32 %v1821_v35, %v1822_v36  ;;  %v1830_v21 = vmax.f32 %v1828_v1, %v1829_v15  ;;  %v1836_v62 = vrot.slane %v1835_v61, 4  ;;  %v840_v35 = vpop.permute.xlu1 %839 }
  0xca   :  { %v1917_v45 = vrot.slane %v1916_v51, 1  ;;  %v1924_v56 = vrot.slane %v1923_v52, 1  ;;  %v1817_v16 = vrot.slane %v1816_v22, 2  ;;  %v1904_v57 = vmax.f32 %v1902_v48, %v1903_v31 }
  0xcb   :  { %v1911_v23 = vmax.f32 %v1909_v58, %v1910_v60  ;;  %v1824_v12 = vrot.slane %v1823_v5, 2  ;;  %v9240_v39 = vadd.f32 %v9042_v8, %v2648_v40  ;;  %v1831_v46 = vrot.slane %v1830_v21, 2 }
  0xcc   :  { %v1918_v13 = vmax.f32 %v1916_v51, %v1917_v45  ;;  %v1818_v54 = vmax.f32 %v1816_v22, %v1817_v16  ;;  %v2656_v55 = vmul.f32 %v9034_v38, %v1904_v57  ;;  %v1837_v11 = vmax.f32 %v1835_v61, %v1836_v62 }
  0xcd   :  { %v2657_v4 = vmul.f32 %v9034_v38, %v1911_v23  ;;  %v1825_v6 = vmax.f32 %v1823_v5, %v1824_v12  ;;  %v7764_v36 = vclamps-f32 %v2781_v25, 1.0  ;;  %v7765_v1 = vclamps-f32 %v2782_v50, 1.0  ;;  %v825_v50 = vpop.permute.xlu0 %824  ;;  %v850_v62 = vpop.permute.xlu1 %849 }
  0xce   :  { %v2658_v48 = vmul.f32 %v9034_v38, %v1918_v13  ;;  %v1832_v58 = vmax.f32 %v1830_v21, %v1831_v46  ;;  %v1925_v31 = vmax.f32 %v1923_v52, %v1924_v56  ;;  %v1819_v51 = vrot.slane %v1818_v54, 1 }
  0xcf   :  { %v2789_v40 = vadd.f32 %v9042_v8, %v2657_v4  ;;  %v9248_v22 = vmax.f32 %v9204_v53, %v1770_v2  ;;  %v9252_v5 = vadd.f32 %v9042_v8, %v2656_v55  ;;  %v9257_v21 = vmul.f32 %v9034_v38, %v9227_v29 }
  0xd0   :  { %v2790_v25 = vadd.f32 %v9042_v8, %v2658_v48  ;;  %v9261_v52 = vmul.f32 %v9034_v38, %v9216_v59  ;;  %v1826_v61 = vrot.slane %v1825_v6, 1  ;;  %v1838_v45 = vrot.slane %v1837_v11, 2 }
  0xd1   :  { %12271 = vst [vmem:[#allocation7_spill] sm:$0xff] %v9252_v5  ;;  %v9264_v2 = vrot.slane %v7764_v36, 7  ;;  %v9266_v56 = vrot.slane %v7765_v1, 6  ;;  %v1833_v16 = vrot.slane %v1832_v58, 1  ;;  %v9269_v57 = vmul.f32 %v9034_v38, %v1925_v31  ;;  %v305_v10 = vpop.permute.xlu1 %304 }
  0xd2   :  { %v7772_v23 = vclamps-f32 %v2789_v40, 1.0  ;;  %v1820_v12 = vmax.f32 %v1818_v54, %v1819_v51  ;;  %v643_v29 = vadd.f32 %v9194_v0, %v9186_v18  ;;  %v7773_v13 = vclamps-f32 %v2790_v25, 1.0 }
  0xd3   :  { %12272 = vst [vmem:[#allocation8_spill] sm:$0xff] %v9266_v56  ;;  %12273 = vst [vmem:[#allocation9_spill] sm:$0xff] %v9269_v57  ;;  %v613_v46 = vmul.f32 %v8885_v27, %v492_v32  ;;  %v969_v55 = vmul.f32 %v8927_v43, %v840_v35  ;;  %v9276_v4 = vmax.f32 %v1825_v6, %v1826_v61  ;;  %v835_v32 = vpop.permute.xlu0 %834 }
  0xd4   :  { %v9278_v36 = vmax.f32 %v1837_v11, %v1838_v45  ;;  %v640_v1 = vadd.f32 %v9197_v24, %v9190_v44  ;;  %v966_v54 = vmul.f32 %v8927_v43, %v825_v50  ;;  %v9283_v48 = vmax.f32 %v1832_v58, %v1833_v16 }
  0xd5   :  { %v416_v18 = vmul.f32 %v8870_v20, %v9224_v28  ;;  %v1001_v0 = vadd.f32 %v969_v55, %v643_v29  ;;  %v971_v31 = vmul.f32 %v8927_v43, %v850_v62  ;;  %v9288_v40 = vrot.slane %v7772_v23, 7 }
  0xd6   :  { %v2644_v6 = vmul.f32 %v9034_v38, %v1820_v12  ;;  %v413_v11 = vmul.f32 %v8870_v20, %v9233_v26  ;;  %v998_v35 = vadd.f32 %v966_v54, %v640_v1  ;;  %v9293_v44 = vrot.slane %v7773_v13, 6 }
  0xd7   :  { %12274 = vst [vmem:[#allocation10_spill] sm:$0xff] %v9288_v40  ;;  %v645_v24 = vadd.f32 %v613_v46, %v416_v18  ;;  %v1193_v58 = vcombine.high %v1001_v0, %v1001_v0  ;;  %v1200_v51 = vrot.slane %v1001_v0, %v8899_v33  ;;  %v610_v28 = vmul.f32 %v8885_v27, %v477_v7 }
  0xd8   :  { %12275 = vst [vmem:[#allocation11_spill] sm:$0xff] %v9293_v44  ;;  %v1142_v25 = vcombine.high %v998_v35, %v998_v35  ;;  %v1149_v50 = vrot.slane %v998_v35, %v8899_v33  ;;  %v968_v61 = vmul.f32 %v8927_v43, %v835_v32 }
  0xd9   :  { %v1207_v45 = vrot.slane %v1193_v58, %v8899_v33  ;;  %v1208_v16 = vcombine.high %v1200_v51, %v1200_v51  ;;  %v1954_v23 = vsel %vm1729_vm5, %v1200_v51, -inf  ;;  %v9301_v26 = vadd.f32 %v971_v31, %v645_v24 }
  0xda   :  { %v1955_v12 = vrot.slane %v1954_v23, 4  ;;  %v1156_v29 = vrot.slane %v1142_v25, %v8899_v33  ;;  %v1157_v62 = vcombine.high %v1149_v50, %v1149_v50  ;;  %v1870_v13 = vsel %vm1729_vm5, %v1149_v50, -inf }
  0xdb   :  { %v1209_v46 = vcombine.high %v1207_v45, %v1207_v45  ;;  %v1961_v27 = vsel %vm1729_vm5, %v1208_v16, -inf  ;;  %v1968_v7 = vsel %vm1729_vm5, %v1207_v45, -inf  ;;  %v1871_v55 = vrot.slane %v1870_v13, 4 }
  0xdc   :  { %v1956_v43 = vmax.f32 %v1954_v23, %v1955_v12  ;;  %v1962_v1 = vrot.slane %v1961_v27, 4  ;;  %v1969_v54 = vrot.slane %v1968_v7, 4  ;;  %v1158_v18 = vcombine.high %v1156_v29, %v1156_v29 }
  0xdd   :  { %v1975_v0 = vsel %vm1729_vm5, %v1209_v46, -inf  ;;  %v1872_v31 = vmax.f32 %v1870_v13, %v1871_v55  ;;  %v1877_v32 = vsel %vm1729_vm5, %v1157_v62, -inf  ;;  %v1884_v35 = vsel %vm1729_vm5, %v1156_v29, -inf }
  0xde   :  { %v1957_v24 = vrot.slane %v1956_v43, 2  ;;  %v1963_v58 = vmax.f32 %v1961_v27, %v1962_v1  ;;  %v1970_v51 = vmax.f32 %v1968_v7, %v1969_v54  ;;  %v1976_v25 = vrot.slane %v1975_v0, 4 }
  0xdf   :  { %v1873_v50 = vrot.slane %v1872_v31, 2  ;;  %v1878_v16 = vrot.slane %v1877_v32, 4  ;;  %v1885_v59 = vrot.slane %v1884_v35, 4  ;;  %v1891_v45 = vsel %vm1729_vm5, %v1158_v18, -inf }
  0xe0   :  { %v1958_v23 = vmax.f32 %v1956_v43, %v1957_v24  ;;  %v1964_v12 = vrot.slane %v1963_v58, 2  ;;  %v1971_v53 = vrot.slane %v1970_v51, 2  ;;  %v1977_v63 = vmax.f32 %v1975_v0, %v1976_v25  ;;  %v290_v0 = vpop.permute.xlu0 %289 }
  0xe1   :  { %v1874_v17 = vmax.f32 %v1872_v31, %v1873_v50  ;;  %v1879_v46 = vmax.f32 %v1877_v32, %v1878_v16  ;;  %v1886_v13 = vmax.f32 %v1884_v35, %v1885_v59  ;;  %v1892_v55 = vrot.slane %v1891_v45, 4 }
  0xe2   :  { %v1959_v62 = vrot.slane %v1958_v23, 1  ;;  %v1965_v15 = vmax.f32 %v1963_v58, %v1964_v12  ;;  %v1972_v29 = vmax.f32 %v1970_v51, %v1971_v53  ;;  %v1978_v60 = vrot.slane %v1977_v63, 2 }
  0xe3   :  { %v9312_v27 = vadd.f32 %v9042_v8, %v2644_v6  ;;  %v642_v7 = vadd.f32 %v610_v28, %v413_v11  ;;  %v1880_v1 = vrot.slane %v1879_v46, 2  ;;  %v1887_v54 = vrot.slane %v1886_v13, 2 }
  0xe4   :  { %v1966_v37 = vrot.slane %v1965_v15, 1  ;;  %v1973_v18 = vrot.slane %v1972_v29, 1  ;;  %v1979_v43 = vmax.f32 %v1977_v63, %v1978_v60  ;;  %v1875_v24 = vrot.slane %v1874_v17, 1 }
  0xe5   :  { %v1960_v31 = vmax.f32 %v1958_v23, %v1959_v62  ;;  %v9314_v32 = vmax.f32 %v1891_v45, %v1892_v55  ;;  %v1227_v59 = vcombine.high %v9301_v26, %v9301_v26  ;;  %v1000_v53 = vadd.f32 %v968_v61, %v642_v7 }
  0xe6   :  { %v1967_v35 = vmax.f32 %v1965_v15, %v1966_v37  ;;  %v1974_v58 = vmax.f32 %v1972_v29, %v1973_v18  ;;  %v9318_v6 = vmax.f32 %v1879_v46, %v1880_v1  ;;  %v9320_v11 = vmax.f32 %v1886_v13, %v1887_v54 }
  0xe7   :  { %v1234_v28 = vrot.slane %v9301_v26, %v8899_v33  ;;  %v9325_v63 = vmul.f32 %v8870_v20, %v305_v10  ;;  %v9328_v60 = vmul.f32 %v8870_v20, %v290_v0  ;;  %v12276_v51 = vrot.slane %v9207_v9, 1 }
  0xe8   :  { %v1980_v37 = vrot.slane %v1979_v43, 1  ;;  %v1876_v15 = vmax.f32 %v1874_v17, %v1875_v24  ;;  %v12277_v61 = vrot.slane %v9209_v49, 2  ;;  %v9342_v26 = vmul.f32 %v9034_v38, %v9248_v22 }
  0xe9   :  { %v9333_v25 = vmax.f32 %v9207_v9, %v12276_v51  ;;  %v2664_v10 = vmul.f32 %v9034_v38, %v1960_v31  ;;  %v1241_v16 = vrot.slane %v1227_v59, %v8899_v33  ;;  %v1176_v45 = vcombine.high %v1000_v53, %v1000_v53 }
  0xea   :  { %v9338_v50 = vmax.f32 %v9209_v49, %v12277_v61  ;;  %v2665_v9 = vmul.f32 %v9034_v38, %v1967_v35  ;;  %v2666_v17 = vmul.f32 %v9034_v38, %v1974_v58  ;;  %v1882_v23 = vrot.slane %v9318_v6, 1 }
  0xeb   :  { %v1242_v12 = vcombine.high %v1234_v28, %v1234_v28  ;;  %v1243_v46 = vcombine.high %v1241_v16, %v1241_v16  ;;  %v2010_v22 = vsel %vm1729_vm5, %v1234_v28, -inf  ;;  %v2024_v13 = vsel %vm1729_vm5, %v1241_v16, -inf }
  0xec   :  { %v1981_v55 = vmax.f32 %v1979_v43, %v1980_v37  ;;  %v2652_v62 = vmul.f32 %v9034_v38, %v1876_v15  ;;  %v2011_v29 = vrot.slane %v2010_v22, 4  ;;  %v2025_v7 = vrot.slane %v2024_v13, 4 }
  0xed   :  { %v2017_v1 = vsel %vm1729_vm5, %v1242_v12, -inf  ;;  %v2031_v54 = vsel %vm1729_vm5, %v1243_v46, -inf  ;;  %v1183_v18 = vrot.slane %v1000_v53, %v8899_v33  ;;  %v1190_v24 = vrot.slane %v1176_v45, %v8899_v33 }
  0xee   :  { %v2797_v0 = vadd.f32 %v9042_v8, %v2665_v9  ;;  %v2798_v31 = vadd.f32 %v9042_v8, %v2666_v17  ;;  %v2012_v59 = vmax.f32 %v2010_v22, %v2011_v29  ;;  %v2018_v35 = vrot.slane %v2017_v1, 4 }
  0xef   :  { %v2026_v58 = vmax.f32 %v2024_v13, %v2025_v7  ;;  %v2032_v43 = vrot.slane %v2031_v54, 4  ;;  %v1191_v28 = vcombine.high %v1183_v18, %v1183_v18  ;;  %v1192_v51 = vcombine.high %v1190_v24, %v1190_v24 }
  0xf0   :  { %v2013_v37 = vrot.slane %v2012_v59, 2  ;;  %v2019_v15 = vmax.f32 %v2017_v1, %v2018_v35  ;;  %v1926_v61 = vsel %vm1729_vm5, %v1183_v18, -inf  ;;  %v1940_v16 = vsel %vm1729_vm5, %v1190_v24, -inf }
  0xf1   :  { %v2027_v12 = vrot.slane %v2026_v58, 2  ;;  %v2033_v53 = vmax.f32 %v2031_v54, %v2032_v43  ;;  %v1927_v46 = vrot.slane %v1926_v61, 4  ;;  %v1933_v45 = vsel %vm1729_vm5, %v1191_v28, -inf }
  0xf2   :  { %v2014_v9 = vmax.f32 %v2012_v59, %v2013_v37  ;;  %v2020_v49 = vrot.slane %v2019_v15, 2  ;;  %v1934_v17 = vrot.slane %v1933_v45, 4  ;;  %v1941_v22 = vrot.slane %v1940_v16, 4 }
  0xf3   :  { %v2028_v29 = vmax.f32 %v2026_v58, %v2027_v12  ;;  %v2034_v13 = vrot.slane %v2033_v53, 2  ;;  %v1928_v7 = vmax.f32 %v1926_v61, %v1927_v46  ;;  %v1947_v20 = vsel %vm1729_vm5, %v1192_v51, -inf }
  0xf4   :  { %v2015_v44 = vrot.slane %v2014_v9, 1  ;;  %v2021_v1 = vmax.f32 %v2019_v15, %v2020_v49  ;;  %v1935_v35 = vmax.f32 %v1933_v45, %v1934_v17  ;;  %v1942_v18 = vmax.f32 %v1940_v16, %v1941_v22  ;;  %v9367_v15 = vpop.permute.xlu1 %501 }
  0xf5   :  { %v2029_v40 = vrot.slane %v2028_v29, 1  ;;  %v2035_v24 = vmax.f32 %v2033_v53, %v2034_v13  ;;  %v1929_v5 = vrot.slane %v1928_v7, 2  ;;  %v1948_v54 = vrot.slane %v1947_v20, 4 }
  0xf6   :  { %v2016_v43 = vmax.f32 %v2014_v9, %v2015_v44  ;;  %v2022_v57 = vrot.slane %v2021_v1, 1  ;;  %v1936_v28 = vrot.slane %v1935_v35, 2  ;;  %v1943_v59 = vrot.slane %v1942_v18, 2 }
  0xf7   :  { %v9365_v37 = vadd.f32 %v9042_v8, %v2664_v10  ;;  %v7780_v58 = vclamps-f32 %v2797_v0, 1.0  ;;  %v2030_v12 = vmax.f32 %v2028_v29, %v2029_v40  ;;  %v2036_v61 = vrot.slane %v2035_v24, 1  ;;  %v9380_v40 = vpop.permute.xlu0 %486 }
  0xf8   :  { %v7781_v46 = vclamps-f32 %v2798_v31, 1.0  ;;  %v2023_v51 = vmax.f32 %v2021_v1, %v2022_v57  ;;  %v1930_v56 = vmax.f32 %v1928_v7, %v1929_v5  ;;  %v1949_v49 = vmax.f32 %v1947_v20, %v1948_v54  ;;  %v9416_v54 = vpop.permute.xlu1 %314 }
  0xf9   :  { %v9370_v16 = vmax.f32 %v9318_v6, %v1882_v23  ;;  %v12278_v44 = vrot.slane %v9314_v32, 2  ;;  %v2672_v10 = vmul.f32 %v9034_v38, %v2016_v43  ;;  %v9378_v45 = vmax.f32 %v1935_v35, %v1936_v28 }
  0xfa   :  { %v9383_v57 = vmul.f32 %v9034_v38, %v1981_v55  ;;  %v12279_v5 = vrot.slane %v9320_v11, 1  ;;  %v9391_v6 = vadd.f32 %v9042_v8, %v2652_v62  ;;  %v9393_v23 = vmax.f32 %v1942_v18, %v1943_v59 }
  0xfb   :  { %v9375_v53 = vmax.f32 %v9314_v32, %v12278_v44  ;;  %v9396_v0 = vrot.slane %v7780_v58, 7  ;;  %v2037_v31 = vmax.f32 %v2035_v24, %v2036_v61  ;;  %v2674_v9 = vmul.f32 %v9034_v38, %v2030_v12  ;;  %v9427_v59 = vpop.permute.xlu0 %299 }
  0xfc   :  { %v9388_v20 = vmax.f32 %v9320_v11, %v12279_v5  ;;  %v9399_v55 = vrot.slane %v7781_v46, 6  ;;  %v2673_v11 = vmul.f32 %v9034_v38, %v2023_v51  ;;  %v1931_v17 = vrot.slane %v1930_v56, 1 }
  0xfd   :  { %v1950_v22 = vrot.slane %v1949_v49, 2  ;;  %v9403_v62 = vadd.f32 %v9042_v8, %v2672_v10  ;;  %v1938_v29 = vrot.slane %v9378_v45, 1  ;;  %v1784_v13 = vrot.slane %v9338_v50, 1 }
  0xfe   :  { %v2638_v7 = vmul.f32 %v9034_v38, %v9333_v25  ;;  %v1945_v1 = vrot.slane %v9393_v23, 1  ;;  %v2766_v35 = vadd.f32 %v9042_v8, %v9152_v41  ;;  %v2767_v18 = vadd.f32 %v9042_v8, %v9202_v42 }
  0xff   :  { %v2768_v24 = vadd.f32 %v9042_v8, %v9261_v52  ;;  %v9419_v43 = vmul.f32 %v9034_v38, %v2037_v31  ;;  %v9422_v25 = vadd.f32 %v9042_v8, %v2674_v9  ;;  %v1785_v28 = vmax.f32 %v9338_v50, %v1784_v13 }
 0x100   :  { %v2769_v41 = vadd.f32 %v9042_v8, %v9342_v26  ;;  %v1932_v42 = vmax.f32 %v1930_v56, %v1931_v17  ;;  %v2770_v52 = vadd.f32 %v9042_v8, %v2638_v7  ;;  %v7749_v58 = vclamps-f32 %v2766_v35, 1.0 }
 0x101   :  { %v7750_v12 = vclamps-f32 %v2767_v18, 1.0  ;;  %v2639_v61 = vmul.f32 %v9034_v38, %v1785_v28  ;;  %v7751_v46 = vclamps-f32 %v2768_v24, 1.0  ;;  %v12280_v44 = vclamps-f32 %v9147_v19, 1.0 }
 0x102   :  { %v7752_v51 = vclamps-f32 %v2769_v41, 1.0  ;;  %v9433_v5 = vmax.f32 %v1949_v49, %v1950_v22  ;;  %v7753_v50 = vclamps-f32 %v2770_v52, 1.0  ;;  %v3295_v31 = vrot.slane %v7749_v58, 6  ;;  %v512_v22 = vpop.permute.xlu1 %511  ;;  %v497_v52 = vpop.permute.xlu0 %496 }
 0x103   :  { %v3292_v10 = vrot.slane %v12280_v44, 7  ;;  %v3298_v26 = vrot.slane %v7750_v12, 5  ;;  %v2771_v9 = vadd.f32 %v9042_v8, %v2639_v61  ;;  %v12281_v56 = vclamps-f32 %v9144_v3, 1.0 }
 0x104   :  { %v3301_v13 = vrot.slane %v7751_v46, 4  ;;  %v3304_v7 = vrot.slane %v7752_v51, 3  ;;  %v9440_v35 = vadd.f32 %v9042_v8, %v2673_v11  ;;  %v3307_v49 = vrot.slane %v7753_v50, 2  ;;  %v9452_v11 = vld [vmem:[%s12221_s1 + $0x1] ss:$0 sm:$0xff] }
 0x105   :  { %v3294_v17 = vsel %vm3293_vm7, %v3292_v10, %v12281_v56  ;;  %v7754_v24 = vclamps-f32 %v2771_v9, 1.0  ;;  %v1840_v41 = vrot.slane %v9278_v36, 1  ;;  %v2645_v3 = vmul.f32 %v9034_v38, %v9276_v4 }
 0x106   :  { %v3297_v19 = vsel %vm3296_vm8, %v3295_v31, %v3294_v17  ;;  %v615_v12 = vmul.f32 %v9452_v11, %v9367_v15  ;;  %v2646_v61 = vmul.f32 %v9034_v38, %v9283_v48  ;;  %v2775_v46 = vadd.f32 %v9042_v8, %v9131_v14 }
 0x107   :  { %v3300_v28 = vsel %vm3299_vm10, %v3298_v26, %v3297_v19  ;;  %v3310_v4 = vrot.slane %v7754_v24, 1  ;;  %v1841_v44 = vmax.f32 %v9278_v36, %v1840_v41  ;;  %v2777_v10 = vadd.f32 %v9042_v8, %v2645_v3 }
 0x108   :  { %v3303_v58 = vsel %vm3302_vm9, %v3301_v13, %v3300_v28  ;;  %v2778_v31 = vadd.f32 %v9042_v8, %v2646_v61  ;;  %v7758_v26 = vclamps-f32 %v2775_v46, 1.0  ;;  %v7759_v15 = vclamps-f32 %v9312_v27, 1.0 }
 0x109   :  { %v3306_v51 = vsel %vm3305_vm11, %v3304_v7, %v3303_v58  ;;  %v2647_v48 = vmul.f32 %v9034_v38, %v1841_v44  ;;  %v7760_v14 = vclamps-f32 %v2777_v10, 1.0  ;;  %v12283_v56 = vclamps-f32 %v9095_v47, 1.0  ;;  %v860_v38 = vpop.permute.xlu1 %859 }
 0x10a   :  { %v3309_v50 = vsel %vm3308_vm12, %v3307_v49, %v3306_v51  ;;  %v9475_v17 = vmax.f32 %v9378_v45, %v1938_v29  ;;  %v612_v27 = vmul.f32 %v9452_v11, %v9380_v40  ;;  %v7761_v13 = vclamps-f32 %v2778_v31, 1.0  ;;  %v9493_v40 = vld [vmem:[%s12222_s2] ss:$0 sm:$0xff] }
 0x10b   :  { %v9467_v9 = vsel %vm3311_vm13, %v3310_v4, %v3309_v50  ;;  %v3314_v36 = vsel %vm3293_vm7, %v9154_v30, %v12283_v56  ;;  %v2779_v19 = vadd.f32 %v9042_v8, %v2647_v48  ;;  %v3317_v47 = vrot.slane %v7758_v26, 5  ;;  %v845_v30 = vpop.permute.xlu0 %844 }
 0x10c   :  { %12282 = vst [vmem:[#allocation12_spill] sm:$0xff] %v9467_v9  ;;  %8259 = vmatprep.mubr.msk.f32.mxu0 %vm3606_vm14, %v9467_v9  ;;  %v3316_v7 = vsel %vm3296_vm8, %v9163_v34, %v3314_v36  ;;  %v3319_v49 = vrot.slane %v7759_v15, 4  ;;  %v3321_v24 = vrot.slane %v7760_v14, 3  ;;  %v7789_v45 = vclamps-f32 %v9422_v25, 1.0  ;;  %v9501_v25 = vld [vmem:[%s12221_s1 + $0x2] ss:$0 sm:$0xff] }
 0x10d   :  { %v9488_v29 = vmax.f32 %v9393_v23, %v1945_v1  ;;  %v2660_v34 = vmul.f32 %v9493_v40, %v1932_v42  ;;  %v3323_v28 = vrot.slane %v7761_v13, 2  ;;  %v647_v41 = vadd.f32 %v615_v12, %v9325_v63  ;;  %v870_v31 = vpop.permute.xlu1 %869 }
 0x10e   :  { %v7762_v3 = vclamps-f32 %v2779_v19, 1.0  ;;  %v3318_v58 = vsel %vm3299_vm10, %v3317_v47, %v3316_v7  ;;  %v973_v23 = vmul.f32 %v9501_v25, %v860_v38  ;;  %v644_v1 = vadd.f32 %v612_v27, %v9328_v60  ;;  %v9516_v60 = vld [vmem:[%s12221_s1] ss:$0 sm:$0xff] }
 0x10f   :  { %v3320_v61 = vsel %vm3302_vm9, %v3319_v49, %v3318_v58  ;;  %v617_v46 = vmul.f32 %v9452_v11, %v512_v22  ;;  %v970_v42 = vmul.f32 %v9501_v25, %v845_v30  ;;  %v7788_v63 = vclamps-f32 %v9440_v35, 1.0 }
 0x110   :  { %v3322_v12 = vsel %vm3305_vm11, %v3321_v24, %v3320_v61  ;;  %v3325_v51 = vrot.slane %v7762_v3, 1  ;;  %v1005_v4 = vadd.f32 %v973_v23, %v647_v41  ;;  %v9510_v44 = vrot.slane %v7789_v45, 6 }
 0x111   :  { %v3324_v10 = vsel %vm3308_vm12, %v3323_v28, %v3322_v12  ;;  %v420_v22 = vmul.f32 %v9516_v60, %v9416_v54  ;;  %v1002_v50 = vadd.f32 %v970_v42, %v644_v1  ;;  %v9521_v26 = vadd.f32 %v9042_v8, %v2660_v34 }
 0x112   :  { %12284 = vst [vmem:[#allocation13_spill] sm:$0xff] %v9510_v44  ;;  %v9524_v15 = vsel %vm3311_vm13, %v3325_v51, %v3324_v10  ;;  %v1261_v48 = vcombine.high %v1005_v4, %v1005_v4  ;;  %v1268_v14 = vrot.slane %v1005_v4, %v8899_v33  ;;  %v614_v36 = vmul.f32 %v9452_v11, %v497_v52 }
 0x113   :  { %12285 = vst [vmem:[#allocation14_spill] sm:$0xff] %v9524_v15  ;;  %8260 = vmatmul.mubr.msk.f32.vlgmr.msra.gmra.mrb[0].mxu0 %vm3606_vm14, %v9524_v15  ;;  %v649_v56 = vadd.f32 %v617_v46, %v420_v22  ;;  %v1210_v27 = vcombine.high %v1002_v50, %v1002_v50  ;;  %v1217_v54 = vrot.slane %v1002_v50, %v8899_v33 }
 0x114   :  { %v1275_v13 = vrot.slane %v1261_v48, %v8899_v33  ;;  %v1276_v7 = vcombine.high %v1268_v14, %v1268_v14  ;;  %v2066_v8 = vsel %vm1729_vm5, %v1268_v14, -inf  ;;  %v975_v38 = vmul.f32 %v9501_v25, %v870_v31 }
 0x115   :  { %v2067_v19 = vrot.slane %v2066_v8, 4  ;;  %v1224_v47 = vrot.slane %v1210_v27, %v8899_v33  ;;  %v1225_v49 = vcombine.high %v1217_v54, %v1217_v54  ;;  %v1982_v24 = vsel %vm1729_vm5, %v1217_v54, -inf }
 0x116   :  { %v1277_v30 = vcombine.high %v1275_v13, %v1275_v13  ;;  %v2073_v45 = vsel %vm1729_vm5, %v1276_v7, -inf  ;;  %v2080_v52 = vsel %vm1729_vm5, %v1275_v13, -inf  ;;  %v1983_v34 = vrot.slane %v1982_v24, 4 }
 0x117   :  { %v2068_v28 = vmax.f32 %v2066_v8, %v2067_v19  ;;  %v2074_v41 = vrot.slane %v2073_v45, 4  ;;  %v2081_v3 = vrot.slane %v2080_v52, 4  ;;  %v1226_v58 = vcombine.high %v1224_v47, %v1224_v47 }
 0x118   :  { %v2087_v23 = vsel %vm1729_vm5, %v1277_v30, -inf  ;;  %v1984_v1 = vmax.f32 %v1982_v24, %v1983_v34  ;;  %v1989_v61 = vsel %vm1729_vm5, %v1225_v49, -inf  ;;  %v1996_v46 = vsel %vm1729_vm5, %v1224_v47, -inf }
 0x119   :  { %v2069_v42 = vrot.slane %v2068_v28, 2  ;;  %v2075_v12 = vmax.f32 %v2073_v45, %v2074_v41  ;;  %v2082_v51 = vmax.f32 %v2080_v52, %v2081_v3  ;;  %v2088_v4 = vrot.slane %v2087_v23, 4 }
 0x11a   :  { %v1985_v10 = vrot.slane %v1984_v1, 2  ;;  %v1990_v22 = vrot.slane %v1989_v61, 4  ;;  %v1997_v50 = vrot.slane %v1996_v46, 4  ;;  %v2003_v31 = vsel %vm1729_vm5, %v1226_v58, -inf }
 0x11b   :  { %v2070_v48 = vmax.f32 %v2068_v28, %v2069_v42  ;;  %v2076_v14 = vrot.slane %v2075_v12, 2  ;;  %v2083_v27 = vrot.slane %v2082_v51, 2  ;;  %v2089_v54 = vmax.f32 %v2087_v23, %v2088_v4  ;;  %v855_v28 = vpop.permute.xlu0 %854  ;;  %v325_v42 = vpop.permute.xlu1 %324 }
 0x11c   :  { %v1986_v13 = vmax.f32 %v1984_v1, %v1985_v10  ;;  %v1991_v7 = vmax.f32 %v1989_v61, %v1990_v22  ;;  %v1998_v8 = vmax.f32 %v1996_v46, %v1997_v50  ;;  %v2004_v19 = vrot.slane %v2003_v31, 4 }
 0x11d   :  { %v2071_v49 = vrot.slane %v2070_v48, 1  ;;  %v2077_v24 = vmax.f32 %v2075_v12, %v2076_v14  ;;  %v2084_v47 = vmax.f32 %v2082_v51, %v2083_v27  ;;  %v2090_v30 = vrot.slane %v2089_v54, 2 }
 0x11e   :  { %v1992_v45 = vrot.slane %v1991_v7, 2  ;;  %v1999_v52 = vrot.slane %v1998_v8, 2  ;;  %v2005_v34 = vmax.f32 %v2003_v31, %v2004_v19  ;;  %v1007_v41 = vadd.f32 %v975_v38, %v649_v56 }
 0x11f   :  { %v2078_v3 = vrot.slane %v2077_v24, 1  ;;  %v2085_v18 = vrot.slane %v2084_v47, 1  ;;  %v2091_v32 = vmax.f32 %v2089_v54, %v2090_v30  ;;  %v1987_v58 = vrot.slane %v1986_v13, 1 }
 0x120   :  { %v9544_v23 = vrot.slane %v7788_v63, 7  ;;  %v417_v61 = vmul.f32 %v9516_v60, %v9427_v59  ;;  %v2072_v46 = vmax.f32 %v2070_v48, %v2071_v49  ;;  %v9549_v51 = vmax.f32 %v1991_v7, %v1992_v45 }
 0x121   :  { %v2079_v12 = vmax.f32 %v2077_v24, %v2078_v3  ;;  %v9551_v56 = vmax.f32 %v1998_v8, %v1999_v52  ;;  %v2006_v38 = vrot.slane %v2005_v34, 2  ;;  %v1295_v22 = vcombine.high %v1007_v41, %v1007_v41 }
 0x122   :  { %v646_v10 = vadd.f32 %v614_v36, %v417_v61  ;;  %v972_v35 = vmul.f32 %v9501_v25, %v855_v28  ;;  %v2086_v63 = vmax.f32 %v2084_v47, %v2085_v18  ;;  %v2092_v50 = vrot.slane %v2091_v32, 1  ;;  %v9578_v28 = vld [vmem:[%s12222_s2 + $0x1] ss:$0 sm:$0xff] }
 0x123   :  { %v1988_v31 = vmax.f32 %v1986_v13, %v1987_v58  ;;  %v9556_v14 = vmul.f32 %v9516_v60, %v325_v42  ;;  %v2680_v27 = vmul.f32 %v9493_v40, %v2072_v46  ;;  %v1302_v54 = vrot.slane %v1007_v41, %v8899_v33 }
 0x124   :  { %v2681_v7 = vmul.f32 %v9493_v40, %v2079_v12  ;;  %v1994_v36 = vrot.slane %v9549_v51, 1  ;;  %v9565_v18 = vmax.f32 %v2005_v34, %v2006_v38  ;;  %v1309_v13 = vrot.slane %v1295_v22, %v8899_v33 }
 0x125   :  { %v1310_v19 = vcombine.high %v1302_v54, %v1302_v54  ;;  %v2122_v49 = vsel %vm1729_vm5, %v1302_v54, -inf  ;;  %v1004_v24 = vadd.f32 %v972_v35, %v646_v10  ;;  %v9569_v47 = vmax.f32 %v2091_v32, %v2092_v50 }
 0x126   :  { %v2682_v30 = vmul.f32 %v9493_v40, %v2086_v63  ;;  %v2668_v45 = vmul.f32 %v9493_v40, %v1988_v31  ;;  %v2123_v52 = vrot.slane %v2122_v49, 4  ;;  %v1311_v41 = vcombine.high %v1309_v13, %v1309_v13 }
 0x127   :  { %v2129_v3 = vsel %vm1729_vm5, %v1310_v19, -inf  ;;  %v2136_v58 = vsel %vm1729_vm5, %v1309_v13, -inf  ;;  %v1244_v34 = vcombine.high %v1004_v24, %v1004_v24  ;;  %v9581_v61 = vadd.f32 %v9578_v28, %v2680_v27 }
 0x128   :  { %v9584_v32 = vadd.f32 %v9578_v28, %v2681_v7  ;;  %v2124_v46 = vmax.f32 %v2122_v49, %v2123_v52  ;;  %v2130_v42 = vrot.slane %v2129_v3, 4  ;;  %v2137_v12 = vrot.slane %v2136_v58, 4 }
 0x129   :  { %12286 = vst [vmem:[#allocation15_spill] sm:$0xff] %v9581_v61  ;;  %v2143_v38 = vsel %vm1729_vm5, %v1311_v41, -inf  ;;  %v1251_v10 = vrot.slane %v1004_v24, %v8899_v33  ;;  %v1258_v22 = vrot.slane %v1244_v34, %v8899_v33  ;;  %v2814_v35 = vadd.f32 %v9578_v28, %v2682_v30  ;;  %v310_v30 = vpop.permute.xlu0 %309 }
 0x12a   :  { %v2125_v63 = vrot.slane %v2124_v46, 2  ;;  %v2131_v50 = vmax.f32 %v2129_v3, %v2130_v42  ;;  %v2144_v31 = vrot.slane %v2143_v38, 4  ;;  %v2138_v54 = vmax.f32 %v2136_v58, %v2137_v12 }
 0x12b   :  { %v1259_v27 = vcombine.high %v1251_v10, %v1251_v10  ;;  %v1260_v13 = vcombine.high %v1258_v22, %v1258_v22  ;;  %v2038_v7 = vsel %vm1729_vm5, %v1251_v10, -inf  ;;  %v2052_v24 = vsel %vm1729_vm5, %v1258_v22, -inf }
 0x12c   :  { %v2126_v19 = vmax.f32 %v2124_v46, %v2125_v63  ;;  %v2132_v49 = vrot.slane %v2131_v50, 2  ;;  %v2145_v52 = vmax.f32 %v2143_v38, %v2144_v31  ;;  %v2039_v4 = vrot.slane %v2038_v7, 4  ;;  %v9594_v46 = vpop.permute.xlu1 %521 }
 0x12d   :  { %v2139_v48 = vrot.slane %v2138_v54, 2  ;;  %v2045_v41 = vsel %vm1729_vm5, %v1259_v27, -inf  ;;  %v2059_v34 = vsel %vm1729_vm5, %v1260_v13, -inf  ;;  %v2053_v8 = vrot.slane %v2052_v24, 4 }
 0x12e   :  { %v2127_v1 = vrot.slane %v2126_v19, 1  ;;  %v2133_v3 = vmax.f32 %v2131_v50, %v2132_v49  ;;  %v2146_v42 = vrot.slane %v2145_v52, 2  ;;  %v2040_v58 = vmax.f32 %v2038_v7, %v2039_v4 }
 0x12f   :  { %v2140_v12 = vmax.f32 %v2138_v54, %v2139_v48  ;;  %v2046_v59 = vrot.slane %v2045_v41, 4  ;;  %v2060_v10 = vrot.slane %v2059_v34, 4  ;;  %v2054_v22 = vmax.f32 %v2052_v24, %v2053_v8 }
 0x130   :  { %v2128_v38 = vmax.f32 %v2126_v19, %v2127_v1  ;;  %v2134_v63 = vrot.slane %v2133_v3, 1  ;;  %v2147_v31 = vmax.f32 %v2145_v52, %v2146_v42  ;;  %v2041_v9 = vrot.slane %v2040_v58, 2  ;;  %v507_v19 = vpop.permute.xlu0 %506  ;;  %v9614_v24 = vpop.permute.xlu1 %334 }
 0x131   :  { %v2141_v27 = vrot.slane %v2140_v12, 1  ;;  %v2047_v15 = vmax.f32 %v2045_v41, %v2046_v59  ;;  %v2061_v44 = vmax.f32 %v2059_v34, %v2060_v10  ;;  %v9597_v13 = vmax.f32 %v9549_v51, %v1994_v36 }
 0x132   :  { %v2135_v50 = vmax.f32 %v2133_v3, %v2134_v63  ;;  %v2148_v49 = vrot.slane %v2147_v31, 1  ;;  %v2688_v4 = vmul.f32 %v9493_v40, %v2128_v38  ;;  %v7796_v48 = vclamps-f32 %v9584_v32, 1.0 }
 0x133   :  { %v7797_v54 = vclamps-f32 %v2814_v35, 1.0  ;;  %v2042_v7 = vmax.f32 %v2040_v58, %v2041_v9  ;;  %v1896_v1 = vrot.slane %v9375_v53, 1  ;;  %v12287_v52 = vrot.slane %v9551_v56, 1 }
 0x134   :  { %v9608_v8 = vadd.f32 %v9578_v28, %v2668_v45  ;;  %v2142_v51 = vmax.f32 %v2140_v12, %v2141_v27  ;;  %v2048_v36 = vrot.slane %v2047_v15, 2  ;;  %v9612_v41 = vmul.f32 %v9493_v40, %v9569_v47 }
 0x135   :  { %v9605_v59 = vmax.f32 %v9551_v56, %v12287_v52  ;;  %v2149_v32 = vmax.f32 %v2147_v31, %v2148_v49  ;;  %v2055_v35 = vrot.slane %v2054_v22, 2  ;;  %v2062_v9 = vrot.slane %v2061_v44, 2 }
 0x136   :  { %v2689_v3 = vmul.f32 %v9493_v40, %v2135_v50  ;;  %v9619_v56 = vadd.f32 %v9578_v28, %v2688_v4  ;;  %v9622_v45 = vmul.f32 %v9516_v60, %v310_v30  ;;  %v9624_v42 = vrot.slane %v7796_v48, 7 }
 0x137   :  { %v9626_v58 = vrot.slane %v7797_v54, 6  ;;  %v2043_v47 = vrot.slane %v2042_v7, 1  ;;  %v1897_v12 = vmax.f32 %v9375_v53, %v1896_v1  ;;  %v2690_v10 = vmul.f32 %v9493_v40, %v2142_v51  ;;  %v9644_v53 = vpop.permute.xlu0 %319  ;;  %v532_v1 = vpop.permute.xlu1 %531 }
 0x138   :  { %12288 = vst [vmem:[#allocation16_spill] sm:$0xff] %v9619_v56  ;;  %12289 = vst [vmem:[#allocation17_spill] sm:$0xff] %v9624_v42  ;;  %v9630_v38 = vmax.f32 %v2047_v15, %v2048_v36  ;;  %v2653_v63 = vmul.f32 %v9493_v40, %v9370_v16  ;;  %v2654_v31 = vmul.f32 %v9493_v40, %v9388_v20  ;;  %v7767_v54 = vclamps-f32 %v9391_v6, 1.0 }
 0x139   :  { %12290 = vst [vmem:[#allocation18_spill] sm:$0xff] %v9626_v58  ;;  %v9637_v30 = vmul.f32 %v9493_v40, %v2149_v32  ;;  %v9639_v27 = vmax.f32 %v2054_v22, %v2055_v35  ;;  %v9641_v50 = vmax.f32 %v2061_v44, %v2062_v9  ;;  %v2655_v49 = vmul.f32 %v9493_v40, %v1897_v12 }
 0x13a   :  { %v9647_v15 = vadd.f32 %v9578_v28, %v2689_v3  ;;  %v2783_v16 = vadd.f32 %v9578_v28, %v9257_v21  ;;  %v2785_v20 = vadd.f32 %v9578_v28, %v2653_v63  ;;  %v2044_v48 = vmax.f32 %v2042_v7, %v2043_v47  ;;  %v12293_v7 = vld [vmem:[#allocation8_spill] sm:$0xff] }
 0x13b   :  { %12291 = vst [vmem:[#allocation19_spill] sm:$0xff] %v9637_v30  ;;  %v2786_v22 = vadd.f32 %v9578_v28, %v2654_v31  ;;  %v2787_v44 = vadd.f32 %v9578_v28, %v2655_v49  ;;  %v9657_v52 = vadd.f32 %v9578_v28, %v2690_v10  ;;  %v12292_v32 = vclamps-f32 %v9240_v39, 1.0 }
 0x13c   :  { %v7766_v51 = vclamps-f32 %v2783_v16, 1.0  ;;  %v7768_v36 = vclamps-f32 %v2785_v20, 1.0  ;;  %v3333_v47 = vrot.slane %v7767_v54, 4  ;;  %v2050_v12 = vrot.slane %v9630_v38, 1  ;;  %v517_v16 = vpop.permute.xlu0 %516  ;;  %v12294_v54 = vld [vmem:[#allocation9_spill] sm:$0xff] }
 0x13d   :  { %v3328_v21 = vsel %vm3293_vm7, %v9264_v2, %v12292_v32  ;;  %v7769_v35 = vclamps-f32 %v2786_v22, 1.0  ;;  %v7770_v9 = vclamps-f32 %v2787_v44, 1.0  ;;  %v619_v10 = vmul.f32 %v9452_v11, %v9594_v46 }
 0x13e   :  { %v3330_v3 = vsel %vm3296_vm8, %v12293_v7, %v3328_v21  ;;  %v3331_v6 = vrot.slane %v7766_v51, 5  ;;  %v3335_v63 = vrot.slane %v7768_v36, 3  ;;  %v616_v49 = vmul.f32 %v9452_v11, %v507_v19  ;;  %v880_v21 = vpop.permute.xlu1 %879  ;;  %v12295_v7 = vld [vmem:[#allocation7_spill] sm:$0xff] }
 0x13f   :  { %v3337_v31 = vrot.slane %v7769_v35, 2  ;;  %v1952_v39 = vrot.slane %v9433_v5, 1  ;;  %v2661_v2 = vmul.f32 %v9493_v40, %v9475_v17  ;;  %v3339_v22 = vrot.slane %v7770_v9, 1 }
 0x140   :  { %v3332_v20 = vsel %vm3299_vm10, %v3331_v6, %v3330_v3  ;;  %v2662_v44 = vmul.f32 %v9493_v40, %v9488_v29  ;;  %v2791_v51 = vadd.f32 %v9578_v28, %v12294_v54  ;;  %v7775_v32 = vclamps-f32 %v9521_v26, 1.0  ;;  %v12297_v29 = vld [vmem:[#allocation10_spill] sm:$0xff] }
 0x141   :  { %v3334_v46 = vsel %vm3302_vm9, %v3333_v47, %v3332_v20  ;;  %v1953_v36 = vmax.f32 %v9433_v5, %v1952_v39  ;;  %v2793_v19 = vadd.f32 %v9578_v28, %v2661_v2  ;;  %v12296_v3 = vclamps-f32 %v12295_v7, 1.0  ;;  %v12298_v39 = vld [vmem:[#allocation11_spill] sm:$0xff] }
 0x142   :  { %v3336_v17 = vsel %vm3305_vm11, %v3335_v63, %v3334_v46  ;;  %v2794_v35 = vadd.f32 %v9578_v28, %v2662_v44  ;;  %v7774_v9 = vclamps-f32 %v2791_v51, 1.0  ;;  %v3347_v44 = vrot.slane %v7775_v32, 4 }
 0x143   :  { %v3342_v6 = vsel %vm3293_vm7, %v12297_v29, %v12296_v3  ;;  %v3338_v54 = vsel %vm3308_vm12, %v3337_v31, %v3336_v17  ;;  %v2663_v47 = vmul.f32 %v9493_v40, %v1953_v36  ;;  %v7776_v5 = vclamps-f32 %v2793_v19, 1.0  ;;  %v865_v19 = vpop.permute.xlu0 %864  ;;  %v890_v29 = vpop.permute.xlu1 %889 }
 0x144   :  { %v3344_v2 = vsel %vm3296_vm8, %v12298_v39, %v3342_v6  ;;  %v9692_v26 = vsel %vm3311_vm13, %v3339_v22, %v3338_v54  ;;  %v7777_v63 = vclamps-f32 %v2794_v35, 1.0  ;;  %v3345_v20 = vrot.slane %v7774_v9, 5 }
 0x145   :  { %12299 = vst [vmem:[#allocation8_spill] sm:$0xff] %v9692_v26  ;;  %v7804_v51 = vclamps-f32 %v9647_v15, 1.0  ;;  %v2057_v46 = vrot.slane %v9639_v27, 1  ;;  %8262 = vmatprep.mubr.msk.f32.mxu0 %vm3606_vm14, %v9692_v26  ;;  %v2795_v31 = vadd.f32 %v9578_v28, %v2663_v47  ;;  %v3349_v36 = vrot.slane %v7776_v5, 3 }
 0x146   :  { %v7805_v17 = vclamps-f32 %v9657_v52, 1.0  ;;  %v2676_v7 = vmul.f32 %v9493_v40, %v2044_v48  ;;  %v3346_v22 = vsel %vm3299_vm10, %v3345_v20, %v3344_v2  ;;  %v3351_v35 = vrot.slane %v7777_v63, 2 }
 0x147   :  { %v651_v32 = vadd.f32 %v619_v10, %v9556_v14  ;;  %v648_v15 = vadd.f32 %v616_v49, %v9622_v45  ;;  %v7778_v9 = vclamps-f32 %v2795_v31, 1.0  ;;  %v3348_v3 = vsel %vm3302_vm9, %v3347_v44, %v3346_v22 }
 0x148   :  { %v3350_v6 = vsel %vm3305_vm11, %v3349_v36, %v3348_v3  ;;  %v621_v54 = vmul.f32 %v9452_v11, %v532_v1  ;;  %v977_v47 = vmul.f32 %v9501_v25, %v880_v21  ;;  %v974_v52 = vmul.f32 %v9501_v25, %v865_v19 }
 0x149   :  { %v9710_v48 = vmax.f32 %v9630_v38, %v2050_v12  ;;  %v9713_v5 = vmax.f32 %v9639_v27, %v2057_v46  ;;  %v3352_v14 = vsel %vm3308_vm12, %v3351_v35, %v3350_v6  ;;  %v3353_v45 = vrot.slane %v7778_v9, 1 }
 0x14a   :  { %v424_v10 = vmul.f32 %v9516_v60, %v9614_v24  ;;  %v1009_v49 = vadd.f32 %v977_v47, %v651_v32  ;;  %v1006_v39 = vadd.f32 %v974_v52, %v648_v15  ;;  %v979_v1 = vmul.f32 %v9501_v25, %v890_v29 }
 0x14b   :  { %v9719_v2 = vrot.slane %v7804_v51, 7  ;;  %v9721_v21 = vrot.slane %v7805_v17, 6  ;;  %v9724_v38 = vadd.f32 %v9578_v28, %v2676_v7  ;;  %v9727_v27 = vsel %vm3311_vm13, %v3353_v45, %v3352_v14 }
 0x14c   :  { %12302 = vst [vmem:[#allocation10_spill] sm:$0xff] %v9727_v27  ;;  %8263 = vmatmul.mubr.msk.f32.gmra.mrb[2].mxu0 %vm3606_vm14, %v9727_v27  ;;  %v653_v24 = vadd.f32 %v621_v54, %v424_v10  ;;  %v1329_v63 = vcombine.high %v1009_v49, %v1009_v49  ;;  %v1336_v20 = vrot.slane %v1009_v49, %v8899_v33 }
 0x14d   :  { %12300 = vst [vmem:[#allocation9_spill] sm:$0xff] %v9719_v2  ;;  %12301 = vst [vmem:[#allocation7_spill] sm:$0xff] %v9721_v21  ;;  %v421_v44 = vmul.f32 %v9516_v60, %v9644_v53  ;;  %v618_v51 = vmul.f32 %v9452_v11, %v517_v16  ;;  %v1278_v46 = vcombine.high %v1006_v39, %v1006_v39 }
 0x14e   :  { %v1285_v31 = vrot.slane %v1006_v39, %v8899_v33  ;;  %v1343_v36 = vrot.slane %v1329_v63, %v8899_v33  ;;  %v1344_v19 = vcombine.high %v1336_v20, %v1336_v20  ;;  %v2178_v17 = vsel %vm1729_vm5, %v1336_v20, -inf  ;;  %v875_v63 = vpop.permute.xlu0 %874 }
 0x14f   :  { %v9739_v7 = vadd.f32 %v979_v1, %v653_v24  ;;  %v2179_v22 = vrot.slane %v2178_v17, 4  ;;  %v1292_v35 = vrot.slane %v1278_v46, %v8899_v33  ;;  %v650_v2 = vadd.f32 %v618_v51, %v421_v44 }
 0x150   :  { %v1293_v32 = vcombine.high %v1285_v31, %v1285_v31  ;;  %v2094_v15 = vsel %vm1729_vm5, %v1285_v31, -inf  ;;  %v1345_v9 = vcombine.high %v1343_v36, %v1343_v36  ;;  %v2185_v53 = vsel %vm1729_vm5, %v1344_v19, -inf }
 0x151   :  { %v2192_v16 = vsel %vm1729_vm5, %v1343_v36, -inf  ;;  %v2095_v3 = vrot.slane %v2094_v15, 4  ;;  %v2180_v29 = vmax.f32 %v2178_v17, %v2179_v22  ;;  %v2186_v6 = vrot.slane %v2185_v53, 4 }
 0x152   :  { %v2193_v54 = vrot.slane %v2192_v16, 4  ;;  %v1294_v47 = vcombine.high %v1292_v35, %v1292_v35  ;;  %v2199_v52 = vsel %vm1729_vm5, %v1345_v9, -inf  ;;  %v2101_v45 = vsel %vm1729_vm5, %v1293_v32, -inf  ;;  %v330_v30 = vpop.permute.xlu0 %329 }
 0x153   :  { %v2096_v14 = vmax.f32 %v2094_v15, %v2095_v3  ;;  %v2108_v10 = vsel %vm1729_vm5, %v1292_v35, -inf  ;;  %v2181_v49 = vrot.slane %v2180_v29, 2  ;;  %v2187_v39 = vmax.f32 %v2185_v53, %v2186_v6 }
 0x154   :  { %v2194_v1 = vmax.f32 %v2192_v16, %v2193_v54  ;;  %v2200_v24 = vrot.slane %v2199_v52, 4  ;;  %v2102_v46 = vrot.slane %v2101_v45, 4  ;;  %v2109_v31 = vrot.slane %v2108_v10, 4 }
 0x155   :  { %v2097_v20 = vrot.slane %v2096_v14, 2  ;;  %v2115_v36 = vsel %vm1729_vm5, %v1294_v47, -inf  ;;  %v2182_v19 = vmax.f32 %v2180_v29, %v2181_v49  ;;  %v2188_v17 = vrot.slane %v2187_v39, 2  ;;  %v345_v49 = vpop.permute.xlu1 %344 }
 0x156   :  { %v2195_v22 = vrot.slane %v2194_v1, 2  ;;  %v2201_v12 = vmax.f32 %v2199_v52, %v2200_v24  ;;  %v2103_v15 = vmax.f32 %v2101_v45, %v2102_v46  ;;  %v2110_v3 = vmax.f32 %v2108_v10, %v2109_v31  ;;  %v527_v42 = vpop.permute.xlu0 %526 }
 0x157   :  { %v2098_v9 = vmax.f32 %v2096_v14, %v2097_v20  ;;  %v2116_v32 = vrot.slane %v2115_v36, 4  ;;  %v2183_v4 = vrot.slane %v2182_v19, 1  ;;  %v2189_v35 = vmax.f32 %v2187_v39, %v2188_v17 }
 0x158   :  { %v2196_v34 = vmax.f32 %v2194_v1, %v2195_v22  ;;  %v2202_v53 = vrot.slane %v2201_v12, 2  ;;  %v2104_v6 = vrot.slane %v2103_v15, 2  ;;  %v2111_v54 = vrot.slane %v2110_v3, 2 }
 0x159   :  { %v2117_v21 = vmax.f32 %v2115_v36, %v2116_v32  ;;  %v2190_v56 = vrot.slane %v2189_v35, 1  ;;  %v2099_v29 = vrot.slane %v2098_v9, 1  ;;  %v2184_v52 = vmax.f32 %v2182_v19, %v2183_v4 }
 0x15a   :  { %v2197_v47 = vrot.slane %v2196_v34, 1  ;;  %v2203_v14 = vmax.f32 %v2201_v12, %v2202_v53  ;;  %v1363_v45 = vcombine.high %v9739_v7, %v9739_v7  ;;  %v976_v10 = vmul.f32 %v9501_v25, %v875_v63 }
 0x15b   :  { %v2191_v39 = vmax.f32 %v2189_v35, %v2190_v56  ;;  %v9753_v1 = vmax.f32 %v2103_v15, %v2104_v6  ;;  %v9755_v24 = vmax.f32 %v2110_v3, %v2111_v54  ;;  %v2118_v20 = vrot.slane %v2117_v21, 2 }
 0x15c   :  { %v1370_v44 = vrot.slane %v9739_v7, %v8899_v33  ;;  %v9760_v51 = vmul.f32 %v9516_v60, %v345_v49  ;;  %v9763_v4 = vmul.f32 %v9516_v60, %v330_v30  ;;  %v2198_v63 = vmax.f32 %v2196_v34, %v2197_v47 }
 0x15d   :  { %v2100_v31 = vmax.f32 %v2098_v9, %v2099_v29  ;;  %v2204_v36 = vrot.slane %v2203_v14, 1  ;;  %v2696_v19 = vmul.f32 %v9493_v40, %v2184_v52  ;;  %v1377_v17 = vrot.slane %v1363_v45, %v8899_v33 }
 0x15e   :  { %v1008_v7 = vadd.f32 %v976_v10, %v650_v2  ;;  %v2697_v22 = vmul.f32 %v9493_v40, %v2191_v39  ;;  %v2106_v15 = vrot.slane %v9753_v1, 1  ;;  %v9773_v3 = vmax.f32 %v2117_v21, %v2118_v20 }
 0x15f   :  { %v1378_v32 = vcombine.high %v1370_v44, %v1370_v44  ;;  %v1379_v35 = vcombine.high %v1377_v17, %v1377_v17  ;;  %v2234_v53 = vsel %vm1729_vm5, %v1370_v44, -inf  ;;  %v2248_v34 = vsel %vm1729_vm5, %v1377_v17, -inf }
 0x160   :  { %v2698_v9 = vmul.f32 %v9493_v40, %v2198_v63  ;;  %v9779_v6 = vmul.f32 %v9493_v40, %v2100_v31  ;;  %v2235_v2 = vrot.slane %v2234_v53, 4  ;;  %v2249_v54 = vrot.slane %v2248_v34, 4 }
 0x161   :  { %v2241_v47 = vsel %vm1729_vm5, %v1378_v32, -inf  ;;  %v2255_v29 = vsel %vm1729_vm5, %v1379_v35, -inf  ;;  %v1312_v49 = vcombine.high %v1008_v7, %v1008_v7  ;;  %v1319_v21 = vrot.slane %v1008_v7, %v8899_v33 }
 0x162   :  { %v2205_v52 = vmax.f32 %v2203_v14, %v2204_v36  ;;  %v2829_v45 = vadd.f32 %v9578_v28, %v2697_v22  ;;  %v2236_v10 = vmax.f32 %v2234_v53, %v2235_v2  ;;  %v2242_v39 = vrot.slane %v2241_v47, 4 }
 0x163   :  { %v2250_v20 = vmax.f32 %v2248_v34, %v2249_v54  ;;  %v2256_v44 = vrot.slane %v2255_v29, 4  ;;  %v1326_v63 = vrot.slane %v1312_v49, %v8899_v33  ;;  %v1327_v31 = vcombine.high %v1319_v21, %v1319_v21 }
 0x164   :  { %v2830_v17 = vadd.f32 %v9578_v28, %v2698_v9  ;;  %v2237_v56 = vrot.slane %v2236_v10, 2  ;;  %v2243_v16 = vmax.f32 %v2241_v47, %v2242_v39  ;;  %v2150_v32 = vsel %vm1729_vm5, %v1319_v21, -inf  ;;  %v9791_v21 = vpop.permute.xlu1 %541 }
 0x165   :  { %v2251_v35 = vrot.slane %v2250_v20, 2  ;;  %v2257_v46 = vmax.f32 %v2255_v29, %v2256_v44  ;;  %v1328_v12 = vcombine.high %v1326_v63, %v1326_v63  ;;  %v2151_v7 = vrot.slane %v2150_v32, 4 }
 0x166   :  { %v2238_v14 = vmax.f32 %v2236_v10, %v2237_v56  ;;  %v2244_v36 = vrot.slane %v2243_v16, 2  ;;  %v2157_v22 = vsel %vm1729_vm5, %v1327_v31, -inf  ;;  %v2164_v53 = vsel %vm1729_vm5, %v1326_v63, -inf }
 0x167   :  { %v2252_v34 = vmax.f32 %v2250_v20, %v2251_v35  ;;  %v2258_v2 = vrot.slane %v2257_v46, 2  ;;  %v2152_v54 = vmax.f32 %v2150_v32, %v2151_v7  ;;  %v2158_v49 = vrot.slane %v2157_v22, 4 }
 0x168   :  { %v2239_v30 = vrot.slane %v2238_v14, 1  ;;  %v2245_v9 = vmax.f32 %v2243_v16, %v2244_v36  ;;  %v2165_v27 = vrot.slane %v2164_v53, 4  ;;  %v2171_v47 = vsel %vm1729_vm5, %v1328_v12, -inf }
 0x169   :  { %v2253_v29 = vrot.slane %v2252_v34, 1  ;;  %v2259_v39 = vmax.f32 %v2257_v46, %v2258_v2  ;;  %v2153_v44 = vrot.slane %v2152_v54, 2  ;;  %v2159_v56 = vmax.f32 %v2157_v22, %v2158_v49 }
 0x16a   :  { %v2240_v10 = vmax.f32 %v2238_v14, %v2239_v30  ;;  %v2246_v26 = vrot.slane %v2245_v9, 1  ;;  %v2166_v31 = vmax.f32 %v2164_v53, %v2165_v27  ;;  %v2172_v58 = vrot.slane %v2171_v47, 4 }
 0x16b   :  { %v2254_v63 = vmax.f32 %v2252_v34, %v2253_v29  ;;  %v2260_v20 = vrot.slane %v2259_v39, 1  ;;  %v2154_v35 = vmax.f32 %v2152_v54, %v2153_v44  ;;  %v2160_v32 = vrot.slane %v2159_v56, 2 }
 0x16c   :  { %v9794_v7 = vadd.f32 %v9578_v28, %v2696_v19  ;;  %v7812_v16 = vclamps-f32 %v2829_v45, 1.0  ;;  %v7813_v36 = vclamps-f32 %v2830_v17, 1.0  ;;  %v2247_v12 = vmax.f32 %v2245_v9, %v2246_v26  ;;  %v9811_v17 = vpop.permute.xlu1 %354 }
 0x16d   :  { %v9797_v61 = vmax.f32 %v9753_v1, %v2106_v15  ;;  %v2704_v46 = vmul.f32 %v9493_v40, %v2240_v10  ;;  %v2167_v30 = vrot.slane %v2166_v31, 2  ;;  %v9800_v14 = vmax.f32 %v2171_v47, %v2172_v58 }
 0x16e   :  { %v12303_v27 = vrot.slane %v9755_v24, 1  ;;  %v2261_v53 = vmax.f32 %v2259_v39, %v2260_v20  ;;  %v2706_v19 = vmul.f32 %v9493_v40, %v2254_v63  ;;  %v12304_v45 = vrot.slane %v9565_v18, 1 }
 0x16f   :  { %v9814_v1 = vmul.f32 %v9493_v40, %v2205_v52  ;;  %v9818_v58 = vadd.f32 %v9578_v28, %v9779_v6  ;;  %v2155_v15 = vrot.slane %v2154_v35, 1  ;;  %v9820_v34 = vmax.f32 %v2159_v56, %v2160_v32  ;;  %v9845_v56 = vpop.permute.xlu0 %339 }
 0x170   :  { %v9805_v22 = vmax.f32 %v9755_v24, %v12303_v27  ;;  %v2009_v26 = vmax.f32 %v9565_v18, %v12304_v45  ;;  %v9823_v2 = vrot.slane %v7812_v16, 7  ;;  %v9825_v54 = vrot.slane %v7813_v36, 6  ;;  %v552_v36 = vpop.permute.xlu1 %551 }
 0x171   :  { %v2705_v18 = vmul.f32 %v9493_v40, %v2247_v12  ;;  %v9829_v49 = vadd.f32 %v9578_v28, %v2704_v46  ;;  %v9831_v52 = vmax.f32 %v2166_v31, %v2167_v30  ;;  %v2174_v9 = vrot.slane %v9800_v14, 2 }
 0x172   :  { %v2669_v6 = vmul.f32 %v9493_v40, %v9597_v13  ;;  %v9837_v47 = vmul.f32 %v9493_v40, %v2261_v53  ;;  %v9840_v29 = vadd.f32 %v9578_v28, %v2706_v19  ;;  %v2670_v39 = vmul.f32 %v9493_v40, %v9605_v59 }
 0x173   :  { %v2671_v44 = vmul.f32 %v9493_v40, %v2009_v26  ;;  %v2156_v10 = vmax.f32 %v2154_v35, %v2155_v15  ;;  %v2162_v31 = vrot.slane %v9820_v34, 1  ;;  %v2799_v63 = vadd.f32 %v9578_v28, %v9383_v57 }
 0x174   :  { %v2801_v13 = vadd.f32 %v9578_v28, %v2669_v6  ;;  %v9852_v20 = vadd.f32 %v9578_v28, %v2705_v18  ;;  %v2802_v32 = vadd.f32 %v9578_v28, %v2670_v39  ;;  %v7783_v59 = vclamps-f32 %v9608_v8, 1.0 }
 0x175   :  { %v2803_v16 = vadd.f32 %v9578_v28, %v2671_v44  ;;  %v7782_v35 = vclamps-f32 %v2799_v63, 1.0  ;;  %v12305_v30 = vclamps-f32 %v9365_v37, 1.0  ;;  %v2169_v26 = vrot.slane %v9831_v52, 1  ;;  %v537_v44 = vpop.permute.xlu0 %536 }
 0x176   :  { %v7784_v46 = vclamps-f32 %v2801_v13, 1.0  ;;  %v7785_v27 = vclamps-f32 %v2802_v32, 1.0  ;;  %v3361_v45 = vrot.slane %v7783_v59, 4  ;;  %v623_v18 = vmul.f32 %v9452_v11, %v9791_v21  ;;  %v900_v59 = vpop.permute.xlu1 %899 }
 0x177   :  { %v3356_v57 = vsel %vm3293_vm7, %v9396_v0, %v12305_v30  ;;  %v7786_v53 = vclamps-f32 %v2803_v16, 1.0  ;;  %v3359_v15 = vrot.slane %v7782_v35, 5  ;;  %v620_v39 = vmul.f32 %v9452_v11, %v527_v42 }
 0x178   :  { %v3358_v19 = vsel %vm3296_vm8, %v9399_v55, %v3356_v57  ;;  %v3363_v8 = vrot.slane %v7784_v46, 3  ;;  %v3365_v6 = vrot.slane %v7785_v27, 2  ;;  %v2064_v37 = vrot.slane %v9641_v50, 1  ;;  %v12307_v27 = vld [vmem:[#allocation13_spill] sm:$0xff] }
 0x179   :  { %v2677_v0 = vmul.f32 %v9493_v40, %v9710_v48  ;;  %v3360_v63 = vsel %vm3299_vm10, %v3359_v15, %v3358_v19  ;;  %v3367_v55 = vrot.slane %v7786_v53, 1  ;;  %v2678_v13 = vmul.f32 %v9493_v40, %v9713_v5 }
 0x17a   :  { %v2807_v32 = vadd.f32 %v9578_v28, %v9419_v43  ;;  %v3362_v21 = vsel %vm3302_vm9, %v3361_v45, %v3360_v63  ;;  %v2065_v16 = vmax.f32 %v9641_v50, %v2064_v37  ;;  %v7791_v42 = vclamps-f32 %v9724_v38, 1.0  ;;  %v885_v37 = vpop.permute.xlu0 %884 }
 0x17b   :  { %v2809_v11 = vadd.f32 %v9578_v28, %v2677_v0  ;;  %v3364_v48 = vsel %vm3305_vm11, %v3363_v8, %v3362_v21  ;;  %v2810_v35 = vadd.f32 %v9578_v28, %v2678_v13  ;;  %v12306_v30 = vclamps-f32 %v9403_v62, 1.0  ;;  %v910_v21 = vpop.permute.xlu1 %909 }
 0x17c   :  { %v7790_v46 = vclamps-f32 %v2807_v32, 1.0  ;;  %v3366_v43 = vsel %vm3308_vm12, %v3365_v6, %v3364_v48  ;;  %v2679_v57 = vmul.f32 %v9493_v40, %v2065_v16  ;;  %v3375_v15 = vrot.slane %v7791_v42, 4 }
 0x17d   :  { %v3370_v5 = vsel %vm3293_vm7, %v9544_v23, %v12306_v30  ;;  %v7792_v50 = vclamps-f32 %v2809_v11, 1.0  ;;  %v9891_v38 = vsel %vm3311_vm13, %v3367_v55, %v3366_v43  ;;  %v7793_v19 = vclamps-f32 %v2810_v35, 1.0  ;;  %v9910_v11 = vld [vmem:[%s12221_s1 + $0x1] ss:$0 sm:$0xff] }
 0x17e   :  { %v3372_v53 = vsel %vm3296_vm8, %v12307_v27, %v3370_v5  ;;  %12308 = vst [vmem:[#allocation11_spill] sm:$0xff] %v9891_v38  ;;  %v3373_v45 = vrot.slane %v7790_v46, 5  ;;  %v7821_v8 = vclamps-f32 %v9840_v29, 1.0  ;;  %v9895_v62 = vmax.f32 %v9800_v14, %v2174_v9  ;;  %8265 = vmatprep.mubr.msk.f32.mxu0 %vm3606_vm14, %v9891_v38 }
 0x17f   :  { %v2811_v23 = vadd.f32 %v9578_v28, %v2679_v57  ;;  %v3377_v6 = vrot.slane %v7792_v50, 3  ;;  %v7820_v0 = vclamps-f32 %v9852_v20, 1.0  ;;  %v2692_v63 = vmul.f32 %v9493_v40, %v2156_v10 }
 0x180   :  { %v3374_v55 = vsel %vm3299_vm10, %v3373_v45, %v3372_v53  ;;  %v3379_v13 = vrot.slane %v7793_v19, 2  ;;  %v655_v32 = vadd.f32 %v623_v18, %v9760_v51  ;;  %v652_v29 = vadd.f32 %v620_v39, %v9763_v4 }
 0x181   :  { %v7794_v14 = vclamps-f32 %v2811_v23, 1.0  ;;  %v3376_v9 = vsel %vm3302_vm9, %v3375_v15, %v3374_v55  ;;  %v625_v40 = vmul.f32 %v9910_v11, %v552_v36  ;;  %v981_v10 = vmul.f32 %v9501_v25, %v900_v59 }
 0x182   :  { %v3378_v16 = vsel %vm3305_vm11, %v3377_v6, %v3376_v9  ;;  %v978_v20 = vmul.f32 %v9501_v25, %v885_v37  ;;  %v9918_v51 = vmax.f32 %v9820_v34, %v2162_v31  ;;  %v9921_v4 = vmax.f32 %v9831_v52, %v2169_v26 }
 0x183   :  { %v3380_v18 = vsel %vm3308_vm12, %v3379_v13, %v3378_v16  ;;  %v3381_v39 = vrot.slane %v7794_v14, 1  ;;  %v428_v42 = vmul.f32 %v9516_v60, %v9811_v17  ;;  %v1013_v48 = vadd.f32 %v981_v10, %v655_v32  ;;  %v895_v10 = vpop.permute.xlu0 %894 }
 0x184   :  { %v1010_v36 = vadd.f32 %v978_v20, %v652_v29  ;;  %v983_v59 = vmul.f32 %v9501_v25, %v910_v21  ;;  %v9927_v35 = vrot.slane %v7820_v0, 7  ;;  %v9929_v46 = vrot.slane %v7821_v8, 6 }
 0x185   :  { %v9932_v34 = vadd.f32 %v9578_v28, %v2692_v63  ;;  %v9935_v52 = vsel %vm3311_vm13, %v3381_v39, %v3380_v18  ;;  %v657_v17 = vadd.f32 %v625_v40, %v428_v42  ;;  %v1397_v26 = vcombine.high %v1013_v48, %v1013_v48 }
 0x186   :  { %12309 = vst [vmem:[#allocation13_spill] sm:$0xff] %v9935_v52  ;;  %8266 = vmatmul.mubr.msk.f32.gmra.mrb[4].mxu0 %vm3606_vm14, %v9935_v52  ;;  %v1404_v30 = vrot.slane %v1013_v48, %v8899_v33  ;;  %v425_v25 = vmul.f32 %v9516_v60, %v9845_v56  ;;  %v622_v5 = vmul.f32 %v9910_v11, %v537_v44 }
 0x187   :  { %v1346_v43 = vcombine.high %v1010_v36, %v1010_v36  ;;  %v1353_v57 = vrot.slane %v1010_v36, %v8899_v33  ;;  %v1411_v50 = vrot.slane %v1397_v26, %v8899_v33  ;;  %v9947_v19 = vadd.f32 %v983_v59, %v657_v17 }
 0x188   :  { %v1412_v27 = vcombine.high %v1404_v30, %v1404_v30  ;;  %v2290_v53 = vsel %vm1729_vm5, %v1404_v30, -inf }
 0x189   :  { %v2291_v45 = vrot.slane %v2290_v53, 4  ;;  %v1360_v15 = vrot.slane %v1346_v43, %v8899_v33  ;;  %v1361_v8 = vcombine.high %v1353_v57, %v1353_v57  ;;  %v2206_v23 = vsel %vm1729_vm5, %v1353_v57, -inf }
 0x18a   :  { %v1413_v6 = vcombine.high %v1411_v50, %v1411_v50  ;;  %v2297_v60 = vsel %vm1729_vm5, %v1412_v27, -inf  ;;  %v2304_v56 = vsel %vm1729_vm5, %v1411_v50, -inf  ;;  %v2207_v44 = vrot.slane %v2206_v23, 4 }
 0x18b   :  { %v2292_v37 = vmax.f32 %v2290_v53, %v2291_v45  ;;  %v2298_v0 = vrot.slane %v2297_v60, 4  ;;  %v2305_v63 = vrot.slane %v2304_v56, 4  ;;  %v1362_v55 = vcombine.high %v1360_v15, %v1360_v15 }
 0x18c   :  { %v2311_v13 = vsel %vm1729_vm5, %v1413_v6, -inf  ;;  %v2208_v32 = vmax.f32 %v2206_v23, %v2207_v44  ;;  %v2213_v29 = vsel %vm1729_vm5, %v1361_v8, -inf  ;;  %v2220_v14 = vsel %vm1729_vm5, %v1360_v15, -inf }
 0x18d   :  { %v2293_v9 = vrot.slane %v2292_v37, 2  ;;  %v2299_v21 = vmax.f32 %v2297_v60, %v2298_v0  ;;  %v2306_v16 = vmax.f32 %v2304_v56, %v2305_v63  ;;  %v2312_v40 = vrot.slane %v2311_v13, 4  ;;  %v365_v0 = vpop.permute.xlu1 %364  ;;  %v350_v63 = vpop.permute.xlu0 %349 }
 0x18e   :  { %v2209_v20 = vrot.slane %v2208_v32, 2  ;;  %v2214_v18 = vrot.slane %v2213_v29, 4  ;;  %v2221_v39 = vrot.slane %v2220_v14, 4  ;;  %v2227_v42 = vsel %vm1729_vm5, %v1362_v55, -inf }
 0x18f   :  { %v2294_v48 = vmax.f32 %v2292_v37, %v2293_v9  ;;  %v2300_v36 = vrot.slane %v2299_v21, 2  ;;  %v2307_v59 = vrot.slane %v2306_v16, 2  ;;  %v2313_v17 = vmax.f32 %v2311_v13, %v2312_v40  ;;  %v9975_v40 = vld [vmem:[%s12221_s1] ss:$0 sm:$0xff] }
 0x190   :  { %v2210_v26 = vmax.f32 %v2208_v32, %v2209_v20  ;;  %v2215_v30 = vmax.f32 %v2213_v29, %v2214_v18  ;;  %v2222_v43 = vmax.f32 %v2220_v14, %v2221_v39  ;;  %v2228_v57 = vrot.slane %v2227_v42, 4  ;;  %v9963_v29 = vld [vmem:[%s12221_s1 + $0x2] ss:$0 sm:$0xff] }
 0x191   :  { %v2295_v50 = vrot.slane %v2294_v48, 1  ;;  %v2301_v27 = vmax.f32 %v2299_v21, %v2300_v36  ;;  %v2308_v53 = vmax.f32 %v2306_v16, %v2307_v59  ;;  %v2314_v45 = vrot.slane %v2313_v17, 2  ;;  %v9989_v59 = vld [vmem:[%s12222_s2] ss:$0 sm:$0xff] }
 0x192   :  { %v2216_v8 = vrot.slane %v2215_v30, 2  ;;  %v2223_v23 = vrot.slane %v2222_v43, 2  ;;  %v2229_v6 = vmax.f32 %v2227_v42, %v2228_v57  ;;  %v654_v60 = vadd.f32 %v622_v5, %v425_v25 }
 0x193   :  { %v2302_v56 = vrot.slane %v2301_v27, 1  ;;  %v2309_v44 = vrot.slane %v2308_v53, 1  ;;  %v2211_v37 = vrot.slane %v2210_v26, 1  ;;  %v2296_v55 = vmax.f32 %v2294_v48, %v2295_v50 }
 0x194   :  { %v2315_v13 = vmax.f32 %v2313_v17, %v2314_v45  ;;  %v1431_v32 = vcombine.high %v9947_v19, %v9947_v19  ;;  %v980_v14 = vmul.f32 %v9963_v29, %v895_v10  ;;  %v9966_v21 = vmax.f32 %v2215_v30, %v2216_v8 }
 0x195   :  { %v2303_v9 = vmax.f32 %v2301_v27, %v2302_v56  ;;  %v9968_v25 = vmax.f32 %v2222_v43, %v2223_v23  ;;  %v2230_v5 = vrot.slane %v2229_v6, 2  ;;  %v1438_v16 = vrot.slane %v9947_v19, %v8899_v33 }
 0x196   :  { %v9978_v20 = vmul.f32 %v9975_v40, %v365_v0  ;;  %v9981_v18 = vmul.f32 %v9975_v40, %v350_v63  ;;  %v2310_v48 = vmax.f32 %v2308_v53, %v2309_v44  ;;  %v2212_v36 = vmax.f32 %v2210_v26, %v2211_v37 }
 0x197   :  { %v2316_v19 = vrot.slane %v2315_v13, 1  ;;  %v2712_v17 = vmul.f32 %v9989_v59, %v2296_v55  ;;  %v1445_v30 = vrot.slane %v1431_v32, %v8899_v33  ;;  %v1012_v43 = vadd.f32 %v980_v14, %v654_v60 }
 0x198   :  { %v2713_v57 = vmul.f32 %v9989_v59, %v2303_v9  ;;  %v2218_v50 = vrot.slane %v9966_v21, 1  ;;  %v9996_v45 = vmax.f32 %v2229_v6, %v2230_v5  ;;  %v1446_v26 = vcombine.high %v1438_v16, %v1438_v16 }
 0x199   :  { %v1447_v53 = vcombine.high %v1445_v30, %v1445_v30  ;;  %v2346_v8 = vsel %vm1729_vm5, %v1438_v16, -inf  ;;  %v2360_v23 = vsel %vm1729_vm5, %v1445_v30, -inf  ;;  %v2714_v56 = vmul.f32 %v9989_v59, %v2310_v48 }
 0x19a   :  { %v10002_v44 = vmul.f32 %v9989_v59, %v2212_v36  ;;  %v2347_v60 = vrot.slane %v2346_v8, 4  ;;  %v2361_v37 = vrot.slane %v2360_v23, 4  ;;  %v2353_v0 = vsel %vm1729_vm5, %v1446_v26, -inf }
 0x19b   :  { %v2367_v63 = vsel %vm1729_vm5, %v1447_v53, -inf  ;;  %v1380_v55 = vcombine.high %v1012_v43, %v1012_v43  ;;  %v1387_v6 = vrot.slane %v1012_v43, %v8899_v33  ;;  %v2317_v32 = vmax.f32 %v2315_v13, %v2316_v19 }
 0x19c   :  { %v2845_v14 = vadd.f32 %v9578_v28, %v2713_v57  ;;  %v2348_v9 = vmax.f32 %v2346_v8, %v2347_v60  ;;  %v2354_v5 = vrot.slane %v2353_v0, 4  ;;  %v2362_v16 = vmax.f32 %v2360_v23, %v2361_v37 }
 0x19d   :  { %v2368_v30 = vrot.slane %v2367_v63, 4  ;;  %v1394_v48 = vrot.slane %v1380_v55, %v8899_v33  ;;  %v1395_v36 = vcombine.high %v1387_v6, %v1387_v6  ;;  %v2846_v42 = vadd.f32 %v9578_v28, %v2714_v56 }
 0x19e   :  { %v2349_v15 = vrot.slane %v2348_v9, 2  ;;  %v2355_v39 = vmax.f32 %v2353_v0, %v2354_v5  ;;  %v2262_v26 = vsel %vm1729_vm5, %v1387_v6, -inf  ;;  %v2363_v53 = vrot.slane %v2362_v16, 2  ;;  %v10014_v6 = vpop.permute.xlu1 %561 }
 0x19f   :  { %v2369_v31 = vmax.f32 %v2367_v63, %v2368_v30  ;;  %v1396_v12 = vcombine.high %v1394_v48, %v1394_v48  ;;  %v2263_v43 = vrot.slane %v2262_v26, 4  ;;  %v2269_v57 = vsel %vm1729_vm5, %v1395_v36, -inf }
 0x1a0   :  { %v2350_v13 = vmax.f32 %v2348_v9, %v2349_v15  ;;  %v2356_v19 = vrot.slane %v2355_v39, 2  ;;  %v2276_v8 = vsel %vm1729_vm5, %v1394_v48, -inf  ;;  %v2364_v23 = vmax.f32 %v2362_v16, %v2363_v53 }
 0x1a1   :  { %v2370_v60 = vrot.slane %v2369_v31, 2  ;;  %v2264_v37 = vmax.f32 %v2262_v26, %v2263_v43  ;;  %v2270_v55 = vrot.slane %v2269_v57, 4  ;;  %v2277_v56 = vrot.slane %v2276_v8, 4 }
 0x1a2   :  { %v2351_v24 = vrot.slane %v2350_v13, 1  ;;  %v2357_v28 = vmax.f32 %v2355_v39, %v2356_v19  ;;  %v2283_v0 = vsel %vm1729_vm5, %v1396_v12, -inf  ;;  %v2365_v63 = vrot.slane %v2364_v23, 1  ;;  %v10019_v39 = vld [vmem:[%s12222_s2 + $0x1] ss:$0 sm:$0xff] }
 0x1a3   :  { %v2371_v5 = vmax.f32 %v2369_v31, %v2370_v60  ;;  %v2265_v30 = vrot.slane %v2264_v37, 2  ;;  %v2271_v15 = vmax.f32 %v2269_v57, %v2270_v55  ;;  %v2278_v36 = vmax.f32 %v2276_v8, %v2277_v56  ;;  %v547_v57 = vpop.permute.xlu0 %546 }
 0x1a4   :  { %v2352_v9 = vmax.f32 %v2350_v13, %v2351_v24  ;;  %v2358_v10 = vrot.slane %v2357_v28, 1  ;;  %v2284_v27 = vrot.slane %v2283_v0, 4  ;;  %v2366_v48 = vmax.f32 %v2364_v23, %v2365_v63 }
 0x1a5   :  { %v2372_v16 = vrot.slane %v2371_v5, 1  ;;  %v2266_v53 = vmax.f32 %v2264_v37, %v2265_v30  ;;  %v2272_v26 = vrot.slane %v2271_v15, 2  ;;  %v10022_v12 = vadd.f32 %v10019_v39, %v2712_v17 }
 0x1a6   :  { %v7828_v43 = vclamps-f32 %v2845_v14, 1.0  ;;  %v7829_v31 = vclamps-f32 %v2846_v42, 1.0  ;;  %v2359_v19 = vmax.f32 %v2357_v28, %v2358_v10  ;;  %v10025_v24 = vmax.f32 %v9966_v21, %v2218_v50  ;;  %v10039_v14 = vpop.permute.xlu1 %374 }
 0x1a7   :  { %12310 = vst [vmem:[#allocation20_spill] sm:$0xff] %v10022_v12  ;;  %v2720_v13 = vmul.f32 %v9989_v59, %v2352_v9  ;;  %v2279_v8 = vrot.slane %v2278_v36, 2  ;;  %v10028_v23 = vmax.f32 %v2283_v0, %v2284_v27  ;;  %v12311_v60 = vrot.slane %v9968_v25, 1 }
 0x1a8   :  { %v2373_v55 = vmax.f32 %v2371_v5, %v2372_v16  ;;  %v2722_v17 = vmul.f32 %v9989_v59, %v2366_v48  ;;  %v12312_v42 = vrot.slane %v9773_v3, 1  ;;  %v10042_v21 = vmul.f32 %v9989_v59, %v2317_v32  ;;  %v10073_v16 = vpop.permute.xlu0 %359 }
 0x1a9   :  { %v10033_v37 = vmax.f32 %v9968_v25, %v12311_v60  ;;  %v10046_v50 = vadd.f32 %v10019_v39, %v10002_v44  ;;  %v2267_v27 = vrot.slane %v2266_v53, 1  ;;  %v10048_v28 = vmax.f32 %v2271_v15, %v2272_v26 }
 0x1aa   :  { %v2121_v10 = vmax.f32 %v9773_v3, %v12312_v42  ;;  %v10051_v56 = vrot.slane %v7828_v43, 7  ;;  %v10053_v0 = vrot.slane %v7829_v31, 6  ;;  %v2721_v3 = vmul.f32 %v9989_v59, %v2359_v19 }
 0x1ab   :  { %v10057_v63 = vadd.f32 %v10019_v39, %v2720_v13  ;;  %v10059_v32 = vmax.f32 %v2278_v36, %v2279_v8  ;;  %v2286_v5 = vrot.slane %v10028_v23, 2  ;;  %v2685_v44 = vmul.f32 %v9989_v59, %v9797_v61  ;;  %v572_v8 = vpop.permute.xlu1 %571 }
 0x1ac   :  { %12313 = vst [vmem:[#allocation21_spill] sm:$0xff] %v10051_v56  ;;  %12314 = vst [vmem:[#allocation22_spill] sm:$0xff] %v10053_v0  ;;  %v10065_v30 = vmul.f32 %v9989_v59, %v2373_v55  ;;  %v10068_v15 = vadd.f32 %v10019_v39, %v2722_v17  ;;  %v2686_v9 = vmul.f32 %v9989_v59, %v9805_v22  ;;  %v7799_v22 = vclamps-f32 %v9818_v58, 1.0  ;;  %v12317_v17 = vld [vmem:[#allocation15_spill] sm:$0xff] }
 0x1ad   :  { %12315 = vst [vmem:[#allocation23_spill] sm:$0xff] %v10057_v63  ;;  %v2687_v48 = vmul.f32 %v9989_v59, %v2121_v10  ;;  %v2268_v36 = vmax.f32 %v2266_v53, %v2267_v27  ;;  %v2815_v43 = vadd.f32 %v10019_v39, %v9612_v41  ;;  %v2817_v61 = vadd.f32 %v10019_v39, %v2685_v44  ;;  %v12319_v10 = vld [vmem:[#allocation17_spill] sm:$0xff] }
 0x1ae   :  { %12316 = vst [vmem:[#allocation24_spill] sm:$0xff] %v10065_v30  ;;  %v10080_v31 = vadd.f32 %v10019_v39, %v2721_v3  ;;  %v2818_v19 = vadd.f32 %v10019_v39, %v2686_v9  ;;  %v12318_v42 = vclamps-f32 %v12317_v17, 1.0  ;;  %v12320_v3 = vld [vmem:[#allocation18_spill] sm:$0xff]  ;;  %v3389_v9 = vrot.slane %v7799_v22, 4 }
 0x1af   :  { %v2819_v13 = vadd.f32 %v10019_v39, %v2687_v48  ;;  %v7798_v53 = vclamps-f32 %v2815_v43, 1.0  ;;  %v7800_v55 = vclamps-f32 %v2817_v61, 1.0  ;;  %v2281_v48 = vrot.slane %v10059_v32, 1 }
 0x1b0   :  { %v3384_v41 = vsel %vm3293_vm7, %v12319_v10, %v12318_v42  ;;  %v7801_v27 = vclamps-f32 %v2818_v19, 1.0  ;;  %v627_v60 = vmul.f32 %v9910_v11, %v10014_v6  ;;  %v624_v61 = vmul.f32 %v9910_v11, %v547_v57 }
 0x1b1   :  { %v7802_v44 = vclamps-f32 %v2819_v13, 1.0  ;;  %v3386_v25 = vsel %vm3296_vm8, %v12320_v3, %v3384_v41  ;;  %v3387_v26 = vrot.slane %v7798_v53, 5  ;;  %v3391_v58 = vrot.slane %v7800_v55, 3  ;;  %v557_v13 = vpop.permute.xlu0 %556  ;;  %v12321_v53 = vld [vmem:[#allocation19_spill] sm:$0xff]  ;;  %v920_v3 = vpop.permute.xlu1 %919 }
 0x1b2   :  { %v3393_v43 = vrot.slane %v7801_v27, 2  ;;  %v2176_v17 = vrot.slane %v9895_v62, 1  ;;  %v2693_v19 = vmul.f32 %v9989_v59, %v9918_v51  ;;  %v2694_v22 = vmul.f32 %v9989_v59, %v9921_v4  ;;  %v12324_v4 = vld [vmem:[#allocation9_spill] sm:$0xff] }
 0x1b3   :  { %v3388_v42 = vsel %vm3299_vm10, %v3387_v26, %v3386_v25  ;;  %v3395_v10 = vrot.slane %v7802_v44, 1  ;;  %v2823_v55 = vadd.f32 %v10019_v39, %v12321_v53  ;;  %v7807_v27 = vclamps-f32 %v9932_v34, 1.0  ;;  %v12322_v44 = vld [vmem:[#allocation16_spill] sm:$0xff] }
 0x1b4   :  { %v3390_v6 = vsel %vm3302_vm9, %v3389_v9, %v3388_v42  ;;  %v2177_v41 = vmax.f32 %v9895_v62, %v2176_v17  ;;  %v2825_v57 = vadd.f32 %v10019_v39, %v2693_v19  ;;  %v2826_v25 = vadd.f32 %v10019_v39, %v2694_v22  ;;  %v12325_v17 = vld [vmem:[#allocation7_spill] sm:$0xff] }
 0x1b5   :  { %v3392_v51 = vsel %vm3305_vm11, %v3391_v58, %v3390_v6  ;;  %v7806_v26 = vclamps-f32 %v2823_v55, 1.0  ;;  %v12323_v52 = vclamps-f32 %v12322_v44, 1.0  ;;  %v3403_v22 = vrot.slane %v7807_v27, 4 }
 0x1b6   :  { %v3394_v53 = vsel %vm3308_vm12, %v3393_v43, %v3392_v51  ;;  %v2695_v9 = vmul.f32 %v9989_v59, %v2177_v41  ;;  %v7808_v62 = vclamps-f32 %v2825_v57, 1.0  ;;  %v7809_v58 = vclamps-f32 %v2826_v25, 1.0  ;;  %v905_v41 = vpop.permute.xlu0 %904  ;;  %v930_v25 = vpop.permute.xlu1 %929 }
 0x1b7   :  { %v3398_v38 = vsel %vm3293_vm7, %v12324_v4, %v12323_v52  ;;  %v10119_v34 = vsel %vm3311_vm13, %v3395_v10, %v3394_v53  ;;  %v3401_v42 = vrot.slane %v7806_v26, 5  ;;  %v7837_v55 = vclamps-f32 %v10068_v15, 1.0 }
 0x1b8   :  { %v3400_v19 = vsel %vm3296_vm8, %v12325_v17, %v3398_v38  ;;  %12326 = vst [vmem:[#allocation15_spill] sm:$0xff] %v10119_v34  ;;  %v10123_v6 = vmax.f32 %v10028_v23, %v2286_v5  ;;  %8268 = vmatprep.mubr.msk.f32.mxu0 %vm3606_vm14, %v10119_v34  ;;  %v2827_v52 = vadd.f32 %v10019_v39, %v2695_v9  ;;  %v3405_v43 = vrot.slane %v7808_v62, 3 }
 0x1b9   :  { %v7836_v38 = vclamps-f32 %v10080_v31, 1.0  ;;  %v2708_v10 = vmul.f32 %v9989_v59, %v2268_v36  ;;  %v3402_v57 = vsel %vm3299_vm10, %v3401_v42, %v3400_v19  ;;  %v3407_v51 = vrot.slane %v7809_v58, 2 }
 0x1ba   :  { %v659_v27 = vadd.f32 %v627_v60, %v9978_v20  ;;  %v656_v15 = vadd.f32 %v624_v61, %v9981_v18  ;;  %v7810_v23 = vclamps-f32 %v2827_v52, 1.0  ;;  %v3404_v5 = vsel %vm3302_vm9, %v3403_v22, %v3402_v57  ;;  %v385_v0 = vpop.permute.xlu1 %384 }
 0x1bb   :  { %v3406_v26 = vsel %vm3305_vm11, %v3405_v43, %v3404_v5  ;;  %v629_v44 = vmul.f32 %v9910_v11, %v572_v8  ;;  %v985_v4 = vmul.f32 %v9963_v29, %v920_v3  ;;  %v982_v31 = vmul.f32 %v9963_v29, %v905_v41 }
 0x1bc   :  { %v12327_v36 = vrot.slane %v10048_v28, 1  ;;  %v10144_v20 = vmax.f32 %v10059_v32, %v2281_v48  ;;  %v3408_v18 = vsel %vm3308_vm12, %v3407_v51, %v3406_v26  ;;  %v3409_v60 = vrot.slane %v7810_v23, 1 }
 0x1bd   :  { %v432_v61 = vmul.f32 %v9975_v40, %v10039_v14  ;;  %v1017_v9 = vadd.f32 %v985_v4, %v659_v27  ;;  %v1014_v8 = vadd.f32 %v982_v31, %v656_v15  ;;  %v987_v3 = vmul.f32 %v9963_v29, %v930_v25 }
 0x1be   :  { %v10141_v53 = vmax.f32 %v10048_v28, %v12327_v36  ;;  %v10150_v62 = vrot.slane %v7836_v38, 7  ;;  %v10152_v17 = vrot.slane %v7837_v55, 6  ;;  %v10155_v28 = vadd.f32 %v10019_v39, %v2708_v10 }
 0x1bf   :  { %v10158_v32 = vsel %vm3311_vm13, %v3409_v60, %v3408_v18  ;;  %v661_v14 = vadd.f32 %v629_v44, %v432_v61  ;;  %v1465_v19 = vcombine.high %v1017_v9, %v1017_v9  ;;  %v1472_v58 = vrot.slane %v1017_v9, %v8899_v33 }
 0x1c0   :  { %12328 = vst [vmem:[#allocation17_spill] sm:$0xff] %v10150_v62  ;;  %12329 = vst [vmem:[#allocation18_spill] sm:$0xff] %v10152_v17  ;;  %8269 = vmatmul.mubr.msk.f32.gmra.mrb[6].mxu0 %vm3606_vm14, %v10158_v32  ;;  %v429_v42 = vmul.f32 %v9975_v40, %v10073_v16  ;;  %v626_v22 = vmul.f32 %v9910_v11, %v557_v13  ;;  %v1414_v55 = vcombine.high %v1014_v8, %v1014_v8 }
 0x1c1   :  { %12330 = vst [vmem:[#allocation19_spill] sm:$0xff] %v10158_v32  ;;  %v1421_v52 = vrot.slane %v1014_v8, %v8899_v33  ;;  %v1479_v43 = vrot.slane %v1465_v19, %v8899_v33  ;;  %v1480_v41 = vcombine.high %v1472_v58, %v1472_v58  ;;  %v2402_v38 = vsel %vm1729_vm5, %v1472_v58, -inf  ;;  %v7875_v19 = vld [vmem:[%s12221_s1 + $0x60] sm:$0xff] }
 0x1c2   :  { %v10170_v10 = vadd.f32 %v987_v3, %v661_v14  ;;  %v2403_v57 = vrot.slane %v2402_v38, 4  ;;  %v1428_v51 = vrot.slane %v1414_v55, %v8899_v33  ;;  %v915_v14 = vpop.permute.xlu0 %914  ;;  %8283 = vmatprep.subr.mxu0 %v7875_v19 }
 0x1c3   :  { %v1429_v27 = vcombine.high %v1421_v52, %v1421_v52  ;;  %v2318_v15 = vsel %vm1729_vm5, %v1421_v52, -inf  ;;  %v1481_v23 = vcombine.high %v1479_v43, %v1479_v43  ;;  %v2409_v16 = vsel %vm1729_vm5, %v1480_v41, -inf  ;;  %8284 = vmatpush3.msra.mxu0 %v7875_v19 }
 0x1c4   :  { %v2416_v13 = vsel %vm1729_vm5, %v1479_v43, -inf  ;;  %v2319_v5 = vrot.slane %v2318_v15, 4  ;;  %v2404_v25 = vmax.f32 %v2402_v38, %v2403_v57  ;;  %v2410_v26 = vrot.slane %v2409_v16, 4 }
 0x1c5   :  { %v2417_v44 = vrot.slane %v2416_v13, 4  ;;  %v1430_v4 = vcombine.high %v1428_v51, %v1428_v51  ;;  %v2423_v31 = vsel %vm1729_vm5, %v1481_v23, -inf  ;;  %v2325_v18 = vsel %vm1729_vm5, %v1429_v27, -inf }
 0x1c6   :  { %v2320_v36 = vmax.f32 %v2318_v15, %v2319_v5  ;;  %v2332_v60 = vsel %vm1729_vm5, %v1428_v51, -inf  ;;  %v2405_v61 = vrot.slane %v2404_v25, 2  ;;  %v2411_v9 = vmax.f32 %v2409_v16, %v2410_v26 }
 0x1c7   :  { %v2418_v8 = vmax.f32 %v2416_v13, %v2417_v44  ;;  %v2424_v3 = vrot.slane %v2423_v31, 4  ;;  %v2326_v55 = vrot.slane %v2325_v18, 4  ;;  %v2333_v52 = vrot.slane %v2332_v60, 4 }
 0x1c8   :  { %v2321_v58 = vrot.slane %v2320_v36, 2  ;;  %v2339_v43 = vsel %vm1729_vm5, %v1430_v4, -inf  ;;  %v2406_v41 = vmax.f32 %v2404_v25, %v2405_v61  ;;  %v2412_v38 = vrot.slane %v2411_v9, 2 }
 0x1c9   :  { %v2419_v57 = vrot.slane %v2418_v8, 2  ;;  %v2425_v27 = vmax.f32 %v2423_v31, %v2424_v3  ;;  %v2327_v15 = vmax.f32 %v2325_v18, %v2326_v55  ;;  %v2334_v23 = vmax.f32 %v2332_v60, %v2333_v52  ;;  %v370_v31 = vpop.permute.xlu0 %369 }
 0x1ca   :  { %v2322_v51 = vmax.f32 %v2320_v36, %v2321_v58  ;;  %v2340_v16 = vrot.slane %v2339_v43, 4  ;;  %v2407_v13 = vrot.slane %v2406_v41, 1  ;;  %v2413_v5 = vmax.f32 %v2411_v9, %v2412_v38 }
 0x1cb   :  { %v2420_v26 = vmax.f32 %v2418_v8, %v2419_v57  ;;  %v2426_v44 = vrot.slane %v2425_v27, 2  ;;  %v2328_v17 = vrot.slane %v2327_v15, 2  ;;  %v2335_v62 = vrot.slane %v2334_v23, 2 }
 0x1cc   :  { %v2341_v63 = vmax.f32 %v2339_v43, %v2340_v16  ;;  %v658_v4 = vadd.f32 %v626_v22, %v429_v42  ;;  %v2414_v30 = vrot.slane %v2413_v5, 1  ;;  %v2323_v61 = vrot.slane %v2322_v51, 1 }
 0x1cd   :  { %v2421_v25 = vrot.slane %v2420_v26, 1  ;;  %v2408_v3 = vmax.f32 %v2406_v41, %v2407_v13  ;;  %v2427_v36 = vmax.f32 %v2425_v27, %v2426_v44  ;;  %v1499_v18 = vcombine.high %v10170_v10, %v10170_v10 }
 0x1ce   :  { %v984_v60 = vmul.f32 %v9963_v29, %v915_v14  ;;  %v2415_v9 = vmax.f32 %v2413_v5, %v2414_v30  ;;  %v10187_v8 = vmax.f32 %v2327_v15, %v2328_v17  ;;  %v10189_v19 = vmax.f32 %v2334_v23, %v2335_v62 }
 0x1cf   :  { %v2342_v58 = vrot.slane %v2341_v63, 2  ;;  %v1506_v42 = vrot.slane %v10170_v10, %v8899_v33  ;;  %v10194_v22 = vmul.f32 %v9975_v40, %v385_v0  ;;  %v10197_v55 = vmul.f32 %v9975_v40, %v370_v31 }
 0x1d0   :  { %v2422_v17 = vmax.f32 %v2420_v26, %v2421_v25  ;;  %v2324_v14 = vmax.f32 %v2322_v51, %v2323_v61  ;;  %v2428_v62 = vrot.slane %v2427_v36, 1  ;;  %v2728_v41 = vmul.f32 %v9989_v59, %v2408_v3 }
 0x1d1   :  { %v1513_v38 = vrot.slane %v1499_v18, %v8899_v33  ;;  %v1016_v10 = vadd.f32 %v984_v60, %v658_v4  ;;  %v2729_v0 = vmul.f32 %v9989_v59, %v2415_v9  ;;  %v2330_v57 = vrot.slane %v10187_v8, 1 }
 0x1d2   :  { %v10207_v15 = vmax.f32 %v2341_v63, %v2342_v58  ;;  %v1514_v23 = vcombine.high %v1506_v42, %v1506_v42  ;;  %v2458_v13 = vsel %vm1729_vm5, %v1506_v42, -inf  ;;  %v2730_v5 = vmul.f32 %v9989_v59, %v2422_v17 }
 0x1d3   :  { %v1515_v16 = vcombine.high %v1513_v38, %v1513_v38  ;;  %v2472_v51 = vsel %vm1729_vm5, %v1513_v38, -inf  ;;  %v10213_v26 = vmul.f32 %v9989_v59, %v2324_v14  ;;  %v2459_v44 = vrot.slane %v2458_v13, 4 }
 0x1d4   :  { %v2473_v4 = vrot.slane %v2472_v51, 4  ;;  %v2465_v25 = vsel %vm1729_vm5, %v1514_v23, -inf  ;;  %v1448_v31 = vcombine.high %v1016_v10, %v1016_v10  ;;  %v1455_v63 = vrot.slane %v1016_v10, %v8899_v33 }
 0x1d5   :  { %v2479_v61 = vsel %vm1729_vm5, %v1515_v16, -inf  ;;  %v2429_v3 = vmax.f32 %v2427_v36, %v2428_v62  ;;  %v2861_v18 = vadd.f32 %v10019_v39, %v2729_v0  ;;  %v2460_v60 = vmax.f32 %v2458_v13, %v2459_v44 }
 0x1d6   :  { %v2466_v9 = vrot.slane %v2465_v25, 4  ;;  %v2474_v58 = vmax.f32 %v2472_v51, %v2473_v4  ;;  %v2480_v42 = vrot.slane %v2479_v61, 4  ;;  %v1462_v17 = vrot.slane %v1448_v31, %v8899_v33 }
 0x1d7   :  { %v1463_v14 = vcombine.high %v1455_v63, %v1455_v63  ;;  %v2862_v38 = vadd.f32 %v10019_v39, %v2730_v5  ;;  %v2461_v30 = vrot.slane %v2460_v60, 2  ;;  %v2374_v23 = vsel %vm1729_vm5, %v1455_v63, -inf  ;;  %v10225_v63 = vpop.permute.xlu1 %566 }
 0x1d8   :  { %v2467_v48 = vmax.f32 %v2465_v25, %v2466_v9  ;;  %v2475_v16 = vrot.slane %v2474_v58, 2  ;;  %v2481_v43 = vmax.f32 %v2479_v61, %v2480_v42  ;;  %v1464_v52 = vcombine.high %v1462_v17, %v1462_v17 }
 0x1d9   :  { %v2375_v10 = vrot.slane %v2374_v23, 4  ;;  %v2462_v36 = vmax.f32 %v2460_v60, %v2461_v30  ;;  %v2381_v0 = vsel %vm1729_vm5, %v1463_v14, -inf  ;;  %v2388_v13 = vsel %vm1729_vm5, %v1462_v17, -inf }
 0x1da   :  { %v2468_v62 = vrot.slane %v2467_v48, 2  ;;  %v2476_v51 = vmax.f32 %v2474_v58, %v2475_v16  ;;  %v2482_v44 = vrot.slane %v2481_v43, 2  ;;  %v2382_v31 = vrot.slane %v2381_v0, 4 }
 0x1db   :  { %v2376_v4 = vmax.f32 %v2374_v23, %v2375_v10  ;;  %v2463_v27 = vrot.slane %v2462_v36, 1  ;;  %v2389_v32 = vrot.slane %v2388_v13, 4  ;;  %v2395_v25 = vsel %vm1729_vm5, %v1464_v52, -inf  ;;  %v10227_v10 = vpop.permute.xlu0 %394 }
 0x1dc   :  { %v2469_v5 = vmax.f32 %v2467_v48, %v2468_v62  ;;  %v2477_v61 = vrot.slane %v2476_v51, 1  ;;  %v2483_v9 = vmax.f32 %v2481_v43, %v2482_v44  ;;  %v2383_v30 = vmax.f32 %v2381_v0, %v2382_v31 }
 0x1dd   :  { %v2377_v42 = vrot.slane %v2376_v4, 2  ;;  %v2464_v60 = vmax.f32 %v2462_v36, %v2463_v27  ;;  %v2390_v14 = vmax.f32 %v2388_v13, %v2389_v32  ;;  %v2396_v56 = vrot.slane %v2395_v25, 4 }
 0x1de   :  { %v2470_v34 = vrot.slane %v2469_v5, 1  ;;  %v2478_v17 = vmax.f32 %v2476_v51, %v2477_v61  ;;  %v2484_v58 = vrot.slane %v2483_v9, 1  ;;  %v2384_v23 = vrot.slane %v2383_v30, 2 }
 0x1df   :  { %v2378_v16 = vmax.f32 %v2376_v4, %v2377_v42  ;;  %v10230_v48 = vadd.f32 %v10019_v39, %v2728_v41  ;;  %v7844_v52 = vclamps-f32 %v2861_v18, 1.0  ;;  %v7845_v62 = vclamps-f32 %v2862_v38, 1.0  ;;  %v10247_v38 = vpop.permute.xlu1 %591 }
 0x1e0   :  { %v2471_v12 = vmax.f32 %v2469_v5, %v2470_v34  ;;  %v10233_v43 = vmax.f32 %v10187_v8, %v2330_v57  ;;  %v2736_v27 = vmul.f32 %v9989_v59, %v2464_v60  ;;  %v2391_v36 = vrot.slane %v2390_v14, 2 }
 0x1e1   :  { %v10236_v32 = vmax.f32 %v2395_v25, %v2396_v56  ;;  %v12331_v0 = vrot.slane %v10189_v19, 1  ;;  %v2485_v51 = vmax.f32 %v2483_v9, %v2484_v58  ;;  %v2738_v41 = vmul.f32 %v9989_v59, %v2478_v17  ;;  %v582_v9 = vpop.permute.xlu0 %581 }
 0x1e2   :  { %v12332_v18 = vrot.slane %v9996_v45, 1  ;;  %v10250_v8 = vmul.f32 %v9989_v59, %v2429_v3  ;;  %v10254_v56 = vadd.f32 %v10019_v39, %v10213_v26  ;;  %v2379_v57 = vrot.slane %v2378_v16, 1  ;;  %v7909_v3 = vld [vmem:[%s12221_s1 + $0x70] sm:$0xff] }
 0x1e3   :  { %v10241_v13 = vmax.f32 %v10189_v19, %v12331_v0  ;;  %v10256_v44 = vmax.f32 %v2383_v30, %v2384_v23  ;;  %v7843_v19 = vclamps-f32 %v10230_v48, 1.0  ;;  %v10259_v4 = vrot.slane %v7844_v52, 7  ;;  %8309 = vmatprep.subr.mxu0 %v7909_v3 }
 0x1e4   :  { %v2233_v34 = vmax.f32 %v9996_v45, %v12332_v18  ;;  %v10261_v31 = vrot.slane %v7845_v62, 6  ;;  %v2737_v45 = vmul.f32 %v9989_v59, %v2471_v12  ;;  %v10268_v5 = vadd.f32 %v10019_v39, %v2736_v27 }
 0x1e5   :  { %v10270_v26 = vmax.f32 %v2390_v14, %v2391_v36  ;;  %v2398_v25 = vrot.slane %v10236_v32, 2  ;;  %v2701_v61 = vmul.f32 %v9989_v59, %v10025_v24  ;;  %v10276_v42 = vmul.f32 %v9989_v59, %v2485_v51 }
 0x1e6   :  { %v10279_v12 = vadd.f32 %v10019_v39, %v2738_v41  ;;  %v2702_v30 = vmul.f32 %v9989_v59, %v10033_v37  ;;  %v2703_v60 = vmul.f32 %v9989_v59, %v2233_v34  ;;  %v2380_v14 = vmax.f32 %v2378_v16, %v2379_v57  ;;  %v577_v37 = vpop.permute.xlu1 %576 }
 0x1e7   :  { %v2386_v17 = vrot.slane %v10256_v44, 1  ;;  %v2831_v58 = vadd.f32 %v10019_v39, %v9814_v1  ;;  %v2833_v24 = vadd.f32 %v10019_v39, %v2701_v61  ;;  %v10289_v23 = vadd.f32 %v10019_v39, %v2737_v45 }
 0x1e8   :  { %v2834_v52 = vadd.f32 %v10019_v39, %v2702_v30  ;;  %v2835_v62 = vadd.f32 %v10019_v39, %v2703_v60  ;;  %v7815_v27 = vclamps-f32 %v10046_v50, 1.0  ;;  %v7851_v36 = vclamps-f32 %v10268_v5, 1.0  ;;  %v380_v30 = vpop.permute.xlu0 %379 }
 0x1e9   :  { %v7814_v16 = vclamps-f32 %v2831_v58, 1.0  ;;  %v7816_v0 = vclamps-f32 %v2833_v24, 1.0  ;;  %v12333_v51 = vclamps-f32 %v9794_v7, 1.0  ;;  %v2393_v45 = vrot.slane %v10270_v26, 1 }
 0x1ea   :  { %v7817_v41 = vclamps-f32 %v2834_v52, 1.0  ;;  %v7818_v18 = vclamps-f32 %v2835_v62, 1.0  ;;  %v3417_v57 = vrot.slane %v7815_v27, 4  ;;  %v628_v61 = vmul.f32 %v9910_v11, %v10225_v63 }
 0x1eb   :  { %v3412_v1 = vsel %vm3293_vm7, %v9823_v2, %v12333_v51  ;;  %v3415_v3 = vrot.slane %v7814_v16, 5  ;;  %v3419_v50 = vrot.slane %v7816_v0, 3  ;;  %v2288_v7 = vrot.slane %v10123_v6, 1  ;;  %v940_v51 = vpop.permute.xlu1 %939 }
 0x1ec   :  { %v3414_v34 = vsel %vm3296_vm8, %v9825_v54, %v3412_v1  ;;  %v3421_v60 = vrot.slane %v7817_v41, 2  ;;  %v3423_v58 = vrot.slane %v7818_v18, 1  ;;  %v2709_v2 = vmul.f32 %v9989_v59, %v10141_v53 }
 0x1ed   :  { %v3416_v24 = vsel %vm3299_vm10, %v3415_v3, %v3414_v34  ;;  %v2710_v54 = vmul.f32 %v9989_v59, %v10144_v20  ;;  %v2839_v52 = vadd.f32 %v10019_v39, %v9837_v47  ;;  %v7823_v62 = vclamps-f32 %v10155_v28, 1.0 }
 0x1ee   :  { %v3418_v63 = vsel %vm3302_vm9, %v3417_v57, %v3416_v24  ;;  %v2289_v27 = vmax.f32 %v10123_v6, %v2288_v7  ;;  %v2841_v16 = vadd.f32 %v10019_v39, %v2709_v2  ;;  %v12334_v0 = vclamps-f32 %v9829_v49, 1.0 }
 0x1ef   :  { %v3420_v1 = vsel %vm3305_vm11, %v3419_v50, %v3418_v63  ;;  %v2842_v20 = vadd.f32 %v10019_v39, %v2710_v54  ;;  %v7822_v41 = vclamps-f32 %v2839_v52, 1.0  ;;  %v3431_v34 = vrot.slane %v7823_v62, 4  ;;  %v925_v50 = vpop.permute.xlu0 %924  ;;  %v935_v63 = vpop.permute.xlu1 %934 }
 0x1f0   :  { %v3426_v53 = vsel %vm3293_vm7, %v9927_v35, %v12334_v0  ;;  %v3422_v28 = vsel %vm3308_vm12, %v3421_v60, %v3420_v1  ;;  %v2711_v6 = vmul.f32 %v9989_v59, %v2289_v27  ;;  %v7824_v18 = vclamps-f32 %v2841_v16, 1.0 }
 0x1f1   :  { %v3428_v47 = vsel %vm3296_vm8, %v9929_v46, %v3426_v53  ;;  %v7853_v49 = vclamps-f32 %v10279_v12, 1.0  ;;  %v10328_v57 = vsel %vm3311_vm13, %v3423_v58, %v3422_v28  ;;  %v7825_v35 = vclamps-f32 %v2842_v20, 1.0 }
 0x1f2   :  { %v3429_v3 = vrot.slane %v7822_v41, 5  ;;  %v7852_v7 = vclamps-f32 %v10289_v23, 1.0  ;;  %v2724_v2 = vmul.f32 %v9989_v59, %v2380_v14  ;;  %8271 = vmatprep.mubr.msk.f32.mxu0 %vm3606_vm14, %v10328_v57  ;;  %v2843_v46 = vadd.f32 %v10019_v39, %v2711_v6 }
 0x1f3   :  { %v3433_v60 = vrot.slane %v7824_v18, 3  ;;  %v660_v24 = vadd.f32 %v628_v61, %v10197_v55  ;;  %v3435_v54 = vrot.slane %v7825_v35, 2  ;;  %v631_v58 = vmul.f32 %v9910_v11, %v582_v9  ;;  %v950_v1 = vpop.permute.xlu0 %949 }
 0x1f4   :  { %v3430_v12 = vsel %vm3299_vm10, %v3429_v3, %v3428_v47  ;;  %v7826_v52 = vclamps-f32 %v2843_v46, 1.0  ;;  %v630_v23 = vmul.f32 %v9910_v11, %v577_v37  ;;  %v433_v14 = vmul.f32 %v9975_v40, %v380_v30  ;;  %v10380_v47 = vld [vmem:[%s12221_s1 + $0x1] ss:$0 sm:$0xff] }
 0x1f5   :  { %v3432_v62 = vsel %vm3302_vm9, %v3431_v34, %v3430_v12  ;;  %v663_v16 = vadd.f32 %v631_v58, %v10194_v22  ;;  %v989_v0 = vmul.f32 %v9963_v29, %v940_v51  ;;  %v986_v55 = vmul.f32 %v9963_v29, %v925_v50 }
 0x1f6   :  { %v3434_v27 = vsel %vm3305_vm11, %v3433_v60, %v3432_v62  ;;  %v10348_v9 = vmax.f32 %v10256_v44, %v2386_v17  ;;  %v10353_v11 = vmax.f32 %v10236_v32, %v2398_v25  ;;  %v3437_v61 = vrot.slane %v7826_v52, 1 }
 0x1f7   :  { %v3436_v37 = vsel %vm3308_vm12, %v3435_v54, %v3434_v27  ;;  %v10357_v30 = vmax.f32 %v10270_v26, %v2393_v45  ;;  %v1021_v22 = vadd.f32 %v989_v0, %v663_v16  ;;  %v1018_v53 = vadd.f32 %v986_v55, %v660_v24 }
 0x1f8   :  { %v988_v51 = vmul.f32 %v9963_v29, %v935_v63  ;;  %v10360_v20 = vrot.slane %v7852_v7, 7  ;;  %v10362_v44 = vrot.slane %v7853_v49, 6  ;;  %v10365_v17 = vadd.f32 %v10019_v39, %v2724_v2 }
 0x1f9   :  { %v10368_v32 = vsel %vm3311_vm13, %v3437_v61, %v3436_v37  ;;  %v10372_v25 = vmul.f32 %v9975_v40, %v10227_v10  ;;  %v662_v26 = vadd.f32 %v630_v23, %v433_v14  ;;  %v1533_v45 = vcombine.high %v1021_v22, %v1021_v22 }
 0x1fa   :  { %8272 = vmatmul.mubr.msk.f32.gmra.mrb[8].mxu0 %vm3606_vm14, %v10368_v32  ;;  %v1540_v41 = vrot.slane %v1021_v22, %v8899_v33  ;;  %v10384_v28 = vmul.f32 %v10380_v47, %v10247_v38  ;;  %v1482_v6 = vcombine.high %v1018_v53, %v1018_v53  ;;  %v1489_v10 = vrot.slane %v1018_v53, %v8899_v33 }
 0x1fb   :  { %v10388_v18 = vmul.f32 %v9963_v29, %v950_v1  ;;  %v1547_v34 = vrot.slane %v1533_v45, %v8899_v33  ;;  %v10392_v3 = vadd.f32 %v988_v51, %v662_v26 }
 0x1fc   :  { %v1548_v49 = vcombine.high %v1540_v41, %v1540_v41  ;;  %v2514_v35 = vsel %vm1729_vm5, %v1540_v41, -inf  ;;  %v1496_v7 = vrot.slane %v1482_v6, %v8899_v33  ;;  %v1497_v2 = vcombine.high %v1489_v10, %v1489_v10 }
 0x1fd   :  { %v2515_v50 = vrot.slane %v2514_v35, 4  ;;  %v2430_v38 = vsel %vm1729_vm5, %v1489_v10, -inf  ;;  %v1549_v46 = vcombine.high %v1547_v34, %v1547_v34  ;;  %v2528_v24 = vsel %vm1729_vm5, %v1547_v34, -inf }
 0x1fe   :  { %v2521_v60 = vsel %vm1729_vm5, %v1548_v49, -inf  ;;  %v2431_v29 = vrot.slane %v2430_v38, 4  ;;  %v2529_v58 = vrot.slane %v2528_v24, 4  ;;  %v1498_v52 = vcombine.high %v1496_v7, %v1496_v7 }
 0x1ff   :  { %v2516_v12 = vmax.f32 %v2514_v35, %v2515_v50  ;;  %v2522_v54 = vrot.slane %v2521_v60, 4  ;;  %v2535_v62 = vsel %vm1729_vm5, %v1549_v46, -inf  ;;  %v2437_v14 = vsel %vm1729_vm5, %v1497_v2, -inf }
 0x200   :  { %v2432_v23 = vmax.f32 %v2430_v38, %v2431_v29  ;;  %v2444_v63 = vsel %vm1729_vm5, %v1496_v7, -inf  ;;  %v2530_v0 = vmax.f32 %v2528_v24, %v2529_v58  ;;  %v2536_v55 = vrot.slane %v2535_v62, 4 }
 0x201   :  { %v2517_v27 = vrot.slane %v2516_v12, 2  ;;  %v2523_v16 = vmax.f32 %v2521_v60, %v2522_v54  ;;  %v2438_v61 = vrot.slane %v2437_v14, 4  ;;  %v2445_v22 = vrot.slane %v2444_v63, 4 }
 0x202   :  { %v2433_v37 = vrot.slane %v2432_v23, 2  ;;  %v2451_v53 = vsel %vm1729_vm5, %v1498_v52, -inf  ;;  %v2531_v26 = vrot.slane %v2530_v0, 2  ;;  %v2537_v45 = vmax.f32 %v2535_v62, %v2536_v55 }
 0x203   :  { %v2518_v51 = vmax.f32 %v2516_v12, %v2517_v27  ;;  %v2524_v1 = vrot.slane %v2523_v16, 2  ;;  %v2439_v6 = vmax.f32 %v2437_v14, %v2438_v61  ;;  %v2446_v10 = vmax.f32 %v2444_v63, %v2445_v22  ;;  %v400_v12 = vpop.permute.xlu1 %399  ;;  %v390_v14 = vpop.permute.xlu0 %389 }
 0x204   :  { %v2434_v41 = vmax.f32 %v2432_v23, %v2433_v37  ;;  %v2452_v34 = vrot.slane %v2451_v53, 4  ;;  %v2532_v50 = vmax.f32 %v2530_v0, %v2531_v26  ;;  %v2538_v7 = vrot.slane %v2537_v45, 2 }
 0x205   :  { %v2519_v49 = vrot.slane %v2518_v51, 1  ;;  %v2525_v35 = vmax.f32 %v2523_v16, %v2524_v1  ;;  %v2440_v38 = vrot.slane %v2439_v6, 2  ;;  %v2447_v46 = vrot.slane %v2446_v10, 2 }
 0x206   :  { %v2435_v2 = vrot.slane %v2434_v41, 1  ;;  %v2453_v60 = vmax.f32 %v2451_v53, %v2452_v34  ;;  %v2533_v54 = vrot.slane %v2532_v50, 1  ;;  %v2539_v58 = vmax.f32 %v2537_v45, %v2538_v7 }
 0x207   :  { %v2520_v24 = vmax.f32 %v2518_v51, %v2519_v49  ;;  %v2526_v29 = vrot.slane %v2525_v35, 1  ;;  %v2441_v27 = vmax.f32 %v2439_v6, %v2440_v38  ;;  %v2448_v62 = vmax.f32 %v2446_v10, %v2447_v46 }
 0x208   :  { %v2436_v52 = vmax.f32 %v2434_v41, %v2435_v2  ;;  %v1516_v23 = vcombine.high %v10392_v3, %v10392_v3  ;;  %v2534_v16 = vmax.f32 %v2532_v50, %v2533_v54  ;;  %v2540_v0 = vrot.slane %v2539_v58, 1 }
 0x209   :  { %v2527_v63 = vmax.f32 %v2525_v35, %v2526_v29  ;;  %v2454_v55 = vrot.slane %v2453_v60, 2  ;;  %v665_v61 = vadd.f32 %v10384_v28, %v10372_v25  ;;  %v1523_v22 = vrot.slane %v10392_v3, %v8899_v33 }
 0x20a   :  { %v10410_v53 = vmul.f32 %v9975_v40, %v400_v12  ;;  %v2744_v51 = vmul.f32 %v9989_v59, %v2520_v24  ;;  %v10415_v26 = vmul.f32 %v9975_v40, %v390_v14  ;;  %v2344_v45 = vrot.slane %v10207_v15, 1 }
 0x20b   :  { %v2745_v1 = vmul.f32 %v9989_v59, %v2527_v63  ;;  %v2442_v41 = vrot.slane %v2441_v27, 1  ;;  %v2449_v6 = vrot.slane %v2448_v62, 1  ;;  %v1530_v10 = vrot.slane %v1516_v23, %v8899_v33 }
 0x20c   :  { %v1023_v25 = vadd.f32 %v10388_v18, %v665_v61  ;;  %v2541_v28 = vmax.f32 %v2539_v58, %v2540_v0  ;;  %v2746_v3 = vmul.f32 %v9989_v59, %v2534_v16  ;;  %v10421_v34 = vmax.f32 %v2453_v60, %v2454_v55 }
 0x20d   :  { %v2732_v49 = vmul.f32 %v9989_v59, %v2436_v52  ;;  %v1531_v35 = vcombine.high %v1523_v22, %v1523_v22  ;;  %v1532_v50 = vcombine.high %v1530_v10, %v1530_v10  ;;  %v2486_v40 = vsel %vm1729_vm5, %v1523_v22, -inf }
 0x20e   :  { %v2500_v7 = vsel %vm1729_vm5, %v1530_v10, -inf  ;;  %v10427_v2 = vadd.f32 %v10019_v39, %v2744_v51  ;;  %v2877_v38 = vadd.f32 %v10019_v39, %v2745_v1  ;;  %v2487_v46 = vrot.slane %v2486_v40, 4 }
 0x20f   :  { %v2501_v18 = vrot.slane %v2500_v7, 4  ;;  %v2493_v24 = vsel %vm1729_vm5, %v1531_v35, -inf  ;;  %v2507_v60 = vsel %vm1729_vm5, %v1532_v50, -inf  ;;  %v1567_v29 = vcombine.high %v1023_v25, %v1023_v25 }
 0x210   :  { %v1574_v59 = vrot.slane %v1023_v25, %v8899_v33  ;;  %v2878_v54 = vadd.f32 %v10019_v39, %v2746_v3  ;;  %v10434_v58 = vmax.f32 %v2441_v27, %v2442_v41  ;;  %v2488_v12 = vmax.f32 %v2486_v40, %v2487_v46  ;;  %v10446_v27 = vld [vmem:[%s12222_s2] ss:$0 sm:$0xff] }
 0x211   :  { %v2494_v52 = vrot.slane %v2493_v24, 4  ;;  %v10436_v23 = vmax.f32 %v2448_v62, %v2449_v6  ;;  %v2502_v14 = vmax.f32 %v2500_v7, %v2501_v18  ;;  %v1581_v63 = vrot.slane %v1567_v29, %v8899_v33 }
 0x212   :  { %v1582_v16 = vcombine.high %v1574_v59, %v1574_v59  ;;  %v10440_v0 = vadd.f32 %v10019_v39, %v2732_v49  ;;  %v2489_v55 = vrot.slane %v2488_v12, 2  ;;  %v2508_v61 = vrot.slane %v2507_v60, 4 }
 0x213   :  { %v2570_v22 = vsel %vm1729_vm5, %v1574_v59, -inf  ;;  %v10449_v51 = vmul.f32 %v10446_v27, %v2541_v28  ;;  %v7860_v62 = vclamps-f32 %v2877_v38, 1.0  ;;  %v1583_v1 = vcombine.high %v1581_v63, %v1581_v63 }
 0x214   :  { %v2571_v41 = vrot.slane %v2570_v22, 4  ;;  %v7861_v6 = vclamps-f32 %v2878_v54, 1.0  ;;  %v2495_v10 = vmax.f32 %v2493_v24, %v2494_v52  ;;  %v2577_v25 = vsel %vm1729_vm5, %v1582_v16, -inf }
 0x215   :  { %v2584_v3 = vsel %vm1729_vm5, %v1581_v63, -inf  ;;  %v2503_v35 = vrot.slane %v2502_v14, 2  ;;  %v2578_v40 = vrot.slane %v2577_v25, 4  ;;  %v2490_v7 = vmax.f32 %v2488_v12, %v2489_v55 }
 0x216   :  { %v2572_v50 = vmax.f32 %v2570_v22, %v2571_v41  ;;  %v2509_v46 = vmax.f32 %v2507_v60, %v2508_v61  ;;  %v2585_v18 = vrot.slane %v2584_v3, 4  ;;  %v2591_v28 = vsel %vm1729_vm5, %v1583_v1, -inf }
 0x217   :  { %v10455_v29 = vrot.slane %v7860_v62, 7  ;;  %v2579_v59 = vmax.f32 %v2577_v25, %v2578_v40  ;;  %v2345_v24 = vmax.f32 %v10207_v15, %v2344_v45  ;;  %v10458_v54 = vrot.slane %v7861_v6, 6 }
 0x218   :  { %v2573_v38 = vrot.slane %v2572_v50, 2  ;;  %v2496_v52 = vrot.slane %v2495_v10, 2  ;;  %v2586_v63 = vmax.f32 %v2584_v3, %v2585_v18  ;;  %v2592_v16 = vrot.slane %v2591_v28, 4 }
 0x219   :  { %v2504_v37 = vmax.f32 %v2502_v14, %v2503_v35  ;;  %v2580_v22 = vrot.slane %v2579_v59, 2  ;;  %v2717_v60 = vmul.f32 %v10446_v27, %v10233_v43  ;;  %v2491_v12 = vrot.slane %v2490_v7, 1 }
 0x21a   :  { %v2574_v49 = vmax.f32 %v2572_v50, %v2573_v38  ;;  %v2510_v55 = vrot.slane %v2509_v46, 2  ;;  %v2587_v61 = vrot.slane %v2586_v63, 2  ;;  %v2593_v62 = vmax.f32 %v2591_v28, %v2592_v16 }
 0x21b   :  { %v2581_v41 = vmax.f32 %v2579_v59, %v2580_v22  ;;  %v2718_v15 = vmul.f32 %v10446_v27, %v10241_v13  ;;  %v2719_v45 = vmul.f32 %v10446_v27, %v2345_v24  ;;  %v2497_v6 = vmax.f32 %v2495_v10, %v2496_v52  ;;  %v10472_v13 = vld [vmem:[%s12222_s2 + $0x1] ss:$0 sm:$0xff] }
 0x21c   :  { %v2575_v1 = vrot.slane %v2574_v49, 1  ;;  %v2588_v25 = vmax.f32 %v2586_v63, %v2587_v61  ;;  %v2594_v3 = vrot.slane %v2593_v62, 2  ;;  %v2847_v14 = vadd.f32 %v10019_v39, %v10042_v21  ;;  %v12337_v61 = vld [vmem:[#allocation21_spill] sm:$0xff] }
 0x21d   :  { %v2582_v50 = vrot.slane %v2581_v41, 1  ;;  %v2849_v43 = vadd.f32 %v10019_v39, %v2717_v60  ;;  %v2850_v40 = vadd.f32 %v10019_v39, %v2718_v15  ;;  %v2492_v18 = vmax.f32 %v2490_v7, %v2491_v12  ;;  %v12335_v60 = vld [vmem:[#allocation20_spill] sm:$0xff] }
 0x21e   :  { %v2576_v35 = vmax.f32 %v2574_v49, %v2575_v1  ;;  %v2505_v28 = vrot.slane %v2504_v37, 1  ;;  %v2851_v10 = vadd.f32 %v10472_v13, %v2719_v45  ;;  %v7830_v38 = vclamps-f32 %v2847_v14, 1.0  ;;  %v597_v45 = vpop.permute.xlu1 %596  ;;  %v587_v14 = vpop.permute.xlu0 %586 }
 0x21f   :  { %v2589_v59 = vrot.slane %v2588_v25, 1  ;;  %v2595_v24 = vmax.f32 %v2593_v62, %v2594_v3  ;;  %v7831_v21 = vclamps-f32 %v10254_v56, 1.0  ;;  %v7832_v49 = vclamps-f32 %v2849_v43, 1.0 }
 0x220   :  { %v10476_v52 = vmax.f32 %v2509_v46, %v2510_v55  ;;  %v2583_v63 = vmax.f32 %v2581_v41, %v2582_v50  ;;  %v2752_v39 = vmul.f32 %v10446_v27, %v2576_v35  ;;  %v7833_v7 = vclamps-f32 %v2850_v40, 1.0  ;;  %v12338_v46 = vld [vmem:[#allocation22_spill] sm:$0xff] }
 0x221   :  { %v2498_v16 = vrot.slane %v2497_v6, 1  ;;  %v7834_v22 = vclamps-f32 %v2851_v10, 1.0  ;;  %v12336_v12 = vclamps-f32 %v12335_v60, 1.0  ;;  %v3443_v15 = vrot.slane %v7830_v38, 5 }
 0x222   :  { %v10483_v62 = vmax.f32 %v2504_v37, %v2505_v28  ;;  %v2740_v56 = vmul.f32 %v10446_v27, %v2492_v18  ;;  %v3445_v41 = vrot.slane %v7831_v21, 4  ;;  %v2590_v3 = vmax.f32 %v2588_v25, %v2589_v59 }
 0x223   :  { %v3440_v1 = vsel %vm3293_vm7, %v12337_v61, %v12336_v12  ;;  %v2596_v35 = vrot.slane %v2595_v24, 1  ;;  %v3447_v43 = vrot.slane %v7832_v49, 3  ;;  %v2753_v40 = vmul.f32 %v10446_v27, %v2583_v63  ;;  %v945_v12 = vpop.permute.xlu0 %944 }
 0x224   :  { %v3442_v55 = vsel %vm3296_vm8, %v12338_v46, %v3440_v1  ;;  %v10491_v10 = vadd.f32 %v10472_v13, %v2752_v39  ;;  %v3449_v37 = vrot.slane %v7833_v7, 2  ;;  %v10494_v28 = vmax.f32 %v2497_v6, %v2498_v16 }
 0x225   :  { %v3444_v50 = vsel %vm3299_vm10, %v3443_v15, %v3442_v55  ;;  %v3451_v60 = vrot.slane %v7834_v22, 1  ;;  %v634_v21 = vmul.f32 %v10380_v47, %v597_v45  ;;  %v10499_v25 = vadd.f32 %v10472_v13, %v2740_v56  ;;  %v955_v22 = vpop.permute.xlu1 %954  ;;  %v12340_v55 = vld [vmem:[#allocation23_spill] sm:$0xff] }
 0x226   :  { %v3446_v38 = vsel %vm3302_vm9, %v3445_v41, %v3444_v50  ;;  %v632_v49 = vmul.f32 %v10380_v47, %v587_v14  ;;  %v2400_v63 = vrot.slane %v10353_v11, 1  ;;  %v10504_v39 = vmax.f32 %v2595_v24, %v2596_v35 }
 0x227   :  { %v3448_v18 = vsel %vm3305_vm11, %v3447_v43, %v3446_v38  ;;  %v2754_v7 = vmul.f32 %v10446_v27, %v2590_v3  ;;  %v2725_v16 = vmul.f32 %v10446_v27, %v10348_v9  ;;  %v10513_v61 = vadd.f32 %v10472_v13, %v2753_v40  ;;  %v12339_v9 = vld [vmem:[#allocation24_spill] sm:$0xff]  ;;  %v12342_v3 = vld [vmem:[#allocation17_spill] sm:$0xff]  ;;  %v12343_v38 = vld [vmem:[#allocation18_spill] sm:$0xff] }
 0x228   :  { %v3450_v59 = vsel %vm3308_vm12, %v3449_v37, %v3448_v18  ;;  %v7867_v1 = vclamps-f32 %v10491_v10, 1.0  ;;  %v666_v47 = vadd.f32 %v634_v21, %v10410_v53  ;;  %v664_v24 = vadd.f32 %v632_v49, %v10415_v26  ;;  %v8596_v53 = vld [vmem:[%s12221_s1 + $0x2] ss:$0 sm:$0xff] }
 0x229   :  { %v10508_v6 = vsel %vm3311_vm13, %v3451_v60, %v3450_v59  ;;  %v2401_v15 = vmax.f32 %v10353_v11, %v2400_v63  ;;  %v2726_v45 = vmul.f32 %v10446_v27, %v10357_v30  ;;  %v2855_v14 = vadd.f32 %v10472_v13, %v12339_v9 }
 0x22a   :  { %8274 = vmatprep.mubr.msk.f32.mxu0 %vm3606_vm14, %v10508_v6  ;;  %v2857_v56 = vadd.f32 %v10472_v13, %v2725_v16  ;;  %v7839_v46 = vclamps-f32 %v10365_v17, 1.0  ;;  %v12341_v41 = vclamps-f32 %v12340_v55, 1.0  ;;  %v992_v11 = vmul.f32 %v8596_v53, %v955_v22 }
 0x22b   :  { %v990_v26 = vmul.f32 %v8596_v53, %v945_v12  ;;  %v2727_v30 = vmul.f32 %v10446_v27, %v2401_v15  ;;  %v2858_v50 = vadd.f32 %v10472_v13, %v2726_v45  ;;  %v7838_v43 = vclamps-f32 %v2855_v14, 1.0 }
 0x22c   :  { %v3454_v35 = vsel %vm3293_vm7, %v12342_v3, %v12341_v41  ;;  %v7840_v40 = vclamps-f32 %v2857_v56, 1.0  ;;  %v3459_v37 = vrot.slane %v7839_v46, 4  ;;  %v1024_v18 = vadd.f32 %v992_v11, %v666_v47 }
 0x22d   :  { %v3456_v17 = vsel %vm3296_vm8, %v12343_v38, %v3454_v35  ;;  %v1022_v60 = vadd.f32 %v990_v26, %v664_v24  ;;  %v2859_v21 = vadd.f32 %v10472_v13, %v2727_v30  ;;  %v7841_v59 = vclamps-f32 %v2858_v50, 1.0 }
 0x22e   :  { %v3457_v49 = vrot.slane %v7838_v43, 5  ;;  %v3461_v63 = vrot.slane %v7840_v40, 3  ;;  %v10540_v16 = vadd.f32 %v10472_v13, %v2754_v7  ;;  %v1584_v22 = vcombine.high %v1024_v18, %v1024_v18 }
 0x22f   :  { %v1591_v12 = vrot.slane %v1024_v18, %v8899_v33  ;;  %v1550_v15 = vcombine.high %v1022_v60, %v1022_v60  ;;  %v7842_v45 = vclamps-f32 %v2859_v21, 1.0  ;;  %v3463_v14 = vrot.slane %v7841_v59, 2 }
 0x230   :  { %v3458_v9 = vsel %vm3299_vm10, %v3457_v49, %v3456_v17  ;;  %v1557_v56 = vrot.slane %v1022_v60, %v8899_v33  ;;  %v1598_v24 = vrot.slane %v1584_v22, %v8899_v33  ;;  %v7868_v17 = vclamps-f32 %v10513_v61, 1.0 }
 0x231   :  { %v3460_v47 = vsel %vm3302_vm9, %v3459_v37, %v3458_v9  ;;  %v1599_v46 = vcombine.high %v1591_v12, %v1591_v12  ;;  %v2598_v55 = vsel %vm1729_vm5, %v1591_v12, -inf  ;;  %v3465_v41 = vrot.slane %v7842_v45, 1 }
 0x232   :  { %v3462_v7 = vsel %vm3305_vm11, %v3461_v63, %v3460_v47  ;;  %v2599_v3 = vrot.slane %v2598_v55, 4  ;;  %v1564_v35 = vrot.slane %v1550_v15, %v8899_v33  ;;  %v1600_v11 = vcombine.high %v1598_v24, %v1598_v24 }
 0x233   :  { %v3464_v53 = vsel %vm3308_vm12, %v3463_v14, %v3462_v7  ;;  %v2605_v26 = vsel %vm1729_vm5, %v1599_v46, -inf  ;;  %v2612_v30 = vsel %vm1729_vm5, %v1598_v24, -inf  ;;  %v1565_v18 = vcombine.high %v1557_v56, %v1557_v56 }
 0x234   :  { %v10554_v50 = vsel %vm3311_vm13, %v3465_v41, %v3464_v53  ;;  %v2600_v43 = vmax.f32 %v2598_v55, %v2599_v3  ;;  %v2606_v40 = vrot.slane %v2605_v26, 4  ;;  %v2613_v38 = vrot.slane %v2612_v30, 4 }
 0x235   :  { %8275 = vmatmul.mubr.msk.f32.gmra.mrb[10].mxu0 %vm3606_vm14, %v10554_v50  ;;  %v2619_v37 = vsel %vm1729_vm5, %v1600_v11, -inf  ;;  %v2456_v60 = vrot.slane %v10421_v34, 1  ;;  %v1566_v22 = vcombine.high %v1564_v35, %v1564_v35  ;;  %v2542_v12 = vsel %vm1729_vm5, %v1557_v56, -inf }
 0x236   :  { %v2601_v21 = vrot.slane %v2600_v43, 2  ;;  %v2607_v59 = vmax.f32 %v2605_v26, %v2606_v40  ;;  %v2614_v49 = vmax.f32 %v2612_v30, %v2613_v38  ;;  %v2620_v63 = vrot.slane %v2619_v37, 4 }
 0x237   :  { %v2549_v15 = vsel %vm1729_vm5, %v1565_v18, -inf  ;;  %v2556_v45 = vsel %vm1729_vm5, %v1564_v35, -inf  ;;  %v2543_v24 = vrot.slane %v2542_v12, 4  ;;  %v2563_v7 = vsel %vm1729_vm5, %v1566_v22, -inf }
 0x238   :  { %v2602_v61 = vmax.f32 %v2600_v43, %v2601_v21  ;;  %v2608_v9 = vrot.slane %v2607_v59, 2  ;;  %v2615_v14 = vrot.slane %v2614_v49, 2  ;;  %v2621_v47 = vmax.f32 %v2619_v37, %v2620_v63 }
 0x239   :  { %v2550_v46 = vrot.slane %v2549_v15, 4  ;;  %v2557_v55 = vrot.slane %v2556_v45, 4  ;;  %v2544_v26 = vmax.f32 %v2542_v12, %v2543_v24  ;;  %v2564_v40 = vrot.slane %v2563_v7, 4 }
 0x23a   :  { %v2603_v41 = vrot.slane %v2602_v61, 1  ;;  %v2609_v3 = vmax.f32 %v2607_v59, %v2608_v9  ;;  %v10565_v53 = vmax.f32 %v2614_v49, %v2615_v14  ;;  %v2622_v11 = vrot.slane %v2621_v47, 2 }
 0x23b   :  { %v2551_v56 = vmax.f32 %v2549_v15, %v2550_v46  ;;  %v2558_v30 = vmax.f32 %v2556_v45, %v2557_v55  ;;  %v10569_v35 = vmul.f32 %v10446_v27, %v10504_v39  ;;  %v7869_v43 = vclamps-f32 %v10540_v16, 1.0 }
 0x23c   :  { %v10572_v38 = vrot.slane %v7868_v17, 7  ;;  %v2610_v37 = vrot.slane %v2609_v3, 1  ;;  %v2545_v18 = vrot.slane %v2544_v26, 2  ;;  %v2565_v59 = vmax.f32 %v2563_v7, %v2564_v40 }
 0x23d   :  { %v2552_v21 = vrot.slane %v2551_v56, 2  ;;  %v2559_v63 = vrot.slane %v2558_v30, 2  ;;  %v2604_v49 = vmax.f32 %v2602_v61, %v2603_v41  ;;  %v2617_v22 = vrot.slane %v10565_v53, 1 }
 0x23e   :  { %v10575_v12 = vmax.f32 %v2621_v47, %v2622_v11  ;;  %v2457_v15 = vmax.f32 %v10421_v34, %v2456_v60  ;;  %v2546_v45 = vmax.f32 %v2544_v26, %v2545_v18  ;;  %v2566_v14 = vrot.slane %v2565_v59, 2 }
 0x23f   :  { %v2553_v9 = vmax.f32 %v2551_v56, %v2552_v21  ;;  %v2560_v39 = vmax.f32 %v2558_v30, %v2559_v63  ;;  %v10578_v24 = vmax.f32 %v2609_v3, %v2610_v37  ;;  %v2733_v17 = vmul.f32 %v10446_v27, %v10434_v58 }
 0x240   :  { %v2734_v46 = vmul.f32 %v10446_v27, %v10436_v23  ;;  %v2735_v61 = vmul.f32 %v10446_v27, %v2457_v15  ;;  %v2547_v55 = vrot.slane %v2546_v45, 1  ;;  %v2567_v41 = vmax.f32 %v2565_v59, %v2566_v14 }
 0x241   :  { %v2554_v7 = vrot.slane %v2553_v9, 1  ;;  %v2561_v47 = vrot.slane %v2560_v39, 1  ;;  %v2863_v34 = vadd.f32 %v10472_v13, %v10250_v8  ;;  %v2865_v60 = vadd.f32 %v10472_v13, %v2733_v17 }
 0x242   :  { %v2866_v3 = vadd.f32 %v10472_v13, %v2734_v46  ;;  %v2867_v11 = vadd.f32 %v10472_v13, %v2735_v61  ;;  %v2548_v26 = vmax.f32 %v2546_v45, %v2547_v55  ;;  %v7847_v23 = vclamps-f32 %v10440_v0, 1.0 }
 0x243   :  { %v2555_v58 = vmax.f32 %v2553_v9, %v2554_v7  ;;  %v2562_v56 = vmax.f32 %v2560_v39, %v2561_v47  ;;  %v7846_v30 = vclamps-f32 %v2863_v34, 1.0  ;;  %v7848_v40 = vclamps-f32 %v2865_v60, 1.0 }
 0x244   :  { %v7849_v37 = vclamps-f32 %v2866_v3, 1.0  ;;  %v7850_v18 = vclamps-f32 %v2867_v11, 1.0  ;;  %v2748_v21 = vmul.f32 %v10446_v27, %v2548_v26  ;;  %v3468_v8 = vsel %vm3293_vm7, %v10259_v4, %v7843_v19 }
 0x245   :  { %v3473_v63 = vrot.slane %v7847_v23, 4  ;;  %v2512_v59 = vrot.slane %v10476_v52, 1  ;;  %v3470_v15 = vsel %vm3296_vm8, %v10261_v31, %v3468_v8  ;;  %v3471_v45 = vrot.slane %v7846_v30, 5 }
 0x246   :  { %v3475_v9 = vrot.slane %v7848_v40, 3  ;;  %v3477_v0 = vrot.slane %v7849_v37, 2  ;;  %v2880_v39 = vadd.f32 %v10472_v13, %v2748_v21  ;;  %v3479_v14 = vrot.slane %v7850_v18, 1 }
 0x247   :  { %v2513_v17 = vmax.f32 %v10476_v52, %v2512_v59  ;;  %v2741_v48 = vmul.f32 %v10446_v27, %v10494_v28  ;;  %v3472_v46 = vsel %vm3299_vm10, %v3471_v45, %v3470_v15  ;;  %v2742_v19 = vmul.f32 %v10446_v27, %v10483_v62 }
 0x248   :  { %v2871_v4 = vadd.f32 %v10472_v13, %v10276_v42  ;;  %v7855_v31 = vclamps-f32 %v10499_v25, 1.0  ;;  %v3474_v61 = vsel %vm3302_vm9, %v3473_v63, %v3472_v46  ;;  %v3482_v52 = vsel %vm3293_vm7, %v10360_v20, %v7851_v36 }
 0x249   :  { %v2743_v55 = vmul.f32 %v10446_v27, %v2513_v17  ;;  %v2873_v7 = vadd.f32 %v10472_v13, %v2741_v48  ;;  %v3476_v28 = vsel %vm3305_vm11, %v3475_v9, %v3474_v61  ;;  %v2874_v62 = vadd.f32 %v10472_v13, %v2742_v19 }
 0x24a   :  { %v7854_v47 = vclamps-f32 %v2871_v4, 1.0  ;;  %v3484_v42 = vsel %vm3296_vm8, %v10362_v44, %v3482_v52  ;;  %v3478_v25 = vsel %vm3308_vm12, %v3477_v0, %v3476_v28  ;;  %v3487_v3 = vrot.slane %v7855_v31, 4 }
 0x24b   :  { %v2875_v34 = vadd.f32 %v10472_v13, %v2743_v55  ;;  %v7856_v60 = vclamps-f32 %v2873_v7, 1.0  ;;  %v10623_v11 = vsel %vm3311_vm13, %v3479_v14, %v3478_v25  ;;  %v7857_v5 = vclamps-f32 %v2874_v62, 1.0 }
 0x24c   :  { %v3485_v26 = vrot.slane %v7854_v47, 5  ;;  %v2568_v36 = vrot.slane %v2567_v41, 1  ;;  %v2618_v20 = vmax.f32 %v10565_v53, %v2617_v22  ;;  %v2756_v23 = vmul.f32 %v10446_v27, %v2604_v49  ;;  %8277 = vmatprep.mubr.msk.f32.mxu0 %vm3606_vm14, %v10623_v11 }
 0x24d   :  { %v7858_v44 = vclamps-f32 %v2875_v34, 1.0  ;;  %v3489_v30 = vrot.slane %v7856_v60, 3  ;;  %v3491_v37 = vrot.slane %v7857_v5, 2  ;;  %v2749_v21 = vmul.f32 %v10446_v27, %v2555_v58 }
 0x24e   :  { %v3486_v40 = vsel %vm3299_vm10, %v3485_v26, %v3484_v42  ;;  %v2569_v18 = vmax.f32 %v2567_v41, %v2568_v36  ;;  %v2750_v59 = vmul.f32 %v10446_v27, %v2562_v56  ;;  %v2879_v53 = vadd.f32 %v10472_v13, %v10449_v51 }
 0x24f   :  { %v3488_v8 = vsel %vm3302_vm9, %v3487_v3, %v3486_v40  ;;  %v3493_v63 = vrot.slane %v7858_v44, 1  ;;  %v2881_v15 = vadd.f32 %v10472_v13, %v2749_v21  ;;  %v7863_v45 = vclamps-f32 %v2880_v39, 1.0 }
 0x250   :  { %v3490_v49 = vsel %vm3305_vm11, %v3489_v30, %v3488_v8  ;;  %v2751_v22 = vmul.f32 %v10446_v27, %v2569_v18  ;;  %v2882_v41 = vadd.f32 %v10472_v13, %v2750_v59  ;;  %v7862_v58 = vclamps-f32 %v2879_v53, 1.0  ;;  %v12345_v18 = vld [vmem:[#allocation14_spill] sm:$0xff]  ;;  %v12347_v8 = vld [vmem:[#allocation12_spill] sm:$0xff]  ;;  %v12349_v59 = vld [vmem:[#allocation5_spill] sm:$0xff] }
 0x251   :  { %v3492_v9 = vsel %vm3308_vm12, %v3491_v37, %v3490_v49  ;;  %v12344_v0 = vclamps-f32 %v10427_v2, 1.0  ;;  %v7864_v17 = vclamps-f32 %v2881_v15, 1.0  ;;  %v3511_v39 = vrot.slane %v7869_v43, 6  ;;  %v12350_v49 = vld [vmem:[#allocation8_spill] sm:$0xff] }
 0x252   :  { %v10645_v14 = vsel %vm3311_vm13, %v3493_v63, %v3492_v9  ;;  %v2883_v51 = vadd.f32 %v10472_v13, %v2751_v22  ;;  %v2888_v46 = vadd.f32 %v10472_v13, %v2756_v23  ;;  %v7865_v2 = vclamps-f32 %v2882_v41, 1.0  ;;  %v12353_v41 = vld [vmem:[#allocation10_spill] sm:$0xff] }
 0x253   :  { %v3496_v56 = vsel %vm3293_vm7, %v10455_v29, %v12344_v0  ;;  %8278 = vmatmul.mubr.msk.f32.gmra.mrb[12].mxu0 %vm3606_vm14, %v10645_v14  ;;  %v3499_v19 = vrot.slane %v7862_v58, 5  ;;  %v3501_v4 = vrot.slane %v7863_v45, 4  ;;  %v3503_v31 = vrot.slane %v7864_v17, 3 }
 0x254   :  { %v3498_v48 = vsel %vm3296_vm8, %v10458_v54, %v3496_v56  ;;  %v7866_v29 = vclamps-f32 %v2883_v51, 1.0  ;;  %v2624_v61 = vrot.slane %v10575_v12, 1  ;;  %v3505_v7 = vrot.slane %v7865_v2, 2  ;;  %v12356_v51 = vld [vmem:[#allocation11_spill] sm:$0xff] }
 0x255   :  { %v3500_v55 = vsel %vm3299_vm10, %v3499_v19, %v3498_v48  ;;  %v2757_v54 = vmul.f32 %v10446_v27, %v10578_v24  ;;  %v2758_v16 = vmul.f32 %v10446_v27, %v2618_v20  ;;  %v2887_v62 = vadd.f32 %v10472_v13, %v10569_v35  ;;  %v12359_v19 = vld [vmem:[#allocation13_spill] sm:$0xff] }
 0x256   :  { %v3502_v43 = vsel %vm3302_vm9, %v3501_v4, %v3500_v55  ;;  %v3507_v52 = vrot.slane %v7866_v29, 1  ;;  %v2625_v28 = vmax.f32 %v10575_v12, %v2624_v61  ;;  %v7871_v34 = vclamps-f32 %v2888_v46, 1.0  ;;  %v12362_v61 = vld [vmem:[#allocation15_spill] sm:$0xff] }
 0x257   :  { %v3504_v47 = vsel %vm3305_vm11, %v3503_v31, %v3502_v43  ;;  %v2889_v42 = vadd.f32 %v10472_v13, %v2757_v54  ;;  %v2890_v25 = vadd.f32 %v10472_v13, %v2758_v16  ;;  %v7870_v3 = vclamps-f32 %v2887_v62, 1.0 }
 0x258   :  { %v3506_v60 = vsel %vm3308_vm12, %v3505_v7, %v3504_v47  ;;  %v2759_v24 = vmul.f32 %v10446_v27, %v2625_v28  ;;  %v3510_v12 = vsel %vm3293_vm7, %v10572_v38, %v7867_v1  ;;  %v3548_v20 = vrot.slane %v10368_v32, 7 }
 0x259   :  { %v10674_v5 = vsel %vm3311_vm13, %v3507_v52, %v3506_v60  ;;  %v7872_v35 = vclamps-f32 %v2889_v42, 1.0  ;;  %v7873_v26 = vclamps-f32 %v2890_v25, 1.0  ;;  %v3512_v36 = vsel %vm3296_vm8, %v3511_v39, %v3510_v12  ;;  %v12365_v52 = vld [vmem:[#allocation19_spill] sm:$0xff] }
 0x25a   :  { %v3549_v23 = vrot.slane %v10508_v6, 7  ;;  %8280 = vmatprep.mubr.msk.f32.mxu0 %vm3606_vm14, %v10674_v5  ;;  %v2891_v27 = vadd.f32 %v10472_v13, %v2759_v24  ;;  %v3513_v10 = vrot.slane %v7870_v3, 5  ;;  %v3550_v44 = vrot.slane %v10554_v50, 7 }
 0x25b   :  { %v3515_v1 = vrot.slane %v7871_v34, 4  ;;  %v3517_v38 = vrot.slane %v7872_v35, 3  ;;  %v3519_v30 = vrot.slane %v7873_v26, 2  ;;  %v12346_v21 = vrot.slane %v12345_v18, 7 }
 0x25c   :  { %v7874_v40 = vclamps-f32 %v2891_v27, 1.0  ;;  %v3514_v37 = vsel %vm3299_vm10, %v3513_v10, %v3512_v36  ;;  %v12348_v63 = vrot.slane %v12347_v8, 7  ;;  %v12351_v22 = vrot.slane %v12350_v49, 7 }
 0x25d   :  { %v12352_v13 = vmov %v12346_v21  ;;  %v3516_v45 = vsel %vm3302_vm9, %v3515_v1, %v3514_v37  ;;  %v3148_v9 = vand.u32 63, %v12349_v59  ;;  %v12354_v58 = vrot.slane %v12353_v41, 7 }
 0x25e   :  { %v3569_v53 = vsel %vm144_vm0, %v12348_v63, %v12346_v21  ;;  %v3568_v15 = vsel %vm144_vm0, %v12352_v13, %v12351_v22  ;;  %v12355_v0 = vmov %v12351_v22  ;;  %v12357_v17 = vrot.slane %v12356_v51, 7 }
 0x25f   :  { %v3567_v56 = vsel %vm144_vm0, %v12355_v0, %v12354_v58  ;;  %v12358_v48 = vmov %v12354_v58  ;;  %v3518_v46 = vsel %vm3305_vm11, %v3517_v38, %v3516_v45  ;;  %v3521_v2 = vrot.slane %v7874_v40, 1 }
 0x260   :  { %v3566_v39 = vsel %vm144_vm0, %v12358_v48, %v12357_v17  ;;  %v12360_v29 = vrot.slane %v12359_v19, 7  ;;  %v12361_v4 = vmov %v12357_v17  ;;  %v12363_v55 = vrot.slane %v12362_v61, 7 }
 0x261   :  { %v3985_v16 = vrot.slane %v10328_v57, 1  ;;  %v3520_v43 = vsel %vm3308_vm12, %v3519_v30, %v3518_v46  ;;  %v12366_v28 = vrot.slane %v12365_v52, 7  ;;  %v12368_v42 = vrot.slane %v10328_v57, 7 }
 0x262   :  { %v3565_v31 = vsel %vm144_vm0, %v12361_v4, %v12360_v29  ;;  %v12364_v7 = vmov %v12360_v29  ;;  %v12367_v62 = vmov %v12363_v55  ;;  %v10738_v60 = vsel %vm3311_vm13, %v3521_v2, %v3520_v43 }
 0x263   :  { %v3564_v54 = vsel %vm144_vm0, %v12364_v7, %v12363_v55  ;;  %v3563_v47 = vsel %vm144_vm0, %v12367_v62, %v12366_v28  ;;  %v12369_v25 = vmov %v12366_v28  ;;  %v12370_v24 = vmov %v12368_v42  ;;  %8281 = vmatmul.mubr.msk.f32.gmra.mrb[14].mxu0 %vm3606_vm14, %v10738_v60 }
 0x264   :  { %v3562_v34 = vsel %vm144_vm0, %v12369_v25, %v12368_v42  ;;  %v3561_v3 = vsel %vm144_vm0, %v12370_v24, %v3548_v20  ;;  %v3560_v12 = vsel %vm144_vm0, %v3548_v20, %v3549_v23  ;;  %v3559_v35 = vsel %vm144_vm0, %v3549_v23, %v3550_v44 }
 0x265   :  { %v3986_v26 = vrot.slane %v10368_v32, 1  ;;  %v3987_v36 = vrot.slane %v10508_v6, 1  ;;  %v3554_v27 = vrot.slane %v10738_v60, 7  ;;  %vm3571_vm15 = vcmp.ge.s32.totalorder %v3148_v9, 1 }
 0x266   :  { %v3988_v57 = vrot.slane %v10554_v50, 1  ;;  %v3989_v10 = vrot.slane %v10623_v11, 1  ;;  %v12371_v20 = vrot.slane %v12345_v18, 1  ;;  %v12372_v1 = vrot.slane %v12347_v8, 1 }
 0x267   :  { %v12373_v32 = vrot.slane %v12350_v49, 1  ;;  %v3990_v30 = vrot.slane %v10645_v14, 1  ;;  %v3991_v40 = vrot.slane %v10674_v5, 1  ;;  %v12375_v37 = vmov %v12348_v63 }
 0x268   :  { %v4007_v23 = vsel %vm699_vm1, %v12372_v1, %v12371_v20  ;;  %v12374_v6 = vmov %v12371_v20  ;;  %v3570_v21 = vsel %vm144_vm0, %v3554_v27, %v12375_v37  ;;  %v12376_v63 = vrot.slane %v12353_v41, 1 }
 0x269   :  { %v4006_v38 = vsel %vm699_vm1, %v12374_v6, %v12373_v32  ;;  %v12377_v22 = vmov %v12373_v32  ;;  %v3587_v18 = vsel %vm3571_vm15, %v3570_v21, 0.0  ;;  %v12378_v45 = vrot.slane %v12356_v51, 1 }
 0x26a   :  { %v4005_v13 = vsel %vm699_vm1, %v12377_v22, %v12376_v63  ;;  %v12379_v9 = vmov %v12376_v63  ;;  %v12380_v0 = vrot.slane %v12359_v19, 1  ;;  %8285 = vmatprep.mubr.msk.f32.mxu0 %vm3606_vm14, %v3587_v18  ;;  %v12382_v49 = vrot.slane %v12362_v61, 1 }
 0x26b   :  { %v4004_v58 = vsel %vm699_vm1, %v12379_v9, %v12378_v45  ;;  %v12381_v17 = vmov %v12378_v45  ;;  %v12384_v41 = vrot.slane %v12365_v52, 1  ;;  %8286 = vmatmul.mubr.msk.f32.vlgmr.msra.gmra.mrb[0].mxu0 %vm3606_vm14, %v3569_v53  ;;  %v3999_v19 = vsel %vm699_vm1, %v3985_v16, %v3986_v26  ;;  %v8597_v52 = vld [vmem:[%s12221_s1 + $0x70] sm:$0xff] }
 0x26c   :  { %v4003_v48 = vsel %vm699_vm1, %v12381_v17, %v12380_v0  ;;  %v12383_v46 = vmov %v12380_v0  ;;  %v12385_v29 = vmov %v12382_v49  ;;  %v3998_v7 = vsel %vm699_vm1, %v3986_v26, %v3987_v36  ;;  %8310 = vmatpush3.msra.mxu0 %v8597_v52  ;;  %8288 = vmatprep.mubr.msk.f32.mxu0 %vm3606_vm14, %v3568_v15 }
 0x26d   :  { %v4002_v2 = vsel %vm699_vm1, %v12383_v46, %v12382_v49  ;;  %v4001_v4 = vsel %vm699_vm1, %v12385_v29, %v12384_v41  ;;  %v12386_v51 = vmov %v12384_v41  ;;  %v3997_v43 = vsel %vm699_vm1, %v3987_v36, %v3988_v57 }
 0x26e   :  { %v4000_v55 = vsel %vm699_vm1, %v12386_v51, %v3985_v16  ;;  %v3996_v61 = vsel %vm699_vm1, %v3988_v57, %v3989_v10  ;;  %v56_v53 = vadd.s32 64, %v12349_v59  ;;  %v3995_v16 = vsel %vm699_vm1, %v3989_v10, %v3990_v30 }
 0x26f   :  { %v3994_v28 = vsel %vm699_vm1, %v3990_v30, %v3991_v40  ;;  %8289 = vmatmul.mubr.msk.f32.gmra.mrb[2].mxu0 %vm3606_vm14, %v3567_v56  ;;  %v3551_v42 = vrot.slane %v10623_v11, 7  ;;  %v3552_v56 = vrot.slane %v10645_v14, 7  ;;  %v10859_v50 = vadd.s32 56, %v12349_v59 }
 0x270   :  { %8291 = vmatprep.mubr.msk.f32.mxu0 %vm3606_vm14, %v3566_v39  ;;  %v3156_v62 = vand.u32 63, %v56_v53  ;;  %v3553_v39 = vrot.slane %v10674_v5, 7  ;;  %v3992_v25 = vrot.slane %v10738_v60, 1  ;;  %vm4603_vm5 = vcmask 123904  }
 0x271   :  { %v3557_v11 = vsel %vm144_vm0, %v3551_v42, %v3552_v56  ;;  %12387 = vst [vmem:[#allocation16_spill] sm:$0xff] %v10859_v50 }
 0x272   :  { %vm3579_vm2 = vcmp.ge.s32.totalorder %v3156_v62, 1  ;;  %v3555_v14 = vsel %vm144_vm0, %v3553_v39, %v3554_v27 }
 0x273   :  { %8292 = vmatmul.mubr.msk.f32.gmra.mrb[4].mxu0 %vm3606_vm14, %v3565_v31  ;;  %v3595_v15 = vsel %vm3579_vm2, %v3562_v34, 0.0  ;;  %v3558_v31 = vsel %vm144_vm0, %v3550_v44, %v3551_v42  ;;  %v3155_v44 = vand.u32 63, %v10859_v50  ;;  %v12388_v34 = vld [vmem:[#allocation6_spill] sm:$0xff] }
 0x274   :  { %8294 = vmatprep.mubr.msk.f32.mxu0 %vm3606_vm14, %v3564_v54  ;;  %v3556_v54 = vsel %vm144_vm0, %v3552_v56, %v3553_v39  ;;  %v3163_v24 = vand.u32 63, %v12388_v34 }
 0x275   :  { %vm4016_vm3 = vcmp.lt.s32.totalorder %v3155_v44, 63 }
 0x276   :  { %vm4024_vm4 = vcmp.lt.s32.totalorder %v3163_v24, 63 }
 0x277   :  { %8295 = vmatmul.mubr.msk.f32.gmra.mrb[6].mxu0 %vm3606_vm14, %v3563_v47  ;;  %v4032_v47 = vsel %vm4016_vm3, %v4000_v55, 0.0 }
 0x278   :  { %8297 = vmatprep.mubr.msk.f32.mxu0 %vm3606_vm14, %v3595_v15 }
 0x27b   :  { %8298 = vmatmul.mubr.msk.f32.gmra.mrb[8].mxu0 %vm3606_vm14, %v3561_v3  ;;  %v3993_v3 = vsel %vm699_vm1, %v3991_v40, %v3992_v25 }
 0x27c   :  { %8300 = vmatprep.mubr.msk.f32.mxu0 %vm3606_vm14, %v3560_v12  ;;  %v12389_v12 = vmov %v12372_v1 }
 0x27f   :  { %8301 = vmatmul.mubr.msk.f32.gmra.mrb[10].mxu0 %vm3606_vm14, %v3559_v35  ;;  %v4008_v35 = vsel %vm699_vm1, %v3992_v25, %v12389_v12 }
 0x280   :  { %8303 = vmatprep.mubr.msk.f32.mxu0 %vm3606_vm14, %v3558_v31  ;;  %v4040_v60 = vsel %vm4024_vm4, %v4008_v35, 0.0  ;;  %vm6146_vm4 = vcmask 254976  }
 0x283   :  { %8304 = vmatmul.mubr.msk.f32.gmra.mrb[12].mxu0 %vm3606_vm14, %v3557_v11 }
 0x284   :  { %8306 = vmatprep.mubr.msk.f32.mxu0 %vm3606_vm14, %v3556_v54  ;;  %v10911_v54 = vld [vmem:[%s12222_s2 + $0x2] ss:$0 sm:$0xff] }
 0x287   :  { %8307 = vmatmul.mubr.msk.f32.gmra.mrb[14].mxu0 %vm3606_vm14, %v3555_v14 }
 0x288   :  { %8311 = vmatprep.mubr.msk.f32.mxu0 %vm3606_vm14, %v4007_v23 }
 0x28b   :  { %8312 = vmatmul.mubr.msk.f32.vlgmr.msra.gmra.mrb[0].mxu0 %vm3606_vm14, %v4006_v38 }
 0x28c   :  { %8314 = vmatprep.mubr.msk.f32.mxu0 %vm3606_vm14, %v4005_v13 }
 0x28f   :  { %8315 = vmatmul.mubr.msk.f32.gmra.mrb[2].mxu0 %vm3606_vm14, %v4004_v58 }
 0x290   :  { %8317 = vmatprep.mubr.msk.f32.mxu0 %vm3606_vm14, %v4003_v48 }
 0x293   :  { %8318 = vmatmul.mubr.msk.f32.gmra.mrb[4].mxu0 %vm3606_vm14, %v4002_v2 }
 0x294   :  { %8320 = vmatprep.mubr.msk.f32.mxu0 %vm3606_vm14, %v4001_v4 }
 0x297   :  { %8321 = vmatmul.mubr.msk.f32.gmra.mrb[6].mxu0 %vm3606_vm14, %v4032_v47 }
 0x298   :  { %8323 = vmatprep.mubr.msk.f32.mxu0 %vm3606_vm14, %v3999_v19 }
 0x29b   :  { %8324 = vmatmul.mubr.msk.f32.gmra.mrb[8].mxu0 %vm3606_vm14, %v3998_v7 }
 0x29c   :  { %8326 = vmatprep.mubr.msk.f32.mxu0 %vm3606_vm14, %v3997_v43 }
 0x29f   :  { %8327 = vmatmul.mubr.msk.f32.gmra.mrb[10].mxu0 %vm3606_vm14, %v3996_v61 }
 0x2a0   :  { %8329 = vmatprep.mubr.msk.f32.mxu0 %vm3606_vm14, %v3995_v16 }
 0x2a3   :  { %8330 = vmatmul.mubr.msk.f32.gmra.mrb[12].mxu0 %vm3606_vm14, %v3994_v28 }
 0x2a4   :  { %8332 = vmatprep.mubr.msk.f32.mxu0 %vm3606_vm14, %v3993_v3 }
 0x2a7   :  { %8333 = vmatmul.mubr.msk.f32.gmra.mrb[14].mxu0 %vm3606_vm14, %v4040_v60  ;;  %v10920_v60 = vld [vmem:[%s12222_s2 + $0x3] ss:$0 sm:$0xff] }
 0x35e   :  { %v8313_v26 = vpop.f32.mrb[0].mxu0 }
 0x35f   :  { %v4284_v36 = vcombine.high %v8313_v26, %v8313_v26  ;;  %v4291_v27 = vrot.slane %v8313_v26, %v8899_v33  ;;  %v4156_v5 = vpop.f32.mrb[1].mxu0 }
 0x360   :  { %v4267_v57 = vcombine.high %v4156_v5, %v4156_v5  ;;  %v4274_v10 = vrot.slane %v4156_v5, %v8899_v33 }
 0x361   :  { %v4298_v8 = vrot.slane %v4284_v36, %v8899_v33  ;;  %v4299_v20 = vcombine.high %v4291_v27, %v4291_v27  ;;  %v4632_v1 = vsel %vm4603_vm5, %v4291_v27, -inf }
 0x362   :  { %v4633_v23 = vrot.slane %v4632_v1, 4  ;;  %v4281_v32 = vrot.slane %v4267_v57, %v8899_v33  ;;  %v4282_v6 = vcombine.high %v4274_v10, %v4274_v10  ;;  %v4604_v38 = vsel %vm4603_vm5, %v4274_v10, -inf  ;;  %v10892_v30 = vpop.f32.mrb[2].mxu0 }
 0x363   :  { %v4300_v40 = vcombine.high %v4298_v8, %v4298_v8  ;;  %v4639_v37 = vsel %vm4603_vm5, %v4299_v20, -inf  ;;  %v4646_v21 = vsel %vm4603_vm5, %v4298_v8, -inf  ;;  %v4605_v63 = vrot.slane %v4604_v38, 4  ;;  %v10896_v22 = vpop.f32.mrb[3].mxu0 }
 0x364   :  { %v4634_v13 = vmax.f32 %v4632_v1, %v4633_v23  ;;  %v4640_v18 = vrot.slane %v4639_v37, 4  ;;  %v4647_v45 = vrot.slane %v4646_v21, 4  ;;  %v4283_v9 = vcombine.high %v4281_v32, %v4281_v32 }
 0x365   :  { %v4653_v58 = vsel %vm4603_vm5, %v4300_v40, -inf  ;;  %v4606_v0 = vmax.f32 %v4604_v38, %v4605_v63  ;;  %v4611_v17 = vsel %vm4603_vm5, %v4282_v6, -inf  ;;  %v4618_v48 = vsel %vm4603_vm5, %v4281_v32, -inf }
 0x366   :  { %v4635_v49 = vrot.slane %v4634_v13, 2  ;;  %v4641_v46 = vmax.f32 %v4639_v37, %v4640_v18  ;;  %v4648_v2 = vmax.f32 %v4646_v21, %v4647_v45  ;;  %v4654_v41 = vrot.slane %v4653_v58, 4  ;;  %v10901_v29 = vpop.f32.mrb[4].mxu0 }
 0x367   :  { %v4607_v4 = vrot.slane %v4606_v0, 2  ;;  %v4612_v51 = vrot.slane %v4611_v17, 4  ;;  %v4619_v55 = vrot.slane %v4618_v48, 4  ;;  %v4625_v19 = vsel %vm4603_vm5, %v4283_v9, -inf  ;;  %v10904_v7 = vpop.f32.mrb[5].mxu0 }
 0x368   :  { %v4636_v43 = vmax.f32 %v4634_v13, %v4635_v49  ;;  %v4642_v61 = vrot.slane %v4641_v46, 2  ;;  %v4649_v52 = vrot.slane %v4648_v2, 2  ;;  %v4655_v53 = vmax.f32 %v4653_v58, %v4654_v41 }
 0x369   :  { %v4608_v16 = vmax.f32 %v4606_v0, %v4607_v4  ;;  %v4613_v28 = vmax.f32 %v4611_v17, %v4612_v51  ;;  %v4620_v62 = vmax.f32 %v4618_v48, %v4619_v55  ;;  %v4626_v15 = vrot.slane %v4625_v19, 4 }
 0x36a   :  { %v4637_v42 = vrot.slane %v4636_v43, 1  ;;  %v4643_v56 = vmax.f32 %v4641_v46, %v4642_v61  ;;  %v4650_v39 = vmax.f32 %v4648_v2, %v4649_v52  ;;  %v4656_v31 = vrot.slane %v4655_v53, 2  ;;  %v10906_v11 = vpop.f32.mrb[6].mxu0 }
 0x36b   :  { %v4609_v14 = vrot.slane %v4608_v16, 1  ;;  %v4614_v44 = vrot.slane %v4613_v28, 2  ;;  %v4621_v47 = vrot.slane %v4620_v62, 2  ;;  %v4627_v25 = vmax.f32 %v4625_v19, %v4626_v15  ;;  %v10913_v34 = vpop.f32.mrb[7].mxu0 }
 0x36c   :  { %v4638_v24 = vmax.f32 %v4636_v43, %v4637_v42  ;;  %v4644_v3 = vrot.slane %v4643_v56, 1  ;;  %v4651_v12 = vrot.slane %v4650_v39, 1  ;;  %v10915_v35 = vmax.f32 %v4655_v53, %v4656_v31 }
 0x36d   :  { %v4610_v26 = vmax.f32 %v4608_v16, %v4609_v14  ;;  %v4615_v36 = vmax.f32 %v4613_v28, %v4614_v44  ;;  %v4622_v27 = vmax.f32 %v4620_v62, %v4621_v47  ;;  %v4628_v5 = vrot.slane %v4627_v25, 2 }
 0x36e   :  { %v4645_v57 = vmax.f32 %v4643_v56, %v4644_v3  ;;  %v10922_v10 = vmax.f32 %v4650_v39, %v4651_v12  ;;  %v5063_v8 = vmul.f32 %v10911_v54, %v4638_v24  ;;  %v10925_v20 = vpop.f32.mrb[8].mxu0  ;;  %v4318_v21 = vcombine.high %v10892_v30, %v10892_v30 }
 0x36f   :  { %v4616_v1 = vrot.slane %v4615_v36, 1  ;;  %v4623_v23 = vrot.slane %v4622_v27, 1  ;;  %v4629_v32 = vmax.f32 %v4627_v25, %v4628_v5  ;;  %v5059_v6 = vmul.f32 %v10911_v54, %v4610_v26  ;;  %v10928_v38 = vpop.f32.mrb[9].mxu0 }
 0x370   :  { %v10932_v37 = vadd.f32 %v10920_v60, %v5063_v8  ;;  %v4325_v63 = vrot.slane %v10892_v30, %v8899_v33  ;;  %v10942_v58 = vmul.f32 %v10911_v54, %v4645_v57  ;;  %v4332_v0 = vrot.slane %v4318_v21, %v8899_v33 }
 0x371   :  { %v4617_v13 = vmax.f32 %v4615_v36, %v4616_v1  ;;  %v4624_v18 = vmax.f32 %v4622_v27, %v4623_v23  ;;  %v4630_v45 = vrot.slane %v4629_v32, 1  ;;  %v10939_v9 = vadd.f32 %v10920_v60, %v5059_v6 }
 0x372   :  { %v4333_v17 = vcombine.high %v4325_v63, %v4325_v63  ;;  %v4688_v48 = vsel %vm4603_vm5, %v4325_v63, -inf  ;;  %v10946_v49 = vpop.f32.mrb[10].mxu0  ;;  %v4334_v51 = vcombine.high %v4332_v0, %v4332_v0  ;;  %v4702_v43 = vsel %vm4603_vm5, %v4332_v0, -inf }
 0x373   :  { %v4631_v2 = vmax.f32 %v4629_v32, %v4630_v45  ;;  %v5060_v30 = vmul.f32 %v10911_v54, %v4617_v13  ;;  %v5061_v41 = vmul.f32 %v10911_v54, %v4624_v18  ;;  %v10951_v4 = vpop.f32.mrb[11].mxu0  ;;  %v4689_v55 = vrot.slane %v4688_v48, 4 }
 0x374   :  { %v4695_v19 = vsel %vm4603_vm5, %v4333_v17, -inf  ;;  %v4703_v62 = vrot.slane %v4702_v43, 4  ;;  %v4709_v15 = vsel %vm4603_vm5, %v4334_v51, -inf  ;;  %v4301_v42 = vcombine.high %v10896_v22, %v10896_v22 }
 0x375   :  { %v5128_v61 = vadd.f32 %v10920_v60, %v5060_v30  ;;  %v5129_v52 = vadd.f32 %v10920_v60, %v5061_v41  ;;  %v4696_v16 = vrot.slane %v4695_v19, 4  ;;  %v4690_v28 = vmax.f32 %v4688_v48, %v4689_v55 }
 0x376   :  { %v10961_v56 = vpop.f32.mrb[12].mxu0  ;;  %v10964_v39 = vmul.f32 %v10911_v54, %v4631_v2  ;;  %v4710_v44 = vrot.slane %v4709_v15, 4  ;;  %v4704_v24 = vmax.f32 %v4702_v43, %v4703_v62  ;;  %v4308_v3 = vrot.slane %v10896_v22, %v8899_v33 }
 0x377   :  { %v7931_v31 = vclamps-f32 %v5128_v61, 1.0  ;;  %v4697_v14 = vmax.f32 %v4695_v19, %v4696_v16  ;;  %v10966_v47 = vpop.f32.mrb[13].mxu0  ;;  %v4691_v25 = vrot.slane %v4690_v28, 2  ;;  %v4315_v12 = vrot.slane %v4301_v42, %v8899_v33 }
 0x378   :  { %v7932_v26 = vclamps-f32 %v5129_v52, 1.0  ;;  %v4711_v5 = vmax.f32 %v4709_v15, %v4710_v44  ;;  %v4705_v8 = vrot.slane %v4704_v24, 2  ;;  %v4316_v1 = vcombine.high %v4308_v3, %v4308_v3 }
 0x379   :  { %v10971_v36 = vrot.slane %v7931_v31, 7  ;;  %v4698_v27 = vrot.slane %v4697_v14, 2  ;;  %v4692_v57 = vmax.f32 %v4690_v28, %v4691_v25  ;;  %v4317_v23 = vcombine.high %v4315_v12, %v4315_v12 }
 0x37a   :  { %v4712_v6 = vrot.slane %v4711_v5, 2  ;;  %v4660_v21 = vsel %vm4603_vm5, %v4308_v3, -inf  ;;  %v4674_v63 = vsel %vm4603_vm5, %v4315_v12, -inf  ;;  %v4706_v18 = vmax.f32 %v4704_v24, %v4705_v8  ;;  %v10977_v16 = vpop.f32.mrb[14].mxu0 }
 0x37b   :  { %v4699_v32 = vmax.f32 %v4697_v14, %v4698_v27  ;;  %v4693_v13 = vrot.slane %v4692_v57, 1  ;;  %v4661_v22 = vrot.slane %v4660_v21, 4  ;;  %v4667_v45 = vsel %vm4603_vm5, %v4316_v1, -inf  ;;  %v10984_v24 = vpop.f32.mrb[15].mxu0 }
 0x37c   :  { %v4713_v17 = vmax.f32 %v4711_v5, %v4712_v6  ;;  %v4668_v48 = vrot.slane %v4667_v45, 4  ;;  %v4675_v2 = vrot.slane %v4674_v63, 4  ;;  %v4707_v41 = vrot.slane %v4706_v18, 1 }
 0x37d   :  { %v4700_v0 = vrot.slane %v4699_v32, 1  ;;  %v4694_v30 = vmax.f32 %v4692_v57, %v4693_v13  ;;  %v4662_v51 = vmax.f32 %v4660_v21, %v4661_v22  ;;  %v4681_v55 = vsel %vm4603_vm5, %v4317_v23, -inf }
 0x37e   :  { %v4714_v43 = vrot.slane %v4713_v17, 1  ;;  %v4669_v61 = vmax.f32 %v4667_v45, %v4668_v48  ;;  %v4676_v52 = vmax.f32 %v4674_v63, %v4675_v2  ;;  %v4708_v28 = vmax.f32 %v4706_v18, %v4707_v41 }
 0x37f   :  { %v4701_v19 = vmax.f32 %v4699_v32, %v4700_v0  ;;  %v5071_v62 = vmul.f32 %v10911_v54, %v4694_v30  ;;  %v4663_v15 = vrot.slane %v4662_v51, 2  ;;  %v4682_v42 = vrot.slane %v4681_v55, 4 }
 0x380   :  { %v10980_v31 = vrot.slane %v7932_v26, 6  ;;  %v10982_v14 = vmax.f32 %v4713_v17, %v4714_v43  ;;  %v4670_v44 = vrot.slane %v4669_v61, 2  ;;  %v4677_v25 = vrot.slane %v4676_v52, 2 }
 0x381   :  { %v10987_v3 = vmul.f32 %v10911_v54, %v4701_v19  ;;  %v5139_v12 = vadd.f32 %v10920_v60, %v5071_v62  ;;  %v4664_v27 = vmax.f32 %v4662_v51, %v4663_v15  ;;  %v4683_v5 = vmax.f32 %v4681_v55, %v4682_v42 }
 0x382   :  { %v4671_v57 = vmax.f32 %v4669_v61, %v4670_v44  ;;  %v4678_v8 = vmax.f32 %v4676_v52, %v4677_v25  ;;  %v4352_v1 = vcombine.high %v10901_v29, %v10901_v29  ;;  %v4359_v26 = vrot.slane %v10901_v29, %v8899_v33 }
 0x383   :  { %v10995_v23 = vmul.f32 %v10911_v54, %v4708_v28  ;;  %v7942_v32 = vclamps-f32 %v5139_v12, 1.0  ;;  %v4665_v6 = vrot.slane %v4664_v27, 1  ;;  %v4684_v21 = vrot.slane %v4683_v5, 2 }
 0x384   :  { %v4672_v63 = vrot.slane %v4671_v57, 1  ;;  %v4679_v13 = vrot.slane %v4678_v8, 1  ;;  %v4366_v18 = vrot.slane %v4352_v1, %v8899_v33  ;;  %v4367_v22 = vcombine.high %v4359_v26, %v4359_v26 }
 0x385   :  { %v4666_v45 = vmax.f32 %v4664_v27, %v4665_v6  ;;  %v4685_v0 = vmax.f32 %v4683_v5, %v4684_v21  ;;  %v4744_v17 = vsel %vm4603_vm5, %v4359_v26, -inf  ;;  %v4335_v48 = vcombine.high %v10904_v7, %v10904_v7 }
 0x386   :  { %v4673_v2 = vmax.f32 %v4671_v57, %v4672_v63  ;;  %v4680_v29 = vmax.f32 %v4678_v8, %v4679_v13  ;;  %v4368_v30 = vcombine.high %v4366_v18, %v4366_v18  ;;  %v4745_v41 = vrot.slane %v4744_v17, 4 }
 0x387   :  { %v4686_v51 = vrot.slane %v4685_v0, 1  ;;  %v5067_v55 = vmul.f32 %v10911_v54, %v4666_v45  ;;  %v4751_v19 = vsel %vm4603_vm5, %v4367_v22, -inf  ;;  %v4758_v43 = vsel %vm4603_vm5, %v4366_v18, -inf }
 0x388   :  { %v5068_v61 = vmul.f32 %v10911_v54, %v4673_v2  ;;  %v5069_v52 = vmul.f32 %v10911_v54, %v4680_v29  ;;  %v4746_v28 = vmax.f32 %v4744_v17, %v4745_v41  ;;  %v4752_v62 = vrot.slane %v4751_v19, 4 }
 0x389   :  { %v4687_v15 = vmax.f32 %v4685_v0, %v4686_v51  ;;  %v11007_v42 = vadd.f32 %v10920_v60, %v5067_v55  ;;  %v4759_v44 = vrot.slane %v4758_v43, 4  ;;  %v4765_v25 = vsel %vm4603_vm5, %v4368_v30, -inf }
 0x38a   :  { %v5136_v12 = vadd.f32 %v10920_v60, %v5068_v61  ;;  %v5137_v27 = vadd.f32 %v10920_v60, %v5069_v52  ;;  %v4747_v5 = vrot.slane %v4746_v28, 2  ;;  %v4753_v57 = vmax.f32 %v4751_v19, %v4752_v62 }
 0x38b   :  { %v11012_v8 = vrot.slane %v7942_v32, 4  ;;  %v5070_v1 = vmul.f32 %v10911_v54, %v4687_v15  ;;  %v4760_v26 = vmax.f32 %v4758_v43, %v4759_v44  ;;  %v4766_v6 = vrot.slane %v4765_v25, 4 }
 0x38c   :  { %v7939_v21 = vclamps-f32 %v5136_v12, 1.0  ;;  %v7940_v63 = vclamps-f32 %v5137_v27, 1.0  ;;  %v4748_v13 = vmax.f32 %v4746_v28, %v4747_v5  ;;  %v4754_v18 = vrot.slane %v4753_v57, 2 }
 0x38d   :  { %v4761_v45 = vrot.slane %v4760_v26, 2  ;;  %v4767_v0 = vmax.f32 %v4765_v25, %v4766_v6  ;;  %v4342_v17 = vrot.slane %v10904_v7, %v8899_v33  ;;  %v11019_v2 = vadd.f32 %v10920_v60, %v5070_v1 }
 0x38e   :  { %v11021_v32 = vrot.slane %v7939_v21, 7  ;;  %v4749_v29 = vrot.slane %v4748_v13, 1  ;;  %v4755_v30 = vmax.f32 %v4753_v57, %v4754_v18  ;;  %v11023_v41 = vrot.slane %v7940_v63, 6 }
 0x38f   :  { %v4762_v51 = vmax.f32 %v4760_v26, %v4761_v45  ;;  %v4768_v55 = vrot.slane %v4767_v0, 2  ;;  %v4349_v19 = vrot.slane %v4335_v48, %v8899_v33  ;;  %v4350_v52 = vcombine.high %v4342_v17, %v4342_v17 }
 0x390   :  { %v4750_v43 = vmax.f32 %v4748_v13, %v4749_v29  ;;  %v4756_v61 = vrot.slane %v4755_v30, 1  ;;  %v4716_v28 = vsel %vm4603_vm5, %v4342_v17, -inf }
 0x391   :  { %v4763_v62 = vrot.slane %v4762_v51, 1  ;;  %v4769_v7 = vmax.f32 %v4767_v0, %v4768_v55  ;;  %v4351_v15 = vcombine.high %v4349_v19, %v4349_v19  ;;  %v4717_v44 = vrot.slane %v4716_v28, 4 }
 0x392   :  { %v4757_v25 = vmax.f32 %v4755_v30, %v4756_v61  ;;  %v5079_v12 = vmul.f32 %v10911_v54, %v4750_v43  ;;  %v4723_v27 = vsel %vm4603_vm5, %v4350_v52, -inf  ;;  %v4730_v5 = vsel %vm4603_vm5, %v4349_v19, -inf }
 0x393   :  { %v4764_v57 = vmax.f32 %v4762_v51, %v4763_v62  ;;  %v4770_v1 = vrot.slane %v4769_v7, 1  ;;  %v4718_v26 = vmax.f32 %v4716_v28, %v4717_v44  ;;  %v4724_v48 = vrot.slane %v4723_v27, 4 }
 0x394   :  { %v5147_v21 = vadd.f32 %v10920_v60, %v5079_v12  ;;  %v4731_v63 = vrot.slane %v4730_v5, 4  ;;  %v4737_v13 = vsel %vm4603_vm5, %v4351_v15, -inf  ;;  %v11036_v45 = vmul.f32 %v10911_v54, %v4757_v25 }
 0x395   :  { %v11033_v18 = vmax.f32 %v4769_v7, %v4770_v1  ;;  %v4719_v0 = vrot.slane %v4718_v26, 2  ;;  %v4725_v17 = vmax.f32 %v4723_v27, %v4724_v48  ;;  %v11039_v29 = vmul.f32 %v10911_v54, %v4764_v57 }
 0x396   :  { %v4732_v30 = vmax.f32 %v4730_v5, %v4731_v63  ;;  %v4738_v51 = vrot.slane %v4737_v13, 4  ;;  %v4386_v55 = vcombine.high %v10906_v11, %v10906_v11  ;;  %v7950_v19 = vclamps-f32 %v5147_v21, 1.0 }
 0x397   :  { %v4720_v43 = vmax.f32 %v4718_v26, %v4719_v0  ;;  %v4726_v61 = vrot.slane %v4725_v17, 2  ;;  %v4393_v52 = vrot.slane %v10906_v11, %v8899_v33  ;;  %v4369_v15 = vcombine.high %v10913_v34, %v10913_v34 }
 0x398   :  { %v4733_v28 = vrot.slane %v4732_v30, 2  ;;  %v4739_v62 = vmax.f32 %v4737_v13, %v4738_v51  ;;  %v4400_v7 = vrot.slane %v4386_v55, %v8899_v33 }
 0x399   :  { %v4721_v44 = vrot.slane %v4720_v43, 1  ;;  %v4727_v25 = vmax.f32 %v4725_v17, %v4726_v61  ;;  %v4401_v12 = vcombine.high %v4393_v52, %v4393_v52  ;;  %v4800_v27 = vsel %vm4603_vm5, %v4393_v52, -inf }
 0x39a   :  { %v4734_v5 = vmax.f32 %v4732_v30, %v4733_v28  ;;  %v4740_v57 = vrot.slane %v4739_v62, 2  ;;  %v4402_v1 = vcombine.high %v4400_v7, %v4400_v7  ;;  %v4801_v26 = vrot.slane %v4800_v27, 4 }
 0x39b   :  { %v4722_v48 = vmax.f32 %v4720_v43, %v4721_v44  ;;  %v4728_v21 = vrot.slane %v4727_v25, 1  ;;  %v4807_v11 = vsel %vm4603_vm5, %v4401_v12, -inf  ;;  %v4814_v63 = vsel %vm4603_vm5, %v4400_v7, -inf }
 0x39c   :  { %v4735_v13 = vrot.slane %v4734_v5, 1  ;;  %v4741_v0 = vmax.f32 %v4739_v62, %v4740_v57  ;;  %v4802_v51 = vmax.f32 %v4800_v27, %v4801_v26  ;;  %v4808_v55 = vrot.slane %v4807_v11, 4 }
 0x39d   :  { %v4729_v6 = vmax.f32 %v4727_v25, %v4728_v21  ;;  %v5075_v17 = vmul.f32 %v10911_v54, %v4722_v48  ;;  %v4815_v61 = vrot.slane %v4814_v63, 4  ;;  %v4821_v52 = vsel %vm4603_vm5, %v4402_v1, -inf }
 0x39e   :  { %v4736_v30 = vmax.f32 %v4734_v5, %v4735_v13  ;;  %v4742_v28 = vrot.slane %v4741_v0, 1  ;;  %v4803_v22 = vrot.slane %v4802_v51, 2  ;;  %v4809_v46 = vmax.f32 %v4807_v11, %v4808_v55 }
 0x39f   :  { %v11053_v43 = vrot.slane %v7950_v19, 4  ;;  %v5076_v44 = vmul.f32 %v10911_v54, %v4729_v6  ;;  %v4816_v12 = vmax.f32 %v4814_v63, %v4815_v61  ;;  %v4822_v7 = vrot.slane %v4821_v52, 4 }
 0x3a0   :  { %v4743_v53 = vmax.f32 %v4741_v0, %v4742_v28  ;;  %v5077_v62 = vmul.f32 %v10911_v54, %v4736_v30  ;;  %v4804_v27 = vmax.f32 %v4802_v51, %v4803_v22  ;;  %v4810_v25 = vrot.slane %v4809_v46, 2 }
 0x3a1   :  { %12390 = vst [vmem:[#allocation9_spill] sm:$0xff] %v11053_v43  ;;  %v11058_v57 = vadd.f32 %v10920_v60, %v5075_v17  ;;  %v5144_v1 = vadd.f32 %v10920_v60, %v5076_v44  ;;  %v4817_v5 = vrot.slane %v4816_v12, 2  ;;  %v4823_v26 = vmax.f32 %v4821_v52, %v4822_v7 }
 0x3a2   :  { %v5078_v48 = vmul.f32 %v10911_v54, %v4743_v53  ;;  %v5145_v19 = vadd.f32 %v10920_v60, %v5077_v62  ;;  %v4805_v21 = vrot.slane %v4804_v27, 1  ;;  %v4811_v6 = vmax.f32 %v4809_v46, %v4810_v25 }
 0x3a3   :  { %v7947_v11 = vclamps-f32 %v5144_v1, 1.0  ;;  %v4818_v63 = vmax.f32 %v4816_v12, %v4817_v5  ;;  %v4824_v13 = vrot.slane %v4823_v26, 2  ;;  %v4376_v22 = vrot.slane %v10913_v34, %v8899_v33 }
 0x3a4   :  { %v11066_v0 = vadd.f32 %v10920_v60, %v5078_v48  ;;  %v7948_v51 = vclamps-f32 %v5145_v19, 1.0  ;;  %v4806_v55 = vmax.f32 %v4804_v27, %v4805_v21  ;;  %v4812_v17 = vrot.slane %v4811_v6, 1 }
 0x3a5   :  { %v4819_v52 = vrot.slane %v4818_v63, 1  ;;  %v4825_v53 = vmax.f32 %v4823_v26, %v4824_v13  ;;  %v4383_v30 = vrot.slane %v4369_v15, %v8899_v33  ;;  %v11071_v28 = vrot.slane %v7947_v11, 7 }
 0x3a6   :  { %v4813_v44 = vmax.f32 %v4811_v6, %v4812_v17  ;;  %v5087_v12 = vmul.f32 %v10911_v54, %v4806_v55  ;;  %v11074_v34 = vrot.slane %v7948_v51, 6  ;;  %v4384_v62 = vcombine.high %v4376_v22, %v4376_v22 }
 0x3a7   :  { %v4826_v7 = vrot.slane %v4825_v53, 1  ;;  %v4385_v25 = vcombine.high %v4383_v30, %v4383_v30  ;;  %v4820_v27 = vmax.f32 %v4818_v63, %v4819_v52  ;;  %v4772_v5 = vsel %vm4603_vm5, %v4376_v22, -inf }
 0x3a8   :  { %v5155_v1 = vadd.f32 %v10920_v60, %v5087_v12  ;;  %v4786_v26 = vsel %vm4603_vm5, %v4383_v30, -inf  ;;  %v11082_v48 = vmul.f32 %v10911_v54, %v4813_v44  ;;  %v4773_v19 = vrot.slane %v4772_v5, 4 }
 0x3a9   :  { %v11079_v15 = vmax.f32 %v4825_v53, %v4826_v7  ;;  %v4779_v21 = vsel %vm4603_vm5, %v4384_v62, -inf  ;;  %v4787_v13 = vrot.slane %v4786_v26, 4  ;;  %v4793_v51 = vsel %vm4603_vm5, %v4385_v25, -inf }
 0x3aa   :  { %12392 = vst [vmem:[#allocation20_spill] sm:$0xff] %v11082_v48  ;;  %v7958_v6 = vclamps-f32 %v5155_v1, 1.0  ;;  %v4780_v11 = vrot.slane %v4779_v21, 4  ;;  %v4774_v63 = vmax.f32 %v4772_v5, %v4773_v19  ;;  %v4794_v55 = vrot.slane %v4793_v51, 4 }
 0x3ab   :  { %12391 = vst [vmem:[#allocation7_spill] sm:$0xff] %v11079_v15  ;;  %v4420_v22 = vcombine.high %v10925_v20, %v10925_v20  ;;  %v4427_v17 = vrot.slane %v10925_v20, %v8899_v33  ;;  %v11091_v52 = vmul.f32 %v10911_v54, %v4820_v27  ;;  %v4788_v44 = vmax.f32 %v4786_v26, %v4787_v13 }
 0x3ac   :  { %v11093_v53 = vrot.slane %v7958_v6, 4  ;;  %v4781_v30 = vmax.f32 %v4779_v21, %v4780_v11  ;;  %v4775_v12 = vrot.slane %v4774_v63, 2  ;;  %v4795_v7 = vmax.f32 %v4793_v51, %v4794_v55 }
 0x3ad   :  { %12393 = vst [vmem:[#allocation21_spill] sm:$0xff] %v11091_v52  ;;  %v4434_v62 = vrot.slane %v4420_v22, %v8899_v33  ;;  %v4435_v25 = vcombine.high %v4427_v17, %v4427_v17  ;;  %v4789_v5 = vrot.slane %v4788_v44, 2  ;;  %v4856_v19 = vsel %vm4603_vm5, %v4427_v17, -inf }
 0x3ae   :  { %12394 = vst [vmem:[#allocation22_spill] sm:$0xff] %v11093_v53  ;;  %v4782_v1 = vrot.slane %v4781_v30, 2  ;;  %v4403_v46 = vcombine.high %v10928_v38, %v10928_v38  ;;  %v4776_v20 = vmax.f32 %v4774_v63, %v4775_v12  ;;  %v4796_v61 = vrot.slane %v4795_v7, 2 }
 0x3af   :  { %v4436_v27 = vcombine.high %v4434_v62, %v4434_v62  ;;  %v4857_v40 = vrot.slane %v4856_v19, 4  ;;  %v4790_v50 = vmax.f32 %v4788_v44, %v4789_v5  ;;  %v4863_v26 = vsel %vm4603_vm5, %v4435_v25, -inf }
 0x3b0   :  { %v4783_v6 = vmax.f32 %v4781_v30, %v4782_v1  ;;  %v4870_v21 = vsel %vm4603_vm5, %v4434_v62, -inf  ;;  %v4777_v11 = vrot.slane %v4776_v20, 1  ;;  %v4797_v13 = vmax.f32 %v4795_v7, %v4796_v61 }
 0x3b1   :  { %v4858_v51 = vmax.f32 %v4856_v19, %v4857_v40  ;;  %v4864_v55 = vrot.slane %v4863_v26, 4  ;;  %v4791_v59 = vrot.slane %v4790_v50, 1  ;;  %v4871_v17 = vrot.slane %v4870_v21, 4 }
 0x3b2   :  { %v4784_v22 = vrot.slane %v4783_v6, 1  ;;  %v4877_v53 = vsel %vm4603_vm5, %v4436_v27, -inf  ;;  %v4778_v52 = vmax.f32 %v4776_v20, %v4777_v11  ;;  %v4798_v63 = vrot.slane %v4797_v13, 1 }
 0x3b3   :  { %v4859_v12 = vrot.slane %v4858_v51, 2  ;;  %v4865_v48 = vmax.f32 %v4863_v26, %v4864_v55  ;;  %v4792_v30 = vmax.f32 %v4790_v50, %v4791_v59  ;;  %v4872_v44 = vmax.f32 %v4870_v21, %v4871_v17 }
 0x3b4   :  { %v4785_v43 = vmax.f32 %v4783_v6, %v4784_v22  ;;  %v4878_v1 = vrot.slane %v4877_v53, 4  ;;  %v4799_v25 = vmax.f32 %v4797_v13, %v4798_v63  ;;  %v5083_v62 = vmul.f32 %v10911_v54, %v4778_v52 }
 0x3b5   :  { %v4860_v5 = vmax.f32 %v4858_v51, %v4859_v12  ;;  %v4866_v61 = vrot.slane %v4865_v48, 2  ;;  %v5085_v7 = vmul.f32 %v10911_v54, %v4792_v30  ;;  %v4873_v19 = vrot.slane %v4872_v44, 2 }
 0x3b6   :  { %v5084_v40 = vmul.f32 %v10911_v54, %v4785_v43  ;;  %v4879_v15 = vmax.f32 %v4877_v53, %v4878_v1  ;;  %v5086_v20 = vmul.f32 %v10911_v54, %v4799_v25  ;;  %v11107_v27 = vadd.f32 %v10920_v60, %v5083_v62 }
 0x3b7   :  { %v4861_v6 = vrot.slane %v4860_v5, 1  ;;  %v4867_v59 = vmax.f32 %v4865_v48, %v4866_v61  ;;  %v5153_v26 = vadd.f32 %v10920_v60, %v5085_v7  ;;  %v4874_v52 = vmax.f32 %v4872_v44, %v4873_v19 }
 0x3b8   :  { %12395 = vst [vmem:[#allocation24_spill] sm:$0xff] %v11107_v27  ;;  %v5152_v50 = vadd.f32 %v10920_v60, %v5084_v40  ;;  %v4880_v21 = vrot.slane %v4879_v15, 2  ;;  %v11112_v11 = vadd.f32 %v10920_v60, %v5086_v20  ;;  %v4410_v53 = vrot.slane %v10928_v38, %v8899_v33 }
 0x3b9   :  { %v4862_v43 = vmax.f32 %v4860_v5, %v4861_v6  ;;  %v4868_v13 = vrot.slane %v4867_v59, 1  ;;  %v7956_v55 = vclamps-f32 %v5153_v26, 1.0  ;;  %v4875_v22 = vrot.slane %v4874_v52, 1 }
 0x3ba   :  { %12396 = vst [vmem:[#allocation23_spill] sm:$0xff] %v11112_v11  ;;  %v7955_v51 = vclamps-f32 %v5152_v50, 1.0  ;;  %v4881_v17 = vmax.f32 %v4879_v15, %v4880_v21  ;;  %v4417_v30 = vrot.slane %v4403_v46, %v8899_v33  ;;  %v4418_v61 = vcombine.high %v4410_v53, %v4410_v53 }
 0x3bb   :  { %v4869_v63 = vmax.f32 %v4867_v59, %v4868_v13  ;;  %v5095_v12 = vmul.f32 %v10911_v54, %v4862_v43  ;;  %v4876_v25 = vmax.f32 %v4874_v52, %v4875_v22  ;;  %v11122_v5 = vrot.slane %v7956_v55, 6 }
 0x3bc   :  { %v11120_v1 = vrot.slane %v7955_v51, 7  ;;  %v4882_v62 = vrot.slane %v4881_v17, 1  ;;  %v4419_v15 = vcombine.high %v4417_v30, %v4417_v30  ;;  %v4828_v46 = vsel %vm4603_vm5, %v4410_v53, -inf }
 0x3bd   :  { %12398 = vst [vmem:[#allocation18_spill] sm:$0xff] %v11122_v5  ;;  %v11125_v38 = vadd.f32 %v10920_v60, %v5095_v12  ;;  %v11130_v7 = vmul.f32 %v10911_v54, %v4869_v63  ;;  %v4842_v19 = vsel %vm4603_vm5, %v4417_v30, -inf  ;;  %v11135_v20 = vmul.f32 %v10911_v54, %v4876_v25 }
 0x3be   :  { %12397 = vst [vmem:[#allocation17_spill] sm:$0xff] %v11120_v1  ;;  %v11127_v40 = vmax.f32 %v4881_v17, %v4882_v62  ;;  %v4829_v6 = vrot.slane %v4828_v46, 4  ;;  %v4835_v59 = vsel %vm4603_vm5, %v4418_v61, -inf  ;;  %v4843_v50 = vrot.slane %v4842_v19, 4 }
 0x3bf   :  { %12400 = vst [vmem:[#allocation12_spill] sm:$0xff] %v11130_v7  ;;  %12401 = vst [vmem:[#allocation8_spill] sm:$0xff] %v11135_v20  ;;  %v4836_v26 = vrot.slane %v4835_v59, 4  ;;  %v4849_v52 = vsel %vm4603_vm5, %v4419_v15, -inf  ;;  %v4454_v21 = vcombine.high %v10946_v49, %v10946_v49  ;;  %v4461_v43 = vrot.slane %v10946_v49, %v8899_v33 }
 0x3c0   :  { %12399 = vst [vmem:[#allocation14_spill] sm:$0xff] %v11127_v40  ;;  %v7966_v13 = vclamps-f32 %v11125_v38, 1.0  ;;  %v4830_v53 = vmax.f32 %v4828_v46, %v4829_v6  ;;  %v4844_v51 = vmax.f32 %v4842_v19, %v4843_v50  ;;  %v4850_v55 = vrot.slane %v4849_v52, 4 }
 0x3c1   :  { %v4837_v22 = vmax.f32 %v4835_v59, %v4836_v26  ;;  %v4468_v17 = vrot.slane %v4454_v21, %v8899_v33  ;;  %v4469_v63 = vcombine.high %v4461_v43, %v4461_v43  ;;  %v4912_v12 = vsel %vm4603_vm5, %v4461_v43, -inf }
 0x3c2   :  { %v4831_v30 = vrot.slane %v4830_v53, 2  ;;  %v4845_v25 = vrot.slane %v4844_v51, 2  ;;  %v4851_v62 = vmax.f32 %v4849_v52, %v4850_v55  ;;  %v4913_v61 = vrot.slane %v4912_v12, 4 }
 0x3c3   :  { %v4838_v15 = vrot.slane %v4837_v22, 2  ;;  %v4470_v44 = vcombine.high %v4468_v17, %v4468_v17  ;;  %v4919_v48 = vsel %vm4603_vm5, %v4469_v63, -inf  ;;  %v4926_v49 = vsel %vm4603_vm5, %v4468_v17, -inf }
 0x3c4   :  { %v4832_v38 = vmax.f32 %v4830_v53, %v4831_v30  ;;  %v4846_v46 = vmax.f32 %v4844_v51, %v4845_v25  ;;  %v4852_v19 = vrot.slane %v4851_v62, 2  ;;  %v4914_v6 = vmax.f32 %v4912_v12, %v4913_v61 }
 0x3c5   :  { %v4839_v59 = vmax.f32 %v4837_v22, %v4838_v15  ;;  %v4920_v50 = vrot.slane %v4919_v48, 4  ;;  %v4927_v26 = vrot.slane %v4926_v49, 4  ;;  %v4933_v21 = vsel %vm4603_vm5, %v4470_v44, -inf }
 0x3c6   :  { %v4833_v43 = vrot.slane %v4832_v38, 1  ;;  %v4847_v20 = vrot.slane %v4846_v46, 1  ;;  %v4853_v7 = vmax.f32 %v4851_v62, %v4852_v19  ;;  %v4915_v52 = vrot.slane %v4914_v6, 2 }
 0x3c7   :  { %v4840_v55 = vrot.slane %v4839_v59, 1  ;;  %v4921_v5 = vmax.f32 %v4919_v48, %v4920_v50  ;;  %v4928_v40 = vmax.f32 %v4926_v49, %v4927_v26  ;;  %v4934_v11 = vrot.slane %v4933_v21, 4 }
 0x3c8   :  { %v4834_v63 = vmax.f32 %v4832_v38, %v4833_v43  ;;  %v4848_v1 = vmax.f32 %v4846_v46, %v4847_v20  ;;  %v4854_v17 = vrot.slane %v4853_v7, 1  ;;  %v4916_v53 = vmax.f32 %v4914_v6, %v4915_v52 }
 0x3c9   :  { %v4841_v51 = vmax.f32 %v4839_v59, %v4840_v55  ;;  %v4922_v30 = vrot.slane %v4921_v5, 2  ;;  %v4929_v12 = vrot.slane %v4928_v40, 2  ;;  %v4935_v22 = vmax.f32 %v4933_v21, %v4934_v11 }
 0x3ca   :  { %v4855_v25 = vmax.f32 %v4853_v7, %v4854_v17  ;;  %v5091_v61 = vmul.f32 %v10911_v54, %v4834_v63  ;;  %v5093_v44 = vmul.f32 %v10911_v54, %v4848_v1  ;;  %v4917_v15 = vrot.slane %v4916_v53, 1 }
 0x3cb   :  { %v5092_v62 = vmul.f32 %v10911_v54, %v4841_v51  ;;  %v4923_v19 = vmax.f32 %v4921_v5, %v4922_v30  ;;  %v4930_v48 = vmax.f32 %v4928_v40, %v4929_v12  ;;  %v4936_v49 = vrot.slane %v4935_v22, 2 }
 0x3cc   :  { %v5094_v38 = vmul.f32 %v10911_v54, %v4855_v25  ;;  %v11154_v20 = vadd.f32 %v10920_v60, %v5091_v61  ;;  %v5161_v46 = vadd.f32 %v10920_v60, %v5093_v44  ;;  %v4918_v6 = vmax.f32 %v4916_v53, %v4917_v15 }
 0x3cd   :  { %v5160_v11 = vadd.f32 %v10920_v60, %v5092_v62  ;;  %v4924_v7 = vrot.slane %v4923_v19, 1  ;;  %v4931_v59 = vrot.slane %v4930_v48, 1  ;;  %v4937_v50 = vmax.f32 %v4935_v22, %v4936_v49 }
 0x3ce   :  { %12402 = vst [vmem:[#allocation10_spill] sm:$0xff] %v11154_v20  ;;  %v11158_v1 = vrot.slane %v7966_v13, 4  ;;  %v11161_v26 = vadd.f32 %v10920_v60, %v5094_v38  ;;  %v7964_v5 = vclamps-f32 %v5161_v46, 1.0  ;;  %v5103_v40 = vmul.f32 %v10911_v54, %v4918_v6 }
 0x3cf   :  { %v7963_v21 = vclamps-f32 %v5160_v11, 1.0  ;;  %v4925_v43 = vmax.f32 %v4923_v19, %v4924_v7  ;;  %v4932_v52 = vmax.f32 %v4930_v48, %v4931_v59  ;;  %v4938_v55 = vrot.slane %v4937_v50, 1 }
 0x3d0   :  { %12403 = vst [vmem:[#allocation11_spill] sm:$0xff] %v11158_v1  ;;  %12404 = vst [vmem:[#allocation13_spill] sm:$0xff] %v11161_v26  ;;  %v11167_v53 = vadd.f32 %v10920_v60, %v5103_v40  ;;  %v4437_v13 = vcombine.high %v10951_v4, %v10951_v4  ;;  %v11173_v30 = vrot.slane %v7964_v5, 6  ;;  %v4444_v61 = vrot.slane %v10951_v4, %v8899_v33 }
 0x3d1   :  { %v11171_v51 = vrot.slane %v7963_v21, 7  ;;  %v11175_v12 = vmax.f32 %v4937_v50, %v4938_v55  ;;  %v11178_v22 = vmul.f32 %v10911_v54, %v4925_v43  ;;  %v11181_v25 = vmul.f32 %v10911_v54, %v4932_v52 }
 0x3d2   :  { %12406 = vst [vmem:[#allocation19_spill] sm:$0xff] %v11173_v30  ;;  %v4451_v44 = vrot.slane %v4437_v13, %v8899_v33  ;;  %v4488_v15 = vcombine.high %v10961_v56, %v10961_v56  ;;  %v4495_v19 = vrot.slane %v10961_v56, %v8899_v33  ;;  %v11195_v49 = vrot.slane %v10966_v47, %v8899_v33 }
 0x3d3   :  { %12405 = vst [vmem:[#allocation15_spill] sm:$0xff] %v11171_v51  ;;  %12407 = vst [vmem:[#allocation6_spill] sm:$0xff] %v11175_v12  ;;  %v4452_v38 = vcombine.high %v4444_v61, %v4444_v61  ;;  %v4884_v4 = vsel %vm4603_vm5, %v4444_v61, -inf }
 0x3d4   :  { %12408 = vst [vmem:[#allocation25_spill] sm:$0xff] %v11178_v22  ;;  %12409 = vst [vmem:[#allocation26_spill] sm:$0xff] %v11181_v25  ;;  %v4453_v46 = vcombine.high %v4451_v44, %v4451_v44  ;;  %v4885_v11 = vrot.slane %v4884_v4, 4  ;;  %v4898_v7 = vsel %vm4603_vm5, %v4451_v44, -inf  ;;  %v4502_v59 = vrot.slane %v4488_v15, %v8899_v33 }
 0x3d5   :  { %v4503_v56 = vcombine.high %v4495_v19, %v4495_v19  ;;  %v4891_v50 = vsel %vm4603_vm5, %v4452_v38, -inf  ;;  %v4899_v5 = vrot.slane %v4898_v7, 4  ;;  %v4968_v21 = vsel %vm4603_vm5, %v4495_v19, -inf }
 0x3d6   :  { %v4905_v40 = vsel %vm4603_vm5, %v4453_v46, -inf  ;;  %v4886_v43 = vmax.f32 %v4884_v4, %v4885_v11  ;;  %v4892_v52 = vrot.slane %v4891_v50, 4  ;;  %v4504_v13 = vcombine.high %v4502_v59, %v4502_v59 }
 0x3d7   :  { %v4906_v55 = vrot.slane %v4905_v40, 4  ;;  %v4900_v61 = vmax.f32 %v4898_v7, %v4899_v5  ;;  %v4969_v17 = vrot.slane %v4968_v21, 4  ;;  %v4975_v63 = vsel %vm4603_vm5, %v4503_v56, -inf }
 0x3d8   :  { %v4982_v44 = vsel %vm4603_vm5, %v4502_v59, -inf  ;;  %v4887_v6 = vrot.slane %v4886_v43, 2  ;;  %v4893_v15 = vmax.f32 %v4891_v50, %v4892_v52  ;;  %v4976_v62 = vrot.slane %v4975_v63, 4 }
 0x3d9   :  { %v4907_v48 = vmax.f32 %v4905_v40, %v4906_v55  ;;  %v4901_v38 = vrot.slane %v4900_v61, 2  ;;  %v4970_v25 = vmax.f32 %v4968_v21, %v4969_v17  ;;  %v4983_v22 = vrot.slane %v4982_v44, 4 }
 0x3da   :  { %v4989_v46 = vsel %vm4603_vm5, %v4504_v13, -inf  ;;  %v4888_v19 = vmax.f32 %v4886_v43, %v4887_v6  ;;  %v4894_v4 = vrot.slane %v4893_v15, 2  ;;  %v4977_v12 = vmax.f32 %v4975_v63, %v4976_v62 }
 0x3db   :  { %v4908_v11 = vrot.slane %v4907_v48, 2  ;;  %v4902_v1 = vmax.f32 %v4900_v61, %v4901_v38  ;;  %v4971_v7 = vrot.slane %v4970_v25, 2  ;;  %v4984_v5 = vmax.f32 %v4982_v44, %v4983_v22 }
 0x3dc   :  { %v4990_v26 = vrot.slane %v4989_v46, 4  ;;  %v4889_v56 = vrot.slane %v4888_v19, 1  ;;  %v4895_v30 = vmax.f32 %v4893_v15, %v4894_v4  ;;  %v4978_v51 = vrot.slane %v4977_v12, 2 }
 0x3dd   :  { %v4909_v59 = vmax.f32 %v4907_v48, %v4908_v11  ;;  %v4903_v50 = vrot.slane %v4902_v1, 1  ;;  %v4972_v40 = vmax.f32 %v4970_v25, %v4971_v7  ;;  %v4985_v52 = vrot.slane %v4984_v5, 2 }
 0x3de   :  { %v4991_v55 = vmax.f32 %v4989_v46, %v4990_v26  ;;  %v4890_v17 = vmax.f32 %v4888_v19, %v4889_v56  ;;  %v4896_v21 = vrot.slane %v4895_v30, 1  ;;  %v4979_v13 = vmax.f32 %v4977_v12, %v4978_v51 }
 0x3df   :  { %v4910_v20 = vrot.slane %v4909_v59, 1  ;;  %v4904_v6 = vmax.f32 %v4902_v1, %v4903_v50  ;;  %v4973_v43 = vrot.slane %v4972_v40, 1  ;;  %v4986_v27 = vmax.f32 %v4984_v5, %v4985_v52 }
 0x3e0   :  { %v4992_v63 = vrot.slane %v4991_v55, 2  ;;  %v4897_v62 = vmax.f32 %v4895_v30, %v4896_v21  ;;  %v5099_v22 = vmul.f32 %v10911_v54, %v4890_v17  ;;  %v4980_v44 = vrot.slane %v4979_v13, 1 }
 0x3e1   :  { %v4911_v61 = vmax.f32 %v4909_v59, %v4910_v20  ;;  %v5101_v48 = vmul.f32 %v10911_v54, %v4904_v6  ;;  %v4974_v15 = vmax.f32 %v4972_v40, %v4973_v43  ;;  %v4987_v38 = vrot.slane %v4986_v27, 1 }
 0x3e2   :  { %v4993_v25 = vmax.f32 %v4991_v55, %v4992_v63  ;;  %v5100_v26 = vmul.f32 %v10911_v54, %v4897_v62  ;;  %v11213_v51 = vadd.f32 %v10920_v60, %v5099_v22  ;;  %v4981_v1 = vmax.f32 %v4979_v13, %v4980_v44 }
 0x3e3   :  { %v5102_v46 = vmul.f32 %v10911_v54, %v4911_v61  ;;  %v5169_v12 = vadd.f32 %v10920_v60, %v5101_v48  ;;  %v4988_v30 = vmax.f32 %v4986_v27, %v4987_v38  ;;  %v5111_v19 = vmul.f32 %v10911_v54, %v4974_v15  ;;  %v11231_v27 = vld [vmem:[%s12222_s2 + $0x2] ss:$0 sm:$0xff] }
 0x3e4   :  { %v4994_v20 = vrot.slane %v4993_v25, 1  ;;  %v12410_v4 = vclamps-f32 %v11167_v53, 1.0  ;;  %v5168_v7 = vadd.f32 %v10920_v60, %v5100_v26  ;;  %v11234_v54 = vmul.f32 %v11231_v27, %v4981_v1 }
 0x3e5   :  { %v11223_v5 = vadd.f32 %v10920_v60, %v5102_v46  ;;  %v7972_v59 = vclamps-f32 %v5169_v12, 1.0  ;;  %v11237_v53 = vadd.f32 %v10920_v60, %v5111_v19  ;;  %v11240_v52 = vmul.f32 %v11231_v27, %v4988_v30 }
 0x3e6   :  { %v11219_v11 = vrot.slane %v12410_v4, 4  ;;  %v11226_v50 = vmax.f32 %v4993_v25, %v4994_v20  ;;  %v7971_v40 = vclamps-f32 %v5168_v7, 1.0  ;;  %v12413_v55 = vcombine.high %v10966_v47, %v10966_v47 }
 0x3e7   :  { %12412 = vst [vmem:[#allocation28_spill] sm:$0xff] %v11240_v52  ;;  %v4486_v21 = vcombine.high %v11195_v49, %v11195_v49  ;;  %v11249_v6 = vrot.slane %v7972_v59, 6  ;;  %v4940_v60 = vsel %vm4603_vm5, %v11195_v49, -inf  ;;  %v4529_v43 = vrot.slane %v10977_v16, %v8899_v33 }
 0x3e8   :  { %12411 = vst [vmem:[#allocation27_spill] sm:$0xff] %v11219_v11  ;;  %v4485_v17 = vrot.slane %v12413_v55, %v8899_v33  ;;  %v4941_v61 = vrot.slane %v4940_v60, 4  ;;  %v11257_v22 = vrot.slane %v7971_v40, 7  ;;  %v12414_v15 = vcombine.high %v10977_v16, %v10977_v16 }
 0x3e9   :  { %v4947_v47 = vsel %vm4603_vm5, %v4486_v21, -inf  ;;  %v4537_v46 = vcombine.high %v4529_v43, %v4529_v43  ;;  %v5024_v20 = vsel %vm4603_vm5, %v4529_v43, -inf }
 0x3ea   :  { %v4487_v62 = vcombine.high %v4485_v17, %v4485_v17  ;;  %v4948_v44 = vrot.slane %v4947_v47, 4  ;;  %v4954_v48 = vsel %vm4603_vm5, %v4485_v17, -inf  ;;  %v4536_v38 = vrot.slane %v12414_v15, %v8899_v33 }
 0x3eb   :  { %v4942_v49 = vmax.f32 %v4940_v60, %v4941_v61  ;;  %v4955_v25 = vrot.slane %v4954_v48, 4  ;;  %v5025_v7 = vrot.slane %v5024_v20, 4  ;;  %v5031_v59 = vsel %vm4603_vm5, %v4537_v46, -inf }
 0x3ec   :  { %v4961_v26 = vsel %vm4603_vm5, %v4487_v62, -inf  ;;  %v4949_v1 = vmax.f32 %v4947_v47, %v4948_v44  ;;  %v4538_v30 = vcombine.high %v4536_v38, %v4536_v38  ;;  %v5032_v17 = vrot.slane %v5031_v59, 4 }
 0x3ed   :  { %v4962_v12 = vrot.slane %v4961_v26, 4  ;;  %v4943_v19 = vrot.slane %v4942_v49, 2  ;;  %v4956_v4 = vmax.f32 %v4954_v48, %v4955_v25  ;;  %v5038_v16 = vsel %vm4603_vm5, %v4536_v38, -inf }
 0x3ee   :  { %v4950_v40 = vrot.slane %v4949_v1, 2  ;;  %v5026_v61 = vmax.f32 %v5024_v20, %v5025_v7  ;;  %v5039_v62 = vrot.slane %v5038_v16, 4  ;;  %v5033_v44 = vmax.f32 %v5031_v59, %v5032_v17 }
 0x3ef   :  { %v4963_v55 = vmax.f32 %v4961_v26, %v4962_v12  ;;  %v4944_v21 = vmax.f32 %v4942_v49, %v4943_v19  ;;  %v4957_v60 = vrot.slane %v4956_v4, 2  ;;  %v5045_v13 = vsel %vm4603_vm5, %v4538_v30, -inf }
 0x3f0   :  { %v4951_v15 = vmax.f32 %v4949_v1, %v4950_v40  ;;  %v5027_v48 = vrot.slane %v5026_v61, 2  ;;  %v5040_v25 = vmax.f32 %v5038_v16, %v5039_v62  ;;  %v5034_v11 = vrot.slane %v5033_v44, 2 }
 0x3f1   :  { %v4964_v47 = vrot.slane %v4963_v55, 2  ;;  %v4945_v43 = vrot.slane %v4944_v21, 1  ;;  %v4958_v56 = vmax.f32 %v4956_v4, %v4957_v60  ;;  %v5046_v26 = vrot.slane %v5045_v13, 4 }
 0x3f2   :  { %v4952_v63 = vrot.slane %v4951_v15, 1  ;;  %v5028_v38 = vmax.f32 %v5026_v61, %v5027_v48  ;;  %v5041_v49 = vrot.slane %v5040_v25, 2  ;;  %v5035_v7 = vmax.f32 %v5033_v44, %v5034_v11 }
 0x3f3   :  { %v4965_v46 = vmax.f32 %v4963_v55, %v4964_v47  ;;  %v4946_v12 = vmax.f32 %v4944_v21, %v4945_v43  ;;  %v4959_v52 = vrot.slane %v4958_v56, 1  ;;  %v5047_v1 = vmax.f32 %v5045_v13, %v5046_v26  ;;  %v11275_v21 = vld [vmem:[%s12222_s2 + $0x3] ss:$0 sm:$0xff] }
 0x3f4   :  { %v4953_v19 = vmax.f32 %v4951_v15, %v4952_v63  ;;  %v5029_v30 = vrot.slane %v5028_v38, 1  ;;  %v5042_v17 = vmax.f32 %v5040_v25, %v5041_v49  ;;  %v5036_v60 = vrot.slane %v5035_v7, 1  ;;  %v7996_v49 = vld [vmem:[%s12221_s1 + $0xd0] sm:$0xff] }
 0x3f5   :  { %v4966_v20 = vrot.slane %v4965_v46, 1  ;;  %v4960_v40 = vmax.f32 %v4958_v56, %v4959_v52  ;;  %v5107_v59 = vmul.f32 %v11231_v27, %v4946_v12  ;;  %v5048_v55 = vrot.slane %v5047_v1, 2 }
 0x3f6   :  { %v5108_v16 = vmul.f32 %v11231_v27, %v4953_v19  ;;  %v5030_v56 = vmax.f32 %v5028_v38, %v5029_v30  ;;  %v5043_v52 = vrot.slane %v5042_v17, 1  ;;  %v5037_v61 = vmax.f32 %v5035_v7, %v5036_v60 }
 0x3f7   :  { %v4967_v4 = vmax.f32 %v4965_v46, %v4966_v20  ;;  %v5109_v62 = vmul.f32 %v11231_v27, %v4960_v40  ;;  %v11278_v11 = vadd.f32 %v11275_v21, %v5107_v59  ;;  %v5049_v15 = vmax.f32 %v5047_v1, %v5048_v55 }
 0x3f8   :  { %v5176_v63 = vadd.f32 %v11275_v21, %v5108_v16  ;;  %v12415_v47 = vclamps-f32 %v11237_v53, 1.0  ;;  %v5044_v48 = vmax.f32 %v5042_v17, %v5043_v52  ;;  %v5119_v25 = vmul.f32 %v11231_v27, %v5030_v56  ;;  %v7997_v53 = vld [vmem:[%s12221_s1 + $0xd8] sm:$0xff] }
 0x3f9   :  { %v5110_v13 = vmul.f32 %v11231_v27, %v4967_v4  ;;  %v5177_v43 = vadd.f32 %v11275_v21, %v5109_v62  ;;  %v7978_v26 = vclamps-f32 %v11278_v11, 1.0  ;;  %v5050_v38 = vrot.slane %v5049_v15, 1 }
 0x3fa   :  { %v11284_v44 = vrot.slane %v12415_v47, 4  ;;  %v7979_v12 = vclamps-f32 %v5176_v63, 1.0  ;;  %v11299_v20 = vmul.f32 %v11231_v27, %v5037_v61  ;;  %v11302_v7 = vadd.f32 %v11275_v21, %v5119_v25 }
 0x3fb   :  { %v11289_v46 = vadd.f32 %v11275_v21, %v5110_v13  ;;  %v7980_v19 = vclamps-f32 %v5177_v43, 1.0  ;;  %v4505_v1 = vcombine.high %v10984_v24, %v10984_v24  ;;  %v11310_v30 = vmul.f32 %v11231_v27, %v5044_v48 }
 0x3fc   :  { %v11307_v59 = vrot.slane %v7979_v12, 7  ;;  %v4512_v17 = vrot.slane %v10984_v24, %v8899_v33  ;;  %v11316_v16 = vmax.f32 %v5049_v15, %v5050_v38  ;;  %v8458_v55 = vpack.c.bf16 %v7997_v53, %v7996_v49 }
 0x3fd   :  { %v11314_v4 = vrot.slane %v7980_v19, 6  ;;  %v4519_v60 = vrot.slane %v4505_v1, %v8899_v33  ;;  %v12416_v52 = vrot.slane %v10915_v35, 1  ;;  %v5065_v63 = vmul.f32 %v11231_v27, %v10922_v10 }
 0x3fe   :  { %v4520_v62 = vcombine.high %v4512_v17, %v4512_v17  ;;  %v4996_v56 = vsel %vm4603_vm5, %v4512_v17, -inf  ;;  %v7990_v61 = vclamps-f32 %v11302_v7, 1.0  ;;  %8459 = vmatprep.subr.bf16.mxu1 %v8458_v55  ;;  %v5130_v12 = vadd.f32 %v11275_v21, %v10964_v39 }
 0x3ff   :  { %v4659_v13 = vmax.f32 %v10915_v35, %v12416_v52  ;;  %v4521_v24 = vcombine.high %v4519_v60, %v4519_v60  ;;  %v4997_v47 = vrot.slane %v4996_v56, 4  ;;  %v5010_v15 = vsel %vm4603_vm5, %v4519_v60, -inf  ;;  %8461 = vmatpush3.bf16.msra.mxu1 %v8458_v55 }
 0x400   :  { %v5003_v43 = vsel %vm4603_vm5, %v4520_v62, -inf  ;;  %v5011_v48 = vrot.slane %v5010_v15, 4  ;;  %v5132_v49 = vadd.f32 %v11275_v21, %v10942_v58  ;;  %v5133_v7 = vadd.f32 %v11275_v21, %v5065_v63 }
 0x401   :  { %v5066_v25 = vmul.f32 %v11231_v27, %v4659_v13  ;;  %v4998_v35 = vmax.f32 %v4996_v56, %v4997_v47  ;;  %v5004_v38 = vrot.slane %v5003_v43, 4  ;;  %v5017_v10 = vsel %vm4603_vm5, %v4521_v24, -inf }
 0x402   :  { %v5012_v53 = vmax.f32 %v5010_v15, %v5011_v48  ;;  %v5018_v19 = vrot.slane %v5017_v10, 4  ;;  %v7933_v62 = vclamps-f32 %v5130_v12, 1.0  ;;  %v7935_v52 = vclamps-f32 %v5132_v49, 1.0 }
 0x403   :  { %v5134_v1 = vadd.f32 %v11275_v21, %v5066_v25  ;;  %v4999_v17 = vrot.slane %v4998_v35, 2  ;;  %v5005_v60 = vmax.f32 %v5003_v43, %v5004_v38  ;;  %v7936_v55 = vclamps-f32 %v5133_v7, 1.0 }
 0x404   :  { %v5013_v13 = vrot.slane %v5012_v53, 2  ;;  %v5019_v39 = vmax.f32 %v5017_v10, %v5018_v19  ;;  %v12417_v24 = vclamps-f32 %v10939_v9, 1.0  ;;  %v5395_v15 = vrot.slane %v7933_v62, 5 }
 0x405   :  { %v7937_v56 = vclamps-f32 %v5134_v1, 1.0  ;;  %v5000_v47 = vmax.f32 %v4998_v35, %v4999_v17  ;;  %v5006_v40 = vrot.slane %v5005_v60, 2  ;;  %v12418_v43 = vclamps-f32 %v10932_v37, 1.0 }
 0x406   :  { %v5392_v58 = vsel %vm3293_vm7, %v10971_v36, %v12417_v24  ;;  %v5014_v48 = vmax.f32 %v5012_v53, %v5013_v13  ;;  %v5020_v63 = vrot.slane %v5019_v39, 2  ;;  %v5399_v35 = vrot.slane %v7935_v52, 3 }
 0x407   :  { %v5394_v25 = vsel %vm3296_vm8, %v10980_v31, %v5392_v58  ;;  %v5397_v12 = vrot.slane %v12418_v43, 4  ;;  %v5001_v38 = vrot.slane %v5000_v47, 1  ;;  %v5007_v10 = vmax.f32 %v5005_v60, %v5006_v40 }
 0x408   :  { %v5396_v49 = vsel %vm3299_vm10, %v5395_v15, %v5394_v25  ;;  %v5015_v19 = vrot.slane %v5014_v48, 1  ;;  %v5021_v7 = vmax.f32 %v5019_v39, %v5020_v63  ;;  %v5401_v1 = vrot.slane %v7936_v55, 2 }
 0x409   :  { %v5398_v9 = vsel %vm3302_vm9, %v5397_v12, %v5396_v49  ;;  %v5002_v36 = vmax.f32 %v5000_v47, %v5001_v38  ;;  %v5008_v17 = vrot.slane %v5007_v10, 1  ;;  %v5403_v62 = vrot.slane %v7937_v56, 1 }
 0x40a   :  { %v5400_v53 = vsel %vm3305_vm11, %v5399_v35, %v5398_v9  ;;  %v5016_v13 = vmax.f32 %v5014_v48, %v5015_v19  ;;  %v5022_v31 = vrot.slane %v5021_v7, 1  ;;  %v5074_v52 = vmul.f32 %v11231_v27, %v10982_v14 }
 0x40b   :  { %v5402_v37 = vsel %vm3308_vm12, %v5401_v1, %v5400_v53  ;;  %v5009_v24 = vmax.f32 %v5007_v10, %v5008_v17  ;;  %v5115_v40 = vmul.f32 %v11231_v27, %v5002_v36  ;;  %v11354_v39 = vrot.slane %v7990_v61, 4 }
 0x40c   :  { %v11350_v60 = vsel %vm3311_vm13, %v5403_v62, %v5402_v37  ;;  %v5023_v55 = vmax.f32 %v5021_v7, %v5022_v31  ;;  %v5117_v47 = vmul.f32 %v11231_v27, %v5016_v13  ;;  %v5140_v48 = vadd.f32 %v11275_v21, %v10987_v3 }
 0x40d   :  { %v5511_v56 = vrot.slane %v11350_v60, 7  ;;  %8339 = vmatprep.mubr.msk.f32.mxu1 %vm5548_vm6, %v11350_v60  ;;  %v5116_v58 = vmul.f32 %v11231_v27, %v5009_v24  ;;  %v5183_v15 = vadd.f32 %v11275_v21, %v5115_v40  ;;  %v5141_v14 = vadd.f32 %v11275_v21, %v10995_v23 }
 0x40e   :  { %v5118_v61 = vmul.f32 %v11231_v27, %v5023_v55  ;;  %v5185_v63 = vadd.f32 %v11275_v21, %v5117_v47  ;;  %v5142_v25 = vadd.f32 %v11275_v21, %v5074_v52  ;;  %v12419_v43 = vclamps-f32 %v11007_v42, 1.0 }
 0x40f   :  { %v5184_v38 = vadd.f32 %v11275_v21, %v5116_v58  ;;  %v5799_v10 = vrot.slane %v11350_v60, 1  ;;  %v7943_v49 = vclamps-f32 %v5140_v48, 1.0  ;;  %v7944_v3 = vclamps-f32 %v5141_v14, 1.0 }
 0x410   :  { %v5406_v12 = vsel %vm3293_vm7, %v11021_v32, %v12419_v43  ;;  %v5186_v35 = vadd.f32 %v11275_v21, %v5118_v61  ;;  %v7988_v23 = vclamps-f32 %v5185_v63, 1.0  ;;  %v7945_v19 = vclamps-f32 %v5142_v25, 1.0  ;;  %v12423_v25 = vld [vmem:[#allocation7_spill] sm:$0xff] }
 0x411   :  { %v5408_v7 = vsel %vm3296_vm8, %v11023_v41, %v5406_v12  ;;  %v7986_v9 = vclamps-f32 %v5183_v15, 1.0  ;;  %v7987_v1 = vclamps-f32 %v5184_v38, 1.0  ;;  %v12420_v42 = vclamps-f32 %v11019_v2, 1.0 }
 0x412   :  { %v5413_v17 = vrot.slane %v7943_v49, 3  ;;  %v7989_v32 = vclamps-f32 %v5186_v35, 1.0  ;;  %v11380_v53 = vrot.slane %v7988_v23, 6  ;;  %v5415_v62 = vrot.slane %v7944_v3, 2  ;;  %v12424_v49 = vld [vmem:[#allocation9_spill] sm:$0xff]  ;;  %v12425_v35 = vld [vmem:[#allocation20_spill] sm:$0xff] }
 0x413   :  { %v5409_v36 = vrot.slane %v12420_v42, 5  ;;  %v5082_v13 = vmul.f32 %v11231_v27, %v11033_v18  ;;  %v5489_v31 = vrot.slane %v7987_v1, 7  ;;  %v5148_v24 = vadd.f32 %v11275_v21, %v11036_v45  ;;  %v12427_v42 = vld [vmem:[#allocation24_spill] sm:$0xff] }
 0x414   :  { %v5149_v41 = vadd.f32 %v11275_v21, %v11039_v29  ;;  %v5417_v40 = vrot.slane %v7945_v19, 1  ;;  %v12421_v55 = vclamps-f32 %v11058_v57, 1.0  ;;  %v11396_v47 = vrot.slane %v7989_v32, 5  ;;  %v12426_v19 = vld [vmem:[#allocation21_spill] sm:$0xff] }
 0x415   :  { %v5410_v37 = vsel %vm3299_vm10, %v5409_v36, %v5408_v7  ;;  %v5150_v52 = vadd.f32 %v11275_v21, %v5082_v13  ;;  %v7951_v15 = vclamps-f32 %v5148_v24, 1.0  ;;  %v12422_v14 = vclamps-f32 %v11066_v0, 1.0 }
 0x416   :  { %v5412_v2 = vsel %vm3302_vm9, %v11012_v8, %v5410_v37  ;;  %v5420_v18 = vsel %vm3293_vm7, %v11071_v28, %v12421_v55  ;;  %v7952_v45 = vclamps-f32 %v5149_v41, 1.0  ;;  %v11405_v57 = vsel %vm3293_vm7, %v5489_v31, %v7986_v9  ;;  %v12432_v37 = vld [vmem:[#allocation14_spill] sm:$0xff] }
 0x417   :  { %v5414_v58 = vsel %vm3305_vm11, %v5413_v17, %v5412_v2  ;;  %v7953_v29 = vclamps-f32 %v5150_v52, 1.0  ;;  %v5422_v8 = vsel %vm3296_vm8, %v11074_v34, %v5420_v18  ;;  %v5423_v61 = vrot.slane %v12422_v14, 5  ;;  %v12429_v17 = vld [vmem:[#allocation17_spill] sm:$0xff]  ;;  %v12433_v18 = vld [vmem:[#allocation18_spill] sm:$0xff] }
 0x418   :  { %v5416_v48 = vsel %vm3308_vm12, %v5415_v62, %v5414_v58  ;;  %v5427_v63 = vrot.slane %v7951_v15, 3  ;;  %v5090_v43 = vmul.f32 %v11231_v27, %v12423_v25  ;;  %v5429_v38 = vrot.slane %v7952_v45, 2  ;;  %v12430_v62 = vld [vmem:[#allocation23_spill] sm:$0xff]  ;;  %v12434_v15 = vld [vmem:[#allocation12_spill] sm:$0xff]  ;;  %v12436_v25 = vld [vmem:[#allocation22_spill] sm:$0xff] }
 0x419   :  { %v11408_v28 = vsel %vm3311_vm13, %v5417_v40, %v5416_v48  ;;  %v5424_v34 = vsel %vm3299_vm10, %v5423_v61, %v5422_v8  ;;  %v5431_v0 = vrot.slane %v7953_v29, 1  ;;  %v5156_v23 = vadd.f32 %v11275_v21, %v12425_v35  ;;  %v12435_v48 = vld [vmem:[#allocation8_spill] sm:$0xff] }
 0x41a   :  { %v5512_v12 = vrot.slane %v11408_v28, 7  ;;  %8340 = vmatmul.mubr.msk.f32.vlgmr.msra.gmra.mrb[0].mxu1 %vm5548_vm6, %v11408_v28  ;;  %v5426_v3 = vsel %vm3302_vm9, %v12424_v49, %v5424_v34  ;;  %v5157_v7 = vadd.f32 %v11275_v21, %v12426_v19  ;;  %v5158_v9 = vadd.f32 %v11275_v21, %v5090_v43  ;;  %v7994_v49 = vld [vmem:[%s12221_s1 + $0xc0] sm:$0xff] }
 0x41b   :  { %v5428_v1 = vsel %vm3305_vm11, %v5427_v63, %v5426_v3  ;;  %v12428_v36 = vclamps-f32 %v12427_v42, 1.0  ;;  %v12431_v13 = vclamps-f32 %v12430_v62, 1.0  ;;  %v5098_v24 = vmul.f32 %v11231_v27, %v12432_v37  ;;  %v7995_v3 = vld [vmem:[%s12221_s1 + $0xc8] sm:$0xff] }
 0x41c   :  { %v5430_v41 = vsel %vm3308_vm12, %v5429_v38, %v5428_v1  ;;  %v7959_v2 = vclamps-f32 %v5156_v23, 1.0  ;;  %v7960_v40 = vclamps-f32 %v5157_v7, 1.0  ;;  %v7961_v52 = vclamps-f32 %v5158_v9, 1.0  ;;  %v12437_v7 = vld [vmem:[#allocation10_spill] sm:$0xff]  ;;  %v12439_v1 = vld [vmem:[#allocation15_spill] sm:$0xff] }
 0x41d   :  { %v5434_v32 = vsel %vm3293_vm7, %v12429_v17, %v12428_v36  ;;  %v5437_v31 = vrot.slane %v12431_v13, 5  ;;  %v11434_v55 = vsel %vm3311_vm13, %v5431_v0, %v5430_v41  ;;  %v5164_v45 = vadd.f32 %v11275_v21, %v12434_v15  ;;  %v12441_v13 = vld [vmem:[#allocation13_spill] sm:$0xff] }
 0x41e   :  { %v5436_v58 = vsel %vm3296_vm8, %v12433_v18, %v5434_v32  ;;  %v5165_v29 = vadd.f32 %v11275_v21, %v12435_v48  ;;  %v5800_v8 = vrot.slane %v11408_v28, 1  ;;  %v5513_v14 = vrot.slane %v11434_v55, 7  ;;  %8342 = vmatprep.mubr.msk.f32.mxu1 %vm5548_vm6, %v11434_v55  ;;  %v12440_v32 = vld [vmem:[#allocation19_spill] sm:$0xff] }
 0x41f   :  { %v5438_v61 = vsel %vm3299_vm10, %v5437_v31, %v5436_v58  ;;  %v5441_v63 = vrot.slane %v7959_v2, 3  ;;  %v5443_v34 = vrot.slane %v7960_v40, 2  ;;  %v5445_v38 = vrot.slane %v7961_v52, 1 }
 0x420   :  { %v5440_v43 = vsel %vm3302_vm9, %v12436_v25, %v5438_v61  ;;  %v5166_v0 = vadd.f32 %v11275_v21, %v5098_v24  ;;  %v7967_v23 = vclamps-f32 %v5164_v45, 1.0  ;;  %v7968_v19 = vclamps-f32 %v5165_v29, 1.0  ;;  %v12443_v45 = vld [vmem:[#allocation11_spill] sm:$0xff]  ;;  %v12444_v29 = vld [vmem:[#allocation6_spill] sm:$0xff] }
 0x421   :  { %v5442_v35 = vsel %vm3305_vm11, %v5441_v63, %v5440_v43  ;;  %v12438_v9 = vclamps-f32 %v12437_v7, 1.0  ;;  %v12442_v31 = vclamps-f32 %v12441_v13, 1.0  ;;  %v5801_v24 = vrot.slane %v11434_v55, 1  ;;  %v12445_v63 = vld [vmem:[#allocation25_spill] sm:$0xff]  ;;  %v12446_v43 = vld [vmem:[#allocation26_spill] sm:$0xff]  ;;  %v12450_v13 = vld [vmem:[#allocation27_spill] sm:$0xff] }
 0x422   :  { %v5444_v36 = vsel %vm3308_vm12, %v5443_v34, %v5442_v35  ;;  %v7969_v17 = vclamps-f32 %v5166_v0, 1.0  ;;  %v5455_v2 = vrot.slane %v7967_v23, 3  ;;  %v8462_v40 = vpack.c.bf16 %v7995_v3, %v7994_v49 }
 0x423   :  { %v5448_v42 = vsel %vm3293_vm7, %v12439_v1, %v12438_v9  ;;  %v5451_v37 = vrot.slane %v12442_v31, 5  ;;  %v11468_v41 = vsel %vm3311_vm13, %v5445_v38, %v5444_v36  ;;  %v5457_v58 = vrot.slane %v7968_v19, 2 }
 0x424   :  { %v5450_v62 = vsel %vm3296_vm8, %v12440_v32, %v5448_v42  ;;  %v5514_v52 = vrot.slane %v11468_v41, 7  ;;  %8343 = vmatmul.mubr.msk.f32.gmra.mrb[2].mxu1 %vm5548_vm6, %v11468_v41  ;;  %v5459_v15 = vrot.slane %v7969_v17, 1  ;;  %8463 = vmatprep.subr.bf16.mxu1 %v8462_v40  ;;  %v5106_v61 = vmul.f32 %v11231_v27, %v12444_v29 }
 0x425   :  { %v5452_v18 = vsel %vm3299_vm10, %v5451_v37, %v5450_v62  ;;  %v5172_v25 = vadd.f32 %v11275_v21, %v12445_v63  ;;  %v5173_v34 = vadd.f32 %v11275_v21, %v12446_v43  ;;  %8465 = vmatpush3.bf16.msra.mxu1 %v8462_v40  ;;  %v12447_v0 = vclamps-f32 %v11213_v51, 1.0 }
 0x426   :  { %v5454_v48 = vsel %vm3302_vm9, %v12443_v45, %v5452_v18  ;;  %v12448_v3 = vclamps-f32 %v11223_v5, 1.0  ;;  %v5114_v23 = vmul.f32 %v11231_v27, %v11226_v50  ;;  %v5174_v7 = vadd.f32 %v11275_v21, %v5106_v61  ;;  %v12449_v5 = vld [vmem:[#allocation28_spill] sm:$0xff] }
 0x427   :  { %v5456_v38 = vsel %vm3305_vm11, %v5455_v2, %v5454_v48  ;;  %v5462_v49 = vsel %vm3293_vm7, %v11257_v22, %v12447_v0  ;;  %v7975_v9 = vclamps-f32 %v5172_v25, 1.0  ;;  %v7976_v1 = vclamps-f32 %v5173_v34, 1.0 }
 0x428   :  { %v5465_v35 = vrot.slane %v12448_v3, 5  ;;  %v5458_v19 = vsel %vm3308_vm12, %v5457_v58, %v5456_v38  ;;  %v5464_v51 = vsel %vm3296_vm8, %v11249_v6, %v5462_v49  ;;  %v5180_v22 = vadd.f32 %v11275_v21, %v11234_v54 }
 0x429   :  { %v11494_v42 = vsel %vm3311_vm13, %v5459_v15, %v5458_v19  ;;  %v5181_v36 = vadd.f32 %v11275_v21, %v12449_v5  ;;  %v5802_v50 = vrot.slane %v11468_v41, 1  ;;  %v7977_v32 = vclamps-f32 %v5174_v7, 1.0 }
 0x42a   :  { %v5515_v17 = vrot.slane %v11494_v42, 7  ;;  %8345 = vmatprep.mubr.msk.f32.mxu1 %vm5548_vm6, %v11494_v42  ;;  %v5466_v62 = vsel %vm3299_vm10, %v5465_v35, %v5464_v51  ;;  %v5469_v6 = vrot.slane %v7975_v9, 3  ;;  %v5471_v37 = vrot.slane %v7976_v1, 2  ;;  %v12452_v51 = vld [vmem:[#allocation5_spill] sm:$0xff] }
 0x42b   :  { %v5468_v31 = vsel %vm3302_vm9, %v12450_v13, %v5466_v62  ;;  %v5182_v54 = vadd.f32 %v11275_v21, %v5114_v23  ;;  %v5473_v2 = vrot.slane %v7977_v32, 1  ;;  %v7983_v40 = vclamps-f32 %v5180_v22, 1.0 }
 0x42c   :  { %v7984_v18 = vclamps-f32 %v5181_v36, 1.0  ;;  %v5476_v58 = vsel %vm3293_vm7, %v11307_v59, %v7978_v26  ;;  %v5470_v15 = vsel %vm3305_vm11, %v5469_v6, %v5468_v31  ;;  %v12451_v29 = vclamps-f32 %v11289_v46, 1.0 }
 0x42d   :  { %v7985_v45 = vclamps-f32 %v5182_v54, 1.0  ;;  %v5478_v48 = vsel %vm3296_vm8, %v11314_v4, %v5476_v58  ;;  %v5803_v63 = vrot.slane %v11494_v42, 1  ;;  %v5472_v25 = vsel %vm3308_vm12, %v5471_v37, %v5470_v15 }
 0x42e   :  { %v5479_v61 = vrot.slane %v12451_v29, 5  ;;  %v5483_v43 = vrot.slane %v7983_v40, 3  ;;  %v5122_v11 = vmul.f32 %v11231_v27, %v11316_v16  ;;  %v5474_v34 = vsel %vm3311_vm13, %v5473_v2, %v5472_v25  ;;  %v12453_v29 = vld [vmem:[#allocation16_spill] sm:$0xff] }
 0x42f   :  { %v5485_v59 = vrot.slane %v7984_v18, 2  ;;  %v5188_v38 = vadd.f32 %v11275_v21, %v11299_v20  ;;  %v5516_v4 = vrot.slane %v5474_v34, 7  ;;  %8346 = vmatmul.mubr.msk.f32.gmra.mrb[4].mxu1 %vm5548_vm6, %v5474_v34  ;;  %v5487_v0 = vrot.slane %v7985_v45, 1  ;;  %v8064_v25 = vld [vmem:[%s12221_s1 + $0x140] sm:$0xff] }
 0x430   :  { %v5480_v26 = vsel %vm3299_vm10, %v5479_v61, %v5478_v48  ;;  %v5189_v49 = vadd.f32 %v11275_v21, %v11310_v30  ;;  %v5190_v16 = vadd.f32 %v11275_v21, %v5122_v11  ;;  %v5492_v35 = vsel %vm3296_vm8, %v11380_v53, %v11405_v57  ;;  %v8014_v30 = vld [vmem:[%s12221_s1 + $0xe0] sm:$0xff]  ;;  %v8015_v21 = vld [vmem:[%s12221_s1 + $0xe8] sm:$0xff] }
 0x431   :  { %v5482_v46 = vsel %vm3302_vm9, %v11284_v44, %v5480_v26  ;;  %v7991_v3 = vclamps-f32 %v5188_v38, 1.0  ;;  %v5804_v20 = vrot.slane %v5474_v34, 1  ;;  %v5494_v44 = vsel %vm3299_vm10, %v11396_v47, %v5492_v35  ;;  %v8066_v34 = vld [vmem:[%s12221_s1 + $0x150] sm:$0xff]  ;;  %v8067_v26 = vld [vmem:[%s12221_s1 + $0x158] sm:$0xff]  ;;  %v8060_v38 = vld [vmem:[%s12221_s1 + $0x120] sm:$0xff] }
 0x432   :  { %v5484_v27 = vsel %vm3305_vm11, %v5483_v43, %v5482_v46  ;;  %v7992_v19 = vclamps-f32 %v5189_v49, 1.0  ;;  %v7993_v9 = vclamps-f32 %v5190_v16, 1.0  ;;  %v5496_v53 = vsel %vm3302_vm9, %v11354_v39, %v5494_v44  ;;  %v8065_v43 = vld [vmem:[%s12221_s1 + $0x148] sm:$0xff]  ;;  %v8063_v49 = vld [vmem:[%s12221_s1 + $0x138] sm:$0xff]  ;;  %v8076_v16 = vld [vmem:[%s12221_s1 + $0x160] sm:$0xff] }
 0x433   :  { %v5486_v23 = vsel %vm3308_vm12, %v5485_v59, %v5484_v27  ;;  %v5497_v57 = vrot.slane %v7991_v3, 3  ;;  %v5319_v22 = vand.u32 31, %v12452_v51  ;;  %v8466_v32 = vpack.c.bf16 %v8015_v21, %v8014_v30  ;;  %v8077_v3 = vld [vmem:[%s12221_s1 + $0x168] sm:$0xff] }
 0x434   :  { %v5488_v7 = vsel %vm3311_vm13, %v5487_v0, %v5486_v23  ;;  %v5499_v47 = vrot.slane %v7992_v19, 2  ;;  %v5501_v36 = vrot.slane %v7993_v9, 1  ;;  %v5525_v62 = vsel %vm144_vm0, %v5511_v56, %v5512_v12  ;;  %v8062_v0 = vld [vmem:[%s12221_s1 + $0x130] sm:$0xff] }
 0x435   :  { %v5517_v1 = vrot.slane %v5488_v7, 7  ;;  %8348 = vmatprep.mubr.msk.f32.mxu1 %vm5548_vm6, %v5488_v7  ;;  %v5805_v42 = vrot.slane %v5488_v7, 1  ;;  %v5498_v5 = vsel %vm3305_vm11, %v5497_v57, %v5496_v53  ;;  %v5524_v13 = vsel %vm144_vm0, %v5512_v12, %v5513_v14  ;;  %8467 = vmatprep.subr.bf16.mxu1 %v8466_v32 }
 0x436   :  { %v5500_v39 = vsel %vm3308_vm12, %v5499_v47, %v5498_v5  ;;  %v5523_v31 = vsel %vm144_vm0, %v5513_v14, %v5514_v52  ;;  %v52_v6 = vadd.s32 32, %v12452_v51  ;;  %v5522_v54 = vsel %vm144_vm0, %v5514_v52, %v5515_v17 }
 0x437   :  { %v5502_v37 = vsel %vm3311_vm13, %v5501_v36, %v5500_v39  ;;  %v5521_v12 = vsel %vm144_vm0, %v5515_v17, %v5516_v4  ;;  %v5520_v2 = vsel %vm144_vm0, %v5516_v4, %v5517_v1  ;;  %vm5527_vm14 = vcmp.ge.s32.totalorder %v5319_v22, 1  ;;  %v8061_v4 = vld [vmem:[%s12221_s1 + $0x128] sm:$0xff] }
 0x438   :  { %v5518_v40 = vrot.slane %v5502_v37, 7  ;;  %8349 = vmatmul.mubr.msk.f32.gmra.mrb[6].mxu1 %vm5548_vm6, %v5502_v37  ;;  %v5806_v14 = vrot.slane %v5502_v37, 1  ;;  %v5813_v18 = vsel %vm699_vm1, %v5799_v10, %v5800_v8  ;;  %v5812_v52 = vsel %vm699_vm1, %v5800_v8, %v5801_v24 }
 0x439   :  { %v5811_v17 = vsel %vm699_vm1, %v5801_v24, %v5802_v50  ;;  %v5810_v58 = vsel %vm699_vm1, %v5802_v50, %v5803_v63  ;;  %v5323_v15 = vand.u32 31, %v52_v6  ;;  %v5809_v55 = vsel %vm699_vm1, %v5803_v63, %v5804_v20 }
 0x43a   :  { %v5526_v28 = vsel %vm144_vm0, %v5518_v40, %v5511_v56  ;;  %v5519_v8 = vsel %vm144_vm0, %v5517_v1, %v5518_v40  ;;  %v5808_v24 = vsel %vm699_vm1, %v5804_v20, %v5805_v42  ;;  %v5807_v41 = vsel %vm699_vm1, %v5805_v42, %v5806_v14 }
 0x43b   :  { %v5535_v45 = vsel %vm5527_vm14, %v5526_v28, 0.0  ;;  %v5814_v56 = vsel %vm699_vm1, %v5806_v14, %v5799_v10  ;;  %vm5531_vm15 = vcmp.ge.s32.totalorder %v5323_v15, 1  ;;  %v11627_v48 = vadd.s32 24, %v12452_v51 }
 0x43c   :  { %8355 = vmatprep.mubr.msk.f32.mxu1 %vm5548_vm6, %v5535_v45  ;;  %v5539_v50 = vsel %vm5531_vm15, %v5522_v54, 0.0  ;;  %v5326_v61 = vand.u32 31, %v12453_v29  ;;  %v8470_v11 = vpack.c.bf16 %v8065_v43, %v8064_v25  ;;  %v8474_v59 = vpack.c.bf16 %v8067_v26, %v8066_v34 }
 0x43d   :  { %8356 = vmatmul.mubr.msk.f32.vlgmr.msra.gmra.mrb[0].mxu1 %vm5548_vm6, %v5525_v62  ;;  %v5322_v60 = vand.u32 31, %v11627_v48  ;;  %v11659_v46 = vpack.c.bf16 %v8061_v4, %v8060_v38  ;;  %v11676_v19 = vadd.s32 16, %v12452_v51  ;;  %v11679_v21 = vpack.c.bf16 %v8063_v49, %v8062_v0  ;;  %v11707_v38 = vld [vmem:[%s12222_s2 + $0x4] ss:$0 sm:$0xff] }
 0x43e   :  { %8469 = vmatpush3.bf16.msra.mxu1 %v8466_v32  ;;  %8358 = vmatprep.mubr.msk.f32.mxu1 %vm5548_vm6, %v5524_v13  ;;  %vm5822_vm3 = vcmp.lt.s32.totalorder %v5326_v61, 31  ;;  %v6510_v7 = vand.u32 15, %v12452_v51  ;;  %v11684_v1 = vpack.c.bf16 %v8077_v3, %v8076_v16  ;;  %vm6631_vm5 = vcmask 261120  }
 0x43f   :  { %vm5818_vm2 = vcmp.lt.s32.totalorder %v5322_v60, 31  ;;  %v5830_v63 = vsel %vm5822_vm3, %v5814_v56, 0.0  ;;  %8471 = vmatprep.subr.bf16.mxu1 %v8470_v11 }
 0x440   :  { %v5826_v10 = vsel %vm5818_vm2, %v5810_v58, 0.0 }
 0x441   :  { %8359 = vmatmul.mubr.msk.f32.gmra.mrb[2].mxu1 %vm5548_vm6, %v5523_v31 }
 0x442   :  { %8361 = vmatprep.mubr.msk.f32.mxu1 %vm5548_vm6, %v5539_v50 }
 0x445   :  { %8362 = vmatmul.mubr.msk.f32.gmra.mrb[4].mxu1 %vm5548_vm6, %v5521_v12 }
 0x446   :  { %8364 = vmatprep.mubr.msk.f32.mxu1 %vm5548_vm6, %v5520_v2 }
 0x449   :  { %8365 = vmatmul.mubr.msk.f32.gmra.mrb[6].mxu1 %vm5548_vm6, %v5519_v8 }
 0x44a   :  { %8371 = vmatprep.mubr.msk.f32.mxu1 %vm5548_vm6, %v5813_v18 }
 0x44d   :  { %8372 = vmatmul.mubr.msk.f32.vlgmr.msra.gmra.mrb[0].mxu1 %vm5548_vm6, %v5812_v52 }
 0x44e   :  { %8374 = vmatprep.mubr.msk.f32.mxu1 %vm5548_vm6, %v5811_v17  ;;  %8473 = vmatpush3.bf16.msra.mxu1 %v8470_v11 }
 0x44f   :  { %8475 = vmatprep.subr.bf16.mxu1 %v8474_v59 }
 0x451   :  { %8375 = vmatmul.mubr.msk.f32.gmra.mrb[2].mxu1 %vm5548_vm6, %v5826_v10 }
 0x452   :  { %8377 = vmatprep.mubr.msk.f32.mxu1 %vm5548_vm6, %v5809_v55  ;;  %8477 = vmatpush3.bf16.msra.mxu1 %v8474_v59 }
 0x453   :  { %8479 = vmatprep.subr.bf16.mxu1 %v11659_v46 }
 0x455   :  { %8378 = vmatmul.mubr.msk.f32.gmra.mrb[4].mxu1 %vm5548_vm6, %v5808_v24 }
 0x456   :  { %8380 = vmatprep.mubr.msk.f32.mxu1 %vm5548_vm6, %v5807_v41 }
 0x459   :  { %8381 = vmatmul.mubr.msk.f32.gmra.mrb[6].mxu1 %vm5548_vm6, %v5830_v63  ;;  %vm6614_vm6 = vcmp.ge.s32.totalorder %v6510_v7, 1 }
 0x520   :  { %v8373_v27 = vpop.f32.mrb[0].mxu1 }
 0x521   :  { %v5995_v35 = vcombine.high %v8373_v27, %v8373_v27  ;;  %v6002_v20 = vrot.slane %v8373_v27, %v8899_v33  ;;  %v5923_v23 = vpop.f32.mrb[1].mxu1 }
 0x522   :  { %v5978_v44 = vcombine.high %v5923_v23, %v5923_v23  ;;  %v5985_v30 = vrot.slane %v5923_v23, %v8899_v33 }
 0x523   :  { %v6009_v9 = vrot.slane %v5995_v35, %v8899_v33  ;;  %v6010_v53 = vcombine.high %v6002_v20, %v6002_v20  ;;  %v6175_v57 = vsel %vm6146_vm4, %v6002_v20, -inf }
 0x524   :  { %v6176_v42 = vrot.slane %v6175_v57, 4  ;;  %v5992_v47 = vrot.slane %v5978_v44, %v8899_v33  ;;  %v5993_v22 = vcombine.high %v5985_v30, %v5985_v30  ;;  %v6147_v5 = vsel %vm6146_vm4, %v5985_v30, -inf  ;;  %v11688_v36 = vpop.f32.mrb[2].mxu1  ;;  %v11714_v44 = vld [vmem:[%s12222_s2 + $0x5] ss:$0 sm:$0xff] }
 0x525   :  { %v6011_v32 = vcombine.high %v6009_v9, %v6009_v9  ;;  %v6182_v62 = vsel %vm6146_vm4, %v6010_v53, -inf  ;;  %v6189_v39 = vsel %vm6146_vm4, %v6009_v9, -inf  ;;  %v6148_v13 = vrot.slane %v6147_v5, 4  ;;  %v11692_v31 = vpop.f32.mrb[3].mxu1 }
 0x526   :  { %v6177_v6 = vmax.f32 %v6175_v57, %v6176_v42  ;;  %v6183_v37 = vrot.slane %v6182_v62, 4  ;;  %v6190_v54 = vrot.slane %v6189_v39, 4  ;;  %v5994_v12 = vcombine.high %v5992_v47, %v5992_v47 }
 0x527   :  { %v6196_v2 = vsel %vm6146_vm4, %v6011_v32, -inf  ;;  %v6149_v40 = vmax.f32 %v6147_v5, %v6148_v13  ;;  %v6154_v14 = vsel %vm6146_vm4, %v5993_v22, -inf  ;;  %v6161_v18 = vsel %vm6146_vm4, %v5992_v47, -inf }
 0x528   :  { %v6178_v52 = vrot.slane %v6177_v6, 2  ;;  %v6184_v17 = vmax.f32 %v6182_v62, %v6183_v37  ;;  %v6191_v58 = vmax.f32 %v6189_v39, %v6190_v54  ;;  %v6197_v28 = vrot.slane %v6196_v2, 4  ;;  %v11697_v15 = vpop.f32.mrb[4].mxu1 }
 0x529   :  { %v6150_v8 = vrot.slane %v6149_v40, 2  ;;  %v6155_v55 = vrot.slane %v6154_v14, 4  ;;  %v6162_v45 = vrot.slane %v6161_v18, 4  ;;  %v6168_v24 = vsel %vm6146_vm4, %v5994_v12, -inf  ;;  %v11700_v41 = vpop.f32.mrb[5].mxu1 }
 0x52a   :  { %v6179_v56 = vmax.f32 %v6177_v6, %v6178_v52  ;;  %v6185_v50 = vrot.slane %v6184_v17, 2  ;;  %v6192_v60 = vrot.slane %v6191_v58, 2  ;;  %v6198_v10 = vmax.f32 %v6196_v2, %v6197_v28 }
 0x52b   :  { %v6151_v29 = vmax.f32 %v6149_v40, %v6150_v8  ;;  %v6156_v61 = vmax.f32 %v6154_v14, %v6155_v55  ;;  %v6163_v63 = vmax.f32 %v6161_v18, %v6162_v45  ;;  %v6169_v25 = vrot.slane %v6168_v24, 4 }
 0x52c   :  { %v6180_v43 = vrot.slane %v6179_v56, 1  ;;  %v6186_v11 = vmax.f32 %v6184_v17, %v6185_v50  ;;  %v6193_v34 = vmax.f32 %v6191_v58, %v6192_v60  ;;  %v6199_v26 = vrot.slane %v6198_v10, 2  ;;  %v11702_v59 = vpop.f32.mrb[6].mxu1 }
 0x52d   :  { %v6152_v4 = vrot.slane %v6151_v29, 1  ;;  %v6157_v0 = vrot.slane %v6156_v61, 2  ;;  %v6164_v49 = vrot.slane %v6163_v63, 2  ;;  %v6170_v27 = vmax.f32 %v6168_v24, %v6169_v25  ;;  %v11709_v16 = vpop.f32.mrb[7].mxu1 }
 0x52e   :  { %v6181_v3 = vmax.f32 %v6179_v56, %v6180_v43  ;;  %v6187_v35 = vrot.slane %v6186_v11, 1  ;;  %v6194_v20 = vrot.slane %v6193_v34, 1  ;;  %v6200_v23 = vmax.f32 %v6198_v10, %v6199_v26 }
 0x52f   :  { %v6153_v30 = vmax.f32 %v6151_v29, %v6152_v4  ;;  %v6158_v9 = vmax.f32 %v6156_v61, %v6157_v0  ;;  %v6165_v53 = vmax.f32 %v6163_v63, %v6164_v49  ;;  %v6171_v57 = vrot.slane %v6170_v27, 2 }
 0x530   :  { %v6188_v42 = vmax.f32 %v6186_v11, %v6187_v35  ;;  %v6195_v47 = vmax.f32 %v6193_v34, %v6194_v20  ;;  %v6201_v22 = vrot.slane %v6200_v23, 1  ;;  %v6382_v5 = vmul.f32 %v11707_v38, %v6181_v3 }
 0x531   :  { %v6159_v32 = vrot.slane %v6158_v9, 1  ;;  %v6166_v62 = vrot.slane %v6165_v53, 1  ;;  %v6172_v39 = vmax.f32 %v6170_v27, %v6171_v57  ;;  %v6378_v13 = vmul.f32 %v11707_v38, %v6153_v30 }
 0x532   :  { %v11718_v6 = vmax.f32 %v6200_v23, %v6201_v22  ;;  %v11721_v37 = vmul.f32 %v11707_v38, %v6188_v42  ;;  %v11724_v54 = vmul.f32 %v11707_v38, %v6195_v47  ;;  %v6418_v12 = vadd.f32 %v11714_v44, %v6382_v5 }
 0x533   :  { %v6160_v2 = vmax.f32 %v6158_v9, %v6159_v32  ;;  %v6167_v40 = vmax.f32 %v6165_v53, %v6166_v62  ;;  %v6173_v14 = vrot.slane %v6172_v39, 1  ;;  %v11728_v18 = vadd.f32 %v11714_v44, %v6378_v13 }
 0x534   :  { %v8032_v52 = vclamps-f32 %v6418_v12, 1.0  ;;  %v6029_v17 = vcombine.high %v11688_v36, %v11688_v36  ;;  %v6036_v58 = vrot.slane %v11688_v36, %v8899_v33  ;;  %v6012_v28 = vcombine.high %v11692_v31, %v11692_v31 }
 0x535   :  { %v6174_v8 = vmax.f32 %v6172_v39, %v6173_v14  ;;  %v6379_v55 = vmul.f32 %v11707_v38, %v6160_v2  ;;  %v6380_v45 = vmul.f32 %v11707_v38, %v6167_v40  ;;  %v8028_v24 = vclamps-f32 %v11728_v18, 1.0 }
 0x536   :  { %v11739_v56 = vrot.slane %v8032_v52, 4  ;;  %v6043_v50 = vrot.slane %v6029_v17, %v8899_v33  ;;  %v6044_v60 = vcombine.high %v6036_v58, %v6036_v58  ;;  %v6231_v10 = vsel %vm6146_vm4, %v6036_v58, -inf }
 0x537   :  { %v6381_v29 = vmul.f32 %v11707_v38, %v6174_v8  ;;  %v6415_v36 = vadd.f32 %v11714_v44, %v6379_v55  ;;  %v6416_v61 = vadd.f32 %v11714_v44, %v6380_v45  ;;  %v6232_v63 = vrot.slane %v6231_v10, 4 }
 0x538   :  { %v6045_v25 = vcombine.high %v6043_v50, %v6043_v50  ;;  %v6238_v43 = vsel %vm6146_vm4, %v6044_v60, -inf  ;;  %v6245_v11 = vsel %vm6146_vm4, %v6043_v50, -inf  ;;  %v6019_v34 = vrot.slane %v11692_v31, %v8899_v33 }
 0x539   :  { %v11751_v26 = vadd.f32 %v11714_v44, %v6381_v29  ;;  %v8029_v4 = vclamps-f32 %v6415_v36, 1.0  ;;  %v8030_v0 = vclamps-f32 %v6416_v61, 1.0  ;;  %v6233_v49 = vmax.f32 %v6231_v10, %v6232_v63 }
 0x53a   :  { %v6239_v27 = vrot.slane %v6238_v43, 4  ;;  %v6246_v3 = vrot.slane %v6245_v11, 4  ;;  %v6252_v35 = vsel %vm6146_vm4, %v6045_v25, -inf  ;;  %v6026_v20 = vrot.slane %v6012_v28, %v8899_v33 }
 0x53b   :  { %v8031_v23 = vclamps-f32 %v11751_v26, 1.0  ;;  %v11756_v30 = vrot.slane %v8029_v4, 7  ;;  %v11758_v9 = vrot.slane %v8030_v0, 6  ;;  %v6234_v53 = vrot.slane %v6233_v49, 2 }
 0x53c   :  { %v6240_v31 = vmax.f32 %v6238_v43, %v6239_v27  ;;  %v6247_v57 = vmax.f32 %v6245_v11, %v6246_v3  ;;  %v6253_v42 = vrot.slane %v6252_v35, 4  ;;  %v6027_v47 = vcombine.high %v6019_v34, %v6019_v34 }
 0x53d   :  { %v6235_v22 = vmax.f32 %v6233_v49, %v6234_v53  ;;  %v6028_v5 = vcombine.high %v6026_v20, %v6026_v20  ;;  %v6203_v32 = vsel %vm6146_vm4, %v6019_v34, -inf  ;;  %v6217_v62 = vsel %vm6146_vm4, %v6026_v20, -inf }
 0x53e   :  { %v6241_v39 = vrot.slane %v6240_v31, 2  ;;  %v6248_v13 = vrot.slane %v6247_v57, 2  ;;  %v6254_v12 = vmax.f32 %v6252_v35, %v6253_v42  ;;  %v6204_v2 = vrot.slane %v6203_v32, 4 }
 0x53f   :  { %v6236_v40 = vrot.slane %v6235_v22, 1  ;;  %v6210_v14 = vsel %vm6146_vm4, %v6027_v47, -inf  ;;  %v6218_v52 = vrot.slane %v6217_v62, 4  ;;  %v6224_v17 = vsel %vm6146_vm4, %v6028_v5, -inf }
 0x540   :  { %v6242_v58 = vmax.f32 %v6240_v31, %v6241_v39  ;;  %v6249_v28 = vmax.f32 %v6247_v57, %v6248_v13  ;;  %v6255_v8 = vrot.slane %v6254_v12, 2  ;;  %v6205_v55 = vmax.f32 %v6203_v32, %v6204_v2 }
 0x541   :  { %v6237_v45 = vmax.f32 %v6235_v22, %v6236_v40  ;;  %v6211_v50 = vrot.slane %v6210_v14, 4  ;;  %v6219_v60 = vmax.f32 %v6217_v62, %v6218_v52  ;;  %v6225_v10 = vrot.slane %v6224_v17, 4 }
 0x542   :  { %v6243_v29 = vrot.slane %v6242_v58, 1  ;;  %v6250_v36 = vrot.slane %v6249_v28, 1  ;;  %v6256_v61 = vmax.f32 %v6254_v12, %v6255_v8  ;;  %v6206_v63 = vrot.slane %v6205_v55, 2 }
 0x543   :  { %v6390_v25 = vmul.f32 %v11707_v38, %v6237_v45  ;;  %v6212_v43 = vmax.f32 %v6210_v14, %v6211_v50  ;;  %v6220_v11 = vrot.slane %v6219_v60, 2  ;;  %v6226_v34 = vmax.f32 %v6224_v17, %v6225_v10 }
 0x544   :  { %v6244_v4 = vmax.f32 %v6242_v58, %v6243_v29  ;;  %v6251_v0 = vmax.f32 %v6249_v28, %v6250_v36  ;;  %v6257_v49 = vrot.slane %v6256_v61, 1  ;;  %v6207_v27 = vmax.f32 %v6205_v55, %v6206_v63 }
 0x545   :  { %v6426_v3 = vadd.f32 %v11714_v44, %v6390_v25  ;;  %v6213_v35 = vrot.slane %v6212_v43, 2  ;;  %v6221_v20 = vmax.f32 %v6219_v60, %v6220_v11  ;;  %v6227_v53 = vrot.slane %v6226_v34, 2 }
 0x546   :  { %v6258_v31 = vmax.f32 %v6256_v61, %v6257_v49  ;;  %v6391_v57 = vmul.f32 %v11707_v38, %v6244_v4  ;;  %v6392_v42 = vmul.f32 %v11707_v38, %v6251_v0  ;;  %v6208_v47 = vrot.slane %v6207_v27, 1 }
 0x547   :  { %v8040_v22 = vclamps-f32 %v6426_v3, 1.0  ;;  %v6214_v5 = vmax.f32 %v6212_v43, %v6213_v35  ;;  %v6222_v32 = vrot.slane %v6221_v20, 1  ;;  %v6228_v62 = vmax.f32 %v6226_v34, %v6227_v53 }
 0x548   :  { %v11769_v39 = vmul.f32 %v11707_v38, %v6258_v31  ;;  %v6427_v13 = vadd.f32 %v11714_v44, %v6391_v57  ;;  %v11773_v12 = vadd.f32 %v11714_v44, %v6392_v42  ;;  %v6209_v2 = vmax.f32 %v6207_v27, %v6208_v47 }
 0x549   :  { %v11775_v40 = vrot.slane %v8040_v22, 4  ;;  %v6215_v14 = vrot.slane %v6214_v5, 1  ;;  %v6223_v52 = vmax.f32 %v6221_v20, %v6222_v32  ;;  %v6229_v17 = vrot.slane %v6228_v62, 1 }
 0x54a   :  { %v8041_v58 = vclamps-f32 %v6427_v13, 1.0  ;;  %v8042_v28 = vclamps-f32 %v11773_v12, 1.0  ;;  %v6386_v8 = vmul.f32 %v11707_v38, %v6209_v2  ;;  %v6063_v55 = vcombine.high %v11697_v15, %v11697_v15 }
 0x54b   :  { %v6216_v45 = vmax.f32 %v6214_v5, %v6215_v14  ;;  %v6230_v50 = vmax.f32 %v6228_v62, %v6229_v17  ;;  %v6388_v60 = vmul.f32 %v11707_v38, %v6223_v52  ;;  %v6070_v10 = vrot.slane %v11697_v15, %v8899_v33 }
 0x54c   :  { %v11784_v29 = vrot.slane %v8041_v58, 3  ;;  %v6422_v36 = vadd.f32 %v11714_v44, %v6386_v8  ;;  %v6077_v61 = vrot.slane %v6063_v55, %v8899_v33  ;;  %v6046_v63 = vcombine.high %v11700_v41, %v11700_v41 }
 0x54d   :  { %v6387_v25 = vmul.f32 %v11707_v38, %v6216_v45  ;;  %v6389_v43 = vmul.f32 %v11707_v38, %v6230_v50  ;;  %v6424_v11 = vadd.f32 %v11714_v44, %v6388_v60  ;;  %v6078_v34 = vcombine.high %v6070_v10, %v6070_v10 }
 0x54e   :  { %v8036_v4 = vclamps-f32 %v6422_v36, 1.0  ;;  %v6079_v0 = vcombine.high %v6077_v61, %v6077_v61  ;;  %v6287_v15 = vsel %vm6146_vm4, %v6070_v10, -inf  ;;  %v6301_v49 = vsel %vm6146_vm4, %v6077_v61, -inf }
 0x54f   :  { %v6423_v27 = vadd.f32 %v11714_v44, %v6387_v25  ;;  %v6425_v3 = vadd.f32 %v11714_v44, %v6389_v43  ;;  %v8038_v35 = vclamps-f32 %v6424_v11, 1.0  ;;  %v6288_v20 = vrot.slane %v6287_v15, 4 }
 0x550   :  { %v6294_v53 = vsel %vm6146_vm4, %v6078_v34, -inf  ;;  %v6302_v31 = vrot.slane %v6301_v49, 4  ;;  %v6308_v57 = vsel %vm6146_vm4, %v6079_v0, -inf  ;;  %v6053_v42 = vrot.slane %v11700_v41, %v8899_v33 }
 0x551   :  { %v8037_v47 = vclamps-f32 %v6423_v27, 1.0  ;;  %v8039_v22 = vclamps-f32 %v6425_v3, 1.0  ;;  %v11801_v5 = vrot.slane %v8038_v35, 6  ;;  %v6289_v32 = vmax.f32 %v6287_v15, %v6288_v20 }
 0x552   :  { %v6295_v62 = vrot.slane %v6294_v53, 4  ;;  %v6303_v13 = vmax.f32 %v6301_v49, %v6302_v31  ;;  %v6309_v2 = vrot.slane %v6308_v57, 4  ;;  %v6060_v14 = vrot.slane %v6046_v63, %v8899_v33 }
 0x553   :  { %v6560_v52 = vrot.slane %v8037_v47, 7  ;;  %v11804_v17 = vrot.slane %v8039_v22, 5  ;;  %v6290_v58 = vrot.slane %v6289_v32, 2  ;;  %v6061_v8 = vcombine.high %v6053_v42, %v6053_v42 }
 0x554   :  { %v6296_v55 = vmax.f32 %v6294_v53, %v6295_v62  ;;  %v6304_v45 = vrot.slane %v6303_v13, 2  ;;  %v6310_v50 = vmax.f32 %v6308_v57, %v6309_v2  ;;  %v6062_v60 = vcombine.high %v6060_v14, %v6060_v14 }
 0x555   :  { %v11807_v41 = vsel %vm3293_vm7, %v6560_v52, %v8036_v4  ;;  %v6291_v10 = vmax.f32 %v6289_v32, %v6290_v58  ;;  %v6259_v36 = vsel %vm6146_vm4, %v6053_v42, -inf  ;;  %v6266_v61 = vsel %vm6146_vm4, %v6061_v8, -inf }
 0x556   :  { %v6297_v25 = vrot.slane %v6296_v55, 2  ;;  %v6305_v43 = vmax.f32 %v6303_v13, %v6304_v45  ;;  %v6311_v63 = vrot.slane %v6310_v50, 2  ;;  %v6260_v11 = vrot.slane %v6259_v36, 4 }
 0x557   :  { %v6292_v34 = vrot.slane %v6291_v10, 1  ;;  %v6267_v0 = vrot.slane %v6266_v61, 4  ;;  %v6273_v15 = vsel %vm6146_vm4, %v6060_v14, -inf  ;;  %v6280_v49 = vsel %vm6146_vm4, %v6062_v60, -inf }
 0x558   :  { %v6298_v27 = vmax.f32 %v6296_v55, %v6297_v25  ;;  %v6306_v3 = vrot.slane %v6305_v43, 1  ;;  %v6312_v35 = vmax.f32 %v6310_v50, %v6311_v63  ;;  %v6261_v4 = vmax.f32 %v6259_v36, %v6260_v11 }
 0x559   :  { %v6293_v20 = vmax.f32 %v6291_v10, %v6292_v34  ;;  %v6268_v53 = vmax.f32 %v6266_v61, %v6267_v0  ;;  %v6274_v31 = vrot.slane %v6273_v15, 4  ;;  %v6281_v57 = vrot.slane %v6280_v49, 4 }
 0x55a   :  { %v6299_v42 = vrot.slane %v6298_v27, 1  ;;  %v6307_v47 = vmax.f32 %v6305_v43, %v6306_v3  ;;  %v6313_v22 = vrot.slane %v6312_v35, 1  ;;  %v6262_v32 = vrot.slane %v6261_v4, 2 }
 0x55b   :  { %v6398_v62 = vmul.f32 %v11707_v38, %v6293_v20  ;;  %v6269_v13 = vrot.slane %v6268_v53, 2  ;;  %v6275_v2 = vmax.f32 %v6273_v15, %v6274_v31  ;;  %v6282_v52 = vmax.f32 %v6280_v49, %v6281_v57 }
 0x55c   :  { %v6300_v14 = vmax.f32 %v6298_v27, %v6299_v42  ;;  %v11814_v58 = vmax.f32 %v6312_v35, %v6313_v22  ;;  %v11817_v8 = vmul.f32 %v11707_v38, %v6307_v47  ;;  %v6263_v55 = vmax.f32 %v6261_v4, %v6262_v32 }
 0x55d   :  { %v6434_v45 = vadd.f32 %v11714_v44, %v6398_v62  ;;  %v6270_v50 = vmax.f32 %v6268_v53, %v6269_v13  ;;  %v6276_v60 = vrot.slane %v6275_v2, 2  ;;  %v6283_v10 = vrot.slane %v6282_v52, 2 }
 0x55e   :  { %v11821_v36 = vmul.f32 %v11707_v38, %v6300_v14  ;;  %v6264_v61 = vrot.slane %v6263_v55, 1  ;;  %v6097_v25 = vcombine.high %v11702_v59, %v11702_v59  ;;  %v6104_v43 = vrot.slane %v11702_v59, %v8899_v33 }
 0x55f   :  { %v8048_v63 = vclamps-f32 %v6434_v45, 1.0  ;;  %v6271_v11 = vrot.slane %v6270_v50, 1  ;;  %v6277_v34 = vmax.f32 %v6275_v2, %v6276_v60  ;;  %v6284_v0 = vmax.f32 %v6282_v52, %v6283_v10 }
 0x560   :  { %v6265_v15 = vmax.f32 %v6263_v55, %v6264_v61  ;;  %v6111_v49 = vrot.slane %v6097_v25, %v8899_v33  ;;  %v6112_v27 = vcombine.high %v6104_v43, %v6104_v43  ;;  %v6343_v3 = vsel %vm6146_vm4, %v6104_v43, -inf }
 0x561   :  { %v11829_v35 = vrot.slane %v8048_v63, 4  ;;  %v6272_v4 = vmax.f32 %v6270_v50, %v6271_v11  ;;  %v6278_v20 = vrot.slane %v6277_v34, 1  ;;  %v6285_v53 = vrot.slane %v6284_v0, 1 }
 0x562   :  { %v6394_v31 = vmul.f32 %v11707_v38, %v6265_v15  ;;  %v6113_v57 = vcombine.high %v6111_v49, %v6111_v49  ;;  %v6344_v42 = vrot.slane %v6343_v3, 4  ;;  %v6350_v59 = vsel %vm6146_vm4, %v6112_v27, -inf }
 0x563   :  { %v6279_v47 = vmax.f32 %v6277_v34, %v6278_v20  ;;  %v6286_v22 = vmax.f32 %v6284_v0, %v6285_v53  ;;  %v6395_v32 = vmul.f32 %v11707_v38, %v6272_v4  ;;  %v6351_v62 = vrot.slane %v6350_v59, 4 }
 0x564   :  { %v11835_v13 = vadd.f32 %v11714_v44, %v6394_v31  ;;  %v6345_v2 = vmax.f32 %v6343_v3, %v6344_v42  ;;  %v6357_v52 = vsel %vm6146_vm4, %v6111_v49, -inf  ;;  %v6364_v14 = vsel %vm6146_vm4, %v6113_v57, -inf }
 0x565   :  { %v6396_v55 = vmul.f32 %v11707_v38, %v6279_v47  ;;  %v6397_v45 = vmul.f32 %v11707_v38, %v6286_v22  ;;  %v6431_v50 = vadd.f32 %v11714_v44, %v6395_v32  ;;  %v6352_v60 = vmax.f32 %v6350_v59, %v6351_v62 }
 0x566   :  { %v8044_v10 = vclamps-f32 %v11835_v13, 1.0  ;;  %v6346_v61 = vrot.slane %v6345_v2, 2  ;;  %v6358_v25 = vrot.slane %v6357_v52, 4  ;;  %v6365_v43 = vrot.slane %v6364_v14, 4 }
 0x567   :  { %v6432_v63 = vadd.f32 %v11714_v44, %v6396_v55  ;;  %v11845_v11 = vadd.f32 %v11714_v44, %v6397_v45  ;;  %v8045_v34 = vclamps-f32 %v6431_v50, 1.0  ;;  %v6353_v0 = vrot.slane %v6352_v60, 2 }
 0x568   :  { %v6347_v15 = vmax.f32 %v6345_v2, %v6346_v61  ;;  %v6359_v49 = vmax.f32 %v6357_v52, %v6358_v25  ;;  %v6366_v27 = vmax.f32 %v6364_v14, %v6365_v43  ;;  %v6080_v3 = vcombine.high %v11709_v16, %v11709_v16 }
 0x569   :  { %v8046_v4 = vclamps-f32 %v6432_v63, 1.0  ;;  %v8047_v20 = vclamps-f32 %v11845_v11, 1.0  ;;  %v11850_v53 = vrot.slane %v8045_v34, 7  ;;  %v6354_v31 = vmax.f32 %v6352_v60, %v6353_v0 }
 0x56a   :  { %v6348_v57 = vrot.slane %v6347_v15, 1  ;;  %v6360_v42 = vrot.slane %v6359_v49, 2  ;;  %v6367_v59 = vrot.slane %v6366_v27, 2  ;;  %v6087_v47 = vrot.slane %v11709_v16, %v8899_v33 }
 0x56b   :  { %v11854_v22 = vrot.slane %v8046_v4, 6  ;;  %v6355_v32 = vrot.slane %v6354_v31, 1  ;;  %v6094_v62 = vrot.slane %v6080_v3, %v8899_v33  ;;  %v6385_v2 = vmul.f32 %v11707_v38, %v11718_v6 }
 0x56c   :  { %v6349_v52 = vmax.f32 %v6347_v15, %v6348_v57  ;;  %v6361_v14 = vmax.f32 %v6359_v49, %v6360_v42  ;;  %v6368_v55 = vmax.f32 %v6366_v27, %v6367_v59  ;;  %v6095_v45 = vcombine.high %v6087_v47, %v6087_v47 }
 0x56d   :  { %v6356_v50 = vmax.f32 %v6354_v31, %v6355_v32  ;;  %v6096_v60 = vcombine.high %v6094_v62, %v6094_v62  ;;  %v6315_v61 = vsel %vm6146_vm4, %v6087_v47, -inf  ;;  %v6329_v25 = vsel %vm6146_vm4, %v6094_v62, -inf }
 0x56e   :  { %v6362_v43 = vrot.slane %v6361_v14, 1  ;;  %v6369_v16 = vrot.slane %v6368_v55, 1  ;;  %v6406_v63 = vmul.f32 %v11707_v38, %v6349_v52  ;;  %v6316_v34 = vrot.slane %v6315_v61, 4 }
 0x56f   :  { %v11863_v0 = vmul.f32 %v11707_v38, %v6356_v50  ;;  %v6322_v6 = vsel %vm6146_vm4, %v6095_v45, -inf  ;;  %v6330_v15 = vrot.slane %v6329_v25, 4  ;;  %v6336_v49 = vsel %vm6146_vm4, %v6096_v60, -inf }
 0x570   :  { %v6363_v27 = vmax.f32 %v6361_v14, %v6362_v43  ;;  %v11867_v3 = vmax.f32 %v6368_v55, %v6369_v16  ;;  %v6442_v4 = vadd.f32 %v11714_v44, %v6406_v63  ;;  %v6317_v31 = vmax.f32 %v6315_v61, %v6316_v34 }
 0x571   :  { %v6323_v57 = vrot.slane %v6322_v6, 4  ;;  %v6331_v42 = vmax.f32 %v6329_v25, %v6330_v15  ;;  %v6337_v59 = vrot.slane %v6336_v49, 4  ;;  %v6419_v47 = vadd.f32 %v11714_v44, %v11721_v37 }
 0x572   :  { %v11873_v32 = vmul.f32 %v11707_v38, %v6363_v27  ;;  %v8056_v62 = vclamps-f32 %v6442_v4, 1.0  ;;  %v6318_v52 = vrot.slane %v6317_v31, 2  ;;  %v6420_v45 = vadd.f32 %v11714_v44, %v11724_v54 }
 0x573   :  { %v6324_v14 = vmax.f32 %v6322_v6, %v6323_v57  ;;  %v6332_v55 = vrot.slane %v6331_v42, 2  ;;  %v6338_v50 = vmax.f32 %v6336_v49, %v6337_v59  ;;  %v6421_v60 = vadd.f32 %v11714_v44, %v6385_v2 }
 0x574   :  { %v11878_v61 = vrot.slane %v8056_v62, 4  ;;  %v6319_v25 = vmax.f32 %v6317_v31, %v6318_v52  ;;  %v8033_v43 = vclamps-f32 %v6419_v47, 1.0  ;;  %v8034_v16 = vclamps-f32 %v6420_v45, 1.0 }
 0x575   :  { %v6325_v37 = vrot.slane %v6324_v14, 2  ;;  %v6333_v63 = vmax.f32 %v6331_v42, %v6332_v55  ;;  %v6339_v34 = vrot.slane %v6338_v50, 2  ;;  %v8035_v15 = vclamps-f32 %v6421_v60, 1.0 }
 0x576   :  { %v6320_v27 = vrot.slane %v6319_v25, 1  ;;  %v6547_v54 = vsel %vm3293_vm7, %v11756_v30, %v8028_v24  ;;  %v6550_v6 = vrot.slane %v8031_v23, 5  ;;  %v6554_v49 = vrot.slane %v8033_v43, 3 }
 0x577   :  { %v6326_v2 = vmax.f32 %v6324_v14, %v6325_v37  ;;  %v6334_v4 = vrot.slane %v6333_v63, 1  ;;  %v6340_v57 = vmax.f32 %v6338_v50, %v6339_v34  ;;  %v6549_v31 = vsel %vm3296_vm8, %v11758_v9, %v6547_v54 }
 0x578   :  { %v6321_v59 = vmax.f32 %v6319_v25, %v6320_v27  ;;  %v6551_v42 = vsel %vm3299_vm10, %v6550_v6, %v6549_v31  ;;  %v6556_v47 = vrot.slane %v8034_v16, 2  ;;  %v6558_v62 = vrot.slane %v8035_v15, 1 }
 0x579   :  { %v6327_v52 = vrot.slane %v6326_v2, 1  ;;  %v6335_v18 = vmax.f32 %v6333_v63, %v6334_v4  ;;  %v6341_v45 = vrot.slane %v6340_v57, 1  ;;  %v6553_v24 = vsel %vm3302_vm9, %v11739_v56, %v6551_v42 }
 0x57a   :  { %v6402_v26 = vmul.f32 %v11707_v38, %v6321_v59  ;;  %v6555_v23 = vsel %vm3305_vm11, %v6554_v49, %v6553_v24  ;;  %v6429_v30 = vadd.f32 %v11714_v44, %v11769_v39  ;;  %v6563_v9 = vsel %vm3296_vm8, %v11801_v5, %v11807_v41 }
 0x57b   :  { %v6328_v14 = vmax.f32 %v6326_v2, %v6327_v52  ;;  %v6342_v55 = vmax.f32 %v6340_v57, %v6341_v45  ;;  %v6404_v50 = vmul.f32 %v11707_v38, %v6335_v18  ;;  %v6557_v60 = vsel %vm3308_vm12, %v6556_v47, %v6555_v23 }
 0x57c   :  { %v6438_v25 = vadd.f32 %v11714_v44, %v6402_v26  ;;  %v11902_v56 = vsel %vm3311_vm13, %v6558_v62, %v6557_v60  ;;  %v8043_v43 = vclamps-f32 %v6429_v30, 1.0  ;;  %v6565_v16 = vsel %vm3299_vm10, %v11804_v17, %v6563_v9 }
 0x57d   :  { %v6403_v39 = vmul.f32 %v11707_v38, %v6328_v14  ;;  %v6405_v37 = vmul.f32 %v11707_v38, %v6342_v55  ;;  %v6440_v5 = vadd.f32 %v11714_v44, %v6404_v50  ;;  %v6606_v41 = vrot.slane %v11902_v56, 7  ;;  %8391 = vmatprep.mubr.msk.f32.mxu1 %vm6631_vm5, %v11902_v56 }
 0x57e   :  { %v8052_v63 = vclamps-f32 %v6438_v25, 1.0  ;;  %v6822_v34 = vrot.slane %v11902_v56, 1  ;;  %v6567_v15 = vsel %vm3302_vm9, %v11775_v40, %v6565_v16  ;;  %v6570_v17 = vrot.slane %v8042_v28, 2 }
 0x57f   :  { %v6439_v27 = vadd.f32 %v11714_v44, %v6403_v39  ;;  %v6441_v54 = vadd.f32 %v11714_v44, %v6405_v37  ;;  %v8054_v6 = vclamps-f32 %v6440_v5, 1.0  ;;  %v6569_v49 = vsel %vm3305_vm11, %v11784_v29, %v6567_v15 }
 0x580   :  { %v6571_v2 = vsel %vm3308_vm12, %v6570_v17, %v6569_v49  ;;  %v6572_v4 = vrot.slane %v8043_v43, 1  ;;  %v6401_v57 = vmul.f32 %v11707_v38, %v11814_v58  ;;  %v6435_v40 = vadd.f32 %v11714_v44, %v11821_v36  ;;  %v8079_v49 = vld [vmem:[%s12221_s1 + $0x178] sm:$0xff] }
 0x581   :  { %v8053_v31 = vclamps-f32 %v6439_v27, 1.0  ;;  %v8055_v12 = vclamps-f32 %v6441_v54, 1.0  ;;  %v6590_v28 = vrot.slane %v8054_v6, 6  ;;  %v6436_v59 = vadd.f32 %v11714_v44, %v11817_v8  ;;  %v8078_v6 = vld [vmem:[%s12221_s1 + $0x170] sm:$0xff] }
 0x582   :  { %v6573_v42 = vsel %vm3311_vm13, %v6572_v4, %v6571_v2  ;;  %v6437_v47 = vadd.f32 %v11714_v44, %v6401_v57  ;;  %v8049_v29 = vclamps-f32 %v6435_v40, 1.0  ;;  %v6575_v62 = vsel %vm3293_vm7, %v11850_v53, %v8044_v10 }
 0x583   :  { %v6588_v58 = vrot.slane %v8053_v31, 7  ;;  %v6607_v52 = vrot.slane %v6573_v42, 7  ;;  %8392 = vmatmul.mubr.msk.f32.vlgmr.msra.gmra.mrb[8].mxu1 %vm6631_vm5, %v6573_v42  ;;  %v8050_v36 = vclamps-f32 %v6436_v59, 1.0  ;;  %v6577_v18 = vsel %vm3296_vm8, %v11854_v22, %v6575_v62 }
 0x584   :  { %v8051_v45 = vclamps-f32 %v6437_v47, 1.0  ;;  %v6578_v8 = vrot.slane %v8047_v20, 5  ;;  %v6582_v24 = vrot.slane %v8049_v29, 3  ;;  %8481 = vmatpush3.bf16.msra.mxu1 %v11659_v46  ;;  %v6409_v13 = vmul.f32 %v11707_v38, %v11867_v3  ;;  %v8110_v47 = vld [vmem:[%s12221_s1 + $0x1b0] sm:$0xff]  ;;  %v8111_v29 = vld [vmem:[%s12221_s1 + $0x1b8] sm:$0xff] }
 0x585   :  { %v6584_v26 = vrot.slane %v8050_v36, 2  ;;  %v6443_v10 = vadd.f32 %v11714_v44, %v11863_v0  ;;  %v6444_v53 = vadd.f32 %v11714_v44, %v11873_v32  ;;  %v6589_v23 = vsel %vm3293_vm7, %v6588_v58, %v8052_v63  ;;  %8483 = vmatprep.subr.bf16.mxu1 %v11679_v21  ;;  %v8104_v58 = vld [vmem:[%s12221_s1 + $0x180] sm:$0xff] }
 0x586   :  { %v6579_v11 = vsel %vm3299_vm10, %v6578_v8, %v6577_v18  ;;  %v6586_v20 = vrot.slane %v8051_v45, 1  ;;  %v6445_v22 = vadd.f32 %v11714_v44, %v6409_v13  ;;  %v6591_v46 = vsel %vm3296_vm8, %v6590_v28, %v6589_v23 }
 0x587   :  { %v6581_v38 = vsel %vm3302_vm9, %v11829_v35, %v6579_v11  ;;  %v8057_v3 = vclamps-f32 %v6443_v10, 1.0  ;;  %v8058_v30 = vclamps-f32 %v6444_v53, 1.0  ;;  %v6592_v0 = vrot.slane %v8055_v12, 5 }
 0x588   :  { %v6583_v9 = vsel %vm3305_vm11, %v6582_v24, %v6581_v38  ;;  %v8059_v32 = vclamps-f32 %v6445_v22, 1.0  ;;  %8485 = vmatpush3.bf16.msra.mxu1 %v11679_v21  ;;  %v6612_v14 = vsel %vm144_vm0, %v6606_v41, %v6607_v52  ;;  %v6823_v55 = vrot.slane %v6573_v42, 1 }
 0x589   :  { %v6585_v44 = vsel %vm3308_vm12, %v6584_v26, %v6583_v9  ;;  %v6593_v50 = vsel %vm3299_vm10, %v6592_v0, %v6591_v46  ;;  %v6596_v60 = vrot.slane %v8057_v3, 3  ;;  %8487 = vmatprep.subr.bf16.mxu1 %v11684_v1  ;;  %v6512_v35 = vand.u32 15, %v11676_v19 }
 0x58a   :  { %v6587_v25 = vsel %vm3311_vm13, %v6586_v20, %v6585_v44  ;;  %v6595_v21 = vsel %vm3302_vm9, %v11878_v61, %v6593_v50  ;;  %v6598_v43 = vrot.slane %v8058_v30, 2  ;;  %v6828_v16 = vsel %vm699_vm1, %v6822_v34, %v6823_v55 }
 0x58b   :  { %v6608_v39 = vrot.slane %v6587_v25, 7  ;;  %8394 = vmatprep.mubr.msk.f32.mxu1 %vm6631_vm5, %v6587_v25  ;;  %v6824_v37 = vrot.slane %v6587_v25, 1  ;;  %v6597_v5 = vsel %vm3305_vm11, %v6596_v60, %v6595_v21  ;;  %v6600_v63 = vrot.slane %v8059_v32, 1 }
 0x58c   :  { %v6599_v19 = vsel %vm3308_vm12, %v6598_v43, %v6597_v5  ;;  %vm6616_vm14 = vcmp.ge.s32.totalorder %v6512_v35, 1  ;;  %v11988_v2 = vadd.s32 8, %v12452_v51  ;;  %v8490_v12 = vpack.c.bf16 %v8079_v49, %v8078_v6 }
 0x58d   :  { %v6601_v15 = vsel %vm3311_vm13, %v6600_v63, %v6599_v19  ;;  %v6611_v61 = vsel %vm144_vm0, %v6607_v52, %v6608_v39  ;;  %v6827_v17 = vsel %vm699_vm1, %v6823_v55, %v6824_v37  ;;  %v6513_v56 = vand.u32 15, %v11627_v48  ;;  %v8109_v48 = vld [vmem:[%s12221_s1 + $0x1a8] sm:$0xff] }
 0x58e   :  { %v6609_v27 = vrot.slane %v6601_v15, 7  ;;  %8395 = vmatmul.mubr.msk.f32.gmra.mrb[10].mxu1 %vm6631_vm5, %v6601_v15  ;;  %v6825_v54 = vrot.slane %v6601_v15, 1  ;;  %v6620_v28 = vsel %vm6616_vm14, %v6611_v61, 0.0  ;;  %v8498_v62 = vpack.c.bf16 %v8111_v29, %v8110_v47  ;;  %v8105_v52 = vld [vmem:[%s12221_s1 + $0x188] sm:$0xff] }
 0x58f   :  { %vm6833_vm2 = vcmp.lt.s32.totalorder %v6513_v56, 15  ;;  %v12031_v36 = vpack.c.bf16 %v8105_v52, %v8104_v58 }
 0x590   :  { %v6613_v4 = vsel %vm144_vm0, %v6609_v27, %v6606_v41  ;;  %v6610_v7 = vsel %vm144_vm0, %v6608_v39, %v6609_v27  ;;  %v6826_v57 = vsel %vm699_vm1, %v6824_v37, %v6825_v54  ;;  %v6829_v40 = vsel %vm699_vm1, %v6825_v54, %v6822_v34 }
 0x591   :  { %v6618_v31 = vsel %vm6614_vm6, %v6613_v4, 0.0  ;;  %v6511_v41 = vand.u32 15, %v11988_v2  ;;  %v6837_v59 = vsel %vm6833_vm2, %v6829_v40, 0.0 }
 0x592   :  { %8405 = vmatprep.mubr.msk.f32.mxu1 %vm6631_vm5, %v6618_v31 }
 0x593   :  { %8406 = vmatmul.mubr.msk.f32.vlgmr.msra.gmra.mrb[8].mxu1 %vm6631_vm5, %v6612_v14  ;;  %vm6831_vm15 = vcmp.lt.s32.totalorder %v6511_v41, 15 }
 0x594   :  { %8489 = vmatpush3.bf16.msra.mxu1 %v11684_v1  ;;  %8408 = vmatprep.mubr.msk.f32.mxu1 %vm6631_vm5, %v6620_v28  ;;  %v6835_v34 = vsel %vm6831_vm15, %v6827_v17, 0.0  ;;  %v8108_v1 = vld [vmem:[%s12221_s1 + $0x1a0] sm:$0xff] }
 0x595   :  { %8491 = vmatprep.subr.bf16.mxu1 %v8490_v12  ;;  %v8494_v42 = vpack.c.bf16 %v8109_v48, %v8108_v1 }
 0x597   :  { %8409 = vmatmul.mubr.msk.f32.gmra.mrb[10].mxu1 %vm6631_vm5, %v6610_v7 }
 0x598   :  { %8493 = vmatpush3.bf16.msra.mxu1 %v8490_v12  ;;  %8419 = vmatprep.mubr.msk.f32.mxu1 %vm6631_vm5, %v6828_v16 }
 0x599   :  { %8495 = vmatprep.subr.bf16.mxu1 %v8494_v42 }
 0x59b   :  { %8420 = vmatmul.mubr.msk.f32.vlgmr.msra.gmra.mrb[8].mxu1 %vm6631_vm5, %v6835_v34 }
 0x59c   :  { %8422 = vmatprep.mubr.msk.f32.mxu1 %vm6631_vm5, %v6826_v57  ;;  %8497 = vmatpush3.bf16.msra.mxu1 %v8494_v42  ;;  %v12053_v42 = vld [vmem:[%s12222_s2 + $0x6] ss:$0 sm:$0xff] }
 0x59d   :  { %8499 = vmatprep.subr.bf16.mxu1 %v8498_v62 }
 0x59f   :  { %8423 = vmatmul.mubr.msk.f32.gmra.mrb[10].mxu1 %vm6631_vm5, %v6837_v59 }
 0x5a0   :  { %8501 = vmatpush3.bf16.msra.mxu1 %v8498_v62 }
 0x5a1   :  { %8503 = vmatprep.subr.bf16.mxu1 %v12031_v36 }
 0x66e   :  { %v8421_v18 = vpop.f32.mrb[8].mxu1 }
 0x66f   :  { %v6964_v45 = vcombine.high %v8421_v18, %v8421_v18  ;;  %v6971_v8 = vrot.slane %v8421_v18, %v8899_v33  ;;  %v6920_v24 = vpop.f32.mrb[9].mxu1 }
 0x670   :  { %v6947_v13 = vcombine.high %v6920_v24, %v6920_v24  ;;  %v6954_v26 = vrot.slane %v6920_v24, %v8899_v33 }
 0x671   :  { %v6978_v10 = vrot.slane %v6964_v45, %v8899_v33  ;;  %v6979_v53 = vcombine.high %v6971_v8, %v6971_v8  ;;  %v7059_v23 = vsel %vm6146_vm4, %v6971_v8, -inf }
 0x672   :  { %v7060_v11 = vrot.slane %v7059_v23, 4  ;;  %v6961_v20 = vrot.slane %v6947_v13, %v8899_v33  ;;  %v6962_v22 = vcombine.high %v6954_v26, %v6954_v26  ;;  %v7031_v46 = vsel %vm6146_vm4, %v6954_v26, -inf  ;;  %v12040_v38 = vpop.f32.mrb[10].mxu1 }
 0x673   :  { %v6980_v3 = vcombine.high %v6978_v10, %v6978_v10  ;;  %v7066_v30 = vsel %vm6146_vm4, %v6979_v53, -inf  ;;  %v7073_v0 = vsel %vm6146_vm4, %v6978_v10, -inf  ;;  %v7032_v9 = vrot.slane %v7031_v46, 4  ;;  %v12044_v32 = vpop.f32.mrb[11].mxu1  ;;  %v12059_v10 = vld [vmem:[%s12222_s2 + $0x7] ss:$0 sm:$0xff] }
 0x674   :  { %v7061_v14 = vmax.f32 %v7059_v23, %v7060_v11  ;;  %v7067_v55 = vrot.slane %v7066_v30, 4  ;;  %v7074_v44 = vrot.slane %v7073_v0, 4  ;;  %v6963_v50 = vcombine.high %v6961_v20, %v6961_v20 }
 0x675   :  { %v7080_v60 = vsel %vm6146_vm4, %v6980_v3, -inf  ;;  %v7033_v35 = vmax.f32 %v7031_v46, %v7032_v9  ;;  %v7038_v25 = vsel %vm6146_vm4, %v6962_v22, -inf  ;;  %v7045_v21 = vsel %vm6146_vm4, %v6961_v20, -inf }
 0x676   :  { %v7062_v43 = vrot.slane %v7061_v14, 2  ;;  %v7068_v16 = vmax.f32 %v7066_v30, %v7067_v55  ;;  %v7075_v39 = vmax.f32 %v7073_v0, %v7074_v44  ;;  %v7081_v37 = vrot.slane %v7080_v60, 4 }
 0x677   :  { %v7034_v5 = vrot.slane %v7033_v35, 2  ;;  %v7039_v63 = vrot.slane %v7038_v25, 4  ;;  %v7046_v19 = vrot.slane %v7045_v21, 4  ;;  %v7052_v15 = vsel %vm6146_vm4, %v6963_v50, -inf }
 0x678   :  { %v7063_v61 = vmax.f32 %v7061_v14, %v7062_v43  ;;  %v7069_v17 = vrot.slane %v7068_v16, 2  ;;  %v7076_v27 = vrot.slane %v7075_v39, 2  ;;  %v7082_v54 = vmax.f32 %v7080_v60, %v7081_v37 }
 0x679   :  { %v7035_v6 = vmax.f32 %v7033_v35, %v7034_v5  ;;  %v7040_v49 = vmax.f32 %v7038_v25, %v7039_v63  ;;  %v7047_v4 = vmax.f32 %v7045_v21, %v7046_v19  ;;  %v7053_v7 = vrot.slane %v7052_v15, 4 }
 0x67a   :  { %v7064_v57 = vrot.slane %v7063_v61, 1  ;;  %v7070_v40 = vmax.f32 %v7068_v16, %v7069_v17  ;;  %v7077_v31 = vmax.f32 %v7075_v39, %v7076_v27  ;;  %v7083_v12 = vrot.slane %v7082_v54, 2 }
 0x67b   :  { %v7036_v28 = vrot.slane %v7035_v6, 1  ;;  %v7041_v41 = vrot.slane %v7040_v49, 2  ;;  %v7048_v56 = vrot.slane %v7047_v4, 2  ;;  %v7054_v34 = vmax.f32 %v7052_v15, %v7053_v7 }
 0x67c   :  { %v7065_v59 = vmax.f32 %v7063_v61, %v7064_v57  ;;  %v7071_v1 = vrot.slane %v7070_v40, 1  ;;  %v7084_v48 = vmax.f32 %v7082_v54, %v7083_v12  ;;  %v7078_v18 = vrot.slane %v7077_v31, 1 }
 0x67d   :  { %v7037_v47 = vmax.f32 %v7035_v6, %v7036_v28  ;;  %v7042_v29 = vmax.f32 %v7040_v49, %v7041_v41  ;;  %v7049_v62 = vmax.f32 %v7047_v4, %v7048_v56  ;;  %v7055_v58 = vrot.slane %v7054_v34, 2 }
 0x67e   :  { %v7072_v52 = vmax.f32 %v7070_v40, %v7071_v1  ;;  %v7085_v45 = vrot.slane %v7084_v48, 1  ;;  %v7154_v8 = vmul.f32 %v12053_v42, %v7065_v59  ;;  %v7079_v20 = vmax.f32 %v7077_v31, %v7078_v18 }
 0x67f   :  { %v7043_v24 = vrot.slane %v7042_v29, 1  ;;  %v7050_v13 = vrot.slane %v7049_v62, 1  ;;  %v7056_v26 = vmax.f32 %v7054_v34, %v7055_v58  ;;  %v7150_v11 = vmul.f32 %v12053_v42, %v7037_v47 }
 0x680   :  { %v6998_v22 = vcombine.high %v12040_v38, %v12040_v38  ;;  %v7005_v46 = vrot.slane %v12040_v38, %v8899_v33  ;;  %v12066_v3 = vmax.f32 %v7084_v48, %v7085_v45  ;;  %v12069_v30 = vmul.f32 %v12053_v42, %v7072_v52 }
 0x681   :  { %v7044_v53 = vmax.f32 %v7042_v29, %v7043_v24  ;;  %v7057_v23 = vrot.slane %v7056_v26, 1  ;;  %v12072_v0 = vadd.f32 %v12059_v10, %v7154_v8  ;;  %v7051_v9 = vmax.f32 %v7049_v62, %v7050_v13 }
 0x682   :  { %v7012_v14 = vrot.slane %v6998_v22, %v8899_v33  ;;  %v7013_v55 = vcombine.high %v7005_v46, %v7005_v46  ;;  %v7115_v44 = vsel %vm6146_vm4, %v7005_v46, -inf  ;;  %v6981_v50 = vcombine.high %v12044_v32, %v12044_v32 }
 0x683   :  { %v7058_v60 = vmax.f32 %v7056_v26, %v7057_v23  ;;  %v7151_v38 = vmul.f32 %v12053_v42, %v7044_v53  ;;  %v12080_v35 = vadd.f32 %v12059_v10, %v7150_v11  ;;  %v7116_v25 = vrot.slane %v7115_v44, 4 }
 0x684   :  { %v7014_v21 = vcombine.high %v7012_v14, %v7012_v14  ;;  %v7122_v43 = vsel %vm6146_vm4, %v7013_v55, -inf  ;;  %v7129_v16 = vsel %vm6146_vm4, %v7012_v14, -inf  ;;  %v6988_v39 = vrot.slane %v12044_v32, %v8899_v33 }
 0x685   :  { %v12087_v37 = vmul.f32 %v12053_v42, %v7079_v20  ;;  %v8092_v5 = vclamps-f32 %v12072_v0, 1.0  ;;  %v7152_v63 = vmul.f32 %v12053_v42, %v7051_v9  ;;  %v7117_v19 = vmax.f32 %v7115_v44, %v7116_v25 }
 0x686   :  { %v7123_v15 = vrot.slane %v7122_v43, 4  ;;  %v7130_v61 = vrot.slane %v7129_v16, 4  ;;  %v7136_v17 = vsel %vm6146_vm4, %v7014_v21, -inf  ;;  %v6995_v27 = vrot.slane %v6981_v50, %v8899_v33 }
 0x687   :  { %v7153_v54 = vmul.f32 %v12053_v42, %v7058_v60  ;;  %v7171_v6 = vadd.f32 %v12059_v10, %v7151_v38  ;;  %v8088_v32 = vclamps-f32 %v12080_v35, 1.0  ;;  %v7118_v49 = vrot.slane %v7117_v19, 2 }
 0x688   :  { %v7124_v4 = vmax.f32 %v7122_v43, %v7123_v15  ;;  %v7131_v7 = vmax.f32 %v7129_v16, %v7130_v61  ;;  %v7137_v57 = vrot.slane %v7136_v17, 4  ;;  %v6996_v40 = vcombine.high %v6988_v39, %v6988_v39 }
 0x689   :  { %v7119_v31 = vmax.f32 %v7117_v19, %v7118_v49  ;;  %v6997_v12 = vcombine.high %v6995_v27, %v6995_v27  ;;  %v7087_v28 = vsel %vm6146_vm4, %v6988_v39, -inf  ;;  %v7101_v41 = vsel %vm6146_vm4, %v6995_v27, -inf }
 0x68a   :  { %v7125_v56 = vrot.slane %v7124_v4, 2  ;;  %v7132_v34 = vrot.slane %v7131_v7, 2  ;;  %v7138_v59 = vmax.f32 %v7136_v17, %v7137_v57  ;;  %v7088_v1 = vrot.slane %v7087_v28, 4 }
 0x68b   :  { %v7120_v48 = vrot.slane %v7119_v31, 1  ;;  %v7094_v47 = vsel %vm6146_vm4, %v6996_v40, -inf  ;;  %v7102_v29 = vrot.slane %v7101_v41, 4  ;;  %v7108_v62 = vsel %vm6146_vm4, %v6997_v12, -inf }
 0x68c   :  { %v7126_v58 = vmax.f32 %v7124_v4, %v7125_v56  ;;  %v7133_v52 = vmax.f32 %v7131_v7, %v7132_v34  ;;  %v7139_v18 = vrot.slane %v7138_v59, 2  ;;  %v7089_v45 = vmax.f32 %v7087_v28, %v7088_v1 }
 0x68d   :  { %v7172_v8 = vadd.f32 %v12059_v10, %v7152_v63  ;;  %v7095_v24 = vrot.slane %v7094_v47, 4  ;;  %v7103_v13 = vmax.f32 %v7101_v41, %v7102_v29  ;;  %v7109_v26 = vrot.slane %v7108_v62, 4 }
 0x68e   :  { %v7121_v53 = vmax.f32 %v7119_v31, %v7120_v48  ;;  %v7127_v23 = vrot.slane %v7126_v58, 1  ;;  %v7140_v11 = vmax.f32 %v7138_v59, %v7139_v18  ;;  %v7090_v20 = vrot.slane %v7089_v45, 2 }
 0x68f   :  { %v7173_v22 = vadd.f32 %v12059_v10, %v7153_v54  ;;  %v7096_v46 = vmax.f32 %v7094_v47, %v7095_v24  ;;  %v7104_v0 = vrot.slane %v7103_v13, 2  ;;  %v7110_v9 = vmax.f32 %v7108_v62, %v7109_v26 }
 0x690   :  { %v8089_v14 = vclamps-f32 %v7171_v6, 1.0  ;;  %v7134_v55 = vrot.slane %v7133_v52, 1  ;;  %v7141_v44 = vrot.slane %v7140_v11, 1  ;;  %v7091_v50 = vmax.f32 %v7089_v45, %v7090_v20 }
 0x691   :  { %v7128_v60 = vmax.f32 %v7126_v58, %v7127_v23  ;;  %v7097_v38 = vrot.slane %v7096_v46, 2  ;;  %v7105_v25 = vmax.f32 %v7103_v13, %v7104_v0  ;;  %v7111_v21 = vrot.slane %v7110_v9, 2 }
 0x692   :  { %v7242_v43 = vrot.slane %v8092_v5, 4  ;;  %v8090_v16 = vclamps-f32 %v7172_v8, 1.0  ;;  %v7162_v39 = vmul.f32 %v12053_v42, %v7121_v53  ;;  %v7092_v63 = vrot.slane %v7091_v50, 1 }
 0x693   :  { %v8091_v19 = vclamps-f32 %v7173_v22, 1.0  ;;  %v7098_v15 = vmax.f32 %v7096_v46, %v7097_v38  ;;  %v7106_v61 = vrot.slane %v7105_v25, 1  ;;  %v7112_v17 = vmax.f32 %v7110_v9, %v7111_v21 }
 0x694   :  { %v7236_v27 = vrot.slane %v8089_v14, 7  ;;  %v7135_v54 = vmax.f32 %v7133_v52, %v7134_v55  ;;  %v7142_v49 = vmax.f32 %v7140_v11, %v7141_v44  ;;  %v7093_v6 = vmax.f32 %v7091_v50, %v7092_v63 }
 0x695   :  { %v7163_v4 = vmul.f32 %v12053_v42, %v7128_v60  ;;  %v7099_v7 = vrot.slane %v7098_v15, 1  ;;  %v7107_v57 = vmax.f32 %v7105_v25, %v7106_v61  ;;  %v7113_v40 = vrot.slane %v7112_v17, 1 }
 0x696   :  { %v7238_v31 = vrot.slane %v8090_v16, 6  ;;  %v7182_v5 = vadd.f32 %v12059_v10, %v7162_v39  ;;  %v7158_v12 = vmul.f32 %v12053_v42, %v7093_v6  ;;  %v7157_v28 = vmul.f32 %v12053_v42, %v12066_v3 }
 0x697   :  { %v7100_v41 = vmax.f32 %v7098_v15, %v7099_v7  ;;  %v7114_v56 = vmax.f32 %v7112_v17, %v7113_v40  ;;  %v7160_v34 = vmul.f32 %v12053_v42, %v7107_v57  ;;  %v7175_v59 = vadd.f32 %v12059_v10, %v12069_v30  ;;  %v8106_v17 = vld [vmem:[%s12221_s1 + $0x190] sm:$0xff] }
 0x698   :  { %v7164_v1 = vmul.f32 %v12053_v42, %v7135_v54  ;;  %v7165_v48 = vmul.f32 %v12053_v42, %v7142_v49  ;;  %v7176_v47 = vadd.f32 %v12059_v10, %v12087_v37  ;;  %v7177_v29 = vadd.f32 %v12059_v10, %v7157_v28 }
 0x699   :  { %v7183_v62 = vadd.f32 %v12059_v10, %v7163_v4  ;;  %v7159_v3 = vmul.f32 %v12053_v42, %v7100_v41  ;;  %v7161_v58 = vmul.f32 %v12053_v42, %v7114_v56  ;;  %v7180_v52 = vadd.f32 %v12059_v10, %v7160_v34 }
 0x69a   :  { %v7178_v18 = vadd.f32 %v12059_v10, %v7158_v12  ;;  %v8093_v30 = vclamps-f32 %v7175_v59, 1.0  ;;  %v8094_v45 = vclamps-f32 %v7176_v47, 1.0  ;;  %v7237_v8 = vsel %vm3293_vm7, %v7236_v27, %v8088_v32  ;;  %v8107_v27 = vld [vmem:[%s12221_s1 + $0x198] sm:$0xff] }
 0x69b   :  { %v7179_v37 = vadd.f32 %v12059_v10, %v7159_v3  ;;  %v7181_v24 = vadd.f32 %v12059_v10, %v7161_v58  ;;  %v8098_v13 = vclamps-f32 %v7180_v52, 1.0  ;;  %v7239_v26 = vsel %vm3296_vm8, %v7238_v31, %v7237_v8  ;;  %v8116_v31 = vld [vmem:[%s12221_s1 + $0x1c0] sm:$0xff]  ;;  %v8119_v58 = vld [vmem:[%s12221_s1 + $0x1d8] sm:$0xff] }
 0x69c   :  { %v7184_v53 = vadd.f32 %v12059_v10, %v7164_v1  ;;  %v8100_v42 = vclamps-f32 %v7182_v5, 1.0  ;;  %v8095_v23 = vclamps-f32 %v7177_v29, 1.0  ;;  %v7240_v11 = vrot.slane %v8091_v19, 5  ;;  %v8117_v5 = vld [vmem:[%s12221_s1 + $0x1c8] sm:$0xff] }
 0x69d   :  { %v8101_v20 = vclamps-f32 %v7183_v62, 1.0  ;;  %v8097_v22 = vclamps-f32 %v7179_v37, 1.0  ;;  %v8099_v46 = vclamps-f32 %v7181_v24, 1.0  ;;  %v7185_v0 = vadd.f32 %v12059_v10, %v7165_v48 }
 0x69e   :  { %v8096_v35 = vclamps-f32 %v7178_v18, 1.0  ;;  %v7252_v9 = vrot.slane %v8098_v13, 6  ;;  %v7241_v32 = vsel %vm3299_vm10, %v7240_v11, %v7239_v26  ;;  %v7244_v14 = vrot.slane %v8093_v30, 3 }
 0x69f   :  { %v7250_v55 = vrot.slane %v8097_v22, 7  ;;  %v7254_v44 = vrot.slane %v8099_v46, 5  ;;  %v7243_v50 = vsel %vm3302_vm9, %v7242_v43, %v7241_v32  ;;  %v7246_v60 = vrot.slane %v8094_v45, 2 }
 0x6a0   :  { %v8102_v38 = vclamps-f32 %v7184_v53, 1.0  ;;  %v7245_v25 = vsel %vm3305_vm11, %v7244_v14, %v7243_v50  ;;  %v7248_v21 = vrot.slane %v8095_v23, 1  ;;  %v8103_v63 = vclamps-f32 %v7185_v0, 1.0 }
 0x6a1   :  { %v7251_v16 = vsel %vm3293_vm7, %v7250_v55, %v8096_v35  ;;  %v7247_v39 = vsel %vm3308_vm12, %v7246_v60, %v7245_v25  ;;  %v7256_v10 = vrot.slane %v8100_v42, 4  ;;  %v7258_v61 = vrot.slane %v8101_v20, 3 }
 0x6a2   :  { %v7249_v19 = vsel %vm3311_vm13, %v7248_v21, %v7247_v39  ;;  %v7253_v15 = vsel %vm3296_vm8, %v7252_v9, %v7251_v16  ;;  %v7218_v54 = vand.u32 7, %v12452_v51  ;;  %v7260_v6 = vrot.slane %v8102_v38, 2 }
 0x6a3   :  { %8433 = vmatprep.mubr.msk.f32.mxu1 %vm6631_vm5, %v7249_v19  ;;  %v7255_v43 = vsel %vm3299_vm10, %v7254_v44, %v7253_v15  ;;  %v7262_v7 = vrot.slane %v8103_v63, 1  ;;  %v8506_v40 = vpack.c.bf16 %v8107_v27, %v8106_v17  ;;  %v7219_v41 = vand.u32 7, %v11988_v2 }
 0x6a4   :  { %v7257_v49 = vsel %vm3302_vm9, %v7256_v10, %v7255_v43  ;;  %vm12155_vm3 = vcmp.ge.s32.totalorder %v7218_v54, 1  ;;  %v7266_v56 = vrot.slane %v7249_v19, 7  ;;  %v7443_v34 = vrot.slane %v7249_v19, 1 }
 0x6a5   :  { %v7259_v4 = vsel %vm3305_vm11, %v7258_v61, %v7257_v49  ;;  %v8510_v48 = vpack.c.bf16 %v8117_v5, %v8116_v31  ;;  %vm7447_vm9 = vcmp.lt.s32.totalorder %v7218_v54, 7  ;;  %vm7582_vm11 = vcmask 517120  }
 0x6a6   :  { %v7261_v57 = vsel %vm3308_vm12, %v7260_v6, %v7259_v4  ;;  %vm7704_vm12 = vcmask 519168  }
 0x6a7   :  { %v7263_v12 = vsel %vm3311_vm13, %v7262_v7, %v7261_v57 }
 0x6a8   :  { %8434 = vmatmul.mubr.msk.f32.vlgmr.msra.gmra.mrb[12].mxu1 %vm6631_vm5, %v7263_v12  ;;  %v7267_v59 = vrot.slane %v7263_v12, 7  ;;  %v7444_v1 = vrot.slane %v7263_v12, 1  ;;  %v8124_v12 = vld [vmem:[%s12222_s2 + $0x8] ss:$0 sm:$0xff] }
 0x6a9   :  { %8505 = vmatpush3.bf16.msra.mxu1 %v12031_v36  ;;  %v8118_v36 = vld [vmem:[%s12221_s1 + $0x1d0] sm:$0xff] }
 0x6aa   :  { %8507 = vmatprep.subr.bf16.mxu1 %v8506_v40  ;;  %v7269_v47 = vsel %vm144_vm0, %v7267_v59, %v7266_v56  ;;  %v7268_v29 = vsel %vm144_vm0, %v7266_v56, %v7267_v59  ;;  %v7445_v62 = vsel %vm699_vm1, %v7443_v34, %v7444_v1  ;;  %v7446_v2 = vsel %vm699_vm1, %v7444_v1, %v7443_v34 }
 0x6ab   :  { %v7272_v3 = vsel %vm12155_vm3, %v7269_v47, 0.0  ;;  %vm7271_vm0 = vcmp.ge.s32.totalorder %v7219_v41, 1  ;;  %v8514_v52 = vpack.c.bf16 %v8119_v58, %v8118_v36  ;;  %v7449_v18 = vsel %vm7447_vm9, %v7445_v62, 0.0 }
 0x6ac   :  { %8444 = vmatprep.mubr.msk.f32.mxu1 %vm6631_vm5, %v7272_v3  ;;  %v7273_v51 = vsel %vm7271_vm0, %v7268_v29, 0.0  ;;  %vm7448_vm1 = vcmp.lt.s32.totalorder %v7219_v41, 7 }
 0x6ad   :  { %8509 = vmatpush3.bf16.msra.mxu1 %v8506_v40  ;;  %v7450_v30 = vsel %vm7448_vm1, %v7446_v2, 0.0 }
 0x6ae   :  { %8511 = vmatprep.subr.bf16.mxu1 %v8510_v48 }
 0x6b0   :  { %8445 = vmatmul.mubr.msk.f32.vlgmr.msra.gmra.mrb[12].mxu1 %vm6631_vm5, %v7273_v51 }
 0x6b1   :  { %8513 = vmatpush3.bf16.msra.mxu1 %v8510_v48  ;;  %8455 = vmatprep.mubr.msk.f32.mxu1 %vm6631_vm5, %v7449_v18  ;;  %v8125_v18 = vld [vmem:[%s12222_s2 + $0x9] ss:$0 sm:$0xff]  ;;  %s8626_s2 = smov [#allocation2]  }
 0x6b2   :  { %8515 = vmatprep.subr.bf16.mxu1 %v8514_v52  ;;  %s7734_s7 = sshll.u32 %s8626_s2, 4  ;;  %s7735_s7 = int_to_ptr.vmem [resolvable:$true] %s7734_s7 }
 0x6b3   :  { %s8600_s8 = scalar_lea.vmem %s7735_s7, 32  ;;  %p8605_p1 = scmp.lt.s32.totalorder %s7735_s7, %s7735_s7 }
 0x6b4   :  { %p8601_p0 = scmp.ne.s32.totalorder %s7735_s7, %s8600_s8  ;;  %p8606_p2 = scmp.lt.s32.totalorder %s8600_s8, %s8600_s8 }
 0x6b5   :  { %8517 = vmatpush3.bf16.msra.mxu1 %v8514_v52 }
 0x6b6   :  { %p8607_p3 = por %p8606_p2, %p8605_p1 }
 0x6b8   :  { %8456 = vmatmul.mubr.msk.f32.vlgmr.msra.gmra.mrb[12].mxu1 %vm6631_vm5, %v7450_v30  ;;  %p8608_p4 = pnand %p8607_p3, %p8601_p0 }
 0x78b   :  { %v8457_v45 = vpop.f32.mrb[12].mxu1 }
 0x78c   :  { %v7557_v8 = vcombine.high %v8457_v45, %v8457_v45  ;;  %v7564_v37 = vrot.slane %v8457_v45, %v8899_v33  ;;  %v7527_v24 = vpop.f32.mrb[13].mxu1 }
 0x78d   :  { %v7540_v13 = vcombine.high %v7527_v24, %v7527_v24  ;;  %v7547_v26 = vrot.slane %v7527_v24, %v8899_v33 }
 0x78e   :  { %v7571_v53 = vrot.slane %v7557_v8, %v8899_v33  ;;  %v7572_v42 = vcombine.high %v7564_v37, %v7564_v37  ;;  %v7611_v23 = vsel %vm7582_vm11, %v7564_v37, -inf }
 0x78f   :  { %v7612_v11 = vrot.slane %v7611_v23, 4  ;;  %v7554_v20 = vrot.slane %v7540_v13, %v8899_v33  ;;  %v7555_v22 = vcombine.high %v7547_v26, %v7547_v26  ;;  %v7583_v46 = vsel %vm7582_vm11, %v7547_v26, -inf }
 0x790   :  { %v7573_v0 = vcombine.high %v7571_v53, %v7571_v53  ;;  %v7618_v35 = vsel %vm7582_vm11, %v7572_v42, -inf  ;;  %v7625_v9 = vsel %vm7582_vm11, %v7571_v53, -inf  ;;  %v7584_v32 = vrot.slane %v7583_v46, 4 }
 0x791   :  { %v7613_v14 = vmax.f32 %v7611_v23, %v7612_v11  ;;  %v7619_v55 = vrot.slane %v7618_v35, 4  ;;  %v7626_v44 = vrot.slane %v7625_v9, 4  ;;  %v7556_v50 = vcombine.high %v7554_v20, %v7554_v20 }
 0x792   :  { %v7632_v60 = vsel %vm7582_vm11, %v7573_v0, -inf  ;;  %v7585_v38 = vmax.f32 %v7583_v46, %v7584_v32  ;;  %v7590_v25 = vsel %vm7582_vm11, %v7555_v22, -inf  ;;  %v7597_v33 = vsel %vm7582_vm11, %v7554_v20, -inf }
 0x793   :  { %v7614_v21 = vrot.slane %v7613_v14, 2  ;;  %v7620_v16 = vmax.f32 %v7618_v35, %v7619_v55  ;;  %v7627_v39 = vmax.f32 %v7625_v9, %v7626_v44  ;;  %v7633_v63 = vrot.slane %v7632_v60, 4 }
 0x794   :  { %v7586_v10 = vrot.slane %v7585_v38, 2  ;;  %v7591_v19 = vrot.slane %v7590_v25, 4  ;;  %v7598_v15 = vrot.slane %v7597_v33, 4  ;;  %v7604_v61 = vsel %vm7582_vm11, %v7556_v50, -inf }
 0x795   :  { %v7615_v43 = vmax.f32 %v7613_v14, %v7614_v21  ;;  %v7621_v17 = vrot.slane %v7620_v16, 2  ;;  %v7628_v27 = vrot.slane %v7627_v39, 2  ;;  %v7634_v54 = vmax.f32 %v7632_v60, %v7633_v63 }
 0x796   :  { %v7587_v49 = vmax.f32 %v7585_v38, %v7586_v10  ;;  %v7592_v6 = vmax.f32 %v7590_v25, %v7591_v19  ;;  %v7599_v4 = vmax.f32 %v7597_v33, %v7598_v15  ;;  %v7605_v7 = vrot.slane %v7604_v61, 4 }
 0x797   :  { %v7616_v57 = vrot.slane %v7615_v43, 1  ;;  %v7622_v40 = vmax.f32 %v7620_v16, %v7621_v17  ;;  %v7629_v31 = vmax.f32 %v7627_v39, %v7628_v27  ;;  %v7635_v5 = vrot.slane %v7634_v54, 2 }
 0x798   :  { %v7588_v28 = vrot.slane %v7587_v49, 1  ;;  %v7593_v41 = vrot.slane %v7592_v6, 2  ;;  %v7600_v56 = vrot.slane %v7599_v4, 2  ;;  %v7606_v34 = vmax.f32 %v7604_v61, %v7605_v7 }
 0x799   :  { %v7617_v59 = vmax.f32 %v7615_v43, %v7616_v57  ;;  %v7623_v1 = vrot.slane %v7622_v40, 1  ;;  %v7630_v48 = vrot.slane %v7629_v31, 1  ;;  %v7636_v47 = vmax.f32 %v7634_v54, %v7635_v5 }
 0x79a   :  { %v7589_v29 = vmax.f32 %v7587_v49, %v7588_v28  ;;  %v7594_v62 = vmax.f32 %v7592_v6, %v7593_v41  ;;  %v7601_v2 = vmax.f32 %v7599_v4, %v7600_v56  ;;  %v7607_v3 = vrot.slane %v7606_v34, 2 }
 0x79b   :  { %v7624_v36 = vmax.f32 %v7622_v40, %v7623_v1  ;;  %v7631_v58 = vmax.f32 %v7629_v31, %v7630_v48  ;;  %v7637_v52 = vrot.slane %v7636_v47, 1  ;;  %v7650_v51 = vmul.f32 %v8124_v12, %v7617_v59 }
 0x79c   :  { %v7595_v30 = vrot.slane %v7594_v62, 1  ;;  %v7602_v45 = vrot.slane %v7601_v2, 1  ;;  %v7608_v8 = vmax.f32 %v7606_v34, %v7607_v3  ;;  %v7646_v26 = vmul.f32 %v8124_v12, %v7589_v29 }
 0x79d   :  { %v7638_v37 = vmax.f32 %v7636_v47, %v7637_v52  ;;  %v7651_v24 = vmul.f32 %v8124_v12, %v7624_v36  ;;  %v7652_v13 = vmul.f32 %v8124_v12, %v7631_v58  ;;  %v7662_v20 = vadd.f32 %v8125_v18, %v7650_v51 }
 0x79e   :  { %v7596_v53 = vmax.f32 %v7594_v62, %v7595_v30  ;;  %v7603_v42 = vmax.f32 %v7601_v2, %v7602_v45  ;;  %v7609_v23 = vrot.slane %v7608_v8, 1  ;;  %v7658_v44 = vadd.f32 %v8125_v18, %v7646_v26 }
 0x79f   :  { %v7653_v11 = vmul.f32 %v8124_v12, %v7638_v37  ;;  %v7663_v22 = vadd.f32 %v8125_v18, %v7651_v24  ;;  %v7664_v46 = vadd.f32 %v8125_v18, %v7652_v13  ;;  %v8130_v25 = vclamps-f32 %v7662_v20, 1.0 }
 0x7a0   :  { %v7610_v0 = vmax.f32 %v7608_v8, %v7609_v23  ;;  %v7647_v35 = vmul.f32 %v8124_v12, %v7596_v53  ;;  %v7648_v9 = vmul.f32 %v8124_v12, %v7603_v42  ;;  %v8126_v61 = vclamps-f32 %v7658_v44, 1.0 }
 0x7a1   :  { %v7665_v32 = vadd.f32 %v8125_v18, %v7653_v11  ;;  %v8131_v14 = vclamps-f32 %v7663_v22, 1.0  ;;  %v8132_v55 = vclamps-f32 %v7664_v46, 1.0 }
 0x7a2   :  { %v7649_v50 = vmul.f32 %v8124_v12, %v7610_v0  ;;  %v7659_v60 = vadd.f32 %v8125_v18, %v7647_v35  ;;  %v7660_v38 = vadd.f32 %v8125_v18, %v7648_v9 }
 0x7a3   :  { %v8133_v33 = vclamps-f32 %v7665_v32, 1.0  ;;  %v7696_v21 = vrot.slane %v8131_v14, 7  ;;  %v7698_v16 = vrot.slane %v8132_v55, 6 }
 0x7a4   :  { %v7661_v39 = vadd.f32 %v8125_v18, %v7649_v50  ;;  %v8127_v63 = vclamps-f32 %v7659_v60, 1.0  ;;  %v8128_v10 = vclamps-f32 %v7660_v38, 1.0 }
 0x7a5   :  { %v7697_v19 = vsel %vm3293_vm7, %v7696_v21, %v8130_v25  ;;  %v7700_v15 = vrot.slane %v8133_v33, 5 }
 0x7a6   :  { %v8129_v43 = vclamps-f32 %v7661_v39, 1.0  ;;  %v7690_v17 = vrot.slane %v8127_v63, 7  ;;  %v7692_v27 = vrot.slane %v8128_v10, 6  ;;  %v7699_v54 = vsel %vm3296_vm8, %v7698_v16, %v7697_v19 }
 0x7a7   :  { %v7701_v49 = vsel %vm3299_vm10, %v7700_v15, %v7699_v54 }
 0x7a8   :  { %v7691_v6 = vsel %vm3293_vm7, %v7690_v17, %v8126_v61  ;;  %v7694_v4 = vrot.slane %v8129_v43, 5  ;;  %v7712_v7 = vsel %vm7704_vm12, %v7701_v49, 0.0 }
 0x7a9   :  { %v7693_v57 = vsel %vm3296_vm8, %v7692_v27, %v7691_v6  ;;  %v7713_v40 = vrot.slane %v7712_v7, 4 }
 0x7aa   :  { %v7695_v31 = vsel %vm3299_vm10, %v7694_v4, %v7693_v57 }
 0x7ab   :  { %v7705_v5 = vsel %vm7704_vm12, %v7695_v31, 0.0  ;;  %v7714_v12 = vadd.f32 %v7713_v40, %v7712_v7 }
 0x7ac   :  { %v7706_v28 = vrot.slane %v7705_v5, 4 }
 0x7ad   :  { %v7715_v41 = vrot.slane %v7714_v12, 2 }
 0x7ae   :  { %v7707_v56 = vadd.f32 %v7706_v28, %v7705_v5 }
 0x7af   :  { %v7716_v34 = vadd.f32 %v7715_v41, %v7714_v12 }
 0x7b0   :  { %v7708_v59 = vrot.slane %v7707_v56, 2 }
 0x7b1   :  { %v7717_v1 = vrot.slane %v7716_v34, 1 }
 0x7b2   :  { %v7709_v48 = vadd.f32 %v7708_v59, %v7707_v56 }
 0x7b3   :  { %v7718_v47 = vadd.f32 %v7717_v1, %v7716_v34 }
 0x7b4   :  { %v7710_v29 = vrot.slane %v7709_v48, 1 }
 0x7b5   :  { %v7721_v62 = vmul.f32 0.25, %v7718_v47 }
 0x7b6   :  { %v7711_v2 = vadd.f32 %v7710_v29, %v7709_v48 }
 0x7b7   :  { %v7724_v3 = vrot.slane %v7721_v62, 7 }
 0x7b8   :  { %v7720_v36 = vmul.f32 0.25, %v7711_v2 }
 0x7ba   :  { %v7725_v58 = vsel %vm3293_vm7, %v7724_v3, %v7720_v36 }
 0x7bb   :  { %7727 = vst.msk [vmem:[#allocation2] sm:$0x3] %vm7582_vm11, %v7725_v58 }
 0x7bc   :  { %8611 = shalt.err (!%p8608_p4)
}
 0x7bd   :  { %s8612_s11 = scalar_lea.hbm %s12223_s3, 32 }
 0x7be   :  { %p8613_p5 = scmp.ne.s32.totalorder %s12223_s3, %s8612_s11  ;;  %p8616_p6 = scmp.lt.u32.totalorder %s8612_s11, %s12223_s3 }
 0x7c0   :  { %p8618_p7 = pnand %p8616_p6, %p8613_p5 }
 0x7c2   :  { %8621 = shalt.err (!%p8618_p7)
}
 0x7c3   :  { %7737 = dma.vmem_to_hbm [thread:$0]  %s7735_s7, 32, %s12223_s3, [#allocation3]  }
 0x7c4   :  { %8622 = dma.done.wait [#allocation3], 32  }
 0x7c5   :  { %8623 = vsyncadd [#allocation3], 4294967264 }
 0x7c6   :  { %7741 = vsyncpa [#allocation3], 1 }

</bundles_post_ra>
